<compile_context>
chip_gen: v5e
topology: v5e:2x2
jax: 0.10.0
libtpu: 0.0.40
codegen_flags: <defaults>
</compile_context>

<pallas_src>
import math
import functools

import jax
import jax.numpy as jnp
from jax.experimental import pallas as pl
from jax.experimental.pallas import tpu as pltpu


# ----------------------------------------------------------------------------
# Fused kernel: embed -> L encoder layers -> sum over seq -> MLP head
# ----------------------------------------------------------------------------

def transformer_kernel(x_ref, mask_ref,
                       ew_ref, eb_ref,
                       wq_ref, bq_ref, wk_ref, bk_ref, wv_ref, bv_ref,
                       wo_ref, bo_ref, w1_ref, b1_ref, w2_ref, b2_ref,
                       m1w_ref, m1b_ref, m2w_ref, m2b_ref, m3w_ref, m3b_ref,
                       o_ref):
    f32 = jnp.float32
    S = x_ref.shape[1]
    D = ew_ref.shape[1]
    L = wq_ref.shape[0]
    H = wq_ref.shape[1]
    d_k = wq_ref.shape[3]
    scale = 1.0 / math.sqrt(d_k)

    x = x_ref[0]                              # (S, 3)
    # Hoisted once per batch element, reused by every layer / head.
    fill = mask_ref[0] == 0                   # (S, S) bool: True -> fill with -1e9

    # ---- Embedder -----------------------------------------------------------
    e = jnp.dot(x, ew_ref[...], preferred_element_type=f32) + eb_ref[...]   # (S, D)

    # ---- Encoder layers (weights stay resident in VMEM; static unroll, L=3) --
    for l in range(L):
        # Broadcast activations across the head axis once per layer; all head
        # math is batched einsums with a leading head dim (no lane slicing,
        # no concatenate).
        e_b = jnp.broadcast_to(e[None], (H, S, D))                          # (H, S, D)

        q = jnp.einsum("hsd,hdf->hsf", e_b, wq_ref[l],
                       preferred_element_type=f32) + bq_ref[l]              # (H, S, d_k)
        k = jnp.einsum("hsd,hdf->hsf", e_b, wk_ref[l],
                       preferred_element_type=f32) + bk_ref[l]
        v = jnp.einsum("hsd,hdf->hsf", e_b, wv_ref[l],
                       preferred_element_type=f32) + bv_ref[l]

        s = jnp.einsum("hqf,hkf->hqk", q, k,
                       preferred_element_type=f32) * scale                  # (H, S, S)
        s = jnp.where(fill, -1e9, s)          # masked_fill(mask == 0, -1e9)
        s = s - jnp.max(s, axis=-1, keepdims=True)
        p = jnp.exp(s)
        denom = jnp.sum(p, axis=-1, keepdims=True)
        p = p * pl.reciprocal(denom)          # approx=True possible if tol allows

        ctx = jnp.einsum("hqk,hkf->hqf", p, v,
                         preferred_element_type=f32)                        # (H, S, d_k)
        # Output projection folded per head and summed over heads
        # (== concat(ctx_heads) @ Wo, without any concatenate).
        attn = jnp.sum(jnp.einsum("hsf,hfd->hsd", ctx, wo_ref[l],
                                  preferred_element_type=f32), axis=0)      # (S, D)
        attn = attn + bo_ref[l]

        x1 = e + attn                                                       # residual 1

        h1 = jnp.maximum(jnp.dot(x1, w1_ref[l],
                                 preferred_element_type=f32) + b1_ref[l], 0.0)
        e = x1 + jnp.dot(h1, w2_ref[l],
                         preferred_element_type=f32) + b2_ref[l]            # residual 2

    # ---- torch.sum(e_outputs, 1) --------------------------------------------
    es = jnp.sum(e, axis=0, keepdims=True)                                  # (1, D)

    # ---- MLP head: Linear -> Swish -> Linear -> Swish -> Linear -------------
    h = jnp.dot(es, m1w_ref[...], preferred_element_type=f32) + m1b_ref[...]
    h = h * (1.0 / (1.0 + jnp.exp(-h)))
    h = jnp.dot(h, m2w_ref[...], preferred_element_type=f32) + m2b_ref[...]
    h = h * (1.0 / (1.0 + jnp.exp(-h)))
    out = jnp.dot(h, m3w_ref[...], preferred_element_type=f32) + m3b_ref[...]  # (1, n_out)

    o_ref[0] = out


# ----------------------------------------------------------------------------
# Wrapper
# ----------------------------------------------------------------------------

def transformer_forward_pallas(x2d, params, *, num_heads, mask=None):
    """x2d: (B, S*3) float32.  Returns (B, n_output) — mirrors Transformer.forward."""
    B = x2d.shape[0]
    x = x2d.reshape(B, -1, 3).astype(jnp.float32)
    S = x.shape[1]
    D = params["embed_w"].shape[1]
    L = params["wq"].shape[0]
    dff = params["w1"].shape[2]
    H1 = params["m1_w"].shape[1]
    n_out = params["m3_w"].shape[1]
    H = num_heads
    d_k = D // H

    # --- mask: replicate Transformer._create_padding_mask when mask is None ---
    if mask is None:
        pad = jnp.sum(x, axis=2) == 0          # (B, S) True where token sums to 0
        mask = pad[:, None, None, :]           # (B, 1, 1, S)
    mask = jnp.asarray(mask)
    if mask.ndim == 4:                         # drop the broadcast head axis
        mask = mask[:, 0]
    mask_i32 = jnp.broadcast_to(mask, (B, S, S)).astype(jnp.int32)

    # --- per-head weight packing (host-side layout plumbing, done once) -------
    wq_h = params["wq"].reshape(L, D, H, d_k).transpose(0, 2, 1, 3)   # (L, H, D, d_k)
    wk_h = params["wk"].reshape(L, D, H, d_k).transpose(0, 2, 1, 3)
    wv_h = params["wv"].reshape(L, D, H, d_k).transpose(0, 2, 1, 3)
    bq_h = params["bq"].reshape(L, H, 1, d_k)                          # (L, H, 1, d_k)
    bk_h = params["bk"].reshape(L, H, 1, d_k)
    bv_h = params["bv"].reshape(L, H, 1, d_k)
    wo_h = params["wo"].reshape(L, H, d_k, D)                          # (L, H, d_k, D)

    full = lambda shape: pl.BlockSpec(shape, lambda b, _s=len(shape): (0,) * _s)

    out = pl.pallas_call(
        transformer_kernel,
        out_shape=jax.ShapeDtypeStruct((B, 1, n_out), jnp.float32),
        grid=(B,),
        in_specs=[
            pl.BlockSpec((1, S, 3), lambda b: (b, 0, 0)),   # x
            pl.BlockSpec((1, S, S), lambda b: (b, 0, 0)),   # mask
            full((3, D)), full((1, D)),                     # embed
            full((L, H, D, d_k)), full((L, H, 1, d_k)),     # wq, bq
            full((L, H, D, d_k)), full((L, H, 1, d_k)),     # wk, bk
            full((L, H, D, d_k)), full((L, H, 1, d_k)),     # wv, bv
            full((L, H, d_k, D)), full((L, 1, D)),          # wo, bo
            full((L, D, dff)), full((L, 1, dff)),           # w1, b1
            full((L, dff, D)), full((L, 1, D)),             # w2, b2
            full((D, H1)), full((1, H1)),                   # mlp linear 1
            full((H1, H1)), full((1, H1)),                  # mlp linear 2
            full((H1, n_out)), full((1, n_out)),            # mlp linear 3
        ],
        out_specs=pl.BlockSpec((1, 1, n_out), lambda b: (b, 0, 0)),
        compiler_params=pltpu.CompilerParams(dimension_semantics=("parallel",)),
    )(x, mask_i32,
      params["embed_w"], params["embed_b"],
      wq_h, bq_h, wk_h, bk_h, wv_h, bv_h,
      wo_h, params["bo"], params["w1"], params["b1"], params["w2"], params["b2"],
      params["m1_w"], params["m1_b"], params["m2_w"], params["m2_b"],
      params["m3_w"], params["m3_b"])

    return out.reshape(B, n_out)


# ----------------------------------------------------------------------------
# Pure-JAX reference (mirrors the PyTorch forward) for validation
# ----------------------------------------------------------------------------

def transformer_forward_ref(x2d, params, *, num_heads, mask=None):
    B = x2d.shape[0]
    x = x2d.reshape(B, -1, 3).astype(jnp.float32)
    S = x.shape[1]
    D = params["embed_w"].shape[1]
    L = params["wq"].shape[0]
    H = num_heads
    d_k = D // H

    if mask is None:
        pad = jnp.sum(x, axis=2) == 0
        mask = pad[:, None, None, :]           # (B, 1, 1, S)
    mask = jnp.asarray(mask)
    if mask.ndim == 3:
        mask = mask[:, None]

    e = x @ params["embed_w"] + params["embed_b"]
    for l in range(L):
        q = (e @ params["wq"][l] + params["bq"][l]).reshape(B, S, H, d_k).transpose(0, 2, 1, 3)
        k = (e @ params["wk"][l] + params["bk"][l]).reshape(B, S, H, d_k).transpose(0, 2, 1, 3)
        v = (e @ params["wv"][l] + params["bv"][l]).reshape(B, S, H, d_k).transpose(0, 2, 1, 3)
        s = jnp.einsum("bhqf,bhkf->bhqk", q, k) / math.sqrt(d_k)
        s = jnp.where(mask == 0, -1e9, s)
        p = jax.nn.softmax(s, axis=-1)
        a = jnp.einsum("bhqk,bhkf->bhqf", p, v).transpose(0, 2, 1, 3).reshape(B, S, D)
        a = a @ params["wo"][l] + params["bo"][l]
        e = e + a
        h = jnp.maximum(e @ params["w1"][l] + params["b1"][l], 0.0)
        e = e + h @ params["w2"][l] + params["b2"][l]

    es = jnp.sum(e, axis=1)                    # (B, D)
    h = es @ params["m1_w"] + params["m1_b"]
    h = h * (1.0 / (1.0 + jnp.exp(-h)))
    h = h @ params["m2_w"] + params["m2_b"]
    h = h * (1.0 / (1.0 + jnp.exp(-h)))
    return h @ params["m3_w"] + params["m3_b"]


# ----------------------------------------------------------------------------
# Deterministic parameter construction (weights stored as (in, out))
# ----------------------------------------------------------------------------

def make_params(key, num_layers, d_model, num_heads, dff, mlp_hidden, n_output, d_in=3):
    def lin(k, fi, fo, scale=0.05):
        kw, kb = jax.random.split(k)
        return (jax.random.normal(kw, (fi, fo), jnp.float32) * scale,
                jax.random.normal(kb, (1, fo), jnp.float32) * scale)

    def stack_lin(k, fi, fo):
        kl = jax.random.split(k, num_layers)
        ws, bs = zip(*(lin(kk, fi, fo) for kk in kl))
        return jnp.stack(ws), jnp.stack(bs)

    ks = jax.random.split(key, 10)
    ew, eb = lin(ks[0], d_in, d_model)
    wq, bq = stack_lin(ks[1], d_model, d_model)
    wk, bk = stack_lin(ks[2], d_model, d_model)
    wv, bv = stack_lin(ks[3], d_model, d_model)
    wo, bo = stack_lin(ks[4], d_model, d_model)
    w1, b1 = stack_lin(ks[5], d_model, dff)
    w2, b2 = stack_lin(ks[6], dff, d_model)
    m1w, m1b = lin(ks[7], d_model, mlp_hidden)
    m2w, m2b = lin(ks[8], mlp_hidden, mlp_hidden)
    m3w, m3b = lin(ks[9], mlp_hidden, n_output)
    return dict(embed_w=ew, embed_b=eb,
                wq=wq, bq=bq, wk=wk, bk=bk, wv=wv, bv=bv, wo=wo, bo=bo,
                w1=w1, b1=b1, w2=w2, b2=b2,
                m1_w=m1w, m1_b=m1b, m2_w=m2w, m2_b=m2b, m3_w=m3w, m3_b=m3b)


# ----------------------------------------------------------------------------
# Main
# ----------------------------------------------------------------------------

if __name__ == "__main__":
    # Default Transformer sizes (lane-dense d_model/dff), small batch/sequence.
    num_layers, d_model, num_heads, dff = 3, 128, 8, 256
    mlp_hidden, n_output = 500, 1
    B, S = 2, 8

    key = jax.random.PRNGKey(0)
    kx, kp = jax.random.split(key)
    x2d = jax.random.normal(kx, (B, S * 3), jnp.float32)
    # Zero the last two tokens so the auto-generated padding mask is non-trivial.
    x2d = x2d.at[:, -6:].set(0.0)

    params = make_params(kp, num_layers, d_model, num_heads, dff, mlp_hidden, n_output)

    fwd = jax.jit(functools.partial(transformer_forward_pallas, num_heads=num_heads))
    out = jax.block_until_ready(fwd(x2d, params))
    assert out.shape == (B, n_output)

    with jax.default_matmul_precision("highest"):
        ref = transformer_forward_ref(x2d, params, num_heads=num_heads)
    max_diff = float(jnp.max(jnp.abs(out - ref)))
    assert jnp.allclose(out, ref, atol=1e-3, rtol=1e-3), f"mismatch vs reference: {max_diff}"

    print("KERNEL_OK")
</pallas_src>

<mosaic_0001>
module attributes {stable_mosaic.version = 11 : i64} {
  func.func @transformer_kernel(%arg0: i32, %arg1: memref<1x8x3xf32, #tpu.memory_space<vmem>>, %arg2: memref<1x8x8xi32, #tpu.memory_space<vmem>>, %arg3: memref<3x128xf32, #tpu.memory_space<vmem>>, %arg4: memref<1x128xf32, #tpu.memory_space<vmem>>, %arg5: memref<3x8x128x16xf32, #tpu.memory_space<vmem>>, %arg6: memref<3x8x1x16xf32, #tpu.memory_space<vmem>>, %arg7: memref<3x8x128x16xf32, #tpu.memory_space<vmem>>, %arg8: memref<3x8x1x16xf32, #tpu.memory_space<vmem>>, %arg9: memref<3x8x128x16xf32, #tpu.memory_space<vmem>>, %arg10: memref<3x8x1x16xf32, #tpu.memory_space<vmem>>, %arg11: memref<3x8x16x128xf32, #tpu.memory_space<vmem>>, %arg12: memref<3x1x128xf32, #tpu.memory_space<vmem>>, %arg13: memref<3x128x256xf32, #tpu.memory_space<vmem>>, %arg14: memref<3x1x256xf32, #tpu.memory_space<vmem>>, %arg15: memref<3x256x128xf32, #tpu.memory_space<vmem>>, %arg16: memref<3x1x128xf32, #tpu.memory_space<vmem>>, %arg17: memref<128x500xf32, #tpu.memory_space<vmem>>, %arg18: memref<1x500xf32, #tpu.memory_space<vmem>>, %arg19: memref<500x500xf32, #tpu.memory_space<vmem>>, %arg20: memref<1x500xf32, #tpu.memory_space<vmem>>, %arg21: memref<500x1xf32, #tpu.memory_space<vmem>>, %arg22: memref<1x1xf32, #tpu.memory_space<vmem>>, %arg23: memref<1x1x1xf32, #tpu.memory_space<vmem>>) attributes {dimension_semantics = [#tpu.dimension_semantics<parallel>], iteration_bounds = array<i64: 2>, scalar_prefetch = 0 : i64, scratch_operands = 0 : i64, tpu.core_type = #tpu.core_type<tc>, window_params = [{transform_indices = @transform_0, window_bounds = array<i64: 1, 8, 3>}, {transform_indices = @transform_1, window_bounds = array<i64: 1, 8, 8>}, {pipeline_mode = #tpu.pipeline_mode<synchronous>, transform_indices = @transform_2, window_bounds = array<i64: 3, 128>}, {pipeline_mode = #tpu.pipeline_mode<synchronous>, transform_indices = @transform_3, window_bounds = array<i64: 1, 128>}, {pipeline_mode = #tpu.pipeline_mode<synchronous>, transform_indices = @transform_4, window_bounds = array<i64: 3, 8, 128, 16>}, {pipeline_mode = #tpu.pipeline_mode<synchronous>, transform_indices = @transform_5, window_bounds = array<i64: 3, 8, 1, 16>}, {pipeline_mode = #tpu.pipeline_mode<synchronous>, transform_indices = @transform_6, window_bounds = array<i64: 3, 8, 128, 16>}, {pipeline_mode = #tpu.pipeline_mode<synchronous>, transform_indices = @transform_7, window_bounds = array<i64: 3, 8, 1, 16>}, {pipeline_mode = #tpu.pipeline_mode<synchronous>, transform_indices = @transform_8, window_bounds = array<i64: 3, 8, 128, 16>}, {pipeline_mode = #tpu.pipeline_mode<synchronous>, transform_indices = @transform_9, window_bounds = array<i64: 3, 8, 1, 16>}, {pipeline_mode = #tpu.pipeline_mode<synchronous>, transform_indices = @transform_10, window_bounds = array<i64: 3, 8, 16, 128>}, {pipeline_mode = #tpu.pipeline_mode<synchronous>, transform_indices = @transform_11, window_bounds = array<i64: 3, 1, 128>}, {pipeline_mode = #tpu.pipeline_mode<synchronous>, transform_indices = @transform_12, window_bounds = array<i64: 3, 128, 256>}, {pipeline_mode = #tpu.pipeline_mode<synchronous>, transform_indices = @transform_13, window_bounds = array<i64: 3, 1, 256>}, {pipeline_mode = #tpu.pipeline_mode<synchronous>, transform_indices = @transform_14, window_bounds = array<i64: 3, 256, 128>}, {pipeline_mode = #tpu.pipeline_mode<synchronous>, transform_indices = @transform_15, window_bounds = array<i64: 3, 1, 128>}, {pipeline_mode = #tpu.pipeline_mode<synchronous>, transform_indices = @transform_16, window_bounds = array<i64: 128, 500>}, {pipeline_mode = #tpu.pipeline_mode<synchronous>, transform_indices = @transform_17, window_bounds = array<i64: 1, 500>}, {pipeline_mode = #tpu.pipeline_mode<synchronous>, transform_indices = @transform_18, window_bounds = array<i64: 500, 500>}, {pipeline_mode = #tpu.pipeline_mode<synchronous>, transform_indices = @transform_19, window_bounds = array<i64: 1, 500>}, {pipeline_mode = #tpu.pipeline_mode<synchronous>, transform_indices = @transform_20, window_bounds = array<i64: 500, 1>}, {pipeline_mode = #tpu.pipeline_mode<synchronous>, transform_indices = @transform_21, window_bounds = array<i64: 1, 1>}, {transform_indices = @transform_22, window_bounds = array<i64: 1, 1, 1>}]} {
    %c0 = arith.constant 0 : index
    %c0_0 = arith.constant 0 : index
    %c0_1 = arith.constant 0 : index
    %0 = vector.load %arg1[%c0, %c0_0, %c0_1] : memref<1x8x3xf32, #tpu.memory_space<vmem>>, vector<1x8x3xf32>
    %1 = vector.shape_cast %0 : vector<1x8x3xf32> to vector<8x3xf32>
    %c0_2 = arith.constant 0 : index
    %c0_3 = arith.constant 0 : index
    %c0_4 = arith.constant 0 : index
    %2 = vector.load %arg2[%c0_2, %c0_3, %c0_4] : memref<1x8x8xi32, #tpu.memory_space<vmem>>, vector<1x8x8xi32>
    %3 = vector.shape_cast %2 : vector<1x8x8xi32> to vector<8x8xi32>
    %c0_i32 = arith.constant 0 : i32
    %4 = vector.broadcast %c0_i32 : i32 to vector<8x8xi32>
    %5 = arith.cmpi eq, %3, %4 : vector<8x8xi32>
    %c0_5 = arith.constant 0 : index
    %c0_6 = arith.constant 0 : index
    %6 = vector.load %arg3[%c0_5, %c0_6] : memref<3x128xf32, #tpu.memory_space<vmem>>, vector<3x128xf32>
    %cst = arith.constant dense<0.000000e+00> : vector<8x128xf32>
    %7 = tpu.matmul %1, %6, %cst {dimension_numbers = #tpu.dot_dimension_numbers<[1], [0], [0], [1], [0, 0, 1, 1], [], []>} : vector<8x3xf32>, vector<3x128xf32>, vector<8x128xf32> -> vector<8x128xf32>
    %c0_7 = arith.constant 0 : index
    %c0_8 = arith.constant 0 : index
    %8 = vector.load %arg4[%c0_7, %c0_8] : memref<1x128xf32, #tpu.memory_space<vmem>>, vector<1x128xf32>
    %9 = vector.broadcast %8 : vector<1x128xf32> to vector<8x128xf32>
    %10 = arith.addf %7, %9 : vector<8x128xf32>
    %11 = vector.shape_cast %10 : vector<8x128xf32> to vector<1x8x128xf32>
    %12 = vector.shape_cast %11 : vector<1x8x128xf32> to vector<1x8x128xf32>
    %13 = vector.broadcast %12 : vector<1x8x128xf32> to vector<8x8x128xf32>
    %c0_9 = arith.constant 0 : index
    %c0_10 = arith.constant 0 : index
    %c0_11 = arith.constant 0 : index
    %c0_12 = arith.constant 0 : index
    %14 = vector.load %arg5[%c0_9, %c0_10, %c0_11, %c0_12] : memref<3x8x128x16xf32, #tpu.memory_space<vmem>>, vector<1x8x128x16xf32>
    %15 = vector.shape_cast %14 : vector<1x8x128x16xf32> to vector<8x128x16xf32>
    "tpu.trace_start"() <{level = 10 : i32, message = "hsd,hdf->hsf"}> : () -> ()
    %cst_13 = arith.constant dense<0.000000e+00> : vector<8x8x16xf32>
    %16 = tpu.matmul %13, %15, %cst_13 {dimension_numbers = #tpu.dot_dimension_numbers<[2], [1], [1], [2], [0, 0, 0, 1, 1, 2], [0], [0]>} : vector<8x8x128xf32>, vector<8x128x16xf32>, vector<8x8x16xf32> -> vector<8x8x16xf32>
    "tpu.trace_stop"() : () -> ()
    %c0_14 = arith.constant 0 : index
    %c0_15 = arith.constant 0 : index
    %c0_16 = arith.constant 0 : index
    %c0_17 = arith.constant 0 : index
    %17 = vector.load %arg6[%c0_14, %c0_15, %c0_16, %c0_17] : memref<3x8x1x16xf32, #tpu.memory_space<vmem>>, vector<1x8x1x16xf32>
    %18 = vector.shape_cast %17 : vector<1x8x1x16xf32> to vector<8x1x16xf32>
    %19 = vector.broadcast %18 : vector<8x1x16xf32> to vector<8x8x16xf32>
    %20 = arith.addf %16, %19 : vector<8x8x16xf32>
    %c0_18 = arith.constant 0 : index
    %c0_19 = arith.constant 0 : index
    %c0_20 = arith.constant 0 : index
    %c0_21 = arith.constant 0 : index
    %21 = vector.load %arg7[%c0_18, %c0_19, %c0_20, %c0_21] : memref<3x8x128x16xf32, #tpu.memory_space<vmem>>, vector<1x8x128x16xf32>
    %22 = vector.shape_cast %21 : vector<1x8x128x16xf32> to vector<8x128x16xf32>
    "tpu.trace_start"() <{level = 10 : i32, message = "hsd,hdf->hsf"}> : () -> ()
    %cst_22 = arith.constant dense<0.000000e+00> : vector<8x8x16xf32>
    %23 = tpu.matmul %13, %22, %cst_22 {dimension_numbers = #tpu.dot_dimension_numbers<[2], [1], [1], [2], [0, 0, 0, 1, 1, 2], [0], [0]>} : vector<8x8x128xf32>, vector<8x128x16xf32>, vector<8x8x16xf32> -> vector<8x8x16xf32>
    "tpu.trace_stop"() : () -> ()
    %c0_23 = arith.constant 0 : index
    %c0_24 = arith.constant 0 : index
    %c0_25 = arith.constant 0 : index
    %c0_26 = arith.constant 0 : index
    %24 = vector.load %arg8[%c0_23, %c0_24, %c0_25, %c0_26] : memref<3x8x1x16xf32, #tpu.memory_space<vmem>>, vector<1x8x1x16xf32>
    %25 = vector.shape_cast %24 : vector<1x8x1x16xf32> to vector<8x1x16xf32>
    %26 = vector.broadcast %25 : vector<8x1x16xf32> to vector<8x8x16xf32>
    %27 = arith.addf %23, %26 : vector<8x8x16xf32>
    %c0_27 = arith.constant 0 : index
    %c0_28 = arith.constant 0 : index
    %c0_29 = arith.constant 0 : index
    %c0_30 = arith.constant 0 : index
    %28 = vector.load %arg9[%c0_27, %c0_28, %c0_29, %c0_30] : memref<3x8x128x16xf32, #tpu.memory_space<vmem>>, vector<1x8x128x16xf32>
    %29 = vector.shape_cast %28 : vector<1x8x128x16xf32> to vector<8x128x16xf32>
    "tpu.trace_start"() <{level = 10 : i32, message = "hsd,hdf->hsf"}> : () -> ()
    %cst_31 = arith.constant dense<0.000000e+00> : vector<8x8x16xf32>
    %30 = tpu.matmul %13, %29, %cst_31 {dimension_numbers = #tpu.dot_dimension_numbers<[2], [1], [1], [2], [0, 0, 0, 1, 1, 2], [0], [0]>} : vector<8x8x128xf32>, vector<8x128x16xf32>, vector<8x8x16xf32> -> vector<8x8x16xf32>
    "tpu.trace_stop"() : () -> ()
    %c0_32 = arith.constant 0 : index
    %c0_33 = arith.constant 0 : index
    %c0_34 = arith.constant 0 : index
    %c0_35 = arith.constant 0 : index
    %31 = vector.load %arg10[%c0_32, %c0_33, %c0_34, %c0_35] : memref<3x8x1x16xf32, #tpu.memory_space<vmem>>, vector<1x8x1x16xf32>
    %32 = vector.shape_cast %31 : vector<1x8x1x16xf32> to vector<8x1x16xf32>
    %33 = vector.broadcast %32 : vector<8x1x16xf32> to vector<8x8x16xf32>
    %34 = arith.addf %30, %33 : vector<8x8x16xf32>
    "tpu.trace_start"() <{level = 10 : i32, message = "hqf,hkf->hqk"}> : () -> ()
    %cst_36 = arith.constant dense<0.000000e+00> : vector<8x8x8xf32>
    %35 = tpu.matmul %20, %27, %cst_36 {dimension_numbers = #tpu.dot_dimension_numbers<[2], [2], [1], [1], [0, 0, 0, 1, 1, 1], [0], [0]>} : vector<8x8x16xf32>, vector<8x8x16xf32>, vector<8x8x8xf32> -> vector<8x8x8xf32>
    "tpu.trace_stop"() : () -> ()
    %cst_37 = arith.constant 2.500000e-01 : f32
    %36 = vector.broadcast %cst_37 : f32 to vector<8x8x8xf32>
    %37 = arith.mulf %35, %36 : vector<8x8x8xf32>
    %cst_38 = arith.constant -1.000000e+09 : f32
    %38 = vector.shape_cast %5 : vector<8x8xi1> to vector<1x8x8xi1>
    %39 = vector.broadcast %38 : vector<1x8x8xi1> to vector<8x8x8xi1>
    %40 = vector.broadcast %cst_38 : f32 to vector<8x8x8xf32>
    %41 = arith.select %39, %40, %37 : vector<8x8x8xi1>, vector<8x8x8xf32>
    %cst_39 = arith.constant dense<0xFF800000> : vector<8x8xf32>
    %42 = vector.multi_reduction <maximumf>, %41, %cst_39 [2] : vector<8x8x8xf32> to vector<8x8xf32>
    %43 = vector.shape_cast %42 : vector<8x8xf32> to vector<8x8x1xf32>
    %44 = vector.broadcast %43 : vector<8x8x1xf32> to vector<8x8x8xf32>
    %45 = arith.subf %41, %44 : vector<8x8x8xf32>
    %46 = math.exp %45 : vector<8x8x8xf32>
    %cst_40 = arith.constant dense<0.000000e+00> : vector<8x8xf32>
    %47 = vector.multi_reduction <add>, %46, %cst_40 [2] : vector<8x8x8xf32> to vector<8x8xf32>
    %48 = vector.shape_cast %47 : vector<8x8xf32> to vector<8x8x1xf32>
    %49 = tpu.reciprocal %48 : vector<8x8x1xf32> -> vector<8x8x1xf32>
    %50 = vector.broadcast %49 : vector<8x8x1xf32> to vector<8x8x8xf32>
    %51 = arith.mulf %46, %50 : vector<8x8x8xf32>
    "tpu.trace_start"() <{level = 10 : i32, message = "hqk,hkf->hqf"}> : () -> ()
    %cst_41 = arith.constant dense<0.000000e+00> : vector<8x8x16xf32>
    %52 = tpu.matmul %51, %34, %cst_41 {dimension_numbers = #tpu.dot_dimension_numbers<[2], [1], [1], [2], [0, 0, 0, 1, 1, 2], [0], [0]>} : vector<8x8x8xf32>, vector<8x8x16xf32>, vector<8x8x16xf32> -> vector<8x8x16xf32>
    "tpu.trace_stop"() : () -> ()
    %c0_42 = arith.constant 0 : index
    %c0_43 = arith.constant 0 : index
    %c0_44 = arith.constant 0 : index
    %c0_45 = arith.constant 0 : index
    %53 = vector.load %arg11[%c0_42, %c0_43, %c0_44, %c0_45] : memref<3x8x16x128xf32, #tpu.memory_space<vmem>>, vector<1x8x16x128xf32>
    %54 = vector.shape_cast %53 : vector<1x8x16x128xf32> to vector<8x16x128xf32>
    "tpu.trace_start"() <{level = 10 : i32, message = "hsf,hfd->hsd"}> : () -> ()
    %cst_46 = arith.constant dense<0.000000e+00> : vector<8x8x128xf32>
    %55 = tpu.matmul %52, %54, %cst_46 {dimension_numbers = #tpu.dot_dimension_numbers<[2], [1], [1], [2], [0, 0, 0, 1, 1, 2], [0], [0]>} : vector<8x8x16xf32>, vector<8x16x128xf32>, vector<8x8x128xf32> -> vector<8x8x128xf32>
    "tpu.trace_stop"() : () -> ()
    %cst_47 = arith.constant dense<0.000000e+00> : vector<8x128xf32>
    %56 = vector.multi_reduction <add>, %55, %cst_47 [0] : vector<8x8x128xf32> to vector<8x128xf32>
    %c0_48 = arith.constant 0 : index
    %c0_49 = arith.constant 0 : index
    %c0_50 = arith.constant 0 : index
    %57 = vector.load %arg12[%c0_48, %c0_49, %c0_50] : memref<3x1x128xf32, #tpu.memory_space<vmem>>, vector<1x1x128xf32>
    %58 = vector.shape_cast %57 : vector<1x1x128xf32> to vector<1x128xf32>
    %59 = vector.broadcast %58 : vector<1x128xf32> to vector<8x128xf32>
    %60 = arith.addf %56, %59 : vector<8x128xf32>
    %61 = arith.addf %10, %60 : vector<8x128xf32>
    %c0_51 = arith.constant 0 : index
    %c0_52 = arith.constant 0 : index
    %c0_53 = arith.constant 0 : index
    %62 = vector.load %arg13[%c0_51, %c0_52, %c0_53] : memref<3x128x256xf32, #tpu.memory_space<vmem>>, vector<1x128x256xf32>
    %63 = vector.shape_cast %62 : vector<1x128x256xf32> to vector<128x256xf32>
    %cst_54 = arith.constant dense<0.000000e+00> : vector<8x256xf32>
    %64 = tpu.matmul %61, %63, %cst_54 {dimension_numbers = #tpu.dot_dimension_numbers<[1], [0], [0], [1], [0, 0, 1, 1], [], []>} : vector<8x128xf32>, vector<128x256xf32>, vector<8x256xf32> -> vector<8x256xf32>
    %c0_55 = arith.constant 0 : index
    %c0_56 = arith.constant 0 : index
    %c0_57 = arith.constant 0 : index
    %65 = vector.load %arg14[%c0_55, %c0_56, %c0_57] : memref<3x1x256xf32, #tpu.memory_space<vmem>>, vector<1x1x256xf32>
    %66 = vector.shape_cast %65 : vector<1x1x256xf32> to vector<1x256xf32>
    %67 = vector.broadcast %66 : vector<1x256xf32> to vector<8x256xf32>
    %68 = arith.addf %64, %67 : vector<8x256xf32>
    %cst_58 = arith.constant 0.000000e+00 : f32
    %69 = vector.broadcast %cst_58 : f32 to vector<8x256xf32>
    %70 = arith.maximumf %68, %69 : vector<8x256xf32>
    %c0_59 = arith.constant 0 : index
    %c0_60 = arith.constant 0 : index
    %c0_61 = arith.constant 0 : index
    %71 = vector.load %arg15[%c0_59, %c0_60, %c0_61] : memref<3x256x128xf32, #tpu.memory_space<vmem>>, vector<1x256x128xf32>
    %72 = vector.shape_cast %71 : vector<1x256x128xf32> to vector<256x128xf32>
    %cst_62 = arith.constant dense<0.000000e+00> : vector<8x128xf32>
    %73 = tpu.matmul %70, %72, %cst_62 {dimension_numbers = #tpu.dot_dimension_numbers<[1], [0], [0], [1], [0, 0, 1, 1], [], []>} : vector<8x256xf32>, vector<256x128xf32>, vector<8x128xf32> -> vector<8x128xf32>
    %74 = arith.addf %61, %73 : vector<8x128xf32>
    %c0_63 = arith.constant 0 : index
    %c0_64 = arith.constant 0 : index
    %c0_65 = arith.constant 0 : index
    %75 = vector.load %arg16[%c0_63, %c0_64, %c0_65] : memref<3x1x128xf32, #tpu.memory_space<vmem>>, vector<1x1x128xf32>
    %76 = vector.shape_cast %75 : vector<1x1x128xf32> to vector<1x128xf32>
    %77 = vector.broadcast %76 : vector<1x128xf32> to vector<8x128xf32>
    %78 = arith.addf %74, %77 : vector<8x128xf32>
    %79 = vector.shape_cast %78 : vector<8x128xf32> to vector<1x8x128xf32>
    %80 = vector.shape_cast %79 : vector<1x8x128xf32> to vector<1x8x128xf32>
    %81 = vector.broadcast %80 : vector<1x8x128xf32> to vector<8x8x128xf32>
    %c1 = arith.constant 1 : index
    %c0_66 = arith.constant 0 : index
    %c0_67 = arith.constant 0 : index
    %c0_68 = arith.constant 0 : index
    %82 = vector.load %arg5[%c1, %c0_66, %c0_67, %c0_68] : memref<3x8x128x16xf32, #tpu.memory_space<vmem>>, vector<1x8x128x16xf32>
    %83 = vector.shape_cast %82 : vector<1x8x128x16xf32> to vector<8x128x16xf32>
    "tpu.trace_start"() <{level = 10 : i32, message = "hsd,hdf->hsf"}> : () -> ()
    %cst_69 = arith.constant dense<0.000000e+00> : vector<8x8x16xf32>
    %84 = tpu.matmul %81, %83, %cst_69 {dimension_numbers = #tpu.dot_dimension_numbers<[2], [1], [1], [2], [0, 0, 0, 1, 1, 2], [0], [0]>} : vector<8x8x128xf32>, vector<8x128x16xf32>, vector<8x8x16xf32> -> vector<8x8x16xf32>
    "tpu.trace_stop"() : () -> ()
    %c1_70 = arith.constant 1 : index
    %c0_71 = arith.constant 0 : index
    %c0_72 = arith.constant 0 : index
    %c0_73 = arith.constant 0 : index
    %85 = vector.load %arg6[%c1_70, %c0_71, %c0_72, %c0_73] : memref<3x8x1x16xf32, #tpu.memory_space<vmem>>, vector<1x8x1x16xf32>
    %86 = vector.shape_cast %85 : vector<1x8x1x16xf32> to vector<8x1x16xf32>
    %87 = vector.broadcast %86 : vector<8x1x16xf32> to vector<8x8x16xf32>
    %88 = arith.addf %84, %87 : vector<8x8x16xf32>
    %c1_74 = arith.constant 1 : index
    %c0_75 = arith.constant 0 : index
    %c0_76 = arith.constant 0 : index
    %c0_77 = arith.constant 0 : index
    %89 = vector.load %arg7[%c1_74, %c0_75, %c0_76, %c0_77] : memref<3x8x128x16xf32, #tpu.memory_space<vmem>>, vector<1x8x128x16xf32>
    %90 = vector.shape_cast %89 : vector<1x8x128x16xf32> to vector<8x128x16xf32>
    "tpu.trace_start"() <{level = 10 : i32, message = "hsd,hdf->hsf"}> : () -> ()
    %cst_78 = arith.constant dense<0.000000e+00> : vector<8x8x16xf32>
    %91 = tpu.matmul %81, %90, %cst_78 {dimension_numbers = #tpu.dot_dimension_numbers<[2], [1], [1], [2], [0, 0, 0, 1, 1, 2], [0], [0]>} : vector<8x8x128xf32>, vector<8x128x16xf32>, vector<8x8x16xf32> -> vector<8x8x16xf32>
    "tpu.trace_stop"() : () -> ()
    %c1_79 = arith.constant 1 : index
    %c0_80 = arith.constant 0 : index
    %c0_81 = arith.constant 0 : index
    %c0_82 = arith.constant 0 : index
    %92 = vector.load %arg8[%c1_79, %c0_80, %c0_81, %c0_82] : memref<3x8x1x16xf32, #tpu.memory_space<vmem>>, vector<1x8x1x16xf32>
    %93 = vector.shape_cast %92 : vector<1x8x1x16xf32> to vector<8x1x16xf32>
    %94 = vector.broadcast %93 : vector<8x1x16xf32> to vector<8x8x16xf32>
    %95 = arith.addf %91, %94 : vector<8x8x16xf32>
    %c1_83 = arith.constant 1 : index
    %c0_84 = arith.constant 0 : index
    %c0_85 = arith.constant 0 : index
    %c0_86 = arith.constant 0 : index
    %96 = vector.load %arg9[%c1_83, %c0_84, %c0_85, %c0_86] : memref<3x8x128x16xf32, #tpu.memory_space<vmem>>, vector<1x8x128x16xf32>
    %97 = vector.shape_cast %96 : vector<1x8x128x16xf32> to vector<8x128x16xf32>
    "tpu.trace_start"() <{level = 10 : i32, message = "hsd,hdf->hsf"}> : () -> ()
    %cst_87 = arith.constant dense<0.000000e+00> : vector<8x8x16xf32>
    %98 = tpu.matmul %81, %97, %cst_87 {dimension_numbers = #tpu.dot_dimension_numbers<[2], [1], [1], [2], [0, 0, 0, 1, 1, 2], [0], [0]>} : vector<8x8x128xf32>, vector<8x128x16xf32>, vector<8x8x16xf32> -> vector<8x8x16xf32>
    "tpu.trace_stop"() : () -> ()
    %c1_88 = arith.constant 1 : index
    %c0_89 = arith.constant 0 : index
    %c0_90 = arith.constant 0 : index
    %c0_91 = arith.constant 0 : index
    %99 = vector.load %arg10[%c1_88, %c0_89, %c0_90, %c0_91] : memref<3x8x1x16xf32, #tpu.memory_space<vmem>>, vector<1x8x1x16xf32>
    %100 = vector.shape_cast %99 : vector<1x8x1x16xf32> to vector<8x1x16xf32>
    %101 = vector.broadcast %100 : vector<8x1x16xf32> to vector<8x8x16xf32>
    %102 = arith.addf %98, %101 : vector<8x8x16xf32>
    "tpu.trace_start"() <{level = 10 : i32, message = "hqf,hkf->hqk"}> : () -> ()
    %cst_92 = arith.constant dense<0.000000e+00> : vector<8x8x8xf32>
    %103 = tpu.matmul %88, %95, %cst_92 {dimension_numbers = #tpu.dot_dimension_numbers<[2], [2], [1], [1], [0, 0, 0, 1, 1, 1], [0], [0]>} : vector<8x8x16xf32>, vector<8x8x16xf32>, vector<8x8x8xf32> -> vector<8x8x8xf32>
    "tpu.trace_stop"() : () -> ()
    %cst_93 = arith.constant 2.500000e-01 : f32
    %104 = vector.broadcast %cst_93 : f32 to vector<8x8x8xf32>
    %105 = arith.mulf %103, %104 : vector<8x8x8xf32>
    %cst_94 = arith.constant -1.000000e+09 : f32
    %106 = vector.shape_cast %5 : vector<8x8xi1> to vector<1x8x8xi1>
    %107 = vector.broadcast %106 : vector<1x8x8xi1> to vector<8x8x8xi1>
    %108 = vector.broadcast %cst_94 : f32 to vector<8x8x8xf32>
    %109 = arith.select %107, %108, %105 : vector<8x8x8xi1>, vector<8x8x8xf32>
    %cst_95 = arith.constant dense<0xFF800000> : vector<8x8xf32>
    %110 = vector.multi_reduction <maximumf>, %109, %cst_95 [2] : vector<8x8x8xf32> to vector<8x8xf32>
    %111 = vector.shape_cast %110 : vector<8x8xf32> to vector<8x8x1xf32>
    %112 = vector.broadcast %111 : vector<8x8x1xf32> to vector<8x8x8xf32>
    %113 = arith.subf %109, %112 : vector<8x8x8xf32>
    %114 = math.exp %113 : vector<8x8x8xf32>
    %cst_96 = arith.constant dense<0.000000e+00> : vector<8x8xf32>
    %115 = vector.multi_reduction <add>, %114, %cst_96 [2] : vector<8x8x8xf32> to vector<8x8xf32>
    %116 = vector.shape_cast %115 : vector<8x8xf32> to vector<8x8x1xf32>
    %117 = tpu.reciprocal %116 : vector<8x8x1xf32> -> vector<8x8x1xf32>
    %118 = vector.broadcast %117 : vector<8x8x1xf32> to vector<8x8x8xf32>
    %119 = arith.mulf %114, %118 : vector<8x8x8xf32>
    "tpu.trace_start"() <{level = 10 : i32, message = "hqk,hkf->hqf"}> : () -> ()
    %cst_97 = arith.constant dense<0.000000e+00> : vector<8x8x16xf32>
    %120 = tpu.matmul %119, %102, %cst_97 {dimension_numbers = #tpu.dot_dimension_numbers<[2], [1], [1], [2], [0, 0, 0, 1, 1, 2], [0], [0]>} : vector<8x8x8xf32>, vector<8x8x16xf32>, vector<8x8x16xf32> -> vector<8x8x16xf32>
    "tpu.trace_stop"() : () -> ()
    %c1_98 = arith.constant 1 : index
    %c0_99 = arith.constant 0 : index
    %c0_100 = arith.constant 0 : index
    %c0_101 = arith.constant 0 : index
    %121 = vector.load %arg11[%c1_98, %c0_99, %c0_100, %c0_101] : memref<3x8x16x128xf32, #tpu.memory_space<vmem>>, vector<1x8x16x128xf32>
    %122 = vector.shape_cast %121 : vector<1x8x16x128xf32> to vector<8x16x128xf32>
    "tpu.trace_start"() <{level = 10 : i32, message = "hsf,hfd->hsd"}> : () -> ()
    %cst_102 = arith.constant dense<0.000000e+00> : vector<8x8x128xf32>
    %123 = tpu.matmul %120, %122, %cst_102 {dimension_numbers = #tpu.dot_dimension_numbers<[2], [1], [1], [2], [0, 0, 0, 1, 1, 2], [0], [0]>} : vector<8x8x16xf32>, vector<8x16x128xf32>, vector<8x8x128xf32> -> vector<8x8x128xf32>
    "tpu.trace_stop"() : () -> ()
    %cst_103 = arith.constant dense<0.000000e+00> : vector<8x128xf32>
    %124 = vector.multi_reduction <add>, %123, %cst_103 [0] : vector<8x8x128xf32> to vector<8x128xf32>
    %c1_104 = arith.constant 1 : index
    %c0_105 = arith.constant 0 : index
    %c0_106 = arith.constant 0 : index
    %125 = vector.load %arg12[%c1_104, %c0_105, %c0_106] : memref<3x1x128xf32, #tpu.memory_space<vmem>>, vector<1x1x128xf32>
    %126 = vector.shape_cast %125 : vector<1x1x128xf32> to vector<1x128xf32>
    %127 = vector.broadcast %126 : vector<1x128xf32> to vector<8x128xf32>
    %128 = arith.addf %124, %127 : vector<8x128xf32>
    %129 = arith.addf %78, %128 : vector<8x128xf32>
    %c1_107 = arith.constant 1 : index
    %c0_108 = arith.constant 0 : index
    %c0_109 = arith.constant 0 : index
    %130 = vector.load %arg13[%c1_107, %c0_108, %c0_109] : memref<3x128x256xf32, #tpu.memory_space<vmem>>, vector<1x128x256xf32>
    %131 = vector.shape_cast %130 : vector<1x128x256xf32> to vector<128x256xf32>
    %cst_110 = arith.constant dense<0.000000e+00> : vector<8x256xf32>
    %132 = tpu.matmul %129, %131, %cst_110 {dimension_numbers = #tpu.dot_dimension_numbers<[1], [0], [0], [1], [0, 0, 1, 1], [], []>} : vector<8x128xf32>, vector<128x256xf32>, vector<8x256xf32> -> vector<8x256xf32>
    %c1_111 = arith.constant 1 : index
    %c0_112 = arith.constant 0 : index
    %c0_113 = arith.constant 0 : index
    %133 = vector.load %arg14[%c1_111, %c0_112, %c0_113] : memref<3x1x256xf32, #tpu.memory_space<vmem>>, vector<1x1x256xf32>
    %134 = vector.shape_cast %133 : vector<1x1x256xf32> to vector<1x256xf32>
    %135 = vector.broadcast %134 : vector<1x256xf32> to vector<8x256xf32>
    %136 = arith.addf %132, %135 : vector<8x256xf32>
    %cst_114 = arith.constant 0.000000e+00 : f32
    %137 = vector.broadcast %cst_114 : f32 to vector<8x256xf32>
    %138 = arith.maximumf %136, %137 : vector<8x256xf32>
    %c1_115 = arith.constant 1 : index
    %c0_116 = arith.constant 0 : index
    %c0_117 = arith.constant 0 : index
    %139 = vector.load %arg15[%c1_115, %c0_116, %c0_117] : memref<3x256x128xf32, #tpu.memory_space<vmem>>, vector<1x256x128xf32>
    %140 = vector.shape_cast %139 : vector<1x256x128xf32> to vector<256x128xf32>
    %cst_118 = arith.constant dense<0.000000e+00> : vector<8x128xf32>
    %141 = tpu.matmul %138, %140, %cst_118 {dimension_numbers = #tpu.dot_dimension_numbers<[1], [0], [0], [1], [0, 0, 1, 1], [], []>} : vector<8x256xf32>, vector<256x128xf32>, vector<8x128xf32> -> vector<8x128xf32>
    %142 = arith.addf %129, %141 : vector<8x128xf32>
    %c1_119 = arith.constant 1 : index
    %c0_120 = arith.constant 0 : index
    %c0_121 = arith.constant 0 : index
    %143 = vector.load %arg16[%c1_119, %c0_120, %c0_121] : memref<3x1x128xf32, #tpu.memory_space<vmem>>, vector<1x1x128xf32>
    %144 = vector.shape_cast %143 : vector<1x1x128xf32> to vector<1x128xf32>
    %145 = vector.broadcast %144 : vector<1x128xf32> to vector<8x128xf32>
    %146 = arith.addf %142, %145 : vector<8x128xf32>
    %147 = vector.shape_cast %146 : vector<8x128xf32> to vector<1x8x128xf32>
    %148 = vector.shape_cast %147 : vector<1x8x128xf32> to vector<1x8x128xf32>
    %149 = vector.broadcast %148 : vector<1x8x128xf32> to vector<8x8x128xf32>
    %c2 = arith.constant 2 : index
    %c0_122 = arith.constant 0 : index
    %c0_123 = arith.constant 0 : index
    %c0_124 = arith.constant 0 : index
    %150 = vector.load %arg5[%c2, %c0_122, %c0_123, %c0_124] : memref<3x8x128x16xf32, #tpu.memory_space<vmem>>, vector<1x8x128x16xf32>
    %151 = vector.shape_cast %150 : vector<1x8x128x16xf32> to vector<8x128x16xf32>
    "tpu.trace_start"() <{level = 10 : i32, message = "hsd,hdf->hsf"}> : () -> ()
    %cst_125 = arith.constant dense<0.000000e+00> : vector<8x8x16xf32>
    %152 = tpu.matmul %149, %151, %cst_125 {dimension_numbers = #tpu.dot_dimension_numbers<[2], [1], [1], [2], [0, 0, 0, 1, 1, 2], [0], [0]>} : vector<8x8x128xf32>, vector<8x128x16xf32>, vector<8x8x16xf32> -> vector<8x8x16xf32>
    "tpu.trace_stop"() : () -> ()
    %c2_126 = arith.constant 2 : index
    %c0_127 = arith.constant 0 : index
    %c0_128 = arith.constant 0 : index
    %c0_129 = arith.constant 0 : index
    %153 = vector.load %arg6[%c2_126, %c0_127, %c0_128, %c0_129] : memref<3x8x1x16xf32, #tpu.memory_space<vmem>>, vector<1x8x1x16xf32>
    %154 = vector.shape_cast %153 : vector<1x8x1x16xf32> to vector<8x1x16xf32>
    %155 = vector.broadcast %154 : vector<8x1x16xf32> to vector<8x8x16xf32>
    %156 = arith.addf %152, %155 : vector<8x8x16xf32>
    %c2_130 = arith.constant 2 : index
    %c0_131 = arith.constant 0 : index
    %c0_132 = arith.constant 0 : index
    %c0_133 = arith.constant 0 : index
    %157 = vector.load %arg7[%c2_130, %c0_131, %c0_132, %c0_133] : memref<3x8x128x16xf32, #tpu.memory_space<vmem>>, vector<1x8x128x16xf32>
    %158 = vector.shape_cast %157 : vector<1x8x128x16xf32> to vector<8x128x16xf32>
    "tpu.trace_start"() <{level = 10 : i32, message = "hsd,hdf->hsf"}> : () -> ()
    %cst_134 = arith.constant dense<0.000000e+00> : vector<8x8x16xf32>
    %159 = tpu.matmul %149, %158, %cst_134 {dimension_numbers = #tpu.dot_dimension_numbers<[2], [1], [1], [2], [0, 0, 0, 1, 1, 2], [0], [0]>} : vector<8x8x128xf32>, vector<8x128x16xf32>, vector<8x8x16xf32> -> vector<8x8x16xf32>
    "tpu.trace_stop"() : () -> ()
    %c2_135 = arith.constant 2 : index
    %c0_136 = arith.constant 0 : index
    %c0_137 = arith.constant 0 : index
    %c0_138 = arith.constant 0 : index
    %160 = vector.load %arg8[%c2_135, %c0_136, %c0_137, %c0_138] : memref<3x8x1x16xf32, #tpu.memory_space<vmem>>, vector<1x8x1x16xf32>
    %161 = vector.shape_cast %160 : vector<1x8x1x16xf32> to vector<8x1x16xf32>
    %162 = vector.broadcast %161 : vector<8x1x16xf32> to vector<8x8x16xf32>
    %163 = arith.addf %159, %162 : vector<8x8x16xf32>
    %c2_139 = arith.constant 2 : index
    %c0_140 = arith.constant 0 : index
    %c0_141 = arith.constant 0 : index
    %c0_142 = arith.constant 0 : index
    %164 = vector.load %arg9[%c2_139, %c0_140, %c0_141, %c0_142] : memref<3x8x128x16xf32, #tpu.memory_space<vmem>>, vector<1x8x128x16xf32>
    %165 = vector.shape_cast %164 : vector<1x8x128x16xf32> to vector<8x128x16xf32>
    "tpu.trace_start"() <{level = 10 : i32, message = "hsd,hdf->hsf"}> : () -> ()
    %cst_143 = arith.constant dense<0.000000e+00> : vector<8x8x16xf32>
    %166 = tpu.matmul %149, %165, %cst_143 {dimension_numbers = #tpu.dot_dimension_numbers<[2], [1], [1], [2], [0, 0, 0, 1, 1, 2], [0], [0]>} : vector<8x8x128xf32>, vector<8x128x16xf32>, vector<8x8x16xf32> -> vector<8x8x16xf32>
    "tpu.trace_stop"() : () -> ()
    %c2_144 = arith.constant 2 : index
    %c0_145 = arith.constant 0 : index
    %c0_146 = arith.constant 0 : index
    %c0_147 = arith.constant 0 : index
    %167 = vector.load %arg10[%c2_144, %c0_145, %c0_146, %c0_147] : memref<3x8x1x16xf32, #tpu.memory_space<vmem>>, vector<1x8x1x16xf32>
    %168 = vector.shape_cast %167 : vector<1x8x1x16xf32> to vector<8x1x16xf32>
    %169 = vector.broadcast %168 : vector<8x1x16xf32> to vector<8x8x16xf32>
    %170 = arith.addf %166, %169 : vector<8x8x16xf32>
    "tpu.trace_start"() <{level = 10 : i32, message = "hqf,hkf->hqk"}> : () -> ()
    %cst_148 = arith.constant dense<0.000000e+00> : vector<8x8x8xf32>
    %171 = tpu.matmul %156, %163, %cst_148 {dimension_numbers = #tpu.dot_dimension_numbers<[2], [2], [1], [1], [0, 0, 0, 1, 1, 1], [0], [0]>} : vector<8x8x16xf32>, vector<8x8x16xf32>, vector<8x8x8xf32> -> vector<8x8x8xf32>
    "tpu.trace_stop"() : () -> ()
    %cst_149 = arith.constant 2.500000e-01 : f32
    %172 = vector.broadcast %cst_149 : f32 to vector<8x8x8xf32>
    %173 = arith.mulf %171, %172 : vector<8x8x8xf32>
    %cst_150 = arith.constant -1.000000e+09 : f32
    %174 = vector.shape_cast %5 : vector<8x8xi1> to vector<1x8x8xi1>
    %175 = vector.broadcast %174 : vector<1x8x8xi1> to vector<8x8x8xi1>
    %176 = vector.broadcast %cst_150 : f32 to vector<8x8x8xf32>
    %177 = arith.select %175, %176, %173 : vector<8x8x8xi1>, vector<8x8x8xf32>
    %cst_151 = arith.constant dense<0xFF800000> : vector<8x8xf32>
    %178 = vector.multi_reduction <maximumf>, %177, %cst_151 [2] : vector<8x8x8xf32> to vector<8x8xf32>
    %179 = vector.shape_cast %178 : vector<8x8xf32> to vector<8x8x1xf32>
    %180 = vector.broadcast %179 : vector<8x8x1xf32> to vector<8x8x8xf32>
    %181 = arith.subf %177, %180 : vector<8x8x8xf32>
    %182 = math.exp %181 : vector<8x8x8xf32>
    %cst_152 = arith.constant dense<0.000000e+00> : vector<8x8xf32>
    %183 = vector.multi_reduction <add>, %182, %cst_152 [2] : vector<8x8x8xf32> to vector<8x8xf32>
    %184 = vector.shape_cast %183 : vector<8x8xf32> to vector<8x8x1xf32>
    %185 = tpu.reciprocal %184 : vector<8x8x1xf32> -> vector<8x8x1xf32>
    %186 = vector.broadcast %185 : vector<8x8x1xf32> to vector<8x8x8xf32>
    %187 = arith.mulf %182, %186 : vector<8x8x8xf32>
    "tpu.trace_start"() <{level = 10 : i32, message = "hqk,hkf->hqf"}> : () -> ()
    %cst_153 = arith.constant dense<0.000000e+00> : vector<8x8x16xf32>
    %188 = tpu.matmul %187, %170, %cst_153 {dimension_numbers = #tpu.dot_dimension_numbers<[2], [1], [1], [2], [0, 0, 0, 1, 1, 2], [0], [0]>} : vector<8x8x8xf32>, vector<8x8x16xf32>, vector<8x8x16xf32> -> vector<8x8x16xf32>
    "tpu.trace_stop"() : () -> ()
    %c2_154 = arith.constant 2 : index
    %c0_155 = arith.constant 0 : index
    %c0_156 = arith.constant 0 : index
    %c0_157 = arith.constant 0 : index
    %189 = vector.load %arg11[%c2_154, %c0_155, %c0_156, %c0_157] : memref<3x8x16x128xf32, #tpu.memory_space<vmem>>, vector<1x8x16x128xf32>
    %190 = vector.shape_cast %189 : vector<1x8x16x128xf32> to vector<8x16x128xf32>
    "tpu.trace_start"() <{level = 10 : i32, message = "hsf,hfd->hsd"}> : () -> ()
    %cst_158 = arith.constant dense<0.000000e+00> : vector<8x8x128xf32>
    %191 = tpu.matmul %188, %190, %cst_158 {dimension_numbers = #tpu.dot_dimension_numbers<[2], [1], [1], [2], [0, 0, 0, 1, 1, 2], [0], [0]>} : vector<8x8x16xf32>, vector<8x16x128xf32>, vector<8x8x128xf32> -> vector<8x8x128xf32>
    "tpu.trace_stop"() : () -> ()
    %cst_159 = arith.constant dense<0.000000e+00> : vector<8x128xf32>
    %192 = vector.multi_reduction <add>, %191, %cst_159 [0] : vector<8x8x128xf32> to vector<8x128xf32>
    %c2_160 = arith.constant 2 : index
    %c0_161 = arith.constant 0 : index
    %c0_162 = arith.constant 0 : index
    %193 = vector.load %arg12[%c2_160, %c0_161, %c0_162] : memref<3x1x128xf32, #tpu.memory_space<vmem>>, vector<1x1x128xf32>
    %194 = vector.shape_cast %193 : vector<1x1x128xf32> to vector<1x128xf32>
    %195 = vector.broadcast %194 : vector<1x128xf32> to vector<8x128xf32>
    %196 = arith.addf %192, %195 : vector<8x128xf32>
    %197 = arith.addf %146, %196 : vector<8x128xf32>
    %c2_163 = arith.constant 2 : index
    %c0_164 = arith.constant 0 : index
    %c0_165 = arith.constant 0 : index
    %198 = vector.load %arg13[%c2_163, %c0_164, %c0_165] : memref<3x128x256xf32, #tpu.memory_space<vmem>>, vector<1x128x256xf32>
    %199 = vector.shape_cast %198 : vector<1x128x256xf32> to vector<128x256xf32>
    %cst_166 = arith.constant dense<0.000000e+00> : vector<8x256xf32>
    %200 = tpu.matmul %197, %199, %cst_166 {dimension_numbers = #tpu.dot_dimension_numbers<[1], [0], [0], [1], [0, 0, 1, 1], [], []>} : vector<8x128xf32>, vector<128x256xf32>, vector<8x256xf32> -> vector<8x256xf32>
    %c2_167 = arith.constant 2 : index
    %c0_168 = arith.constant 0 : index
    %c0_169 = arith.constant 0 : index
    %201 = vector.load %arg14[%c2_167, %c0_168, %c0_169] : memref<3x1x256xf32, #tpu.memory_space<vmem>>, vector<1x1x256xf32>
    %202 = vector.shape_cast %201 : vector<1x1x256xf32> to vector<1x256xf32>
    %203 = vector.broadcast %202 : vector<1x256xf32> to vector<8x256xf32>
    %204 = arith.addf %200, %203 : vector<8x256xf32>
    %cst_170 = arith.constant 0.000000e+00 : f32
    %205 = vector.broadcast %cst_170 : f32 to vector<8x256xf32>
    %206 = arith.maximumf %204, %205 : vector<8x256xf32>
    %c2_171 = arith.constant 2 : index
    %c0_172 = arith.constant 0 : index
    %c0_173 = arith.constant 0 : index
    %207 = vector.load %arg15[%c2_171, %c0_172, %c0_173] : memref<3x256x128xf32, #tpu.memory_space<vmem>>, vector<1x256x128xf32>
    %208 = vector.shape_cast %207 : vector<1x256x128xf32> to vector<256x128xf32>
    %cst_174 = arith.constant dense<0.000000e+00> : vector<8x128xf32>
    %209 = tpu.matmul %206, %208, %cst_174 {dimension_numbers = #tpu.dot_dimension_numbers<[1], [0], [0], [1], [0, 0, 1, 1], [], []>} : vector<8x256xf32>, vector<256x128xf32>, vector<8x128xf32> -> vector<8x128xf32>
    %210 = arith.addf %197, %209 : vector<8x128xf32>
    %c2_175 = arith.constant 2 : index
    %c0_176 = arith.constant 0 : index
    %c0_177 = arith.constant 0 : index
    %211 = vector.load %arg16[%c2_175, %c0_176, %c0_177] : memref<3x1x128xf32, #tpu.memory_space<vmem>>, vector<1x1x128xf32>
    %212 = vector.shape_cast %211 : vector<1x1x128xf32> to vector<1x128xf32>
    %213 = vector.broadcast %212 : vector<1x128xf32> to vector<8x128xf32>
    %214 = arith.addf %210, %213 : vector<8x128xf32>
    %cst_178 = arith.constant dense<0.000000e+00> : vector<128xf32>
    %215 = vector.multi_reduction <add>, %214, %cst_178 [0] : vector<8x128xf32> to vector<128xf32>
    %216 = vector.shape_cast %215 : vector<128xf32> to vector<1x128xf32>
    %c0_179 = arith.constant 0 : index
    %c0_180 = arith.constant 0 : index
    %217 = vector.load %arg17[%c0_179, %c0_180] : memref<128x500xf32, #tpu.memory_space<vmem>>, vector<128x500xf32>
    %cst_181 = arith.constant dense<0.000000e+00> : vector<1x500xf32>
    %218 = tpu.matmul %216, %217, %cst_181 {dimension_numbers = #tpu.dot_dimension_numbers<[1], [0], [0], [1], [0, 0, 1, 1], [], []>} : vector<1x128xf32>, vector<128x500xf32>, vector<1x500xf32> -> vector<1x500xf32>
    %c0_182 = arith.constant 0 : index
    %c0_183 = arith.constant 0 : index
    %219 = vector.load %arg18[%c0_182, %c0_183] : memref<1x500xf32, #tpu.memory_space<vmem>>, vector<1x500xf32>
    %220 = arith.addf %218, %219 : vector<1x500xf32>
    %cst_184 = arith.constant 0.000000e+00 : f32
    %221 = vector.broadcast %cst_184 : f32 to vector<1x500xf32>
    %222 = arith.subf %221, %220 : vector<1x500xf32>
    %223 = math.exp %222 : vector<1x500xf32>
    %cst_185 = arith.constant 1.000000e+00 : f32
    %224 = vector.broadcast %cst_185 : f32 to vector<1x500xf32>
    %225 = arith.addf %224, %223 : vector<1x500xf32>
    %cst_186 = arith.constant 1.000000e+00 : f32
    %226 = vector.broadcast %cst_186 : f32 to vector<1x500xf32>
    %227 = arith.divf %226, %225 : vector<1x500xf32>
    %228 = arith.mulf %220, %227 : vector<1x500xf32>
    %c0_187 = arith.constant 0 : index
    %c0_188 = arith.constant 0 : index
    %229 = vector.load %arg19[%c0_187, %c0_188] : memref<500x500xf32, #tpu.memory_space<vmem>>, vector<500x500xf32>
    %cst_189 = arith.constant dense<0.000000e+00> : vector<1x500xf32>
    %230 = tpu.matmul %228, %229, %cst_189 {dimension_numbers = #tpu.dot_dimension_numbers<[1], [0], [0], [1], [0, 0, 1, 1], [], []>} : vector<1x500xf32>, vector<500x500xf32>, vector<1x500xf32> -> vector<1x500xf32>
    %c0_190 = arith.constant 0 : index
    %c0_191 = arith.constant 0 : index
    %231 = vector.load %arg20[%c0_190, %c0_191] : memref<1x500xf32, #tpu.memory_space<vmem>>, vector<1x500xf32>
    %232 = arith.addf %230, %231 : vector<1x500xf32>
    %cst_192 = arith.constant 0.000000e+00 : f32
    %233 = vector.broadcast %cst_192 : f32 to vector<1x500xf32>
    %234 = arith.subf %233, %232 : vector<1x500xf32>
    %235 = math.exp %234 : vector<1x500xf32>
    %cst_193 = arith.constant 1.000000e+00 : f32
    %236 = vector.broadcast %cst_193 : f32 to vector<1x500xf32>
    %237 = arith.addf %236, %235 : vector<1x500xf32>
    %cst_194 = arith.constant 1.000000e+00 : f32
    %238 = vector.broadcast %cst_194 : f32 to vector<1x500xf32>
    %239 = arith.divf %238, %237 : vector<1x500xf32>
    %240 = arith.mulf %232, %239 : vector<1x500xf32>
    %c0_195 = arith.constant 0 : index
    %c0_196 = arith.constant 0 : index
    %241 = vector.load %arg21[%c0_195, %c0_196] : memref<500x1xf32, #tpu.memory_space<vmem>>, vector<500x1xf32>
    %cst_197 = arith.constant dense<0.000000e+00> : vector<1x1xf32>
    %242 = tpu.matmul %240, %241, %cst_197 {dimension_numbers = #tpu.dot_dimension_numbers<[1], [0], [0], [1], [0, 0, 1, 1], [], []>} : vector<1x500xf32>, vector<500x1xf32>, vector<1x1xf32> -> vector<1x1xf32>
    %c0_198 = arith.constant 0 : index
    %c0_199 = arith.constant 0 : index
    %243 = vector.load %arg22[%c0_198, %c0_199] : memref<1x1xf32, #tpu.memory_space<vmem>>, vector<1x1xf32>
    %244 = arith.addf %242, %243 : vector<1x1xf32>
    %c0_200 = arith.constant 0 : index
    %c0_201 = arith.constant 0 : index
    %c0_202 = arith.constant 0 : index
    %245 = vector.load %arg23[%c0_200, %c0_201, %c0_202] : memref<1x1x1xf32, #tpu.memory_space<vmem>>, vector<1x1x1xf32>
    %246 = vector.shape_cast %245 : vector<1x1x1xf32> to vector<1x1xf32>
    %247 = vector.shape_cast %244 : vector<1x1xf32> to vector<1x1x1xf32>
    tpu.vector_store %arg23[%c0_200, %c0_201, %c0_202], %247 {strides = array<i32>} : memref<1x1x1xf32, #tpu.memory_space<vmem>>, vector<1x1x1xf32>,
    return
  }
  func.func @transform_0(%arg0: i32) -> (i32, i32, i32) {
    %c0_i32 = arith.constant 0 : i32
    %c0_i32_0 = arith.constant 0 : i32
    %c0_i32_1 = arith.constant 0 : i32
    return %arg0, %c0_i32, %c0_i32_0 : i32, i32, i32
  }
  func.func @transform_1(%arg0: i32) -> (i32, i32, i32) {
    %c0_i32 = arith.constant 0 : i32
    %c0_i32_0 = arith.constant 0 : i32
    %c0_i32_1 = arith.constant 0 : i32
    return %arg0, %c0_i32, %c0_i32_0 : i32, i32, i32
  }
  func.func @transform_2(%arg0: i32) -> (i32, i32) {
    %c0_i32 = arith.constant 0 : i32
    %c0_i32_0 = arith.constant 0 : i32
    %c0_i32_1 = arith.constant 0 : i32
    return %c0_i32, %c0_i32_0 : i32, i32
  }
  func.func @transform_3(%arg0: i32) -> (i32, i32) {
    %c0_i32 = arith.constant 0 : i32
    %c0_i32_0 = arith.constant 0 : i32
    %c0_i32_1 = arith.constant 0 : i32
    return %c0_i32, %c0_i32_0 : i32, i32
  }
  func.func @transform_4(%arg0: i32) -> (i32, i32, i32, i32) {
    %c0_i32 = arith.constant 0 : i32
    %c0_i32_0 = arith.constant 0 : i32
    %c0_i32_1 = arith.constant 0 : i32
    %c0_i32_2 = arith.constant 0 : i32
    %c0_i32_3 = arith.constant 0 : i32
    return %c0_i32, %c0_i32_0, %c0_i32_1, %c0_i32_2 : i32, i32, i32, i32
  }
  func.func @transform_5(%arg0: i32) -> (i32, i32, i32, i32) {
    %c0_i32 = arith.constant 0 : i32
    %c0_i32_0 = arith.constant 0 : i32
    %c0_i32_1 = arith.constant 0 : i32
    %c0_i32_2 = arith.constant 0 : i32
    %c0_i32_3 = arith.constant 0 : i32
    return %c0_i32, %c0_i32_0, %c0_i32_1, %c0_i32_2 : i32, i32, i32, i32
  }
  func.func @transform_6(%arg0: i32) -> (i32, i32, i32, i32) {
    %c0_i32 = arith.constant 0 : i32
    %c0_i32_0 = arith.constant 0 : i32
    %c0_i32_1 = arith.constant 0 : i32
    %c0_i32_2 = arith.constant 0 : i32
    %c0_i32_3 = arith.constant 0 : i32
    return %c0_i32, %c0_i32_0, %c0_i32_1, %c0_i32_2 : i32, i32, i32, i32
  }
  func.func @transform_7(%arg0: i32) -> (i32, i32, i32, i32) {
    %c0_i32 = arith.constant 0 : i32
    %c0_i32_0 = arith.constant 0 : i32
    %c0_i32_1 = arith.constant 0 : i32
    %c0_i32_2 = arith.constant 0 : i32
    %c0_i32_3 = arith.constant 0 : i32
    return %c0_i32, %c0_i32_0, %c0_i32_1, %c0_i32_2 : i32, i32, i32, i32
  }
  func.func @transform_8(%arg0: i32) -> (i32, i32, i32, i32) {
    %c0_i32 = arith.constant 0 : i32
    %c0_i32_0 = arith.constant 0 : i32
    %c0_i32_1 = arith.constant 0 : i32
    %c0_i32_2 = arith.constant 0 : i32
    %c0_i32_3 = arith.constant 0 : i32
    return %c0_i32, %c0_i32_0, %c0_i32_1, %c0_i32_2 : i32, i32, i32, i32
  }
  func.func @transform_9(%arg0: i32) -> (i32, i32, i32, i32) {
    %c0_i32 = arith.constant 0 : i32
    %c0_i32_0 = arith.constant 0 : i32
    %c0_i32_1 = arith.constant 0 : i32
    %c0_i32_2 = arith.constant 0 : i32
    %c0_i32_3 = arith.constant 0 : i32
    return %c0_i32, %c0_i32_0, %c0_i32_1, %c0_i32_2 : i32, i32, i32, i32
  }
  func.func @transform_10(%arg0: i32) -> (i32, i32, i32, i32) {
    %c0_i32 = arith.constant 0 : i32
    %c0_i32_0 = arith.constant 0 : i32
    %c0_i32_1 = arith.constant 0 : i32
    %c0_i32_2 = arith.constant 0 : i32
    %c0_i32_3 = arith.constant 0 : i32
    return %c0_i32, %c0_i32_0, %c0_i32_1, %c0_i32_2 : i32, i32, i32, i32
  }
  func.func @transform_11(%arg0: i32) -> (i32, i32, i32) {
    %c0_i32 = arith.constant 0 : i32
    %c0_i32_0 = arith.constant 0 : i32
    %c0_i32_1 = arith.constant 0 : i32
    %c0_i32_2 = arith.constant 0 : i32
    return %c0_i32, %c0_i32_0, %c0_i32_1 : i32, i32, i32
  }
  func.func @transform_12(%arg0: i32) -> (i32, i32, i32) {
    %c0_i32 = arith.constant 0 : i32
    %c0_i32_0 = arith.constant 0 : i32
    %c0_i32_1 = arith.constant 0 : i32
    %c0_i32_2 = arith.constant 0 : i32
    return %c0_i32, %c0_i32_0, %c0_i32_1 : i32, i32, i32
  }
  func.func @transform_13(%arg0: i32) -> (i32, i32, i32) {
    %c0_i32 = arith.constant 0 : i32
    %c0_i32_0 = arith.constant 0 : i32
    %c0_i32_1 = arith.constant 0 : i32
    %c0_i32_2 = arith.constant 0 : i32
    return %c0_i32, %c0_i32_0, %c0_i32_1 : i32, i32, i32
  }
  func.func @transform_14(%arg0: i32) -> (i32, i32, i32) {
    %c0_i32 = arith.constant 0 : i32
    %c0_i32_0 = arith.constant 0 : i32
    %c0_i32_1 = arith.constant 0 : i32
    %c0_i32_2 = arith.constant 0 : i32
    return %c0_i32, %c0_i32_0, %c0_i32_1 : i32, i32, i32
  }
  func.func @transform_15(%arg0: i32) -> (i32, i32, i32) {
    %c0_i32 = arith.constant 0 : i32
    %c0_i32_0 = arith.constant 0 : i32
    %c0_i32_1 = arith.constant 0 : i32
    %c0_i32_2 = arith.constant 0 : i32
    return %c0_i32, %c0_i32_0, %c0_i32_1 : i32, i32, i32
  }
  func.func @transform_16(%arg0: i32) -> (i32, i32) {
    %c0_i32 = arith.constant 0 : i32
    %c0_i32_0 = arith.constant 0 : i32
    %c0_i32_1 = arith.constant 0 : i32
    return %c0_i32, %c0_i32_0 : i32, i32
  }
  func.func @transform_17(%arg0: i32) -> (i32, i32) {
    %c0_i32 = arith.constant 0 : i32
    %c0_i32_0 = arith.constant 0 : i32
    %c0_i32_1 = arith.constant 0 : i32
    return %c0_i32, %c0_i32_0 : i32, i32
  }
  func.func @transform_18(%arg0: i32) -> (i32, i32) {
    %c0_i32 = arith.constant 0 : i32
    %c0_i32_0 = arith.constant 0 : i32
    %c0_i32_1 = arith.constant 0 : i32
    return %c0_i32, %c0_i32_0 : i32, i32
  }
  func.func @transform_19(%arg0: i32) -> (i32, i32) {
    %c0_i32 = arith.constant 0 : i32
    %c0_i32_0 = arith.constant 0 : i32
    %c0_i32_1 = arith.constant 0 : i32
    return %c0_i32, %c0_i32_0 : i32, i32
  }
  func.func @transform_20(%arg0: i32) -> (i32, i32) {
    %c0_i32 = arith.constant 0 : i32
    %c0_i32_0 = arith.constant 0 : i32
    %c0_i32_1 = arith.constant 0 : i32
    return %c0_i32, %c0_i32_0 : i32, i32
  }
  func.func @transform_21(%arg0: i32) -> (i32, i32) {
    %c0_i32 = arith.constant 0 : i32
    %c0_i32_0 = arith.constant 0 : i32
    %c0_i32_1 = arith.constant 0 : i32
    return %c0_i32, %c0_i32_0 : i32, i32
  }
  func.func @transform_22(%arg0: i32) -> (i32, i32, i32) {
    %c0_i32 = arith.constant 0 : i32
    %c0_i32_0 = arith.constant 0 : i32
    %c0_i32_1 = arith.constant 0 : i32
    return %arg0, %c0_i32, %c0_i32_0 : i32, i32, i32
  }
}

</mosaic_0001>

<bundles_post_ra>
// kernel: transformer_forward_pallas.1
= control target key start
LH: loop header
LB: loop body
LE: loop exit
PB: predicated region body
PF: predicated region fallthrough
CT: control target
= control target key end

     0   :  { %s9123_s29 = smov 0   ;;  %s15220_s0 = inlined_call_operand.vmem [shape: f32[2,8,3], index: 0, kind: input, shape index: {}]   ;;  %s15221_s1 = inlined_call_operand.vmem [shape: s32[2,8,8], index: 1, kind: input, shape index: {}]   ;;  %s15222_s2 = inlined_call_operand.vmem [shape: f32[3,128], index: 2, kind: input, shape index: {}]   ;;  %s15223_s3 = inlined_call_operand.vmem [shape: f32[1,128], index: 3, kind: input, shape index: {}]   ;;  %s15224_s4 = inlined_call_operand.vmem [shape: f32[3,8,128,16], index: 4, kind: input, shape index: {}]   ;;  %s15225_s5 = inlined_call_operand.vmem [shape: f32[3,8,1,16], index: 5, kind: input, shape index: {}]   ;;  %s15226_s6 = inlined_call_operand.vmem [shape: f32[3,8,128,16], index: 6, kind: input, shape index: {}]   ;;  %s15227_s7 = inlined_call_operand.vmem [shape: f32[3,8,1,16], index: 7, kind: input, shape index: {}]   ;;  %s15228_s8 = inlined_call_operand.vmem [shape: f32[3,8,128,16], index: 8, kind: input, shape index: {}]   ;;  %s15229_s9 = inlined_call_operand.vmem [shape: f32[3,8,1,16], index: 9, kind: input, shape index: {}]   ;;  %s15230_s10 = inlined_call_operand.vmem [shape: f32[3,8,16,128], index: 10, kind: input, shape index: {}]   ;;  %s15231_s11 = inlined_call_operand.vmem [shape: f32[3,1,128], index: 11, kind: input, shape index: {}]   ;;  %s15232_s12 = inlined_call_operand.vmem [shape: f32[3,128,256], index: 12, kind: input, shape index: {}]   ;;  %s15233_s13 = inlined_call_operand.vmem [shape: f32[3,1,256], index: 13, kind: input, shape index: {}]   ;;  %s15234_s14 = inlined_call_operand.vmem [shape: f32[3,256,128], index: 14, kind: input, shape index: {}]   ;;  %s15235_s15 = inlined_call_operand.vmem [shape: f32[3,1,128], index: 15, kind: input, shape index: {}]   ;;  %s15236_s16 = inlined_call_operand.vmem [shape: f32[128,500], index: 16, kind: input, shape index: {}]   ;;  %s15237_s17 = inlined_call_operand.vmem [shape: f32[1,500], index: 17, kind: input, shape index: {}]   ;;  %s15238_s18 = inlined_call_operand.vmem [shape: f32[500,500], index: 18, kind: input, shape index: {}]   ;;  %s15239_s19 = inlined_call_operand.vmem [shape: f32[1,500], index: 19, kind: input, shape index: {}]   ;;  %s15240_s20 = inlined_call_operand.vmem [shape: f32[500,1], index: 20, kind: input, shape index: {}]   ;;  %s15241_s21 = inlined_call_operand.<no memory space> [shape: f32[1,1], index: 21, kind: input, shape index: {}]   ;;  %s15242_s22 = inlined_call_operand.vmem [shape: f32[2,1,1], index: 22, kind: output, shape index: {}]  }
   0x1   :  { %15246 = sst [smem:[#allocation3_spill]] %s15220_s0  ;;  %v27_v0 = vstv %s15241_s21 }
   0x2   :  { %15247 = sst [smem:[#allocation4_spill]] %s15221_s1  ;;  %28 = vst [vmem:[#allocation2] sm:$0x1] %v27_v0 }
   0x3   :  { %15248 = sst [smem:[#allocation5_spill]] %s15222_s2 }
   0x4   :  { %15249 = sst [smem:[#allocation6_spill]] %s15223_s3 }
   0x5   :  { %15250 = sst [smem:[#allocation7_spill]] %s15224_s4 }
   0x6   :  { %15251 = sst [smem:[#allocation8_spill]] %s15225_s5 }
   0x7   :  { %15252 = sst [smem:[#allocation9_spill]] %s15226_s6 }
   0x8 LB: > { %s7683_s30 = sadd.s32 4294967295, %s9003_s29   ;;  %p7687_p0 = scmp.ge.s32.totalorder %s9003_s29, 1  ;;  %s9003_s29 = sphi %s9123_s29, %s34_s29  }
   0x9   : > { %p622_p1 = scmp.lt.s32.totalorder %s9003_s29, 3 }
   0xb   : > { %p623_p2 = pnand %p7687_p0, %p622_p1 }
   0xc   : > { %s15253_s23 = sld [smem:[#allocation5_spill]] (!%p623_p2)  ;;  %p685_p3 = scmp.lt.s32.totalorder (!%p623_p2), %s7683_s30, 1 }
   0xd   : > { %626 = sbr.rel (%p623_p2) target bundleno = 4151 (0x1037), region = 108  ;;  %s15254_s5 = sld [smem:[#allocation7_spill]] (!%p623_p2) }
   0xe   : > { %s15255_s1 = sld [smem:[#allocation3_spill]] (!%p623_p2) }
   0xf   : > { %s15256_s4 = sld [smem:[#allocation6_spill]] (!%p623_p2) }
  0x10   : > { %s15257_s21 = sld [smem:[#allocation9_spill]] (!%p623_p2) }
  0x11   : > { %s15259_s26 = sld [smem:[#allocation4_spill]] (!%p623_p2) }
  0x12   : > { %v699_v1 = vld [vmem:[%s15253_s23] sm:$0x7]  ;;  %vm708_vm0 = vcmask 1042432   ;;  %s15261_s30 = smov (!%p685_p3, %s7683_s30), 1  ;;  %vm704_vm1 = vcmask 23552   ;;  %s15258_s23 = sld [smem:[#allocation8_spill]] }
  0x13   : > { %v747_v2 = vld [vmem:[%s15254_s5 + $0x78] sm:$0xff]  ;;  %7690 = vmatpush.msk.msra.mxu0 %vm708_vm0, %v699_v1  ;;  %v746_v6 = vld [vmem:[%s15254_s5 + $0x70] sm:$0xff]  ;;  %v745_v10 = vld [vmem:[%s15254_s5 + $0x68] sm:$0xff]  ;;  %s7688_s27 = sshll.u32 %s15261_s30, 3  ;;  %vm1692_vm2 = vcmask 130048   ;;  %vm1919_vm4 = vcmask 64512   ;;  %s695_s3 = scalar_lea.vmem %s15242_s22, %s15261_s30 }
  0x14   : > { %892 = vmatpush.msra.mxu1 %v747_v2  ;;  %v763_v3 = vld [vmem:[%s15254_s5 + $0xf8] sm:$0xff]  ;;  %v762_v7 = vld [vmem:[%s15254_s5 + $0xf0] sm:$0xff]  ;;  %v761_v11 = vld [vmem:[%s15254_s5 + $0xe8] sm:$0xff]  ;;  %s688_s24 = scalar_lea.vmem %s15255_s1, %s7688_s27 }
  0x15   : > { %v779_v4 = vld [vmem:[%s15254_s5 + $0x178] sm:$0xff]  ;;  %912 = vmatpush.msra.mxu2 %v763_v3  ;;  %v778_v8 = vld [vmem:[%s15254_s5 + $0x170] sm:$0xff]  ;;  %v777_v12 = vld [vmem:[%s15254_s5 + $0x168] sm:$0xff] }
  0x16   : > { %v795_v5 = vld [vmem:[%s15254_s5 + $0x1f8] sm:$0xff]  ;;  %932 = vmatpush.msra.mxu3 %v779_v4  ;;  %893 = vmatpush.msra.mxu1 %v746_v6  ;;  %v794_v9 = vld [vmem:[%s15254_s5 + $0x1f0] sm:$0xff]  ;;  %v744_v13 = vld [vmem:[%s15254_s5 + $0x60] sm:$0xff] }
  0x17   : > { %952 = vmatpush.msrb.mxu0 %v795_v5  ;;  %913 = vmatpush.msra.mxu2 %v762_v7  ;;  %v793_v14 = vld [vmem:[%s15254_s5 + $0x1e8] sm:$0xff]  ;;  %v760_v15 = vld [vmem:[%s15254_s5 + $0xe0] sm:$0xff]  ;;  %v743_v18 = vld [vmem:[%s15254_s5 + $0x58] sm:$0xff]  ;;  %s692_s2 = scalar_lea.vmem %s15259_s26, %s7688_s27 }
  0x18   : > { %933 = vmatpush.msra.mxu3 %v778_v8  ;;  %894 = vmatpush.msra.mxu1 %v745_v10  ;;  %v696_v16 = vld [vmem:[%s688_s24] sm:$0xff]  ;;  %v759_v20 = vld [vmem:[%s15254_s5 + $0xd8] sm:$0xff]  ;;  %v742_v22 = vld [vmem:[%s15254_s5 + $0x50] sm:$0xff] }
  0x19   : > { %953 = vmatpush.msrb.mxu0 %v794_v9  ;;  %914 = vmatpush.msra.mxu2 %v761_v11  ;;  %v776_v17 = vld [vmem:[%s15254_s5 + $0x160] sm:$0xff]  ;;  %v775_v21 = vld [vmem:[%s15254_s5 + $0x158] sm:$0xff]  ;;  %v758_v24 = vld [vmem:[%s15254_s5 + $0xd0] sm:$0xff] }
  0x1a   : > { %934 = vmatpush.msra.mxu3 %v777_v12  ;;  %7691 = vmatmul.msk.f32.vlgmr.msra.gmra.mxu0 %vm704_vm1, %v696_v16  ;;  %v792_v19 = vld [vmem:[%s15254_s5 + $0x1e0] sm:$0xff]  ;;  %v791_v23 = vld [vmem:[%s15254_s5 + $0x1d8] sm:$0xff]  ;;  %v774_v25 = vld [vmem:[%s15254_s5 + $0x150] sm:$0xff] }
  0x1b   : > { %895 = vmatpush.msra.mxu1 %v744_v13  ;;  %954 = vmatpush.msrb.mxu0 %v793_v14  ;;  %v741_v26 = vld [vmem:[%s15254_s5 + $0x48] sm:$0xff]  ;;  %v790_v27 = vld [vmem:[%s15254_s5 + $0x1d0] sm:$0xff]  ;;  %v740_v30 = vld [vmem:[%s15254_s5 + $0x40] sm:$0xff] }
  0x1c   : > { %915 = vmatpush.msra.mxu2 %v760_v15  ;;  %935 = vmatpush.msra.mxu3 %v776_v17  ;;  %v757_v28 = vld [vmem:[%s15254_s5 + $0xc8] sm:$0xff]  ;;  %v756_v32 = vld [vmem:[%s15254_s5 + $0xc0] sm:$0xff]  ;;  %v739_v34 = vld [vmem:[%s15254_s5 + $0x38] sm:$0xff] }
  0x1d   : > { %896 = vmatpush.msra.mxu1 %v743_v18  ;;  %955 = vmatpush.msrb.mxu0 %v792_v19  ;;  %v773_v29 = vld [vmem:[%s15254_s5 + $0x148] sm:$0xff]  ;;  %v772_v33 = vld [vmem:[%s15254_s5 + $0x140] sm:$0xff]  ;;  %v755_v36 = vld [vmem:[%s15254_s5 + $0xb8] sm:$0xff] }
  0x1e   : > { %916 = vmatpush.msra.mxu2 %v759_v20  ;;  %936 = vmatpush.msra.mxu3 %v775_v21  ;;  %v789_v31 = vld [vmem:[%s15254_s5 + $0x1c8] sm:$0xff]  ;;  %v788_v35 = vld [vmem:[%s15254_s5 + $0x1c0] sm:$0xff]  ;;  %v771_v37 = vld [vmem:[%s15254_s5 + $0x138] sm:$0xff] }
  0x1f   : > { %897 = vmatpush.msra.mxu1 %v742_v22  ;;  %956 = vmatpush.msrb.mxu0 %v791_v23  ;;  %v738_v38 = vld [vmem:[%s15254_s5 + $0x30] sm:$0xff]  ;;  %v787_v39 = vld [vmem:[%s15254_s5 + $0x1b8] sm:$0xff]  ;;  %v737_v42 = vld [vmem:[%s15254_s5 + $0x28] sm:$0xff] }
  0x20   : > { %917 = vmatpush.msra.mxu2 %v758_v24  ;;  %937 = vmatpush.msra.mxu3 %v774_v25  ;;  %v754_v40 = vld [vmem:[%s15254_s5 + $0xb0] sm:$0xff]  ;;  %v753_v44 = vld [vmem:[%s15254_s5 + $0xa8] sm:$0xff]  ;;  %v736_v46 = vld [vmem:[%s15254_s5 + $0x20] sm:$0xff] }
  0x21   : > { %898 = vmatpush.msra.mxu1 %v741_v26  ;;  %957 = vmatpush.msrb.mxu0 %v790_v27  ;;  %v770_v41 = vld [vmem:[%s15254_s5 + $0x130] sm:$0xff]  ;;  %v769_v45 = vld [vmem:[%s15254_s5 + $0x128] sm:$0xff]  ;;  %v752_v48 = vld [vmem:[%s15254_s5 + $0xa0] sm:$0xff] }
  0x22   : > { %918 = vmatpush.msra.mxu2 %v757_v28  ;;  %938 = vmatpush.msra.mxu3 %v773_v29  ;;  %v786_v43 = vld [vmem:[%s15254_s5 + $0x1b0] sm:$0xff]  ;;  %v785_v47 = vld [vmem:[%s15254_s5 + $0x1a8] sm:$0xff]  ;;  %v768_v49 = vld [vmem:[%s15254_s5 + $0x120] sm:$0xff] }
  0x23   : > { %899 = vmatpush.msra.mxu1 %v740_v30  ;;  %958 = vmatpush.msrb.mxu0 %v789_v31  ;;  %v735_v50 = vld [vmem:[%s15254_s5 + $0x18] sm:$0xff]  ;;  %v784_v51 = vld [vmem:[%s15254_s5 + $0x1a0] sm:$0xff]  ;;  %v734_v54 = vld [vmem:[%s15254_s5 + $0x10] sm:$0xff] }
  0x24   : > { %919 = vmatpush.msra.mxu2 %v756_v32  ;;  %939 = vmatpush.msra.mxu3 %v772_v33  ;;  %v751_v52 = vld [vmem:[%s15254_s5 + $0x98] sm:$0xff]  ;;  %v750_v56 = vld [vmem:[%s15254_s5 + $0x90] sm:$0xff]  ;;  %v733_v58 = vld [vmem:[%s15254_s5 + $0x8] sm:$0xff] }
  0x25   : > { %900 = vmatpush.msra.mxu1 %v739_v34  ;;  %959 = vmatpush.msrb.mxu0 %v788_v35  ;;  %v767_v53 = vld [vmem:[%s15254_s5 + $0x118] sm:$0xff]  ;;  %v766_v57 = vld [vmem:[%s15254_s5 + $0x110] sm:$0xff]  ;;  %v749_v60 = vld [vmem:[%s15254_s5 + $0x88] sm:$0xff] }
  0x26   : > { %920 = vmatpush.msra.mxu2 %v755_v36  ;;  %940 = vmatpush.msra.mxu3 %v771_v37  ;;  %v783_v55 = vld [vmem:[%s15254_s5 + $0x198] sm:$0xff]  ;;  %v782_v59 = vld [vmem:[%s15254_s5 + $0x190] sm:$0xff]  ;;  %v765_v61 = vld [vmem:[%s15254_s5 + $0x108] sm:$0xff] }
  0x27   : > { %901 = vmatpush.msra.mxu1 %v738_v38  ;;  %960 = vmatpush.msrb.mxu0 %v787_v39  ;;  %v732_v62 = vld [vmem:[%s15254_s5] sm:$0xff]  ;;  %v781_v63 = vld [vmem:[%s15254_s5 + $0x188] sm:$0xff]  ;;  %v811_v2 = vld [vmem:[%s15254_s5 + $0x278] sm:$0xff] }
  0x28   : > { %921 = vmatpush.msra.mxu2 %v754_v40  ;;  %941 = vmatpush.msra.mxu3 %v770_v41  ;;  %v748_v0 = vld [vmem:[%s15254_s5 + $0x80] sm:$0xff]  ;;  %v827_v4 = vld [vmem:[%s15254_s5 + $0x2f8] sm:$0xff]  ;;  %v810_v7 = vld [vmem:[%s15254_s5 + $0x270] sm:$0xff] }
  0x29   : > { %902 = vmatpush.msra.mxu1 %v737_v42  ;;  %961 = vmatpush.msrb.mxu0 %v786_v43  ;;  %v764_v1 = vld [vmem:[%s15254_s5 + $0x100] sm:$0xff]  ;;  %v843_v5 = vld [vmem:[%s15254_s5 + $0x378] sm:$0xff]  ;;  %v826_v8 = vld [vmem:[%s15254_s5 + $0x2f0] sm:$0xff] }
  0x2a   : > { %922 = vmatpush.msra.mxu2 %v753_v44  ;;  %942 = vmatpush.msra.mxu3 %v769_v45  ;;  %v780_v3 = vld [vmem:[%s15254_s5 + $0x180] sm:$0xff]  ;;  %v859_v6 = vld [vmem:[%s15254_s5 + $0x3f8] sm:$0xff]  ;;  %v842_v9 = vld [vmem:[%s15254_s5 + $0x370] sm:$0xff] }
  0x2b   : > { %903 = vmatpush.msra.mxu1 %v736_v46  ;;  %962 = vmatpush.msrb.mxu0 %v785_v47  ;;  %v858_v10 = vld [vmem:[%s15254_s5 + $0x3f0] sm:$0xff]  ;;  %v809_v11 = vld [vmem:[%s15254_s5 + $0x268] sm:$0xff]  ;;  %v808_v15 = vld [vmem:[%s15254_s5 + $0x260] sm:$0xff] }
  0x2c   : > { %923 = vmatpush.msra.mxu2 %v752_v48  ;;  %943 = vmatpush.msra.mxu3 %v768_v49  ;;  %v825_v12 = vld [vmem:[%s15254_s5 + $0x2e8] sm:$0xff]  ;;  %v824_v16 = vld [vmem:[%s15254_s5 + $0x2e0] sm:$0xff]  ;;  %v807_v19 = vld [vmem:[%s15254_s5 + $0x258] sm:$0xff] }
  0x2d   : > { %904 = vmatpush.msra.mxu1 %v735_v50  ;;  %963 = vmatpush.msrb.mxu0 %v784_v51  ;;  %v841_v13 = vld [vmem:[%s15254_s5 + $0x368] sm:$0xff]  ;;  %v840_v17 = vld [vmem:[%s15254_s5 + $0x360] sm:$0xff]  ;;  %v823_v20 = vld [vmem:[%s15254_s5 + $0x2d8] sm:$0xff] }
  0x2e   : > { %924 = vmatpush.msra.mxu2 %v751_v52  ;;  %944 = vmatpush.msra.mxu3 %v767_v53  ;;  %v857_v14 = vld [vmem:[%s15254_s5 + $0x3e8] sm:$0xff]  ;;  %v856_v18 = vld [vmem:[%s15254_s5 + $0x3e0] sm:$0xff]  ;;  %v839_v21 = vld [vmem:[%s15254_s5 + $0x358] sm:$0xff] }
  0x2f   : > { %905 = vmatpush.msra.mxu1 %v734_v54  ;;  %964 = vmatpush.msrb.mxu0 %v783_v55  ;;  %v855_v22 = vld [vmem:[%s15254_s5 + $0x3d8] sm:$0xff]  ;;  %v806_v23 = vld [vmem:[%s15254_s5 + $0x250] sm:$0xff]  ;;  %v805_v27 = vld [vmem:[%s15254_s5 + $0x248] sm:$0xff] }
  0x30   : > { %925 = vmatpush.msra.mxu2 %v750_v56  ;;  %945 = vmatpush.msra.mxu3 %v766_v57  ;;  %v822_v24 = vld [vmem:[%s15254_s5 + $0x2d0] sm:$0xff]  ;;  %v821_v28 = vld [vmem:[%s15254_s5 + $0x2c8] sm:$0xff]  ;;  %v804_v31 = vld [vmem:[%s15254_s5 + $0x240] sm:$0xff] }
  0x31   : > { %906 = vmatpush.msra.mxu1 %v733_v58  ;;  %965 = vmatpush.msrb.mxu0 %v782_v59  ;;  %v838_v25 = vld [vmem:[%s15254_s5 + $0x350] sm:$0xff]  ;;  %v837_v29 = vld [vmem:[%s15254_s5 + $0x348] sm:$0xff]  ;;  %v820_v32 = vld [vmem:[%s15254_s5 + $0x2c0] sm:$0xff] }
  0x32   : > { %926 = vmatpush.msra.mxu2 %v749_v60  ;;  %946 = vmatpush.msra.mxu3 %v765_v61  ;;  %v854_v26 = vld [vmem:[%s15254_s5 + $0x3d0] sm:$0xff]  ;;  %v853_v30 = vld [vmem:[%s15254_s5 + $0x3c8] sm:$0xff]  ;;  %v836_v33 = vld [vmem:[%s15254_s5 + $0x340] sm:$0xff] }
  0x33   : > { %907 = vmatpush.msra.mxu1 %v732_v62  ;;  %966 = vmatpush.msrb.mxu0 %v781_v63  ;;  %v852_v34 = vld [vmem:[%s15254_s5 + $0x3c0] sm:$0xff]  ;;  %v803_v35 = vld [vmem:[%s15254_s5 + $0x238] sm:$0xff]  ;;  %v802_v39 = vld [vmem:[%s15254_s5 + $0x230] sm:$0xff] }
  0x34   : > { %927 = vmatpush.msra.mxu2 %v748_v0  ;;  %947 = vmatpush.msra.mxu3 %v764_v1  ;;  %v819_v36 = vld [vmem:[%s15254_s5 + $0x2b8] sm:$0xff]  ;;  %v818_v40 = vld [vmem:[%s15254_s5 + $0x2b0] sm:$0xff]  ;;  %v801_v43 = vld [vmem:[%s15254_s5 + $0x228] sm:$0xff] }
  0x35   : > { %972 = vmatpush.msrb.mxu1 %v811_v2  ;;  %967 = vmatpush.msrb.mxu0 %v780_v3  ;;  %v835_v37 = vld [vmem:[%s15254_s5 + $0x338] sm:$0xff]  ;;  %v834_v41 = vld [vmem:[%s15254_s5 + $0x330] sm:$0xff]  ;;  %v817_v44 = vld [vmem:[%s15254_s5 + $0x2a8] sm:$0xff] }
  0x36   : > { %992 = vmatpush.msrb.mxu2 %v827_v4  ;;  %1012 = vmatpush.msrb.mxu3 %v843_v5  ;;  %v851_v38 = vld [vmem:[%s15254_s5 + $0x3b8] sm:$0xff]  ;;  %v850_v42 = vld [vmem:[%s15254_s5 + $0x3b0] sm:$0xff]  ;;  %v833_v45 = vld [vmem:[%s15254_s5 + $0x328] sm:$0xff] }
  0x37   : > { %1032 = vmatpush.msra.mxu0 %v859_v6  ;;  %973 = vmatpush.msrb.mxu1 %v810_v7  ;;  %v849_v46 = vld [vmem:[%s15254_s5 + $0x3a8] sm:$0xff]  ;;  %v800_v47 = vld [vmem:[%s15254_s5 + $0x220] sm:$0xff]  ;;  %v799_v51 = vld [vmem:[%s15254_s5 + $0x218] sm:$0xff] }
  0x38   : > { %993 = vmatpush.msrb.mxu2 %v826_v8  ;;  %1013 = vmatpush.msrb.mxu3 %v842_v9  ;;  %v816_v48 = vld [vmem:[%s15254_s5 + $0x2a0] sm:$0xff]  ;;  %v815_v52 = vld [vmem:[%s15254_s5 + $0x298] sm:$0xff]  ;;  %v798_v55 = vld [vmem:[%s15254_s5 + $0x210] sm:$0xff] }
  0x39   : > { %1033 = vmatpush.msra.mxu0 %v858_v10  ;;  %974 = vmatpush.msrb.mxu1 %v809_v11  ;;  %v832_v49 = vld [vmem:[%s15254_s5 + $0x320] sm:$0xff]  ;;  %v831_v53 = vld [vmem:[%s15254_s5 + $0x318] sm:$0xff]  ;;  %v814_v56 = vld [vmem:[%s15254_s5 + $0x290] sm:$0xff] }
  0x3a   : > { %994 = vmatpush.msrb.mxu2 %v825_v12  ;;  %1014 = vmatpush.msrb.mxu3 %v841_v13  ;;  %v848_v50 = vld [vmem:[%s15254_s5 + $0x3a0] sm:$0xff]  ;;  %v847_v54 = vld [vmem:[%s15254_s5 + $0x398] sm:$0xff]  ;;  %v830_v57 = vld [vmem:[%s15254_s5 + $0x310] sm:$0xff] }
  0x3b   : > { %1034 = vmatpush.msra.mxu0 %v857_v14  ;;  %975 = vmatpush.msrb.mxu1 %v808_v15  ;;  %v846_v58 = vld [vmem:[%s15254_s5 + $0x390] sm:$0xff]  ;;  %v797_v59 = vld [vmem:[%s15254_s5 + $0x208] sm:$0xff]  ;;  %v796_v63 = vld [vmem:[%s15254_s5 + $0x200] sm:$0xff] }
  0x3c   : > { %995 = vmatpush.msrb.mxu2 %v824_v16  ;;  %1015 = vmatpush.msrb.mxu3 %v840_v17  ;;  %v813_v60 = vld [vmem:[%s15254_s5 + $0x288] sm:$0xff]  ;;  %v812_v0 = vld [vmem:[%s15254_s5 + $0x280] sm:$0xff]  ;;  %v1067_v6 = vld [vmem:[%s15257_s21 + $0x78] sm:$0xff] }
  0x3d   : > { %1035 = vmatpush.msra.mxu0 %v856_v18  ;;  %976 = vmatpush.msrb.mxu1 %v807_v19  ;;  %v829_v61 = vld [vmem:[%s15254_s5 + $0x308] sm:$0xff]  ;;  %v828_v1 = vld [vmem:[%s15254_s5 + $0x300] sm:$0xff]  ;;  %v1083_v7 = vld [vmem:[%s15257_s21 + $0xf8] sm:$0xff] }
  0x3e   : > { %996 = vmatpush.msrb.mxu2 %v823_v20  ;;  %1016 = vmatpush.msrb.mxu3 %v839_v21  ;;  %v845_v62 = vld [vmem:[%s15254_s5 + $0x388] sm:$0xff]  ;;  %v844_v2 = vld [vmem:[%s15254_s5 + $0x380] sm:$0xff]  ;;  %v1099_v8 = vld [vmem:[%s15257_s21 + $0x178] sm:$0xff] }
  0x3f   : > { %1036 = vmatpush.msra.mxu0 %v855_v22  ;;  %977 = vmatpush.msrb.mxu1 %v806_v23  ;;  %v8790_v3 = vld [vmem:[%s15256_s4] ss:$0 sm:$0xff]  ;;  %v1115_v9 = vld [vmem:[%s15257_s21 + $0x1f8] sm:$0xff]  ;;  %v1066_v10 = vld [vmem:[%s15257_s21 + $0x70] sm:$0xff] }
  0x40   : > { %997 = vmatpush.msrb.mxu2 %v822_v24  ;;  %1017 = vmatpush.msrb.mxu3 %v838_v25  ;;  %v1082_v11 = vld [vmem:[%s15257_s21 + $0xf0] sm:$0xff]  ;;  %v1065_v14 = vld [vmem:[%s15257_s21 + $0x68] sm:$0xff]  ;;  %v1064_v18 = vld [vmem:[%s15257_s21 + $0x60] sm:$0xff] }
  0x41   : > { %1037 = vmatpush.msra.mxu0 %v854_v26  ;;  %978 = vmatpush.msrb.mxu1 %v805_v27  ;;  %v1098_v12 = vld [vmem:[%s15257_s21 + $0x170] sm:$0xff]  ;;  %v1081_v15 = vld [vmem:[%s15257_s21 + $0xe8] sm:$0xff]  ;;  %v1080_v19 = vld [vmem:[%s15257_s21 + $0xe0] sm:$0xff] }
  0x42   : > { %998 = vmatpush.msrb.mxu2 %v821_v28  ;;  %1018 = vmatpush.msrb.mxu3 %v837_v29  ;;  %v1114_v13 = vld [vmem:[%s15257_s21 + $0x1f0] sm:$0xff]  ;;  %v1097_v16 = vld [vmem:[%s15257_s21 + $0x168] sm:$0xff]  ;;  %v1096_v20 = vld [vmem:[%s15257_s21 + $0x160] sm:$0xff] }
  0x43   : > { %1038 = vmatpush.msra.mxu0 %v853_v30  ;;  %979 = vmatpush.msrb.mxu1 %v804_v31  ;;  %v1113_v17 = vld [vmem:[%s15257_s21 + $0x1e8] sm:$0xff]  ;;  %v1112_v21 = vld [vmem:[%s15257_s21 + $0x1e0] sm:$0xff]  ;;  %v1063_v22 = vld [vmem:[%s15257_s21 + $0x58] sm:$0xff] }
  0x44   : > { %999 = vmatpush.msrb.mxu2 %v820_v32  ;;  %1019 = vmatpush.msrb.mxu3 %v836_v33  ;;  %v1079_v23 = vld [vmem:[%s15257_s21 + $0xd8] sm:$0xff]  ;;  %v1062_v26 = vld [vmem:[%s15257_s21 + $0x50] sm:$0xff]  ;;  %v1061_v30 = vld [vmem:[%s15257_s21 + $0x48] sm:$0xff] }
  0x45   : > { %1039 = vmatpush.msra.mxu0 %v852_v34  ;;  %980 = vmatpush.msrb.mxu1 %v803_v35  ;;  %v1095_v24 = vld [vmem:[%s15257_s21 + $0x158] sm:$0xff]  ;;  %v1078_v27 = vld [vmem:[%s15257_s21 + $0xd0] sm:$0xff]  ;;  %v1077_v31 = vld [vmem:[%s15257_s21 + $0xc8] sm:$0xff] }
  0x46   : > { %1000 = vmatpush.msrb.mxu2 %v819_v36  ;;  %1020 = vmatpush.msrb.mxu3 %v835_v37  ;;  %v1111_v25 = vld [vmem:[%s15257_s21 + $0x1d8] sm:$0xff]  ;;  %v1094_v28 = vld [vmem:[%s15257_s21 + $0x150] sm:$0xff]  ;;  %v1093_v32 = vld [vmem:[%s15257_s21 + $0x148] sm:$0xff] }
  0x47   : > { %1040 = vmatpush.msra.mxu0 %v851_v38  ;;  %981 = vmatpush.msrb.mxu1 %v802_v39  ;;  %v1110_v29 = vld [vmem:[%s15257_s21 + $0x1d0] sm:$0xff]  ;;  %v1109_v33 = vld [vmem:[%s15257_s21 + $0x1c8] sm:$0xff]  ;;  %v1060_v34 = vld [vmem:[%s15257_s21 + $0x40] sm:$0xff] }
  0x48   : > { %1001 = vmatpush.msrb.mxu2 %v818_v40  ;;  %1021 = vmatpush.msrb.mxu3 %v834_v41  ;;  %v1076_v35 = vld [vmem:[%s15257_s21 + $0xc0] sm:$0xff]  ;;  %v1059_v38 = vld [vmem:[%s15257_s21 + $0x38] sm:$0xff] }
  0x49   : > { %1041 = vmatpush.msra.mxu0 %v850_v42  ;;  %982 = vmatpush.msrb.mxu1 %v801_v43  ;;  %v1092_v36 = vld [vmem:[%s15257_s21 + $0x140] sm:$0xff]  ;;  %v1075_v39 = vld [vmem:[%s15257_s21 + $0xb8] sm:$0xff]  ;;  %v1058_v42 = vld [vmem:[%s15257_s21 + $0x30] sm:$0xff] }
  0x4a   : > { %1002 = vmatpush.msrb.mxu2 %v817_v44  ;;  %1022 = vmatpush.msrb.mxu3 %v833_v45  ;;  %v1108_v37 = vld [vmem:[%s15257_s21 + $0x1c0] sm:$0xff]  ;;  %v1091_v40 = vld [vmem:[%s15257_s21 + $0x138] sm:$0xff]  ;;  %v1074_v43 = vld [vmem:[%s15257_s21 + $0xb0] sm:$0xff] }
  0x4b   : > { %1042 = vmatpush.msra.mxu0 %v849_v46  ;;  %983 = vmatpush.msrb.mxu1 %v800_v47  ;;  %v1107_v41 = vld [vmem:[%s15257_s21 + $0x1b8] sm:$0xff]  ;;  %v1090_v44 = vld [vmem:[%s15257_s21 + $0x130] sm:$0xff]  ;;  %v1057_v46 = vld [vmem:[%s15257_s21 + $0x28] sm:$0xff] }
  0x4c   : > { %1003 = vmatpush.msrb.mxu2 %v816_v48  ;;  %1023 = vmatpush.msrb.mxu3 %v832_v49  ;;  %v1106_v45 = vld [vmem:[%s15257_s21 + $0x1b0] sm:$0xff]  ;;  %v1073_v47 = vld [vmem:[%s15257_s21 + $0xa8] sm:$0xff] }
  0x4d   : > { %1043 = vmatpush.msra.mxu0 %v848_v50  ;;  %984 = vmatpush.msrb.mxu1 %v799_v51  ;;  %v1089_v48 = vld [vmem:[%s15257_s21 + $0x128] sm:$0xff]  ;;  %v1056_v50 = vld [vmem:[%s15257_s21 + $0x20] sm:$0xff] }
  0x4e   : > { %1004 = vmatpush.msrb.mxu2 %v815_v52  ;;  %1024 = vmatpush.msrb.mxu3 %v831_v53  ;;  %v1105_v49 = vld [vmem:[%s15257_s21 + $0x1a8] sm:$0xff]  ;;  %v1072_v51 = vld [vmem:[%s15257_s21 + $0xa0] sm:$0xff] }
  0x4f   : > { %1044 = vmatpush.msra.mxu0 %v847_v54  ;;  %985 = vmatpush.msrb.mxu1 %v798_v55  ;;  %v1088_v52 = vld [vmem:[%s15257_s21 + $0x120] sm:$0xff]  ;;  %v1055_v54 = vld [vmem:[%s15257_s21 + $0x18] sm:$0xff] }
  0x50   : > { %1005 = vmatpush.msrb.mxu2 %v814_v56  ;;  %1025 = vmatpush.msrb.mxu3 %v830_v57  ;;  %v1104_v53 = vld [vmem:[%s15257_s21 + $0x1a0] sm:$0xff]  ;;  %v1071_v55 = vld [vmem:[%s15257_s21 + $0x98] sm:$0xff] }
  0x51   : > { %1045 = vmatpush.msra.mxu0 %v846_v58  ;;  %986 = vmatpush.msrb.mxu1 %v797_v59  ;;  %v1087_v56 = vld [vmem:[%s15257_s21 + $0x118] sm:$0xff]  ;;  %v1054_v58 = vld [vmem:[%s15257_s21 + $0x10] sm:$0xff] }
  0x52   : > { %1006 = vmatpush.msrb.mxu2 %v813_v60  ;;  %1026 = vmatpush.msrb.mxu3 %v829_v61  ;;  %v1103_v57 = vld [vmem:[%s15257_s21 + $0x198] sm:$0xff]  ;;  %v1070_v59 = vld [vmem:[%s15257_s21 + $0x90] sm:$0xff] }
  0x53   : > { %1046 = vmatpush.msra.mxu0 %v845_v62  ;;  %987 = vmatpush.msrb.mxu1 %v796_v63  ;;  %v1086_v60 = vld [vmem:[%s15257_s21 + $0x110] sm:$0xff]  ;;  %v1053_v62 = vld [vmem:[%s15257_s21 + $0x8] sm:$0xff] }
  0x54   : > { %1007 = vmatpush.msrb.mxu2 %v812_v0  ;;  %1027 = vmatpush.msrb.mxu3 %v828_v1  ;;  %v1102_v61 = vld [vmem:[%s15257_s21 + $0x190] sm:$0xff]  ;;  %v1069_v63 = vld [vmem:[%s15257_s21 + $0x88] sm:$0xff] }
  0x55   : > { %1047 = vmatpush.msra.mxu0 %v844_v2  ;;  %v1085_v0 = vld [vmem:[%s15257_s21 + $0x108] sm:$0xff]  ;;  %v1052_v2 = vld [vmem:[%s15257_s21] sm:$0xff] }
  0x56   : > { %v1101_v1 = vld [vmem:[%s15257_s21 + $0x188] sm:$0xff] }
  0x97   : > { %v729_v4 = vpop.f32.mrf.mxu0 }
  0x98   : > { %v9529_v5 = vadd.f32 %v8790_v3, %v729_v4  ;;  %v1068_v3 = vld [vmem:[%s15257_s21 + $0x80] sm:$0xff] }
  0x99   : > { %v1084_v4 = vld [vmem:[%s15257_s21 + $0x100] sm:$0xff] }
  0x9a   : > { %908 = vmatmul.f32.vlgmr.msra.gmra.mxu1 %v9529_v5  ;;  %928 = vmatmul.f32.vlgmr.msra.gmra.mxu2 %v9529_v5 }
  0x9b   : > { %948 = vmatmul.f32.vlgmr.msra.gmra.mxu3 %v9529_v5  ;;  %968 = vmatmul.f32.vlgmr.msrb.gmra.mxu0 %v9529_v5 }
  0x9c   : > { %1212 = vmatpush.msra.mxu1 %v1067_v6  ;;  %1232 = vmatpush.msra.mxu2 %v1083_v7  ;;  %v1100_v6 = vld [vmem:[%s15257_s21 + $0x180] sm:$0xff]  ;;  %v1131_v7 = vld [vmem:[%s15257_s21 + $0x278] sm:$0xff] }
  0x9d   : > { %1252 = vmatpush.msra.mxu3 %v1099_v8  ;;  %1272 = vmatpush.msrb.mxu0 %v1115_v9  ;;  %v1147_v8 = vld [vmem:[%s15257_s21 + $0x2f8] sm:$0xff] }
  0x9e   : > { %1213 = vmatpush.msra.mxu1 %v1066_v10  ;;  %1233 = vmatpush.msra.mxu2 %v1082_v11  ;;  %v1163_v9 = vld [vmem:[%s15257_s21 + $0x378] sm:$0xff]  ;;  %v1130_v11 = vld [vmem:[%s15257_s21 + $0x270] sm:$0xff] }
  0x9f   : > { %1253 = vmatpush.msra.mxu3 %v1098_v12  ;;  %1273 = vmatpush.msrb.mxu0 %v1114_v13  ;;  %v1179_v10 = vld [vmem:[%s15257_s21 + $0x3f8] sm:$0xff]  ;;  %v1146_v12 = vld [vmem:[%s15257_s21 + $0x2f0] sm:$0xff] }
  0xa0   : > { %1214 = vmatpush.msra.mxu1 %v1065_v14  ;;  %1234 = vmatpush.msra.mxu2 %v1081_v15  ;;  %v1162_v13 = vld [vmem:[%s15257_s21 + $0x370] sm:$0xff]  ;;  %v1129_v15 = vld [vmem:[%s15257_s21 + $0x268] sm:$0xff] }
  0xa1   : > { %1254 = vmatpush.msra.mxu3 %v1097_v16  ;;  %1274 = vmatpush.msrb.mxu0 %v1113_v17  ;;  %v1178_v14 = vld [vmem:[%s15257_s21 + $0x3f0] sm:$0xff]  ;;  %v1145_v16 = vld [vmem:[%s15257_s21 + $0x2e8] sm:$0xff] }
  0xa2   : > { %1215 = vmatpush.msra.mxu1 %v1064_v18  ;;  %1235 = vmatpush.msra.mxu2 %v1080_v19  ;;  %v1161_v17 = vld [vmem:[%s15257_s21 + $0x368] sm:$0xff]  ;;  %v1128_v19 = vld [vmem:[%s15257_s21 + $0x260] sm:$0xff] }
  0xa3   : > { %1255 = vmatpush.msra.mxu3 %v1096_v20  ;;  %1275 = vmatpush.msrb.mxu0 %v1112_v21  ;;  %v1177_v18 = vld [vmem:[%s15257_s21 + $0x3e8] sm:$0xff]  ;;  %v1144_v20 = vld [vmem:[%s15257_s21 + $0x2e0] sm:$0xff] }
  0xa4   : > { %988 = vmatmul.f32.vlgmr.msrb.gmra.mxu1 %v9529_v5  ;;  %1008 = vmatmul.f32.vlgmr.msrb.gmra.mxu2 %v9529_v5  ;;  %v1160_v21 = vld [vmem:[%s15257_s21 + $0x360] sm:$0xff] }
  0xa5   : > { %1028 = vmatmul.f32.vlgmr.msrb.gmra.mxu3 %v9529_v5  ;;  %1048 = vmatmul.f32.vlgmr.msra.gmra.mxu0 %v9529_v5 }
  0xa6   : > { %1216 = vmatpush.msra.mxu1 %v1063_v22  ;;  %1236 = vmatpush.msra.mxu2 %v1079_v23  ;;  %v1176_v22 = vld [vmem:[%s15257_s21 + $0x3e0] sm:$0xff]  ;;  %v1127_v23 = vld [vmem:[%s15257_s21 + $0x258] sm:$0xff] }
  0xa7   : > { %1256 = vmatpush.msra.mxu3 %v1095_v24  ;;  %1276 = vmatpush.msrb.mxu0 %v1111_v25  ;;  %v1143_v24 = vld [vmem:[%s15257_s21 + $0x2d8] sm:$0xff] }
  0xa8   : > { %1217 = vmatpush.msra.mxu1 %v1062_v26  ;;  %1237 = vmatpush.msra.mxu2 %v1078_v27  ;;  %v1159_v25 = vld [vmem:[%s15257_s21 + $0x358] sm:$0xff]  ;;  %v1126_v27 = vld [vmem:[%s15257_s21 + $0x250] sm:$0xff] }
  0xa9   : > { %1257 = vmatpush.msra.mxu3 %v1094_v28  ;;  %1277 = vmatpush.msrb.mxu0 %v1110_v29  ;;  %v1175_v26 = vld [vmem:[%s15257_s21 + $0x3d8] sm:$0xff]  ;;  %v1142_v28 = vld [vmem:[%s15257_s21 + $0x2d0] sm:$0xff] }
  0xaa   : > { %1218 = vmatpush.msra.mxu1 %v1061_v30  ;;  %1238 = vmatpush.msra.mxu2 %v1077_v31  ;;  %v1158_v29 = vld [vmem:[%s15257_s21 + $0x350] sm:$0xff]  ;;  %v1125_v31 = vld [vmem:[%s15257_s21 + $0x248] sm:$0xff] }
  0xab   : > { %1258 = vmatpush.msra.mxu3 %v1093_v32  ;;  %1278 = vmatpush.msrb.mxu0 %v1109_v33  ;;  %v1174_v30 = vld [vmem:[%s15257_s21 + $0x3d0] sm:$0xff]  ;;  %v1141_v32 = vld [vmem:[%s15257_s21 + $0x2c8] sm:$0xff] }
  0xac   : > { %1219 = vmatpush.msra.mxu1 %v1060_v34  ;;  %1239 = vmatpush.msra.mxu2 %v1076_v35  ;;  %v1157_v33 = vld [vmem:[%s15257_s21 + $0x348] sm:$0xff]  ;;  %v1124_v35 = vld [vmem:[%s15257_s21 + $0x240] sm:$0xff] }
  0xad   : > { %1259 = vmatpush.msra.mxu3 %v1092_v36  ;;  %1279 = vmatpush.msrb.mxu0 %v1108_v37  ;;  %v1173_v34 = vld [vmem:[%s15257_s21 + $0x3c8] sm:$0xff]  ;;  %v1140_v36 = vld [vmem:[%s15257_s21 + $0x2c0] sm:$0xff] }
  0xae   : > { %1220 = vmatpush.msra.mxu1 %v1059_v38  ;;  %1240 = vmatpush.msra.mxu2 %v1075_v39  ;;  %v1156_v37 = vld [vmem:[%s15257_s21 + $0x340] sm:$0xff]  ;;  %v1123_v39 = vld [vmem:[%s15257_s21 + $0x238] sm:$0xff] }
  0xaf   : > { %1260 = vmatpush.msra.mxu3 %v1091_v40  ;;  %1280 = vmatpush.msrb.mxu0 %v1107_v41  ;;  %v1172_v38 = vld [vmem:[%s15257_s21 + $0x3c0] sm:$0xff]  ;;  %v1139_v40 = vld [vmem:[%s15257_s21 + $0x2b8] sm:$0xff] }
  0xb0   : > { %1221 = vmatpush.msra.mxu1 %v1058_v42  ;;  %1241 = vmatpush.msra.mxu2 %v1074_v43  ;;  %v1155_v41 = vld [vmem:[%s15257_s21 + $0x338] sm:$0xff]  ;;  %v1122_v43 = vld [vmem:[%s15257_s21 + $0x230] sm:$0xff] }
  0xb1   : > { %1261 = vmatpush.msra.mxu3 %v1090_v44  ;;  %1281 = vmatpush.msrb.mxu0 %v1106_v45  ;;  %v1171_v42 = vld [vmem:[%s15257_s21 + $0x3b8] sm:$0xff]  ;;  %v1138_v44 = vld [vmem:[%s15257_s21 + $0x2b0] sm:$0xff] }
  0xb2   : > { %1222 = vmatpush.msra.mxu1 %v1057_v46  ;;  %1242 = vmatpush.msra.mxu2 %v1073_v47  ;;  %v1154_v45 = vld [vmem:[%s15257_s21 + $0x330] sm:$0xff]  ;;  %v1121_v47 = vld [vmem:[%s15257_s21 + $0x228] sm:$0xff] }
  0xb3   : > { %1262 = vmatpush.msra.mxu3 %v1089_v48  ;;  %1282 = vmatpush.msrb.mxu0 %v1105_v49  ;;  %v1170_v46 = vld [vmem:[%s15257_s21 + $0x3b0] sm:$0xff]  ;;  %v1137_v48 = vld [vmem:[%s15257_s21 + $0x2a8] sm:$0xff] }
  0xb4   : > { %1223 = vmatpush.msra.mxu1 %v1056_v50  ;;  %1243 = vmatpush.msra.mxu2 %v1072_v51  ;;  %v1153_v49 = vld [vmem:[%s15257_s21 + $0x328] sm:$0xff]  ;;  %v1120_v51 = vld [vmem:[%s15257_s21 + $0x220] sm:$0xff] }
  0xb5   : > { %1263 = vmatpush.msra.mxu3 %v1088_v52  ;;  %1283 = vmatpush.msrb.mxu0 %v1104_v53  ;;  %v1169_v50 = vld [vmem:[%s15257_s21 + $0x3a8] sm:$0xff]  ;;  %v1136_v52 = vld [vmem:[%s15257_s21 + $0x2a0] sm:$0xff] }
  0xb6   : > { %1224 = vmatpush.msra.mxu1 %v1055_v54  ;;  %1244 = vmatpush.msra.mxu2 %v1071_v55  ;;  %v1152_v53 = vld [vmem:[%s15257_s21 + $0x320] sm:$0xff]  ;;  %v1119_v55 = vld [vmem:[%s15257_s21 + $0x218] sm:$0xff] }
  0xb7   : > { %1264 = vmatpush.msra.mxu3 %v1087_v56  ;;  %1284 = vmatpush.msrb.mxu0 %v1103_v57  ;;  %v1168_v54 = vld [vmem:[%s15257_s21 + $0x3a0] sm:$0xff]  ;;  %v1135_v56 = vld [vmem:[%s15257_s21 + $0x298] sm:$0xff] }
  0xb8   : > { %1225 = vmatpush.msra.mxu1 %v1054_v58  ;;  %1245 = vmatpush.msra.mxu2 %v1070_v59  ;;  %v1151_v57 = vld [vmem:[%s15257_s21 + $0x318] sm:$0xff]  ;;  %v1118_v59 = vld [vmem:[%s15257_s21 + $0x210] sm:$0xff] }
  0xb9   : > { %1265 = vmatpush.msra.mxu3 %v1086_v60  ;;  %1285 = vmatpush.msrb.mxu0 %v1102_v61  ;;  %v1167_v58 = vld [vmem:[%s15257_s21 + $0x398] sm:$0xff]  ;;  %v1134_v60 = vld [vmem:[%s15257_s21 + $0x290] sm:$0xff] }
  0xba   : > { %1226 = vmatpush.msra.mxu1 %v1053_v62  ;;  %1246 = vmatpush.msra.mxu2 %v1069_v63  ;;  %v1150_v61 = vld [vmem:[%s15257_s21 + $0x310] sm:$0xff]  ;;  %v1117_v63 = vld [vmem:[%s15257_s21 + $0x208] sm:$0xff] }
  0xbb   : > { %1266 = vmatpush.msra.mxu3 %v1085_v0  ;;  %1286 = vmatpush.msrb.mxu0 %v1101_v1  ;;  %v1166_v62 = vld [vmem:[%s15257_s21 + $0x390] sm:$0xff]  ;;  %v1133_v0 = vld [vmem:[%s15257_s21 + $0x288] sm:$0xff] }
  0xbc   : > { %1227 = vmatpush.msra.mxu1 %v1052_v2  ;;  %1247 = vmatpush.msra.mxu2 %v1068_v3  ;;  %v1149_v1 = vld [vmem:[%s15257_s21 + $0x308] sm:$0xff]  ;;  %v1116_v3 = vld [vmem:[%s15257_s21 + $0x200] sm:$0xff] }
  0xbd   : > { %1267 = vmatpush.msra.mxu3 %v1084_v4  ;;  %1287 = vmatpush.msrb.mxu0 %v1100_v6  ;;  %v1165_v2 = vld [vmem:[%s15257_s21 + $0x388] sm:$0xff]  ;;  %v1132_v4 = vld [vmem:[%s15257_s21 + $0x280] sm:$0xff] }
  0xbe   : > { %1228 = vmatmul.f32.vlgmr.msra.gmra.mxu1 %v9529_v5  ;;  %1248 = vmatmul.f32.vlgmr.msra.gmra.mxu2 %v9529_v5  ;;  %v1148_v6 = vld [vmem:[%s15257_s21 + $0x300] sm:$0xff] }
  0xbf   : > { %1268 = vmatmul.f32.vlgmr.msra.gmra.mxu3 %v9529_v5  ;;  %1288 = vmatmul.f32.vlgmr.msrb.gmra.mxu0 %v9529_v5 }
  0xc0   : > { %1292 = vmatpush.msrb.mxu1 %v1131_v7  ;;  %1312 = vmatpush.msrb.mxu2 %v1147_v8  ;;  %v1164_v7 = vld [vmem:[%s15257_s21 + $0x380] sm:$0xff]  ;;  %v1387_v8 = vld [vmem:[%s15228_s8 + $0x78] sm:$0xff] }
  0xc1   : > { %1332 = vmatpush.msrb.mxu3 %v1163_v9  ;;  %1352 = vmatpush.msra.mxu0 %v1179_v10  ;;  %v1403_v9 = vld [vmem:[%s15228_s8 + $0xf8] sm:$0xff] }
  0xc2   : > { %1293 = vmatpush.msrb.mxu1 %v1130_v11  ;;  %1313 = vmatpush.msrb.mxu2 %v1146_v12  ;;  %v1419_v10 = vld [vmem:[%s15228_s8 + $0x178] sm:$0xff]  ;;  %v1386_v12 = vld [vmem:[%s15228_s8 + $0x70] sm:$0xff] }
  0xc3   : > { %1333 = vmatpush.msrb.mxu3 %v1162_v13  ;;  %1353 = vmatpush.msra.mxu0 %v1178_v14  ;;  %v1435_v11 = vld [vmem:[%s15228_s8 + $0x1f8] sm:$0xff]  ;;  %v1402_v13 = vld [vmem:[%s15228_s8 + $0xf0] sm:$0xff] }
  0xc4   : > { %1294 = vmatpush.msrb.mxu1 %v1129_v15  ;;  %1314 = vmatpush.msrb.mxu2 %v1145_v16  ;;  %v1418_v14 = vld [vmem:[%s15228_s8 + $0x170] sm:$0xff]  ;;  %v1385_v16 = vld [vmem:[%s15228_s8 + $0x68] sm:$0xff] }
  0xc5   : > { %1334 = vmatpush.msrb.mxu3 %v1161_v17  ;;  %1354 = vmatpush.msra.mxu0 %v1177_v18  ;;  %v1434_v15 = vld [vmem:[%s15228_s8 + $0x1f0] sm:$0xff]  ;;  %v1401_v17 = vld [vmem:[%s15228_s8 + $0xe8] sm:$0xff] }
  0xc6   : > { %1295 = vmatpush.msrb.mxu1 %v1128_v19  ;;  %1315 = vmatpush.msrb.mxu2 %v1144_v20  ;;  %v1417_v18 = vld [vmem:[%s15228_s8 + $0x168] sm:$0xff]  ;;  %v1384_v20 = vld [vmem:[%s15228_s8 + $0x60] sm:$0xff] }
  0xc7   : > { %1335 = vmatpush.msrb.mxu3 %v1160_v21  ;;  %1355 = vmatpush.msra.mxu0 %v1176_v22  ;;  %v1433_v19 = vld [vmem:[%s15228_s8 + $0x1e8] sm:$0xff]  ;;  %v1400_v21 = vld [vmem:[%s15228_s8 + $0xe0] sm:$0xff] }
  0xc8   : > { %1296 = vmatpush.msrb.mxu1 %v1127_v23  ;;  %1316 = vmatpush.msrb.mxu2 %v1143_v24  ;;  %v1416_v22 = vld [vmem:[%s15228_s8 + $0x160] sm:$0xff]  ;;  %v1383_v24 = vld [vmem:[%s15228_s8 + $0x58] sm:$0xff] }
  0xc9   : > { %1336 = vmatpush.msrb.mxu3 %v1159_v25  ;;  %1356 = vmatpush.msra.mxu0 %v1175_v26  ;;  %v1432_v23 = vld [vmem:[%s15228_s8 + $0x1e0] sm:$0xff]  ;;  %v1399_v25 = vld [vmem:[%s15228_s8 + $0xd8] sm:$0xff] }
  0xca   : > { %1297 = vmatpush.msrb.mxu1 %v1126_v27  ;;  %1317 = vmatpush.msrb.mxu2 %v1142_v28  ;;  %v1415_v26 = vld [vmem:[%s15228_s8 + $0x158] sm:$0xff]  ;;  %v1382_v28 = vld [vmem:[%s15228_s8 + $0x50] sm:$0xff] }
  0xcb   : > { %1337 = vmatpush.msrb.mxu3 %v1158_v29  ;;  %1357 = vmatpush.msra.mxu0 %v1174_v30  ;;  %v1431_v27 = vld [vmem:[%s15228_s8 + $0x1d8] sm:$0xff]  ;;  %v1398_v29 = vld [vmem:[%s15228_s8 + $0xd0] sm:$0xff] }
  0xcc   : > { %1298 = vmatpush.msrb.mxu1 %v1125_v31  ;;  %1318 = vmatpush.msrb.mxu2 %v1141_v32  ;;  %v1414_v30 = vld [vmem:[%s15228_s8 + $0x150] sm:$0xff]  ;;  %v1381_v32 = vld [vmem:[%s15228_s8 + $0x48] sm:$0xff] }
  0xcd   : > { %1338 = vmatpush.msrb.mxu3 %v1157_v33  ;;  %1358 = vmatpush.msra.mxu0 %v1173_v34  ;;  %v1430_v31 = vld [vmem:[%s15228_s8 + $0x1d0] sm:$0xff]  ;;  %v1397_v33 = vld [vmem:[%s15228_s8 + $0xc8] sm:$0xff] }
  0xce   : > { %1299 = vmatpush.msrb.mxu1 %v1124_v35  ;;  %1319 = vmatpush.msrb.mxu2 %v1140_v36  ;;  %v1413_v34 = vld [vmem:[%s15228_s8 + $0x148] sm:$0xff]  ;;  %v1380_v36 = vld [vmem:[%s15228_s8 + $0x40] sm:$0xff] }
  0xcf   : > { %1339 = vmatpush.msrb.mxu3 %v1156_v37  ;;  %1359 = vmatpush.msra.mxu0 %v1172_v38  ;;  %v1429_v35 = vld [vmem:[%s15228_s8 + $0x1c8] sm:$0xff]  ;;  %v1396_v37 = vld [vmem:[%s15228_s8 + $0xc0] sm:$0xff] }
  0xd0   : > { %1300 = vmatpush.msrb.mxu1 %v1123_v39  ;;  %1320 = vmatpush.msrb.mxu2 %v1139_v40  ;;  %v1412_v38 = vld [vmem:[%s15228_s8 + $0x140] sm:$0xff]  ;;  %v1379_v40 = vld [vmem:[%s15228_s8 + $0x38] sm:$0xff] }
  0xd1   : > { %1340 = vmatpush.msrb.mxu3 %v1155_v41  ;;  %1360 = vmatpush.msra.mxu0 %v1171_v42  ;;  %v1428_v39 = vld [vmem:[%s15228_s8 + $0x1c0] sm:$0xff]  ;;  %v1395_v41 = vld [vmem:[%s15228_s8 + $0xb8] sm:$0xff] }
  0xd2   : > { %1301 = vmatpush.msrb.mxu1 %v1122_v43  ;;  %1321 = vmatpush.msrb.mxu2 %v1138_v44  ;;  %v1411_v42 = vld [vmem:[%s15228_s8 + $0x138] sm:$0xff]  ;;  %v1378_v44 = vld [vmem:[%s15228_s8 + $0x30] sm:$0xff] }
  0xd3   : > { %1341 = vmatpush.msrb.mxu3 %v1154_v45  ;;  %1361 = vmatpush.msra.mxu0 %v1170_v46  ;;  %v1427_v43 = vld [vmem:[%s15228_s8 + $0x1b8] sm:$0xff]  ;;  %v1394_v45 = vld [vmem:[%s15228_s8 + $0xb0] sm:$0xff] }
  0xd4   : > { %1302 = vmatpush.msrb.mxu1 %v1121_v47  ;;  %1322 = vmatpush.msrb.mxu2 %v1137_v48  ;;  %v1410_v46 = vld [vmem:[%s15228_s8 + $0x130] sm:$0xff]  ;;  %v1377_v48 = vld [vmem:[%s15228_s8 + $0x28] sm:$0xff] }
  0xd5   : > { %1342 = vmatpush.msrb.mxu3 %v1153_v49  ;;  %1362 = vmatpush.msra.mxu0 %v1169_v50  ;;  %v1426_v47 = vld [vmem:[%s15228_s8 + $0x1b0] sm:$0xff]  ;;  %v1393_v49 = vld [vmem:[%s15228_s8 + $0xa8] sm:$0xff] }
  0xd6   : > { %1303 = vmatpush.msrb.mxu1 %v1120_v51  ;;  %1323 = vmatpush.msrb.mxu2 %v1136_v52  ;;  %v1409_v50 = vld [vmem:[%s15228_s8 + $0x128] sm:$0xff]  ;;  %v1376_v52 = vld [vmem:[%s15228_s8 + $0x20] sm:$0xff] }
  0xd7   : > { %1343 = vmatpush.msrb.mxu3 %v1152_v53  ;;  %1363 = vmatpush.msra.mxu0 %v1168_v54  ;;  %v1425_v51 = vld [vmem:[%s15228_s8 + $0x1a8] sm:$0xff]  ;;  %v1392_v53 = vld [vmem:[%s15228_s8 + $0xa0] sm:$0xff] }
  0xd8   : > { %1304 = vmatpush.msrb.mxu1 %v1119_v55  ;;  %1324 = vmatpush.msrb.mxu2 %v1135_v56  ;;  %v1408_v54 = vld [vmem:[%s15228_s8 + $0x120] sm:$0xff]  ;;  %v1375_v56 = vld [vmem:[%s15228_s8 + $0x18] sm:$0xff] }
  0xd9   : > { %1344 = vmatpush.msrb.mxu3 %v1151_v57  ;;  %1364 = vmatpush.msra.mxu0 %v1167_v58  ;;  %v1424_v55 = vld [vmem:[%s15228_s8 + $0x1a0] sm:$0xff]  ;;  %v1391_v57 = vld [vmem:[%s15228_s8 + $0x98] sm:$0xff] }
  0xda   : > { %1305 = vmatpush.msrb.mxu1 %v1118_v59  ;;  %1325 = vmatpush.msrb.mxu2 %v1134_v60  ;;  %v1407_v58 = vld [vmem:[%s15228_s8 + $0x118] sm:$0xff]  ;;  %v1374_v60 = vld [vmem:[%s15228_s8 + $0x10] sm:$0xff] }
  0xdb   : > { %1345 = vmatpush.msrb.mxu3 %v1150_v61  ;;  %1365 = vmatpush.msra.mxu0 %v1166_v62  ;;  %v1423_v59 = vld [vmem:[%s15228_s8 + $0x198] sm:$0xff]  ;;  %v1390_v61 = vld [vmem:[%s15228_s8 + $0x90] sm:$0xff] }
  0xdc   : > { %1306 = vmatpush.msrb.mxu1 %v1117_v63  ;;  %1326 = vmatpush.msrb.mxu2 %v1133_v0  ;;  %v1406_v62 = vld [vmem:[%s15228_s8 + $0x110] sm:$0xff]  ;;  %v1373_v0 = vld [vmem:[%s15228_s8 + $0x8] sm:$0xff] }
  0xdd   : > { %1346 = vmatpush.msrb.mxu3 %v1149_v1  ;;  %1366 = vmatpush.msra.mxu0 %v1165_v2  ;;  %v1422_v63 = vld [vmem:[%s15228_s8 + $0x190] sm:$0xff]  ;;  %v1389_v1 = vld [vmem:[%s15228_s8 + $0x88] sm:$0xff] }
  0xde   : > { %1307 = vmatpush.msrb.mxu1 %v1116_v3  ;;  %1327 = vmatpush.msrb.mxu2 %v1132_v4  ;;  %v1405_v2 = vld [vmem:[%s15228_s8 + $0x108] sm:$0xff]  ;;  %v1372_v4 = vld [vmem:[%s15228_s8] sm:$0xff] }
  0xdf   : > { %1347 = vmatpush.msrb.mxu3 %v1148_v6  ;;  %1367 = vmatpush.msra.mxu0 %v1164_v7  ;;  %v1421_v3 = vld [vmem:[%s15228_s8 + $0x188] sm:$0xff]  ;;  %v1388_v6 = vld [vmem:[%s15228_s8 + $0x80] sm:$0xff] }
  0xe0   : > { %1308 = vmatmul.f32.vlgmr.msrb.gmra.mxu1 %v9529_v5  ;;  %1328 = vmatmul.f32.vlgmr.msrb.gmra.mxu2 %v9529_v5  ;;  %v1404_v7 = vld [vmem:[%s15228_s8 + $0x100] sm:$0xff] }
  0xe1   : > { %1348 = vmatmul.f32.vlgmr.msrb.gmra.mxu3 %v9529_v5  ;;  %1368 = vmatmul.f32.vlgmr.msra.gmra.mxu0 %v9529_v5 }
  0xe2   : > { %1532 = vmatpush.msra.mxu1 %v1387_v8  ;;  %1552 = vmatpush.msra.mxu2 %v1403_v9  ;;  %v1420_v8 = vld [vmem:[%s15228_s8 + $0x180] sm:$0xff]  ;;  %v1451_v9 = vld [vmem:[%s15228_s8 + $0x278] sm:$0xff] }
  0xe3   : > { %1572 = vmatpush.msra.mxu3 %v1419_v10  ;;  %1592 = vmatpush.msrb.mxu0 %v1435_v11  ;;  %v1467_v10 = vld [vmem:[%s15228_s8 + $0x2f8] sm:$0xff] }
  0xe4   : > { %1533 = vmatpush.msra.mxu1 %v1386_v12  ;;  %1553 = vmatpush.msra.mxu2 %v1402_v13  ;;  %v1483_v11 = vld [vmem:[%s15228_s8 + $0x378] sm:$0xff]  ;;  %v1450_v13 = vld [vmem:[%s15228_s8 + $0x270] sm:$0xff] }
  0xe5   : > { %1573 = vmatpush.msra.mxu3 %v1418_v14  ;;  %1593 = vmatpush.msrb.mxu0 %v1434_v15  ;;  %v1499_v12 = vld [vmem:[%s15228_s8 + $0x3f8] sm:$0xff]  ;;  %v1466_v14 = vld [vmem:[%s15228_s8 + $0x2f0] sm:$0xff] }
  0xe6   : > { %1534 = vmatpush.msra.mxu1 %v1385_v16  ;;  %1554 = vmatpush.msra.mxu2 %v1401_v17  ;;  %v1482_v15 = vld [vmem:[%s15228_s8 + $0x370] sm:$0xff]  ;;  %v1449_v17 = vld [vmem:[%s15228_s8 + $0x268] sm:$0xff] }
  0xe7   : > { %1574 = vmatpush.msra.mxu3 %v1417_v18  ;;  %1594 = vmatpush.msrb.mxu0 %v1433_v19  ;;  %v1498_v16 = vld [vmem:[%s15228_s8 + $0x3f0] sm:$0xff]  ;;  %v1465_v18 = vld [vmem:[%s15228_s8 + $0x2e8] sm:$0xff] }
  0xe8   : > { %1535 = vmatpush.msra.mxu1 %v1384_v20  ;;  %1555 = vmatpush.msra.mxu2 %v1400_v21  ;;  %v1481_v19 = vld [vmem:[%s15228_s8 + $0x368] sm:$0xff]  ;;  %v1448_v21 = vld [vmem:[%s15228_s8 + $0x260] sm:$0xff] }
  0xe9   : > { %1575 = vmatpush.msra.mxu3 %v1416_v22  ;;  %1595 = vmatpush.msrb.mxu0 %v1432_v23  ;;  %v1497_v20 = vld [vmem:[%s15228_s8 + $0x3e8] sm:$0xff]  ;;  %v1464_v22 = vld [vmem:[%s15228_s8 + $0x2e0] sm:$0xff] }
  0xea   : > { %1536 = vmatpush.msra.mxu1 %v1383_v24  ;;  %1556 = vmatpush.msra.mxu2 %v1399_v25  ;;  %v1480_v23 = vld [vmem:[%s15228_s8 + $0x360] sm:$0xff]  ;;  %v1447_v25 = vld [vmem:[%s15228_s8 + $0x258] sm:$0xff] }
  0xeb   : > { %1576 = vmatpush.msra.mxu3 %v1415_v26  ;;  %1596 = vmatpush.msrb.mxu0 %v1431_v27  ;;  %v1496_v24 = vld [vmem:[%s15228_s8 + $0x3e0] sm:$0xff]  ;;  %v1463_v26 = vld [vmem:[%s15228_s8 + $0x2d8] sm:$0xff] }
  0xec   : > { %1537 = vmatpush.msra.mxu1 %v1382_v28  ;;  %1557 = vmatpush.msra.mxu2 %v1398_v29  ;;  %v1479_v27 = vld [vmem:[%s15228_s8 + $0x358] sm:$0xff]  ;;  %v1446_v29 = vld [vmem:[%s15228_s8 + $0x250] sm:$0xff] }
  0xed   : > { %1577 = vmatpush.msra.mxu3 %v1414_v30  ;;  %1597 = vmatpush.msrb.mxu0 %v1430_v31  ;;  %v1495_v28 = vld [vmem:[%s15228_s8 + $0x3d8] sm:$0xff]  ;;  %v1462_v30 = vld [vmem:[%s15228_s8 + $0x2d0] sm:$0xff] }
  0xee   : > { %1538 = vmatpush.msra.mxu1 %v1381_v32  ;;  %1558 = vmatpush.msra.mxu2 %v1397_v33  ;;  %v1478_v31 = vld [vmem:[%s15228_s8 + $0x350] sm:$0xff]  ;;  %v1445_v33 = vld [vmem:[%s15228_s8 + $0x248] sm:$0xff] }
  0xef   : > { %1578 = vmatpush.msra.mxu3 %v1413_v34  ;;  %1598 = vmatpush.msrb.mxu0 %v1429_v35  ;;  %v1494_v32 = vld [vmem:[%s15228_s8 + $0x3d0] sm:$0xff]  ;;  %v1461_v34 = vld [vmem:[%s15228_s8 + $0x2c8] sm:$0xff] }
  0xf0   : > { %1539 = vmatpush.msra.mxu1 %v1380_v36  ;;  %1559 = vmatpush.msra.mxu2 %v1396_v37  ;;  %v1477_v35 = vld [vmem:[%s15228_s8 + $0x348] sm:$0xff]  ;;  %v1444_v37 = vld [vmem:[%s15228_s8 + $0x240] sm:$0xff] }
  0xf1   : > { %1579 = vmatpush.msra.mxu3 %v1412_v38  ;;  %1599 = vmatpush.msrb.mxu0 %v1428_v39  ;;  %v1493_v36 = vld [vmem:[%s15228_s8 + $0x3c8] sm:$0xff]  ;;  %v1460_v38 = vld [vmem:[%s15228_s8 + $0x2c0] sm:$0xff] }
  0xf2   : > { %1540 = vmatpush.msra.mxu1 %v1379_v40  ;;  %1560 = vmatpush.msra.mxu2 %v1395_v41  ;;  %v1476_v39 = vld [vmem:[%s15228_s8 + $0x340] sm:$0xff]  ;;  %v1443_v41 = vld [vmem:[%s15228_s8 + $0x238] sm:$0xff] }
  0xf3   : > { %1580 = vmatpush.msra.mxu3 %v1411_v42  ;;  %1600 = vmatpush.msrb.mxu0 %v1427_v43  ;;  %v1492_v40 = vld [vmem:[%s15228_s8 + $0x3c0] sm:$0xff]  ;;  %v1459_v42 = vld [vmem:[%s15228_s8 + $0x2b8] sm:$0xff] }
  0xf4   : > { %1541 = vmatpush.msra.mxu1 %v1378_v44  ;;  %1561 = vmatpush.msra.mxu2 %v1394_v45  ;;  %v1475_v43 = vld [vmem:[%s15228_s8 + $0x338] sm:$0xff]  ;;  %v1442_v45 = vld [vmem:[%s15228_s8 + $0x230] sm:$0xff] }
  0xf5   : > { %1581 = vmatpush.msra.mxu3 %v1410_v46  ;;  %1601 = vmatpush.msrb.mxu0 %v1426_v47  ;;  %v1491_v44 = vld [vmem:[%s15228_s8 + $0x3b8] sm:$0xff]  ;;  %v1458_v46 = vld [vmem:[%s15228_s8 + $0x2b0] sm:$0xff] }
  0xf6   : > { %1542 = vmatpush.msra.mxu1 %v1377_v48  ;;  %1562 = vmatpush.msra.mxu2 %v1393_v49  ;;  %v1474_v47 = vld [vmem:[%s15228_s8 + $0x330] sm:$0xff]  ;;  %v1441_v49 = vld [vmem:[%s15228_s8 + $0x228] sm:$0xff] }
  0xf7   : > { %1582 = vmatpush.msra.mxu3 %v1409_v50  ;;  %1602 = vmatpush.msrb.mxu0 %v1425_v51  ;;  %v1490_v48 = vld [vmem:[%s15228_s8 + $0x3b0] sm:$0xff]  ;;  %v1457_v50 = vld [vmem:[%s15228_s8 + $0x2a8] sm:$0xff] }
  0xf8   : > { %1543 = vmatpush.msra.mxu1 %v1376_v52  ;;  %1563 = vmatpush.msra.mxu2 %v1392_v53  ;;  %v1473_v51 = vld [vmem:[%s15228_s8 + $0x328] sm:$0xff]  ;;  %v1440_v53 = vld [vmem:[%s15228_s8 + $0x220] sm:$0xff] }
  0xf9   : > { %1583 = vmatpush.msra.mxu3 %v1408_v54  ;;  %1603 = vmatpush.msrb.mxu0 %v1424_v55  ;;  %v1489_v52 = vld [vmem:[%s15228_s8 + $0x3a8] sm:$0xff]  ;;  %v1456_v54 = vld [vmem:[%s15228_s8 + $0x2a0] sm:$0xff] }
  0xfa   : > { %1544 = vmatpush.msra.mxu1 %v1375_v56  ;;  %1564 = vmatpush.msra.mxu2 %v1391_v57  ;;  %v1472_v55 = vld [vmem:[%s15228_s8 + $0x320] sm:$0xff]  ;;  %v1439_v57 = vld [vmem:[%s15228_s8 + $0x218] sm:$0xff] }
  0xfb   : > { %1584 = vmatpush.msra.mxu3 %v1407_v58  ;;  %1604 = vmatpush.msrb.mxu0 %v1423_v59  ;;  %v1488_v56 = vld [vmem:[%s15228_s8 + $0x3a0] sm:$0xff]  ;;  %v1455_v58 = vld [vmem:[%s15228_s8 + $0x298] sm:$0xff] }
  0xfc   : > { %1545 = vmatpush.msra.mxu1 %v1374_v60  ;;  %1565 = vmatpush.msra.mxu2 %v1390_v61  ;;  %v1471_v59 = vld [vmem:[%s15228_s8 + $0x318] sm:$0xff]  ;;  %v1438_v61 = vld [vmem:[%s15228_s8 + $0x210] sm:$0xff] }
  0xfd   : > { %1585 = vmatpush.msra.mxu3 %v1406_v62  ;;  %1605 = vmatpush.msrb.mxu0 %v1422_v63  ;;  %v1487_v60 = vld [vmem:[%s15228_s8 + $0x398] sm:$0xff]  ;;  %v1454_v62 = vld [vmem:[%s15228_s8 + $0x290] sm:$0xff] }
  0xfe   : > { %1546 = vmatpush.msra.mxu1 %v1373_v0  ;;  %1566 = vmatpush.msra.mxu2 %v1389_v1  ;;  %v1470_v63 = vld [vmem:[%s15228_s8 + $0x310] sm:$0xff]  ;;  %v1437_v1 = vld [vmem:[%s15228_s8 + $0x208] sm:$0xff] }
  0xff   : > { %1586 = vmatpush.msra.mxu3 %v1405_v2  ;;  %1606 = vmatpush.msrb.mxu0 %v1421_v3  ;;  %v1486_v0 = vld [vmem:[%s15228_s8 + $0x390] sm:$0xff]  ;;  %v1453_v2 = vld [vmem:[%s15228_s8 + $0x288] sm:$0xff] }
 0x100   : > { %1547 = vmatpush.msra.mxu1 %v1372_v4  ;;  %1567 = vmatpush.msra.mxu2 %v1388_v6  ;;  %v1469_v3 = vld [vmem:[%s15228_s8 + $0x308] sm:$0xff]  ;;  %v1436_v6 = vld [vmem:[%s15228_s8 + $0x200] sm:$0xff] }
 0x101   : > { %1587 = vmatpush.msra.mxu3 %v1404_v7  ;;  %1607 = vmatpush.msrb.mxu0 %v1420_v8  ;;  %v1485_v4 = vld [vmem:[%s15228_s8 + $0x388] sm:$0xff]  ;;  %v1452_v7 = vld [vmem:[%s15228_s8 + $0x280] sm:$0xff] }
 0x102   : > { %1548 = vmatmul.f32.vlgmr.msra.gmra.mxu1 %v9529_v5  ;;  %1568 = vmatmul.f32.vlgmr.msra.gmra.mxu2 %v9529_v5  ;;  %v1468_v8 = vld [vmem:[%s15228_s8 + $0x300] sm:$0xff] }
 0x103   : > { %1588 = vmatmul.f32.vlgmr.msra.gmra.mxu3 %v9529_v5  ;;  %1608 = vmatmul.f32.vlgmr.msrb.gmra.mxu0 %v9529_v5 }
 0x104   : > { %1612 = vmatpush.msrb.mxu1 %v1451_v9  ;;  %1632 = vmatpush.msrb.mxu2 %v1467_v10  ;;  %v1484_v9 = vld [vmem:[%s15228_s8 + $0x380] sm:$0xff] }
 0x105   : > { %1652 = vmatpush.msrb.mxu3 %v1483_v11  ;;  %1672 = vmatpush.msra.mxu0 %v1499_v12 }
 0x106   : > { %1613 = vmatpush.msrb.mxu1 %v1450_v13  ;;  %1633 = vmatpush.msrb.mxu2 %v1466_v14 }
 0x107   : > { %1653 = vmatpush.msrb.mxu3 %v1482_v15  ;;  %1673 = vmatpush.msra.mxu0 %v1498_v16  ;;  %v8799_v16 = vld [vmem:[%s15227_s7] ss:$0 sm:$0xff] }
 0x108   : > { %1614 = vmatpush.msrb.mxu1 %v1449_v17  ;;  %1634 = vmatpush.msrb.mxu2 %v1465_v18  ;;  %v8800_v18 = vld [vmem:[%s15227_s7 + $0x3] ss:$0 sm:$0xff] }
 0x109   : > { %1654 = vmatpush.msrb.mxu3 %v1481_v19  ;;  %1674 = vmatpush.msra.mxu0 %v1497_v20  ;;  %v8791_v20 = vld [vmem:[%s15258_s23] ss:$0 sm:$0xff] }
 0x10a   : > { %1615 = vmatpush.msrb.mxu1 %v1448_v21  ;;  %1635 = vmatpush.msrb.mxu2 %v1464_v22  ;;  %v8792_v22 = vld [vmem:[%s15258_s23 + $0x3] ss:$0 sm:$0xff] }
 0x10b   : > { %1655 = vmatpush.msrb.mxu3 %v1480_v23  ;;  %1675 = vmatpush.msra.mxu0 %v1496_v24 }
 0x10c   : > { %1616 = vmatpush.msrb.mxu1 %v1447_v25  ;;  %1636 = vmatpush.msrb.mxu2 %v1463_v26  ;;  %v8801_v26 = vld [vmem:[%s15227_s7 + $0x1] ss:$0 sm:$0xff] }
 0x10d   : > { %1656 = vmatpush.msrb.mxu3 %v1479_v27  ;;  %1676 = vmatpush.msra.mxu0 %v1495_v28  ;;  %v8802_v28 = vld [vmem:[%s15227_s7 + $0x2] ss:$0 sm:$0xff] }
 0x10e   : > { %1617 = vmatpush.msrb.mxu1 %v1446_v29  ;;  %1637 = vmatpush.msrb.mxu2 %v1462_v30  ;;  %v8793_v30 = vld [vmem:[%s15258_s23 + $0x1] ss:$0 sm:$0xff] }
 0x10f   : > { %1657 = vmatpush.msrb.mxu3 %v1478_v31  ;;  %1677 = vmatpush.msra.mxu0 %v1494_v32  ;;  %v8794_v32 = vld [vmem:[%s15258_s23 + $0x2] ss:$0 sm:$0xff] }
 0x110   : > { %1618 = vmatpush.msrb.mxu1 %v1445_v33  ;;  %1638 = vmatpush.msrb.mxu2 %v1461_v34 }
 0x111   : > { %1658 = vmatpush.msrb.mxu3 %v1477_v35  ;;  %1678 = vmatpush.msra.mxu0 %v1493_v36 }
 0x112   : > { %1619 = vmatpush.msrb.mxu1 %v1444_v37  ;;  %1639 = vmatpush.msrb.mxu2 %v1460_v38  ;;  %v8803_v38 = vld [vmem:[%s15227_s7 + $0x4] ss:$0 sm:$0xff] }
 0x113   : > { %1659 = vmatpush.msrb.mxu3 %v1476_v39  ;;  %1679 = vmatpush.msra.mxu0 %v1492_v40  ;;  %v8804_v39 = vld [vmem:[%s15227_s7 + $0x7] ss:$0 sm:$0xff]  ;;  %v8795_v40 = vld [vmem:[%s15258_s23 + $0x4] ss:$0 sm:$0xff] }
 0x114   : > { %1620 = vmatpush.msrb.mxu1 %v1443_v41  ;;  %1640 = vmatpush.msrb.mxu2 %v1459_v42  ;;  %v8796_v42 = vld [vmem:[%s15258_s23 + $0x7] ss:$0 sm:$0xff] }
 0x115   : > { %1660 = vmatpush.msrb.mxu3 %v1475_v43  ;;  %1680 = vmatpush.msra.mxu0 %v1491_v44 }
 0x116   : > { %1621 = vmatpush.msrb.mxu1 %v1442_v45  ;;  %1641 = vmatpush.msrb.mxu2 %v1458_v46  ;;  %v8805_v46 = vld [vmem:[%s15227_s7 + $0x5] ss:$0 sm:$0xff] }
 0x117   : > { %1661 = vmatpush.msrb.mxu3 %v1474_v47  ;;  %1681 = vmatpush.msra.mxu0 %v1490_v48  ;;  %v909_v10 = vpop.f32.mrf.mxu1  ;;  %v8806_v48 = vld [vmem:[%s15227_s7 + $0x6] ss:$0 sm:$0xff] }
 0x118   : > { %1622 = vmatpush.msrb.mxu1 %v1441_v49  ;;  %1642 = vmatpush.msrb.mxu2 %v1457_v50  ;;  %v969_v11 = vpop.f32.mrf.mxu0  ;;  %v910_v27 = vadd.f32 %v8791_v20, %v909_v10  ;;  %v8797_v50 = vld [vmem:[%s15258_s23 + $0x5] ss:$0 sm:$0xff] }
 0x119   : > { %1662 = vmatpush.msrb.mxu3 %v1473_v51  ;;  %1682 = vmatpush.msra.mxu0 %v1489_v52  ;;  %v970_v29 = vadd.f32 %v8792_v22, %v969_v11  ;;  %v8798_v52 = vld [vmem:[%s15258_s23 + $0x6] ss:$0 sm:$0xff] }
 0x11a   : > { %1623 = vmatpush.msrb.mxu1 %v1440_v53  ;;  %1643 = vmatpush.msrb.mxu2 %v1456_v54 }
 0x11b   : > { %1663 = vmatpush.msrb.mxu3 %v1472_v55  ;;  %1683 = vmatpush.msra.mxu0 %v1488_v56 }
 0x11c   : > { %1624 = vmatpush.msrb.mxu1 %v1439_v57  ;;  %1644 = vmatpush.msrb.mxu2 %v1455_v58  ;;  %v8807_v58 = vld [vmem:[%s15229_s9] ss:$0 sm:$0xff] }
 0x11d   : > { %1664 = vmatpush.msrb.mxu3 %v1471_v59  ;;  %1684 = vmatpush.msra.mxu0 %v1487_v60  ;;  %v929_v12 = vpop.f32.mrf.mxu2  ;;  %v8808_v59 = vld [vmem:[%s15229_s9 + $0x3] ss:$0 sm:$0xff] }
 0x11e   : > { %1625 = vmatpush.msrb.mxu1 %v1438_v61  ;;  %1645 = vmatpush.msrb.mxu2 %v1454_v62  ;;  %v949_v13 = vpop.f32.mrf.mxu3  ;;  %v930_v36 = vadd.f32 %v8793_v30, %v929_v12 }
 0x11f   : > { %1665 = vmatpush.msrb.mxu3 %v1470_v63  ;;  %1685 = vmatpush.msra.mxu0 %v1486_v0  ;;  %v950_v37 = vadd.f32 %v8794_v32, %v949_v13  ;;  %v8809_v0 = vld [vmem:[%s15229_s9 + $0x1] ss:$0 sm:$0xff]  ;;  %v8813_v13 = vld [vmem:[%s15229_s9 + $0x5] ss:$0 sm:$0xff] }
 0x120   : > { %1626 = vmatpush.msrb.mxu1 %v1437_v1  ;;  %1646 = vmatpush.msrb.mxu2 %v1453_v2  ;;  %v8810_v1 = vld [vmem:[%s15229_s9 + $0x2] ss:$0 sm:$0xff] }
 0x121   : > { %1666 = vmatpush.msrb.mxu3 %v1469_v3  ;;  %1686 = vmatpush.msra.mxu0 %v1485_v4  ;;  %v989_v14 = vpop.f32.mrf.mxu1 }
 0x122   : > { %1627 = vmatpush.msrb.mxu1 %v1436_v6  ;;  %1647 = vmatpush.msrb.mxu2 %v1452_v7  ;;  %v1049_v15 = vpop.f32.mrf.mxu0  ;;  %v990_v47 = vadd.f32 %v8795_v40, %v989_v14  ;;  %v8811_v7 = vld [vmem:[%s15229_s9 + $0x4] ss:$0 sm:$0xff]  ;;  %v8814_v14 = vld [vmem:[%s15229_s9 + $0x6] ss:$0 sm:$0xff] }
 0x123   : > { %1667 = vmatpush.msrb.mxu3 %v1468_v8  ;;  %1687 = vmatpush.msra.mxu0 %v1484_v9  ;;  %v1050_v49 = vadd.f32 %v8796_v42, %v1049_v15  ;;  %v8812_v8 = vld [vmem:[%s15229_s9 + $0x7] ss:$0 sm:$0xff] }
 0x124   : > { %1628 = vmatmul.f32.vlgmr.msrb.gmra.mxu1 %v9529_v5  ;;  %1648 = vmatmul.f32.vlgmr.msrb.gmra.mxu2 %v9529_v5 }
 0x125   : > { %1668 = vmatmul.f32.vlgmr.msrb.gmra.mxu3 %v9529_v5  ;;  %1688 = vmatmul.f32.vlgmr.msra.gmra.mxu0 %v9529_v5 }
 0x127   : > { %v1009_v17 = vpop.f32.mrf.mxu2 }
 0x128   : > { %v1029_v19 = vpop.f32.mrf.mxu3  ;;  %v1010_v56 = vadd.f32 %v8797_v50, %v1009_v17 }
 0x129   : > { %v1030_v57 = vadd.f32 %v8798_v52, %v1029_v19  ;;  %v10416_v19 = vld [vmem:[%s692_s2] sm:$0xff] }
 0x12a   : > { %vm698_vm3 = vcmp.eq.s32.totalorder %v10416_v19, 0 }
 0x13b   : > { %v1229_v21 = vpop.f32.mrf.mxu1 }
 0x13c   : > { %v1230_v23 = vadd.f32 %v8799_v16, %v1229_v21  ;;  %v1289_v24 = vpop.f32.mrf.mxu0 }
 0x13d   : > { %v1290_v25 = vadd.f32 %v8800_v18, %v1289_v24 }
 0x13e   : > { %7692 = vmatpush.xpose.msk.msra.mxu1 %vm1692_vm2, %v1230_v23 }
 0x13f   : > { %7698 = vmatpush.xpose.msk.msrb.mxu0 %vm1692_vm2, %v1290_v25 }
 0x141   : > { %v1249_v31 = vpop.f32.mrf.mxu2  ;;  %7693 = vmatmul.msk.f32.vlgmr.msra.gmra.mxu1 %vm1692_vm2, %v910_v27 }
 0x142   : > { %v1250_v33 = vadd.f32 %v8801_v26, %v1249_v31  ;;  %v1269_v34 = vpop.f32.mrf.mxu3  ;;  %7699 = vmatmul.msk.f32.vlgmr.msrb.gmra.mxu0 %vm1692_vm2, %v970_v29 }
 0x143   : > { %v1270_v35 = vadd.f32 %v8802_v28, %v1269_v34 }
 0x144   : > { %7694 = vmatpush.xpose.msk.msra.mxu2 %vm1692_vm2, %v1250_v33 }
 0x145   : > { %7696 = vmatpush.xpose.msk.msra.mxu3 %vm1692_vm2, %v1270_v35 }
 0x147   : > { %7695 = vmatmul.msk.f32.vlgmr.msra.gmra.mxu2 %vm1692_vm2, %v930_v36 }
 0x148   : > { %7697 = vmatmul.msk.f32.vlgmr.msra.gmra.mxu3 %vm1692_vm2, %v950_v37 }
 0x15d   : > { %v1309_v41 = vpop.f32.mrf.mxu1 }
 0x15e   : > { %v1310_v43 = vadd.f32 %v8803_v38, %v1309_v41  ;;  %v1369_v44 = vpop.f32.mrf.mxu0 }
 0x15f   : > { %v1370_v45 = vadd.f32 %v8804_v39, %v1369_v44 }
 0x160   : > { %7700 = vmatpush.xpose.msk.msrb.mxu1 %vm1692_vm2, %v1310_v43 }
 0x161   : > { %7706 = vmatpush.xpose.msk.msra.mxu0 %vm1692_vm2, %v1370_v45 }
 0x163   : > { %v1329_v51 = vpop.f32.mrf.mxu2  ;;  %7701 = vmatmul.msk.f32.vlgmr.msrb.gmra.mxu1 %vm1692_vm2, %v990_v47 }
 0x164   : > { %v1330_v53 = vadd.f32 %v8805_v46, %v1329_v51  ;;  %v1349_v54 = vpop.f32.mrf.mxu3  ;;  %7707 = vmatmul.msk.f32.vlgmr.msra.gmra.mxu0 %vm1692_vm2, %v1050_v49 }
 0x165   : > { %v1350_v55 = vadd.f32 %v8806_v48, %v1349_v54 }
 0x166   : > { %7702 = vmatpush.xpose.msk.msrb.mxu2 %vm1692_vm2, %v1330_v53 }
 0x167   : > { %7704 = vmatpush.xpose.msk.msrb.mxu3 %vm1692_vm2, %v1350_v55 }
 0x169   : > { %7703 = vmatmul.msk.f32.vlgmr.msrb.gmra.mxu2 %vm1692_vm2, %v1010_v56 }
 0x16a   : > { %7705 = vmatmul.msk.f32.vlgmr.msrb.gmra.mxu3 %vm1692_vm2, %v1030_v57 }
 0x17f   : > { %v1549_v60 = vpop.f32.mrf.mxu1 }
 0x180   : > { %v1550_v61 = vadd.f32 %v8807_v58, %v1549_v60  ;;  %v1609_v62 = vpop.f32.mrf.mxu0 }
 0x181   : > { %v1610_v63 = vadd.f32 %v8808_v59, %v1609_v62 }
 0x182   : > { %2130 = vmatpush.msra.mxu1 %v1550_v61 }
 0x183   : > { %2199 = vmatpush.msrb.mxu0 %v1610_v63 }
 0x185   : > { %v1569_v2 = vpop.f32.mrf.mxu2 }
 0x186   : > { %v1570_v3 = vadd.f32 %v8809_v0, %v1569_v2  ;;  %v1589_v4 = vpop.f32.mrf.mxu3 }
 0x187   : > { %v1590_v6 = vadd.f32 %v8810_v1, %v1589_v4 }
 0x188   : > { %2153 = vmatpush.msra.mxu2 %v1570_v3 }
 0x189   : > { %2176 = vmatpush.msra.mxu3 %v1590_v6 }
 0x1a1   : > { %v1629_v9 = vpop.f32.mrf.mxu1 }
 0x1a2   : > { %v1630_v10 = vadd.f32 %v8811_v7, %v1629_v9  ;;  %v1689_v11 = vpop.f32.mrf.mxu0 }
 0x1a3   : > { %v1690_v12 = vadd.f32 %v8812_v8, %v1689_v11 }
 0x1a4   : > { %2222 = vmatpush.msrb.mxu1 %v1630_v10 }
 0x1a5   : > { %2291 = vmatpush.msra.mxu0 %v1690_v12 }
 0x1a7   : > { %v1649_v15 = vpop.f32.mrf.mxu2 }
 0x1a8   : > { %v1650_v16 = vadd.f32 %v8813_v13, %v1649_v15  ;;  %v1669_v17 = vpop.f32.mrf.mxu3 }
 0x1a9   : > { %v1670_v18 = vadd.f32 %v8814_v14, %v1669_v17 }
 0x1aa   : > { %2245 = vmatpush.msrb.mxu2 %v1650_v16 }
 0x1ab   : > { %2268 = vmatpush.msrb.mxu3 %v1670_v18 }
 0x1be   : > { %v1716_v28 = vpop.f32.mrf.mxu1 }
 0x1bf   : > { %v1794_v36 = vpop.f32.mrf.mxu0  ;;  %v1901_v41 = vmul.f32 0.25, %v1716_v28 }
 0x1c0   : > { %v1904_v43 = vmul.f32 0.25, %v1794_v36 }
 0x1c1   : > { %v1911_v44 = vsel %vm698_vm3, -1e+09, %v1901_v41 }
 0x1c2   : > { %v1914_v46 = vsel %vm698_vm3, -1e+09, %v1904_v43  ;;  %v1920_v47 = vsel %vm1919_vm4, %v1911_v44, -inf }
 0x1c3   : > { %v1929_v49 = vsel %vm1919_vm4, %v1914_v46, -inf }
 0x1ca   : > { %v1742_v20 = vpop.f32.mrf.mxu2 }
 0x1cb   : > { %v1902_v21 = vmul.f32 0.25, %v1742_v20  ;;  %v1768_v22 = vpop.f32.mrf.mxu3 }
 0x1cc   : > { %v1903_v25 = vmul.f32 0.25, %v1768_v22 }
 0x1cd   : > { %v1912_v23 = vsel %vm698_vm3, -1e+09, %v1902_v21 }
 0x1ce   : > { %v1923_v24 = vsel %vm1919_vm4, %v1912_v23, -inf  ;;  %v1913_v26 = vsel %vm698_vm3, -1e+09, %v1903_v25 }
 0x1cf   : > { %1924 = vmax.xlane.f32.xlu0 %v1923_v24  ;;  %v1926_v27 = vsel %vm1919_vm4, %v1913_v26, -inf }
 0x1d7   : > { %1927 = vmax.xlane.f32.xlu0 %v1926_v27 }
 0x1e0   : > { %v1820_v29 = vpop.f32.mrf.mxu1 }
 0x1e1   : > { %v1905_v30 = vmul.f32 0.25, %v1820_v29  ;;  %v1898_v45 = vpop.f32.mrf.mxu0 }
 0x1e2   : > { %v1908_v48 = vmul.f32 0.25, %v1898_v45 }
 0x1e3   : > { %v10427_v31 = vsel %vm698_vm3, -1e+09, %v1905_v30 }
 0x1e4   : > { %v1932_v32 = vsel %vm1919_vm4, %v10427_v31, -inf  ;;  %v1918_v50 = vsel %vm698_vm3, -1e+09, %v1908_v48 }
 0x1e5   : > { %1933 = vmax.xlane.f32.xlu0 %v1932_v32  ;;  %v1941_v51 = vsel %vm1919_vm4, %v1918_v50, -inf }
 0x1ec   : > { %v1846_v33 = vpop.f32.mrf.mxu2 }
 0x1ed   : > { %v1906_v34 = vmul.f32 0.25, %v1846_v33  ;;  %v1872_v35 = vpop.f32.mrf.mxu3 }
 0x1ee   : > { %v1907_v37 = vmul.f32 0.25, %v1872_v35 }
 0x1ef   : > { %v1916_v38 = vsel %vm698_vm3, -1e+09, %v1906_v34 }
 0x1f0   : > { %v1917_v39 = vsel %vm698_vm3, -1e+09, %v1907_v37  ;;  %v1935_v40 = vsel %vm1919_vm4, %v1916_v38, -inf }
 0x1f1   : > { %v1938_v42 = vsel %vm1919_vm4, %v1917_v39, -inf  ;;  %1936 = vmax.xlane.f32.xlu1 %v1935_v40 }
 0x1f2   : > { %1939 = vmax.xlane.f32.xlu2 %v1938_v42 }
 0x1f9   : > { %1921 = vmax.xlane.f32.xlu1 %v1920_v47 }
 0x1fa   : > { %1930 = vmax.xlane.f32.xlu2 %v1929_v49 }
 0x201   : > { %1942 = vmax.xlane.f32.xlu1 %v1941_v51 }
 0x242   : > { %v1925_v52 = vpop.xlane.xlu0 %1924 }
 0x243   : > { %v1945_v53 = vsub.f32 %v1912_v23, %v1925_v52 }
 0x245   : > { %v1954_v54 = vmul.f32 1.442695, %v1945_v53 }
 0x247   : > { %8869 = vpow2.f32 %v1954_v54 }
 0x24a   : > { %v1928_v55 = vpop.xlane.xlu0 %1927 }
 0x24b   : > { %v1946_v56 = vsub.f32 %v1913_v26, %v1928_v55 }
 0x24d   : > { %v10446_v57 = vpop.eup %8869  ;;  %v1956_v58 = vmul.f32 1.442695, %v1946_v56  ;;  %v2299_v56 = vld [vmem:[%s15230_s10 + $0x18] sm:$0xff] }
 0x24e   : > { %v1971_v59 = vsel %vm1919_vm4, %v10446_v57, 0.0 }
 0x24f   : > { %8871 = vpow2.f32 %v1956_v58  ;;  %1972 = vadd.xlane.f32.xlu2 %v1971_v59 }
 0x255   : > { %v10450_v60 = vpop.eup %8871 }
 0x256   : > { %v1974_v61 = vsel %vm1919_vm4, %v10450_v60, 0.0 }
 0x257   : > { %1975 = vadd.xlane.f32.xlu0 %v1974_v61 }
 0x258   : > { %v1934_v4 = vpop.xlane.xlu0 %1933 }
 0x259   : > { %v1948_v11 = vsub.f32 %v10427_v31, %v1934_v4 }
 0x25b   : > { %v1960_v17 = vmul.f32 1.442695, %v1948_v11 }
 0x264   : > { %v1937_v62 = vpop.xlane.xlu1 %1936 }
 0x265   : > { %v1940_v63 = vpop.xlane.xlu2 %1939  ;;  %v1949_v0 = vsub.f32 %v1916_v38, %v1937_v62 }
 0x266   : > { %v1950_v1 = vsub.f32 %v1917_v39, %v1940_v63 }
 0x267   : > { %v1962_v2 = vmul.f32 1.442695, %v1949_v0 }
 0x268   : > { %v1964_v3 = vmul.f32 1.442695, %v1950_v1 }
 0x269   : > { %8873 = vpow2.f32 %v1962_v2 }
 0x26a   : > { %8875 = vpow2.f32 %v1964_v3 }
 0x26c   : > { %v1922_v6 = vpop.xlane.xlu1 %1921 }
 0x26d   : > { %v1931_v7 = vpop.xlane.xlu2 %1930  ;;  %v1944_v8 = vsub.f32 %v1911_v44, %v1922_v6 }
 0x26e   : > { %v1947_v9 = vsub.f32 %v1914_v46, %v1931_v7 }
 0x26f   : > { %v10454_v10 = vpop.eup %8873  ;;  %v1952_v12 = vmul.f32 1.442695, %v1944_v8 }
 0x270   : > { %v10457_v13 = vpop.eup %8875  ;;  %v1958_v14 = vmul.f32 1.442695, %v1947_v9  ;;  %v1983_v15 = vsel %vm1919_vm4, %v10454_v10, 0.0 }
 0x271   : > { %8877 = vpow2.f32 %v1952_v12  ;;  %1984 = vadd.xlane.f32.xlu1 %v1983_v15  ;;  %v1986_v16 = vsel %vm1919_vm4, %v10457_v13, 0.0 }
 0x272   : > { %8879 = vpow2.f32 %v1958_v14  ;;  %1987 = vadd.xlane.f32.xlu0 %v1986_v16 }
 0x273   : > { %8881 = vpow2.f32 %v1960_v17 }
 0x274   : > { %v1943_v18 = vpop.xlane.xlu1 %1942 }
 0x275   : > { %v1951_v20 = vsub.f32 %v1918_v50, %v1943_v18 }
 0x277   : > { %v10463_v21 = vpop.eup %8877  ;;  %v1966_v22 = vmul.f32 1.442695, %v1951_v20 }
 0x278   : > { %v10465_v23 = vpop.eup %8879  ;;  %v1968_v24 = vsel %vm1919_vm4, %v10463_v21, 0.0 }
 0x279   : > { %8883 = vpow2.f32 %v1966_v22  ;;  %v1977_v25 = vsel %vm1919_vm4, %v10465_v23, 0.0  ;;  %1969 = vadd.xlane.f32.xlu2 %v1968_v24  ;;  %v10471_v26 = vpop.eup %8881 }
 0x27a   : > { %1978 = vadd.xlane.f32.xlu1 %v1977_v25  ;;  %v1980_v29 = vsel %vm1919_vm4, %v10471_v26, 0.0 }
 0x27f   : > { %v10473_v27 = vpop.eup %8883 }
 0x280   : > { %v1989_v28 = vsel %vm1919_vm4, %v10473_v27, 0.0 }
 0x281   : > { %1990 = vadd.xlane.f32.xlu0 %v1989_v28  ;;  %1981 = vadd.xlane.f32.xlu2 %v1980_v29 }
 0x2c2   : > { %v1973_v30 = vpop.xlane.xlu2 %1972 }
 0x2c3   : > { %8885 = vrcp.f32 %v1973_v30  ;;  %v2017_v35 = vand.u32 2147483648, %v1973_v30  ;;  %v2015_v37 = vand.u32 2147483647, %v1973_v30  ;;  %vm2011_vm6 = vweird.f32 %v1973_v30 }
 0x2c5   : > { %v2018_v40 = vor.u32 1.1754944e-38, %v2017_v35  ;;  %vm2016_vm8 = vcmp.eq.f32.partialorder %v2015_v37, 8.507059e+37 }
 0x2c9   : > { %v8886_v31 = vpop.eup %8885 }
 0x2ca   : > { %v2007_v32 = vmul.f32 %v8886_v31, %v1973_v30  ;;  %v1976_v33 = vpop.xlane.xlu0 %1975  ;;  %vm2012_vm5 = vweird.f32 %v8886_v31 }
 0x2cb   : > { %8887 = vrcp.f32 %v1976_v33  ;;  %vm2013_vm7 = vmor %vm2011_vm6, %vm2012_vm5  ;;  %v2031_v46 = vand.u32 2147483648, %v1976_v33  ;;  %v2029_v48 = vand.u32 2147483647, %v1976_v33  ;;  %vm2025_vm10 = vweird.f32 %v1976_v33 }
 0x2cc   : > { %v2008_v34 = vsub.f32 1.0, %v2007_v32 }
 0x2cd   : > { %v2032_v50 = vor.u32 1.1754944e-38, %v2031_v46  ;;  %vm2030_vm12 = vcmp.eq.f32.partialorder %v2029_v48, 8.507059e+37 }
 0x2ce   : > { %v2009_v36 = vmul.f32 %v8886_v31, %v2008_v34 }
 0x2d0   : > { %v2010_v38 = vadd.f32 %v8886_v31, %v2009_v36 }
 0x2d1   : > { %v8888_v39 = vpop.eup %8887 }
 0x2d2   : > { %v2014_v41 = vsel %vm2013_vm7, %v8886_v31, %v2010_v38  ;;  %v2021_v42 = vmul.f32 %v8888_v39, %v1976_v33  ;;  %vm2026_vm9 = vweird.f32 %v8888_v39 }
 0x2d3   : > { %v2019_v43 = vsel %vm2016_vm8, %v2018_v40, %v2014_v41  ;;  %vm2027_vm11 = vmor %vm2025_vm10, %vm2026_vm9 }
 0x2d4   : > { %v2022_v44 = vsub.f32 1.0, %v2021_v42  ;;  %v2105_v45 = vmul.f32 %v10446_v57, %v2019_v43 }
 0x2d6   : > { %v2023_v47 = vmul.f32 %v8888_v39, %v2022_v44  ;;  %7709 = vmatmul.msk.f32.vlgmr.msra.gmra.mxu2 %vm1919_vm4, %v2105_v45 }
 0x2d7   : > { %2352 = vmatpush.msra.mxu2 %v2299_v56 }
 0x2d8   : > { %v2024_v49 = vadd.f32 %v8888_v39, %v2023_v47 }
 0x2da   : > { %v2028_v51 = vsel %vm2027_vm11, %v8888_v39, %v2024_v49 }
 0x2db   : > { %v2033_v52 = vsel %vm2030_vm12, %v2032_v50, %v2028_v51 }
 0x2dc   : > { %v2106_v53 = vmul.f32 %v10450_v60, %v2033_v52 }
 0x2de   : > { %7710 = vmatmul.msk.f32.vlgmr.msra.gmra.mxu3 %vm1919_vm4, %v2106_v53 }
 0x2e4   : > { %v1985_v54 = vpop.xlane.xlu1 %1984 }
 0x2e5   : > { %8889 = vrcp.f32 %v1985_v54  ;;  %v1988_v55 = vpop.xlane.xlu0 %1987  ;;  %v2073_v2 = vand.u32 2147483648, %v1985_v54  ;;  %v2071_v3 = vand.u32 2147483647, %v1985_v54  ;;  %vm2067_vm15 = vweird.f32 %v1985_v54 }
 0x2e6   : > { %8891 = vrcp.f32 %v1988_v55  ;;  %v2087_v6 = vand.u32 2147483648, %v1988_v55  ;;  %v2085_v8 = vand.u32 2147483647, %v1988_v55  ;;  %vm2081_vm1 = vweird.f32 %v1988_v55 }
 0x2e7   : > { %v2074_v15 = vor.u32 1.1754944e-38, %v2073_v2  ;;  %vm2072_vm6 = vcmp.eq.f32.partialorder %v2071_v3, 8.507059e+37  ;;  %v2298_v3 = vld [vmem:[%s15230_s10 + $0x10] sm:$0xff] }
 0x2e8   : > { %v2088_v22 = vor.u32 1.1754944e-38, %v2087_v6  ;;  %vm2086_vm7 = vcmp.eq.f32.partialorder %v2085_v8, 8.507059e+37  ;;  %2353 = vmatpush.msra.mxu2 %v2298_v3  ;;  %v2309_v6 = vld [vmem:[%s15230_s10 + $0x68] sm:$0xff]  ;;  %v2600_v3 = vld [vmem:[%s15234_s14 + $0x58] sm:$0xff] }
 0x2e9   : > { %v2297_v8 = vld [vmem:[%s15230_s10 + $0x8] sm:$0xff] }
 0x2eb   : > { %v8890_v57 = vpop.eup %8889 }
 0x2ec   : > { %v8892_v58 = vpop.eup %8891  ;;  %v2063_v59 = vmul.f32 %v8890_v57, %v1985_v54  ;;  %v1970_v61 = vpop.xlane.xlu2 %1969  ;;  %vm2068_vm13 = vweird.f32 %v8890_v57 }
 0x2ed   : > { %v2077_v62 = vmul.f32 %v8892_v58, %v1988_v55  ;;  %8893 = vrcp.f32 %v1970_v61  ;;  %v10486_v63 = vpop.xlane.xlu1 %1978  ;;  %vm2082_vm14 = vweird.f32 %v8892_v58  ;;  %vm2069_vm0 = vmor %vm2067_vm15, %vm2068_vm13  ;;  %v2003_v30 = vand.u32 2147483648, %v1970_v61 }
 0x2ee   : > { %v2064_v60 = vsub.f32 1.0, %v2063_v59  ;;  %8895 = vrcp.f32 %v10486_v63  ;;  %vm2083_vm5 = vmor %vm2081_vm1, %vm2082_vm14  ;;  %v2001_v33 = vand.u32 2147483647, %v1970_v61  ;;  %v2045_v34 = vand.u32 2147483648, %v10486_v63 }
 0x2ef   : > { %v2078_v0 = vsub.f32 1.0, %v2077_v62  ;;  %v2043_v36 = vand.u32 2147483647, %v10486_v63  ;;  %vm1997_vm10 = vweird.f32 %v1970_v61  ;;  %v2004_v40 = vor.u32 1.1754944e-38, %v2003_v30 }
 0x2f0   : > { %v2065_v1 = vmul.f32 %v8890_v57, %v2064_v60  ;;  %vm2039_vm12 = vweird.f32 %v10486_v63  ;;  %vm2002_vm13 = vcmp.eq.f32.partialorder %v2001_v33, 8.507059e+37  ;;  %v2046_v44 = vor.u32 1.1754944e-38, %v2045_v34  ;;  %v2540_v33 = vld [vmem:[%s15232_s12 + $0xf8] sm:$0xff]  ;;  %v2537_v34 = vld [vmem:[%s15232_s12 + $0xe0] sm:$0xff] }
 0x2f1   : > { %v2079_v4 = vmul.f32 %v8892_v58, %v2078_v0  ;;  %vm2044_vm15 = vcmp.eq.f32.partialorder %v2043_v36, 8.507059e+37  ;;  %v2535_v36 = vld [vmem:[%s15232_s12 + $0xd0] sm:$0xff] }
 0x2f2   : > { %v2066_v7 = vadd.f32 %v8890_v57, %v2065_v1 }
 0x2f3   : > { %v8894_v9 = vpop.eup %8893  ;;  %v2080_v11 = vadd.f32 %v8892_v58, %v2079_v4  ;;  %v2301_v4 = vld [vmem:[%s15230_s10 + $0x28] sm:$0xff] }
 0x2f4   : > { %v8896_v12 = vpop.eup %8895  ;;  %v2070_v14 = vsel %vm2069_vm0, %v8890_v57, %v2066_v7  ;;  %v1993_v16 = vmul.f32 %v8894_v9, %v1970_v61  ;;  %v10489_v17 = vpop.xlane.xlu2 %1981  ;;  %vm1998_vm8 = vweird.f32 %v8894_v9  ;;  %2375 = vmatpush.msra.mxu3 %v2301_v4  ;;  %v2617_v4 = vld [vmem:[%s15234_s14 + $0xe0] sm:$0xff] }
 0x2f5   : > { %v10491_v18 = vpop.xlane.xlu0 %1990  ;;  %v2084_v20 = vsel %vm2083_vm5, %v8892_v58, %v2080_v11  ;;  %v2035_v24 = vmul.f32 %v8896_v12, %v10486_v63  ;;  %v2075_v25 = vsel %vm2072_vm6, %v2074_v15, %v2070_v14  ;;  %8897 = vrcp.f32 %v10489_v17  ;;  %vm1999_vm11 = vmor %vm1997_vm10, %vm1998_vm8  ;;  %v2306_v11 = vld [vmem:[%s15230_s10 + $0x50] sm:$0xff]  ;;  %v2296_v14 = vld [vmem:[%s15230_s10] sm:$0xff] }
 0x2f6   : > { %v1994_v28 = vsub.f32 1.0, %v1993_v16  ;;  %v2089_v29 = vsel %vm2086_vm7, %v2088_v22, %v2084_v20  ;;  %8899 = vrcp.f32 %v10491_v18  ;;  %vm2040_vm9 = vweird.f32 %v8896_v12  ;;  %v2302_v15 = vld [vmem:[%s15230_s10 + $0x30] sm:$0xff]  ;;  %v2304_v20 = vld [vmem:[%s15230_s10 + $0x40] sm:$0xff] }
 0x2f7   : > { %v2036_v31 = vsub.f32 1.0, %v2035_v24  ;;  %v2109_v37 = vmul.f32 %v10454_v10, %v2075_v25  ;;  %v2110_v39 = vmul.f32 %v10457_v13, %v2089_v29  ;;  %vm2041_vm14 = vmor %vm2039_vm12, %vm2040_vm9  ;;  %v2059_v52 = vand.u32 2147483648, %v10489_v17  ;;  %v2310_v22 = vld [vmem:[%s15230_s10 + $0x70] sm:$0xff] }
 0x2f8   : > { %v1995_v32 = vmul.f32 %v8894_v9, %v1994_v28  ;;  %v2057_v55 = vand.u32 2147483647, %v10489_v17  ;;  %v2101_v56 = vand.u32 2147483648, %v10491_v18  ;;  %vm2053_vm5 = vweird.f32 %v10489_v17 }
 0x2f9   : > { %v2037_v35 = vmul.f32 %v8896_v12, %v2036_v31  ;;  %7713 = vmatmul.msk.f32.vlgmr.msrb.gmra.mxu2 %vm1919_vm4, %v2109_v37  ;;  %7714 = vmatmul.msk.f32.vlgmr.msrb.gmra.mxu3 %vm1919_vm4, %v2110_v39  ;;  %vm2095_vm7 = vweird.f32 %v10491_v18  ;;  %v2536_v37 = vld [vmem:[%s15232_s12 + $0xd8] sm:$0xff]  ;;  %v2534_v39 = vld [vmem:[%s15232_s12 + $0xc8] sm:$0xff] }
 0x2fa   : > { %v1996_v38 = vadd.f32 %v8894_v9, %v1995_v32  ;;  %vm2058_vm8 = vcmp.eq.f32.partialorder %v2057_v55, 8.507059e+37  ;;  %v2102_v62 = vor.u32 1.1754944e-38, %v2101_v56  ;;  %v2539_v32 = vld [vmem:[%s15232_s12 + $0xf0] sm:$0xff]  ;;  %v2516_v55 = vld [vmem:[%s15232_s12 + $0x38] sm:$0xff]  ;;  %v2513_v56 = vld [vmem:[%s15232_s12 + $0x20] sm:$0xff] }
 0x2fb   : > { %v2038_v41 = vadd.f32 %v8896_v12, %v2037_v35  ;;  %v8898_v42 = vpop.eup %8897  ;;  %v2538_v35 = vld [vmem:[%s15232_s12 + $0xe8] sm:$0xff] }
 0x2fc   : > { %v2000_v43 = vsel %vm1999_vm11, %v8894_v9, %v1996_v38  ;;  %v8900_v45 = vpop.eup %8899  ;;  %v2049_v13 = vmul.f32 %v8898_v42, %v10489_v17  ;;  %vm2054_vm0 = vweird.f32 %v8898_v42  ;;  %v2303_v9 = vld [vmem:[%s15230_s10 + $0x38] sm:$0xff]  ;;  %v2305_v17 = vld [vmem:[%s15230_s10 + $0x48] sm:$0xff]  ;;  %v2533_v38 = vld [vmem:[%s15232_s12 + $0xc0] sm:$0xff] }
 0x2fd   : > { %v2005_v10 = vsel %vm2002_vm13, %v2004_v40, %v2000_v43  ;;  %v2042_v46 = vsel %vm2041_vm14, %v8896_v12, %v2038_v41  ;;  %v2091_v48 = vmul.f32 %v8900_v45, %v10491_v18  ;;  %vm2096_vm1 = vweird.f32 %v8900_v45  ;;  %vm2055_vm6 = vmor %vm2053_vm5, %vm2054_vm0  ;;  %v2308_v12 = vld [vmem:[%s15230_s10 + $0x60] sm:$0xff]  ;;  %v2531_v40 = vld [vmem:[%s15232_s12 + $0xb0] sm:$0xff] }
 0x2fe   : > { %v2047_v47 = vsel %vm2044_vm15, %v2046_v44, %v2042_v46  ;;  %v2104_v49 = vmul.f32 %v10463_v21, %v2005_v10  ;;  %v2050_v50 = vsub.f32 1.0, %v2049_v13  ;;  %v2099_v21 = vand.u32 2147483647, %v10491_v18  ;;  %vm2097_vm9 = vmor %vm2095_vm7, %vm2096_vm1  ;;  %v2311_v18 = vld [vmem:[%s15230_s10 + $0x78] sm:$0xff]  ;;  %v2530_v43 = vld [vmem:[%s15232_s12 + $0xa8] sm:$0xff] }
 0x2ff   : > { %v2107_v51 = vmul.f32 %v10465_v23, %v2047_v47  ;;  %v2092_v53 = vsub.f32 1.0, %v2091_v48  ;;  %v2060_v23 = vor.u32 1.1754944e-38, %v2059_v52  ;;  %v2532_v41 = vld [vmem:[%s15232_s12 + $0xb8] sm:$0xff]  ;;  %v2527_v44 = vld [vmem:[%s15232_s12 + $0x90] sm:$0xff]  ;;  %v2525_v10 = vld [vmem:[%s15232_s12 + $0x80] sm:$0xff] }
 0x300   : > { %7708 = vmatmul.msk.f32.vlgmr.msra.gmra.mxu1 %vm1919_vm4, %v2104_v49  ;;  %v2051_v54 = vmul.f32 %v8898_v42, %v2050_v50  ;;  %vm2100_vm10 = vcmp.eq.f32.partialorder %v2099_v21, 8.507059e+37  ;;  %v2526_v46 = vld [vmem:[%s15232_s12 + $0x88] sm:$0xff]  ;;  %v2523_v13 = vld [vmem:[%s15232_s12 + $0x70] sm:$0xff]  ;;  %v2524_v47 = vld [vmem:[%s15232_s12 + $0x78] sm:$0xff] }
 0x301   : > { %7711 = vmatmul.msk.f32.vlgmr.msrb.gmra.mxu0 %vm1919_vm4, %v2107_v51  ;;  %v2093_v57 = vmul.f32 %v8900_v45, %v2092_v53  ;;  %2329 = vmatpush.msra.mxu1 %v2297_v8  ;;  %v2521_v48 = vld [vmem:[%s15232_s12 + $0x60] sm:$0xff]  ;;  %v2522_v49 = vld [vmem:[%s15232_s12 + $0x68] sm:$0xff]  ;;  %v2519_v50 = vld [vmem:[%s15232_s12 + $0x50] sm:$0xff] }
 0x302   : > { %v2052_v58 = vadd.f32 %v8898_v42, %v2051_v54  ;;  %2398 = vmatpush.msrb.mxu0 %v2303_v9  ;;  %v2520_v51 = vld [vmem:[%s15232_s12 + $0x58] sm:$0xff]  ;;  %v2517_v52 = vld [vmem:[%s15232_s12 + $0x40] sm:$0xff]  ;;  %v2518_v53 = vld [vmem:[%s15232_s12 + $0x48] sm:$0xff] }
 0x303   : > { %v2094_v59 = vadd.f32 %v8900_v45, %v2093_v57  ;;  %2330 = vmatpush.msra.mxu1 %v2296_v14  ;;  %v2515_v54 = vld [vmem:[%s15232_s12 + $0x30] sm:$0xff]  ;;  %v2514_v57 = vld [vmem:[%s15232_s12 + $0x28] sm:$0xff]  ;;  %v2597_v14 = vld [vmem:[%s15234_s14 + $0x40] sm:$0xff] }
 0x304   : > { %v2056_v61 = vsel %vm2055_vm6, %v8898_v42, %v2052_v58  ;;  %2399 = vmatpush.msrb.mxu0 %v2302_v15  ;;  %v2529_v42 = vld [vmem:[%s15232_s12 + $0xa0] sm:$0xff]  ;;  %v2511_v21 = vld [vmem:[%s15232_s12 + $0x10] sm:$0xff]  ;;  %v2512_v58 = vld [vmem:[%s15232_s12 + $0x18] sm:$0xff] }
 0x305   : > { %v2061_v63 = vsel %vm2058_vm8, %v2060_v23, %v2056_v61  ;;  %v2098_v60 = vsel %vm2097_vm9, %v8900_v45, %v2094_v59  ;;  %v2528_v45 = vld [vmem:[%s15232_s12 + $0x98] sm:$0xff]  ;;  %v2603_v59 = vld [vmem:[%s15234_s14 + $0x70] sm:$0xff]  ;;  %v2509_v61 = vld [vmem:[%s15232_s12] sm:$0xff] }
 0x306   : > { %v2103_v0 = vsel %vm2100_vm10, %v2102_v62, %v2098_v60  ;;  %v2108_v1 = vmul.f32 %v10471_v26, %v2061_v63  ;;  %v2300_v26 = vld [vmem:[%s15230_s10 + $0x20] sm:$0xff]  ;;  %v2604_v23 = vld [vmem:[%s15234_s14 + $0x78] sm:$0xff]  ;;  %v2510_v62 = vld [vmem:[%s15232_s12 + $0x8] sm:$0xff] }
 0x307   : > { %v2111_v2 = vmul.f32 %v10473_v27, %v2103_v0  ;;  %2376 = vmatpush.msra.mxu3 %v2300_v26  ;;  %v2307_v27 = vld [vmem:[%s15230_s10 + $0x58] sm:$0xff]  ;;  %v2602_v60 = vld [vmem:[%s15234_s14 + $0x68] sm:$0xff]  ;;  %v2619_v0 = vld [vmem:[%s15234_s14 + $0xf0] sm:$0xff] }
 0x308   : > { %7712 = vmatmul.msk.f32.vlgmr.msrb.gmra.mxu1 %vm1919_vm4, %v2108_v1  ;;  %2444 = vmatpush.msrb.mxu2 %v2307_v27  ;;  %v2620_v63 = vld [vmem:[%s15234_s14 + $0xf8] sm:$0xff]  ;;  %v2601_v1 = vld [vmem:[%s15234_s14 + $0x60] sm:$0xff]  ;;  %v2599_v26 = vld [vmem:[%s15234_s14 + $0x50] sm:$0xff] }
 0x309   : > { %7715 = vmatmul.msk.f32.vlgmr.msra.gmra.mxu0 %vm1919_vm4, %v2111_v2  ;;  %2467 = vmatpush.msrb.mxu3 %v2309_v6  ;;  %v2618_v2 = vld [vmem:[%s15234_s14 + $0xe8] sm:$0xff]  ;;  %v2616_v27 = vld [vmem:[%s15234_s14 + $0xd8] sm:$0xff] }
 0x30a   : > { %2445 = vmatpush.msrb.mxu2 %v2306_v11  ;;  %2421 = vmatpush.msrb.mxu1 %v2305_v17  ;;  %v2598_v9 = vld [vmem:[%s15234_s14 + $0x48] sm:$0xff]  ;;  %v2615_v11 = vld [vmem:[%s15234_s14 + $0xd0] sm:$0xff] }
 0x30b   : > { %2468 = vmatpush.msrb.mxu3 %v2308_v12  ;;  %2490 = vmatpush.msra.mxu0 %v2311_v18  ;;  %v2614_v15 = vld [vmem:[%s15234_s14 + $0xc8] sm:$0xff]  ;;  %v2596_v18 = vld [vmem:[%s15234_s14 + $0x38] sm:$0xff] }
 0x30c   : > { %2422 = vmatpush.msrb.mxu1 %v2304_v20  ;;  %v2613_v20 = vld [vmem:[%s15234_s14 + $0xc0] sm:$0xff] }
 0x30d   : > { %2491 = vmatpush.msra.mxu0 %v2310_v22  ;;  %v2595_v22 = vld [vmem:[%s15234_s14 + $0x30] sm:$0xff] }
 0x359   : > { %v2155_v7 = vpop.f32.mrf.mxu2 }
 0x35a   : > { %7717 = vmatmul.msk.f32.vlgmr.msra.gmra.mxu2 %vm1692_vm2, %v2155_v7 }
 0x35b   : > { %2567 = vmatpush.msra.mxu2 %v2540_v33  ;;  %v2593_v33 = vld [vmem:[%s15234_s14 + $0x20] sm:$0xff] }
 0x35d   : > { %2568 = vmatpush.msra.mxu2 %v2538_v35 }
 0x35f   : > { %2569 = vmatpush.msra.mxu2 %v2536_v37 }
 0x361   : > { %v2178_v16 = vpop.f32.mrf.mxu3  ;;  %2570 = vmatpush.msra.mxu2 %v2534_v39 }
 0x362   : > { %7718 = vmatmul.msk.f32.vlgmr.msra.gmra.mxu3 %vm1692_vm2, %v2178_v16 }
 0x363   : > { %2571 = vmatpush.msra.mxu2 %v2532_v41  ;;  %2621 = vmatpush.msra.mxu3 %v2604_v23  ;;  %v7736_v23 = vld [vmem:[%s15254_s5 + $0x460] sm:$0xff] }
 0x365   : > { %2572 = vmatpush.msra.mxu2 %v2530_v43  ;;  %2622 = vmatpush.msra.mxu3 %v2603_v59  ;;  %v2591_v43 = vld [vmem:[%s15234_s14 + $0x10] sm:$0xff]  ;;  %v7785_v59 = vld [vmem:[%s15254_s5 + $0x5e8] sm:$0xff] }
 0x367   : > { %2573 = vmatpush.msra.mxu2 %v2528_v45  ;;  %2623 = vmatpush.msra.mxu3 %v2602_v60  ;;  %v2590_v45 = vld [vmem:[%s15234_s14 + $0x8] sm:$0xff]  ;;  %v7784_v60 = vld [vmem:[%s15254_s5 + $0x5e0] sm:$0xff] }
 0x369   : > { %2574 = vmatpush.msra.mxu2 %v2526_v46  ;;  %2624 = vmatpush.msra.mxu3 %v2601_v1  ;;  %v2608_v46 = vld [vmem:[%s15234_s14 + $0x98] sm:$0xff] }
 0x36a   : > { %v7767_v1 = vld [vmem:[%s15254_s5 + $0x558] sm:$0xff] }
 0x36b   : > { %2575 = vmatpush.msra.mxu2 %v2524_v47  ;;  %2625 = vmatpush.msra.mxu3 %v2600_v3  ;;  %v2606_v47 = vld [vmem:[%s15234_s14 + $0x88] sm:$0xff]  ;;  %v7783_v3 = vld [vmem:[%s15254_s5 + $0x5d8] sm:$0xff] }
 0x36d   : > { %2576 = vmatpush.msra.mxu2 %v2522_v49  ;;  %2626 = vmatpush.msra.mxu3 %v2599_v26  ;;  %v7739_v49 = vld [vmem:[%s15254_s5 + $0x478] sm:$0xff]  ;;  %v7766_v26 = vld [vmem:[%s15254_s5 + $0x550] sm:$0xff] }
 0x36f   : > { %2577 = vmatpush.msra.mxu2 %v2520_v51  ;;  %2627 = vmatpush.msra.mxu3 %v2598_v9  ;;  %v7771_v51 = vld [vmem:[%s15254_s5 + $0x578] sm:$0xff]  ;;  %v7732_v9 = vld [vmem:[%s15254_s5 + $0x440] sm:$0xff] }
 0x371   : > { %2578 = vmatpush.msra.mxu2 %v2518_v53  ;;  %2628 = vmatpush.msra.mxu3 %v2597_v14  ;;  %v7738_v53 = vld [vmem:[%s15254_s5 + $0x470] sm:$0xff]  ;;  %v7764_v14 = vld [vmem:[%s15254_s5 + $0x540] sm:$0xff] }
 0x373   : > { %2579 = vmatpush.msra.mxu2 %v2516_v55  ;;  %2629 = vmatpush.msra.mxu3 %v2596_v18  ;;  %v7770_v55 = vld [vmem:[%s15254_s5 + $0x570] sm:$0xff]  ;;  %v7747_v18 = vld [vmem:[%s15254_s5 + $0x4b8] sm:$0xff] }
 0x375   : > { %2580 = vmatpush.msra.mxu2 %v2514_v57  ;;  %2630 = vmatpush.msra.mxu3 %v2595_v22  ;;  %v7786_v57 = vld [vmem:[%s15254_s5 + $0x5f0] sm:$0xff] }
 0x376   : > { %v7730_v22 = vld [vmem:[%s15254_s5 + $0x430] sm:$0xff] }
 0x377   : > { %2581 = vmatpush.msra.mxu2 %v2512_v58  ;;  %v7769_v58 = vld [vmem:[%s15254_s5 + $0x568] sm:$0xff] }
 0x379   : > { %2582 = vmatpush.msra.mxu2 %v2510_v62  ;;  %v7768_v62 = vld [vmem:[%s15254_s5 + $0x560] sm:$0xff] }
 0x37c   : > { %v2247_v25 = vpop.f32.mrf.mxu2  ;;  %v2270_v29 = vpop.f32.mrf.mxu3 }
 0x37d   : > { %v2132_v24 = vpop.f32.mrf.mxu1  ;;  %7721 = vmatmul.msk.f32.vlgmr.msrb.gmra.mxu2 %vm1692_vm2, %v2247_v25  ;;  %7722 = vmatmul.msk.f32.vlgmr.msrb.gmra.mxu3 %vm1692_vm2, %v2270_v29  ;;  %v2594_v29 = vld [vmem:[%s15234_s14 + $0x28] sm:$0xff] }
 0x37e   : > { %v2201_v28 = vpop.f32.mrf.mxu0  ;;  %7716 = vmatmul.msk.f32.vlgmr.msra.gmra.mxu1 %vm1692_vm2, %v2132_v24  ;;  %v2612_v24 = vld [vmem:[%s15234_s14 + $0xb8] sm:$0xff]  ;;  %2631 = vmatpush.msra.mxu3 %v2594_v29  ;;  %v7762_v29 = vld [vmem:[%s15254_s5 + $0x530] sm:$0xff] }
 0x37f   : > { %7719 = vmatmul.msk.f32.vlgmr.msrb.gmra.mxu0 %vm1692_vm2, %v2201_v28  ;;  %2547 = vmatpush.msra.mxu1 %v2539_v32 }
 0x380   : > { %2641 = vmatpush.msrb.mxu0 %v2620_v63  ;;  %2632 = vmatpush.msra.mxu3 %v2593_v33  ;;  %v7735_v63 = vld [vmem:[%s15254_s5 + $0x458] sm:$0xff]  ;;  %v7761_v33 = vld [vmem:[%s15254_s5 + $0x528] sm:$0xff] }
 0x381   : > { %2548 = vmatpush.msra.mxu1 %v2537_v34 }
 0x382   : > { %2642 = vmatpush.msrb.mxu0 %v2619_v0  ;;  %v7751_v0 = vld [vmem:[%s15254_s5 + $0x4d8] sm:$0xff] }
 0x383   : > { %2549 = vmatpush.msra.mxu1 %v2535_v36  ;;  %v2592_v36 = vld [vmem:[%s15234_s14 + $0x18] sm:$0xff] }
 0x384   : > { %2643 = vmatpush.msrb.mxu0 %v2618_v2  ;;  %2633 = vmatpush.msra.mxu3 %v2592_v36  ;;  %v7734_v2 = vld [vmem:[%s15254_s5 + $0x450] sm:$0xff]  ;;  %v7777_v36 = vld [vmem:[%s15254_s5 + $0x5a8] sm:$0xff] }
 0x385   : > { %v2224_v30 = vpop.f32.mrf.mxu1  ;;  %2550 = vmatpush.msra.mxu1 %v2533_v38  ;;  %v8815_v38 = vld [vmem:[%s15231_s11] ss:$0 sm:$0xff] }
 0x386   : > { %v2293_v31 = vpop.f32.mrf.mxu0  ;;  %7720 = vmatmul.msk.f32.vlgmr.msrb.gmra.mxu1 %vm1692_vm2, %v2224_v30  ;;  %2644 = vmatpush.msrb.mxu0 %v2617_v4  ;;  %v2611_v30 = vld [vmem:[%s15234_s14 + $0xb0] sm:$0xff] }
 0x387   : > { %7723 = vmatmul.msk.f32.vlgmr.msra.gmra.mxu0 %vm1692_vm2, %v2293_v31  ;;  %2551 = vmatpush.msra.mxu1 %v2531_v40  ;;  %v7750_v4 = vld [vmem:[%s15254_s5 + $0x4d0] sm:$0xff] }
 0x388   : > { %2645 = vmatpush.msrb.mxu0 %v2616_v27  ;;  %2634 = vmatpush.msra.mxu3 %v2591_v43  ;;  %v7733_v27 = vld [vmem:[%s15254_s5 + $0x448] sm:$0xff] }
 0x389   : > { %2552 = vmatpush.msra.mxu1 %v2529_v42 }
 0x38a   : > { %2646 = vmatpush.msrb.mxu0 %v2615_v11  ;;  %2635 = vmatpush.msra.mxu3 %v2590_v45  ;;  %v7781_v11 = vld [vmem:[%s15254_s5 + $0x5c8] sm:$0xff]  ;;  %v7743_v45 = vld [vmem:[%s15254_s5 + $0x498] sm:$0xff] }
 0x38b   : > { %2553 = vmatpush.msra.mxu1 %v2527_v44  ;;  %v2610_v44 = vld [vmem:[%s15234_s14 + $0xa8] sm:$0xff] }
 0x38c   : > { %2647 = vmatpush.msrb.mxu0 %v2614_v15  ;;  %v7731_v15 = vld [vmem:[%s15254_s5 + $0x438] sm:$0xff] }
 0x38d   : > { %2554 = vmatpush.msra.mxu1 %v2525_v10  ;;  %v2589_v10 = vld [vmem:[%s15234_s14] sm:$0xff] }
 0x38e   : > { %2648 = vmatpush.msrb.mxu0 %v2613_v20  ;;  %2636 = vmatpush.msra.mxu3 %v2589_v10  ;;  %v7763_v20 = vld [vmem:[%s15254_s5 + $0x538] sm:$0xff] }
 0x38f   : > { %2555 = vmatpush.msra.mxu1 %v2523_v13  ;;  %v2607_v13 = vld [vmem:[%s15234_s14 + $0x90] sm:$0xff]  ;;  %v7775_v10 = vld [vmem:[%s15254_s5 + $0x598] sm:$0xff] }
 0x390   : > { %2649 = vmatpush.msrb.mxu0 %v2612_v24  ;;  %2869 = vmatpush.msrb.mxu3 %v7771_v51  ;;  %v7779_v24 = vld [vmem:[%s15254_s5 + $0x5b8] sm:$0xff] }
 0x391   : > { %2556 = vmatpush.msra.mxu1 %v2521_v48  ;;  %v2605_v48 = vld [vmem:[%s15234_s14 + $0x80] sm:$0xff] }
 0x392   : > { %2650 = vmatpush.msrb.mxu0 %v2611_v30  ;;  %2870 = vmatpush.msrb.mxu3 %v7770_v55  ;;  %v7729_v30 = vld [vmem:[%s15254_s5 + $0x428] sm:$0xff] }
 0x393   : > { %2557 = vmatpush.msra.mxu1 %v2519_v50  ;;  %v7755_v50 = vld [vmem:[%s15254_s5 + $0x4f8] sm:$0xff] }
 0x394   : > { %2651 = vmatpush.msrb.mxu0 %v2610_v44  ;;  %2849 = vmatpush.msrb.mxu2 %v7755_v50  ;;  %v7725_v50 = vld [vmem:[%s15254_s5 + $0x408] sm:$0xff] }
 0x395   : > { %2558 = vmatpush.msra.mxu1 %v2517_v52  ;;  %v7787_v52 = vld [vmem:[%s15254_s5 + $0x5f8] sm:$0xff]  ;;  %2871 = vmatpush.msrb.mxu3 %v7769_v58 }
 0x396   : > { %v7803_v58 = vld [vmem:[%s15254_s5 + $0x678] sm:$0xff] }
 0x397   : > { %2559 = vmatpush.msra.mxu1 %v2515_v54  ;;  %v7754_v54 = vld [vmem:[%s15254_s5 + $0x4f0] sm:$0xff]  ;;  %2872 = vmatpush.msrb.mxu3 %v7768_v62  ;;  %v7851_v62 = vld [vmem:[%s15254_s5 + $0x7f8] sm:$0xff] }
 0x398   : > { %2850 = vmatpush.msrb.mxu2 %v7754_v54  ;;  %v7724_v54 = vld [vmem:[%s15254_s5 + $0x400] sm:$0xff] }
 0x399   : > { %2560 = vmatpush.msra.mxu1 %v2513_v56  ;;  %v7737_v56 = vld [vmem:[%s15254_s5 + $0x468] sm:$0xff]  ;;  %2873 = vmatpush.msrb.mxu3 %v7767_v1  ;;  %v7850_v1 = vld [vmem:[%s15254_s5 + $0x7f0] sm:$0xff] }
 0x39b   : > { %2561 = vmatpush.msra.mxu1 %v2511_v21  ;;  %v7753_v21 = vld [vmem:[%s15254_s5 + $0x4e8] sm:$0xff]  ;;  %2874 = vmatpush.msrb.mxu3 %v7766_v26 }
 0x39c   : > { %2851 = vmatpush.msrb.mxu2 %v7753_v21  ;;  %v7756_v21 = vld [vmem:[%s15254_s5 + $0x500] sm:$0xff]  ;;  %v7849_v26 = vld [vmem:[%s15254_s5 + $0x7e8] sm:$0xff] }
 0x39d   : > { %2562 = vmatpush.msra.mxu1 %v2509_v61  ;;  %v7752_v61 = vld [vmem:[%s15254_s5 + $0x4e0] sm:$0xff] }
 0x39e   : > { %2852 = vmatpush.msrb.mxu2 %v7752_v61  ;;  %v7835_v61 = vld [vmem:[%s15254_s5 + $0x778] sm:$0xff] }
 0x39f   : > { %2829 = vmatpush.msrb.mxu1 %v7739_v49  ;;  %v7774_v49 = vld [vmem:[%s15254_s5 + $0x590] sm:$0xff] }
 0x3a0   : > { %2853 = vmatpush.msrb.mxu2 %v7751_v0  ;;  %v7834_v0 = vld [vmem:[%s15254_s5 + $0x770] sm:$0xff] }
 0x3a1   : > { %2830 = vmatpush.msrb.mxu1 %v7738_v53  ;;  %v7757_v53 = vld [vmem:[%s15254_s5 + $0x508] sm:$0xff] }
 0x3a2   : > { %2854 = vmatpush.msrb.mxu2 %v7750_v4  ;;  %v7833_v4 = vld [vmem:[%s15254_s5 + $0x768] sm:$0xff] }
 0x3a3   : > { %2831 = vmatpush.msrb.mxu1 %v7737_v56  ;;  %v7773_v56 = vld [vmem:[%s15254_s5 + $0x588] sm:$0xff] }
 0x3a5   : > { %2832 = vmatpush.msrb.mxu1 %v7736_v23  ;;  %v7772_v23 = vld [vmem:[%s15254_s5 + $0x580] sm:$0xff] }
 0x3a7   : > { %2833 = vmatpush.msrb.mxu1 %v7735_v63  ;;  %v7802_v63 = vld [vmem:[%s15254_s5 + $0x670] sm:$0xff] }
 0x3a9   : > { %2834 = vmatpush.msrb.mxu1 %v7734_v2  ;;  %v7801_v2 = vld [vmem:[%s15254_s5 + $0x668] sm:$0xff] }
 0x3ab   : > { %2835 = vmatpush.msrb.mxu1 %v7733_v27  ;;  %v7800_v27 = vld [vmem:[%s15254_s5 + $0x660] sm:$0xff] }
 0x3ad   : > { %2836 = vmatpush.msrb.mxu1 %v7732_v9  ;;  %v7799_v9 = vld [vmem:[%s15254_s5 + $0x658] sm:$0xff] }
 0x3af   : > { %2837 = vmatpush.msrb.mxu1 %v7731_v15  ;;  %v7798_v15 = vld [vmem:[%s15254_s5 + $0x650] sm:$0xff] }
 0x3b1   : > { %2838 = vmatpush.msrb.mxu1 %v7730_v22  ;;  %v7813_v22 = vld [vmem:[%s15254_s5 + $0x6c8] sm:$0xff] }
 0x3b3   : > { %2839 = vmatpush.msrb.mxu1 %v7729_v30  ;;  %v7828_v30 = vld [vmem:[%s15254_s5 + $0x740] sm:$0xff] }
 0x3dd   : > { %v2355_v6 = vpop.f32.mrf.mxu2 }
 0x3e5   : > { %v2378_v12 = vpop.f32.mrf.mxu3 }
 0x3fb   : > { %v2332_v7 = vpop.f32.mrf.mxu1 }
 0x3fc   : > { %v2496_v8 = vadd.f32 %v2355_v6, %v2332_v7  ;;  %v2401_v17 = vpop.f32.mrf.mxu0  ;;  %v7782_v6 = vld [vmem:[%s15254_s5 + $0x5d0] sm:$0xff]  ;;  %v7749_v7 = vld [vmem:[%s15254_s5 + $0x4c8] sm:$0xff] }
 0x3fd   : > { %2855 = vmatpush.msrb.mxu2 %v7749_v7  ;;  %v7832_v7 = vld [vmem:[%s15254_s5 + $0x760] sm:$0xff] }
 0x3fe   : > { %v2497_v16 = vadd.f32 %v2496_v8, %v2378_v12  ;;  %v7765_v8 = vld [vmem:[%s15254_s5 + $0x548] sm:$0xff]  ;;  %v7748_v12 = vld [vmem:[%s15254_s5 + $0x4c0] sm:$0xff] }
 0x3ff   : > { %2875 = vmatpush.msrb.mxu3 %v7765_v8  ;;  %2856 = vmatpush.msrb.mxu2 %v7748_v12  ;;  %v7848_v8 = vld [vmem:[%s15254_s5 + $0x7e0] sm:$0xff]  ;;  %v7831_v12 = vld [vmem:[%s15254_s5 + $0x758] sm:$0xff] }
 0x400   : > { %v2498_v25 = vadd.f32 %v2497_v16, %v2401_v17  ;;  %v2447_v32 = vpop.f32.mrf.mxu2  ;;  %v2470_v35 = vpop.f32.mrf.mxu3  ;;  %v2541_v16 = vld [vmem:[%s15233_s13] sm:$0x3] }
 0x401   : > { %v7780_v17 = vld [vmem:[%s15254_s5 + $0x5c0] sm:$0xff]  ;;  %2876 = vmatpush.msrb.mxu3 %v7764_v14  ;;  %2857 = vmatpush.msrb.mxu2 %v7747_v18  ;;  %v2544_v44 = vperm.slane %v2541_v16, 1  ;;  %v7847_v14 = vld [vmem:[%s15254_s5 + $0x7d8] sm:$0xff]  ;;  %v7846_v18 = vld [vmem:[%s15254_s5 + $0x7d0] sm:$0xff] }
 0x403   : > { %v2424_v28 = vpop.f32.mrf.mxu1  ;;  %2877 = vmatpush.msrb.mxu3 %v7763_v20  ;;  %v7797_v20 = vld [vmem:[%s15254_s5 + $0x648] sm:$0xff] }
 0x404   : > { %v2499_v31 = vadd.f32 %v2498_v25, %v2424_v28  ;;  %v2493_v39 = vpop.f32.mrf.mxu0  ;;  %v7746_v25 = vld [vmem:[%s15254_s5 + $0x4b0] sm:$0xff]  ;;  %v2543_v28 = vperm.slane %v2541_v16, 0 }
 0x405   : > { %2858 = vmatpush.msrb.mxu2 %v7746_v25  ;;  %2878 = vmatpush.msrb.mxu3 %v7762_v29  ;;  %v7814_v16 = vld [vmem:[%s15254_s5 + $0x6d0] sm:$0xff]  ;;  %v7845_v25 = vld [vmem:[%s15254_s5 + $0x7c8] sm:$0xff]  ;;  %v7812_v29 = vld [vmem:[%s15254_s5 + $0x6c0] sm:$0xff] }
 0x406   : > { %v2500_v34 = vadd.f32 %v2499_v31, %v2447_v32  ;;  %v7778_v31 = vld [vmem:[%s15254_s5 + $0x5b0] sm:$0xff]  ;;  %v7745_v32 = vld [vmem:[%s15254_s5 + $0x4a8] sm:$0xff] }
 0x407   : > { %2859 = vmatpush.msrb.mxu2 %v7745_v32  ;;  %2879 = vmatpush.msrb.mxu3 %v7761_v33  ;;  %v7795_v32 = vld [vmem:[%s15254_s5 + $0x638] sm:$0xff] }
 0x408   : > { %v2501_v37 = vadd.f32 %v2500_v34, %v2470_v35  ;;  %v7728_v34 = vld [vmem:[%s15254_s5 + $0x420] sm:$0xff]  ;;  %v7811_v33 = vld [vmem:[%s15254_s5 + $0x6b8] sm:$0xff] }
 0x409   : > { %2840 = vmatpush.msrb.mxu1 %v7728_v34  ;;  %v7827_v34 = vld [vmem:[%s15254_s5 + $0x738] sm:$0xff] }
 0x40a   : > { %v2502_v40 = vadd.f32 %v2501_v37, %v2493_v39  ;;  %v7744_v37 = vld [vmem:[%s15254_s5 + $0x4a0] sm:$0xff] }
 0x40b   : > { %v7760_v39 = vld [vmem:[%s15254_s5 + $0x520] sm:$0xff]  ;;  %2860 = vmatpush.msrb.mxu2 %v7744_v37  ;;  %v7810_v37 = vld [vmem:[%s15254_s5 + $0x6b0] sm:$0xff] }
 0x40c   : > { %v2507_v41 = vadd.f32 %v8815_v38, %v2502_v40  ;;  %v7727_v40 = vld [vmem:[%s15254_s5 + $0x418] sm:$0xff]  ;;  %2880 = vmatpush.msrb.mxu3 %v7760_v39  ;;  %v7842_v39 = vld [vmem:[%s15254_s5 + $0x7b0] sm:$0xff] }
 0x40d   : > { %2841 = vmatpush.msrb.mxu1 %v7727_v40  ;;  %2861 = vmatpush.msrb.mxu2 %v7743_v45  ;;  %v7793_v40 = vld [vmem:[%s15254_s5 + $0x628] sm:$0xff]  ;;  %v7792_v45 = vld [vmem:[%s15254_s5 + $0x620] sm:$0xff] }
 0x40e   : > { %v10741_v42 = vadd.f32 %v2507_v41, %v9529_v5  ;;  %v2609_v5 = vld [vmem:[%s15234_s14 + $0xa0] sm:$0xff] }
 0x40f   : > { %2652 = vmatpush.msrb.mxu0 %v2609_v5  ;;  %v7776_v41 = vld [vmem:[%s15254_s5 + $0x5a0] sm:$0xff]  ;;  %v7759_v5 = vld [vmem:[%s15254_s5 + $0x518] sm:$0xff] }
 0x410   : > { %2563 = vmatmul.f32.vlgmr.msra.gmra.mxu1 %v10741_v42  ;;  %2583 = vmatmul.f32.vlgmr.msra.gmra.mxu2 %v10741_v42 }
 0x411   : > { %2653 = vmatpush.msrb.mxu0 %v2608_v46  ;;  %v7726_v46 = vld [vmem:[%s15254_s5 + $0x410] sm:$0xff]  ;;  %2881 = vmatpush.msrb.mxu3 %v7759_v5  ;;  %v7808_v5 = vld [vmem:[%s15254_s5 + $0x6a0] sm:$0xff] }
 0x412   : > { %2842 = vmatpush.msrb.mxu1 %v7726_v46  ;;  %v7840_v46 = vld [vmem:[%s15254_s5 + $0x7a0] sm:$0xff] }
 0x413   : > { %2654 = vmatpush.msrb.mxu0 %v2607_v13  ;;  %v7742_v13 = vld [vmem:[%s15254_s5 + $0x490] sm:$0xff] }
 0x414   : > { %2862 = vmatpush.msrb.mxu2 %v7742_v13  ;;  %2843 = vmatpush.msrb.mxu1 %v7725_v50  ;;  %v7791_v13 = vld [vmem:[%s15254_s5 + $0x618] sm:$0xff]  ;;  %v7790_v50 = vld [vmem:[%s15254_s5 + $0x610] sm:$0xff] }
 0x415   : > { %2655 = vmatpush.msrb.mxu0 %v2606_v47  ;;  %v7758_v47 = vld [vmem:[%s15254_s5 + $0x510] sm:$0xff] }
 0x416   : > { %2882 = vmatpush.msrb.mxu3 %v7758_v47  ;;  %2844 = vmatpush.msrb.mxu1 %v7724_v54  ;;  %v7807_v47 = vld [vmem:[%s15254_s5 + $0x698] sm:$0xff]  ;;  %v7789_v54 = vld [vmem:[%s15254_s5 + $0x608] sm:$0xff] }
 0x417   : > { %2656 = vmatpush.msrb.mxu0 %v2605_v48 }
 0x418   : > { %2883 = vmatpush.msrb.mxu3 %v7757_v53  ;;  %2909 = vmatpush.msra.mxu1 %v7803_v58  ;;  %v7838_v53 = vld [vmem:[%s15254_s5 + $0x790] sm:$0xff]  ;;  %v7804_v58 = vld [vmem:[%s15254_s5 + $0x680] sm:$0xff] }
 0x419   : > { %2889 = vmatpush.msra.mxu0 %v7787_v52  ;;  %v7741_v52 = vld [vmem:[%s15254_s5 + $0x488] sm:$0xff] }
 0x41a   : > { %2863 = vmatpush.msrb.mxu2 %v7741_v52  ;;  %2884 = vmatpush.msrb.mxu3 %v7756_v21  ;;  %v7822_v52 = vld [vmem:[%s15254_s5 + $0x710] sm:$0xff]  ;;  %v7788_v21 = vld [vmem:[%s15254_s5 + $0x600] sm:$0xff] }
 0x41b   : > { %2890 = vmatpush.msra.mxu0 %v7786_v57  ;;  %v7740_v57 = vld [vmem:[%s15254_s5 + $0x480] sm:$0xff]  ;;  %2910 = vmatpush.msra.mxu1 %v7802_v63 }
 0x41c   : > { %2864 = vmatpush.msrb.mxu2 %v7740_v57  ;;  %v7837_v57 = vld [vmem:[%s15254_s5 + $0x788] sm:$0xff] }
 0x41d   : > { %2891 = vmatpush.msra.mxu0 %v7785_v59  ;;  %v7819_v59 = vld [vmem:[%s15254_s5 + $0x6f8] sm:$0xff]  ;;  %2911 = vmatpush.msra.mxu1 %v7801_v2 }
 0x41e   : > { %2929 = vmatpush.msra.mxu2 %v7819_v59  ;;  %v7836_v59 = vld [vmem:[%s15254_s5 + $0x780] sm:$0xff]  ;;  %v7875_v2 = vld [vmem:[%s15257_s21 + $0x478] sm:$0xff] }
 0x41f   : > { %2892 = vmatpush.msra.mxu0 %v7784_v60  ;;  %v7818_v60 = vld [vmem:[%s15254_s5 + $0x6f0] sm:$0xff]  ;;  %2912 = vmatpush.msra.mxu1 %v7800_v27 }
 0x420   : > { %2930 = vmatpush.msra.mxu2 %v7818_v60  ;;  %v8816_v60 = vld [vmem:[%s15235_s15] ss:$0 sm:$0xff]  ;;  %v7890_v27 = vld [vmem:[%s15257_s21 + $0x4f0] sm:$0xff] }
 0x421   : > { %2893 = vmatpush.msra.mxu0 %v7783_v3  ;;  %v7817_v3 = vld [vmem:[%s15254_s5 + $0x6e8] sm:$0xff]  ;;  %2913 = vmatpush.msra.mxu1 %v7799_v9 }
 0x422   : > { %2931 = vmatpush.msra.mxu2 %v7817_v3  ;;  %v7891_v3 = vld [vmem:[%s15257_s21 + $0x4f8] sm:$0xff]  ;;  %v7889_v9 = vld [vmem:[%s15257_s21 + $0x4e8] sm:$0xff] }
 0x423   : > { %2894 = vmatpush.msra.mxu0 %v7782_v6  ;;  %v7816_v6 = vld [vmem:[%s15254_s5 + $0x6e0] sm:$0xff]  ;;  %2914 = vmatpush.msra.mxu1 %v7798_v15 }
 0x424   : > { %2932 = vmatpush.msra.mxu2 %v7816_v6  ;;  %v7906_v6 = vld [vmem:[%s15257_s21 + $0x570] sm:$0xff]  ;;  %v7888_v15 = vld [vmem:[%s15257_s21 + $0x4e0] sm:$0xff] }
 0x425   : > { %2895 = vmatpush.msra.mxu0 %v7781_v11  ;;  %v7815_v11 = vld [vmem:[%s15254_s5 + $0x6d8] sm:$0xff]  ;;  %2915 = vmatpush.msra.mxu1 %v7797_v20 }
 0x426   : > { %2933 = vmatpush.msra.mxu2 %v7815_v11  ;;  %v7905_v11 = vld [vmem:[%s15257_s21 + $0x568] sm:$0xff]  ;;  %v7887_v20 = vld [vmem:[%s15257_s21 + $0x4d8] sm:$0xff] }
 0x427   : > { %2896 = vmatpush.msra.mxu0 %v7780_v17  ;;  %v7830_v17 = vld [vmem:[%s15254_s5 + $0x750] sm:$0xff] }
 0x428   : > { %2934 = vmatpush.msra.mxu2 %v7814_v16  ;;  %v7904_v16 = vld [vmem:[%s15257_s21 + $0x560] sm:$0xff] }
 0x429   : > { %2897 = vmatpush.msra.mxu0 %v7779_v24  ;;  %v7829_v24 = vld [vmem:[%s15254_s5 + $0x748] sm:$0xff] }
 0x42a   : > { %2935 = vmatpush.msra.mxu2 %v7813_v22  ;;  %v7903_v22 = vld [vmem:[%s15257_s21 + $0x558] sm:$0xff] }
 0x42b   : > { %2898 = vmatpush.msra.mxu0 %v7778_v31  ;;  %v7844_v31 = vld [vmem:[%s15254_s5 + $0x7c0] sm:$0xff] }
 0x42c   : > { %2936 = vmatpush.msra.mxu2 %v7812_v29  ;;  %v7902_v29 = vld [vmem:[%s15257_s21 + $0x550] sm:$0xff] }
 0x42d   : > { %2899 = vmatpush.msra.mxu0 %v7777_v36  ;;  %v7794_v36 = vld [vmem:[%s15254_s5 + $0x630] sm:$0xff] }
 0x42e   : > { %2937 = vmatpush.msra.mxu2 %v7811_v33  ;;  %v7901_v33 = vld [vmem:[%s15257_s21 + $0x548] sm:$0xff] }
 0x42f   : > { %2900 = vmatpush.msra.mxu0 %v7776_v41  ;;  %v7809_v41 = vld [vmem:[%s15254_s5 + $0x6a8] sm:$0xff] }
 0x430   : > { %2938 = vmatpush.msra.mxu2 %v7810_v37  ;;  %v7900_v37 = vld [vmem:[%s15257_s21 + $0x540] sm:$0xff] }
 0x431   : > { %2901 = vmatpush.msra.mxu0 %v7775_v10  ;;  %v7824_v10 = vld [vmem:[%s15254_s5 + $0x720] sm:$0xff] }
 0x432   : > { %2939 = vmatpush.msra.mxu2 %v7809_v41  ;;  %v7899_v41 = vld [vmem:[%s15257_s21 + $0x538] sm:$0xff] }
 0x433   : > { %2902 = vmatpush.msra.mxu0 %v7774_v49  ;;  %v7839_v49 = vld [vmem:[%s15254_s5 + $0x798] sm:$0xff] }
 0x434   : > { %2940 = vmatpush.msra.mxu2 %v7808_v5  ;;  %v7898_v5 = vld [vmem:[%s15257_s21 + $0x530] sm:$0xff] }
 0x435   : > { %2903 = vmatpush.msra.mxu0 %v7773_v56  ;;  %v7821_v56 = vld [vmem:[%s15254_s5 + $0x708] sm:$0xff] }
 0x436   : > { %2941 = vmatpush.msra.mxu2 %v7807_v47  ;;  %v7897_v47 = vld [vmem:[%s15257_s21 + $0x528] sm:$0xff] }
 0x437   : > { %2904 = vmatpush.msra.mxu0 %v7772_v23  ;;  %v7820_v23 = vld [vmem:[%s15254_s5 + $0x700] sm:$0xff] }
 0x48d   : > { %v2564_v35 = vpop.f32.mrf.mxu1 }
 0x48e   : > { %v2565_v38 = vadd.f32 %v2564_v35, %v2543_v28  ;;  %v7796_v28 = vld [vmem:[%s15254_s5 + $0x640] sm:$0xff]  ;;  %v7843_v35 = vld [vmem:[%s15254_s5 + $0x7b8] sm:$0xff] }
 0x48f   : > { %2916 = vmatpush.msra.mxu1 %v7796_v28  ;;  %v7886_v28 = vld [vmem:[%s15257_s21 + $0x4d0] sm:$0xff] }
 0x490   : > { %v2587_v43 = vmax.f32 %v2565_v38, 0.0  ;;  %v7826_v38 = vld [vmem:[%s15254_s5 + $0x730] sm:$0xff] }
 0x491   : > { %2917 = vmatpush.msra.mxu1 %v7795_v32  ;;  %v7885_v32 = vld [vmem:[%s15257_s21 + $0x4c8] sm:$0xff] }
 0x492   : > { %2637 = vmatmul.f32.vlgmr.msra.gmra.mxu3 %v2587_v43  ;;  %v7825_v43 = vld [vmem:[%s15254_s5 + $0x728] sm:$0xff] }
 0x493   : > { %v2584_v48 = vpop.f32.mrf.mxu2  ;;  %2949 = vmatpush.msra.mxu3 %v7835_v61  ;;  %2918 = vmatpush.msra.mxu1 %v7794_v36  ;;  %v7884_v36 = vld [vmem:[%s15257_s21 + $0x4c0] sm:$0xff] }
 0x494   : > { %v2585_v51 = vadd.f32 %v2584_v48, %v2544_v44  ;;  %v7841_v44 = vld [vmem:[%s15254_s5 + $0x7a8] sm:$0xff]  ;;  %v7823_v48 = vld [vmem:[%s15254_s5 + $0x718] sm:$0xff] }
 0x495   : > { %2950 = vmatpush.msra.mxu3 %v7834_v0  ;;  %2919 = vmatpush.msra.mxu1 %v7793_v40  ;;  %v7883_v40 = vld [vmem:[%s15257_s21 + $0x4b8] sm:$0xff] }
 0x496   : > { %v2588_v55 = vmax.f32 %v2585_v51, 0.0  ;;  %v7806_v51 = vld [vmem:[%s15254_s5 + $0x690] sm:$0xff] }
 0x497   : > { %2951 = vmatpush.msra.mxu3 %v7833_v4  ;;  %2920 = vmatpush.msra.mxu1 %v7792_v45  ;;  %v7907_v4 = vld [vmem:[%s15257_s21 + $0x578] sm:$0xff]  ;;  %v7882_v45 = vld [vmem:[%s15257_s21 + $0x4b0] sm:$0xff] }
 0x498   : > { %2657 = vmatmul.f32.vlgmr.msrb.gmra.mxu0 %v2588_v55  ;;  %2942 = vmatpush.msra.mxu2 %v7806_v51  ;;  %v7805_v55 = vld [vmem:[%s15254_s5 + $0x688] sm:$0xff]  ;;  %v7896_v51 = vld [vmem:[%s15257_s21 + $0x520] sm:$0xff] }
 0x499   : > { %2969 = vmatpush.msrb.mxu0 %v7851_v62  ;;  %2952 = vmatpush.msra.mxu3 %v7832_v7  ;;  %v7922_v7 = vld [vmem:[%s15257_s21 + $0x5f0] sm:$0xff] }
 0x49a   : > { %2921 = vmatpush.msra.mxu1 %v7791_v13  ;;  %2943 = vmatpush.msra.mxu2 %v7805_v55  ;;  %v7881_v13 = vld [vmem:[%s15257_s21 + $0x4a8] sm:$0xff]  ;;  %v7895_v55 = vld [vmem:[%s15257_s21 + $0x518] sm:$0xff] }
 0x49b   : > { %2970 = vmatpush.msrb.mxu0 %v7850_v1  ;;  %2953 = vmatpush.msra.mxu3 %v7831_v12  ;;  %v7921_v12 = vld [vmem:[%s15257_s21 + $0x5e8] sm:$0xff] }
 0x49c   : > { %2922 = vmatpush.msra.mxu1 %v7790_v50  ;;  %2944 = vmatpush.msra.mxu2 %v7804_v58  ;;  %v7880_v50 = vld [vmem:[%s15257_s21 + $0x4a0] sm:$0xff]  ;;  %v7894_v58 = vld [vmem:[%s15257_s21 + $0x510] sm:$0xff] }
 0x49d   : > { %2971 = vmatpush.msrb.mxu0 %v7849_v26  ;;  %2954 = vmatpush.msra.mxu3 %v7830_v17  ;;  %v7874_v26 = vld [vmem:[%s15257_s21 + $0x470] sm:$0xff]  ;;  %v7920_v17 = vld [vmem:[%s15257_s21 + $0x5e0] sm:$0xff] }
 0x49e   : > { %2923 = vmatpush.msra.mxu1 %v7789_v54  ;;  %v7879_v54 = vld [vmem:[%s15257_s21 + $0x498] sm:$0xff] }
 0x49f   : > { %2972 = vmatpush.msrb.mxu0 %v7848_v8  ;;  %2955 = vmatpush.msra.mxu3 %v7829_v24  ;;  %v7873_v8 = vld [vmem:[%s15257_s21 + $0x468] sm:$0xff]  ;;  %v7919_v24 = vld [vmem:[%s15257_s21 + $0x5d8] sm:$0xff] }
 0x4a0   : > { %2924 = vmatpush.msra.mxu1 %v7788_v21  ;;  %v7878_v21 = vld [vmem:[%s15257_s21 + $0x490] sm:$0xff] }
 0x4a1   : > { %2973 = vmatpush.msrb.mxu0 %v7847_v14  ;;  %2956 = vmatpush.msra.mxu3 %v7828_v30  ;;  %v7872_v14 = vld [vmem:[%s15257_s21 + $0x460] sm:$0xff]  ;;  %v7918_v30 = vld [vmem:[%s15257_s21 + $0x5d0] sm:$0xff] }
 0x4a3   : > { %2974 = vmatpush.msrb.mxu0 %v7846_v18  ;;  %2957 = vmatpush.msra.mxu3 %v7827_v34  ;;  %v7871_v18 = vld [vmem:[%s15257_s21 + $0x458] sm:$0xff]  ;;  %v7917_v34 = vld [vmem:[%s15257_s21 + $0x5c8] sm:$0xff] }
 0x4a5   : > { %2975 = vmatpush.msrb.mxu0 %v7845_v25  ;;  %2958 = vmatpush.msra.mxu3 %v7826_v38  ;;  %v7870_v25 = vld [vmem:[%s15257_s21 + $0x450] sm:$0xff]  ;;  %v7916_v38 = vld [vmem:[%s15257_s21 + $0x5c0] sm:$0xff] }
 0x4a7   : > { %2976 = vmatpush.msrb.mxu0 %v7844_v31  ;;  %2959 = vmatpush.msra.mxu3 %v7825_v43  ;;  %v7869_v31 = vld [vmem:[%s15257_s21 + $0x448] sm:$0xff]  ;;  %v7915_v43 = vld [vmem:[%s15257_s21 + $0x5b8] sm:$0xff] }
 0x4a9   : > { %2977 = vmatpush.msrb.mxu0 %v7843_v35  ;;  %2960 = vmatpush.msra.mxu3 %v7824_v10  ;;  %v7868_v35 = vld [vmem:[%s15257_s21 + $0x440] sm:$0xff]  ;;  %v7914_v10 = vld [vmem:[%s15257_s21 + $0x5b0] sm:$0xff] }
 0x4ab   : > { %2978 = vmatpush.msrb.mxu0 %v7842_v39  ;;  %2961 = vmatpush.msra.mxu3 %v7823_v48  ;;  %v7867_v39 = vld [vmem:[%s15257_s21 + $0x438] sm:$0xff]  ;;  %v7913_v48 = vld [vmem:[%s15257_s21 + $0x5a8] sm:$0xff] }
 0x4ad   : > { %2979 = vmatpush.msrb.mxu0 %v7841_v44  ;;  %2962 = vmatpush.msra.mxu3 %v7822_v52  ;;  %v7866_v44 = vld [vmem:[%s15257_s21 + $0x430] sm:$0xff]  ;;  %v7912_v52 = vld [vmem:[%s15257_s21 + $0x5a0] sm:$0xff] }
 0x4af   : > { %2980 = vmatpush.msrb.mxu0 %v7840_v46  ;;  %2963 = vmatpush.msra.mxu3 %v7821_v56  ;;  %v7865_v46 = vld [vmem:[%s15257_s21 + $0x428] sm:$0xff]  ;;  %v7911_v56 = vld [vmem:[%s15257_s21 + $0x598] sm:$0xff] }
 0x4b1   : > { %2981 = vmatpush.msrb.mxu0 %v7839_v49  ;;  %2964 = vmatpush.msra.mxu3 %v7820_v23  ;;  %v7864_v49 = vld [vmem:[%s15257_s21 + $0x420] sm:$0xff]  ;;  %v7910_v23 = vld [vmem:[%s15257_s21 + $0x590] sm:$0xff] }
 0x4b3   : > { %2982 = vmatpush.msrb.mxu0 %v7838_v53  ;;  %v7863_v53 = vld [vmem:[%s15257_s21 + $0x418] sm:$0xff] }
 0x4b5   : > { %2983 = vmatpush.msrb.mxu0 %v7837_v57  ;;  %v7862_v57 = vld [vmem:[%s15257_s21 + $0x410] sm:$0xff] }
 0x4b7   : > { %2984 = vmatpush.msrb.mxu0 %v7836_v59  ;;  %v7861_v59 = vld [vmem:[%s15257_s21 + $0x408] sm:$0xff] }
 0x515   : > { %v2638_v61 = vpop.f32.mrf.mxu3  ;;  %v2658_v62 = vpop.f32.mrf.mxu0 }
 0x516   : > { %v2659_v63 = vadd.f32 %v2658_v62, %v2638_v61  ;;  %v7877_v61 = vld [vmem:[%s15257_s21 + $0x488] sm:$0xff] }
 0x517   : > { %v7893_v62 = vld [vmem:[%s15257_s21 + $0x508] sm:$0xff] }
 0x518   : > { %v2661_v0 = vadd.f32 %v2659_v63, %v10741_v42  ;;  %v7923_v42 = vld [vmem:[%s15257_s21 + $0x5f8] sm:$0xff]  ;;  %v7909_v63 = vld [vmem:[%s15257_s21 + $0x588] sm:$0xff] }
 0x51a   : > { %v11163_v1 = vadd.f32 %v8816_v60, %v2661_v0  ;;  %v7860_v60 = vld [vmem:[%s15257_s21 + $0x400] sm:$0xff] }
 0x51b   : > { %v7876_v0 = vld [vmem:[%s15257_s21 + $0x480] sm:$0xff] }
 0x51c   : > { %2845 = vmatmul.f32.vlgmr.msrb.gmra.mxu1 %v11163_v1  ;;  %2865 = vmatmul.f32.vlgmr.msrb.gmra.mxu2 %v11163_v1 }
 0x51d   : > { %2885 = vmatmul.f32.vlgmr.msrb.gmra.mxu3 %v11163_v1  ;;  %2905 = vmatmul.f32.vlgmr.msra.gmra.mxu0 %v11163_v1 }
 0x51e   : > { %3151 = vmatpush.msrb.mxu1 %v7875_v2  ;;  %3171 = vmatpush.msrb.mxu2 %v7891_v3  ;;  %v7892_v2 = vld [vmem:[%s15257_s21 + $0x500] sm:$0xff] }
 0x51f   : > { %3191 = vmatpush.msrb.mxu3 %v7907_v4  ;;  %3211 = vmatpush.msra.mxu0 %v7923_v42  ;;  %v7908_v3 = vld [vmem:[%s15257_s21 + $0x580] sm:$0xff]  ;;  %v7939_v4 = vld [vmem:[%s15257_s21 + $0x678] sm:$0xff] }
 0x520   : > { %3152 = vmatpush.msrb.mxu1 %v7874_v26  ;;  %3172 = vmatpush.msrb.mxu2 %v7890_v27  ;;  %v7955_v42 = vld [vmem:[%s15257_s21 + $0x6f8] sm:$0xff] }
 0x521   : > { %3192 = vmatpush.msrb.mxu3 %v7906_v6  ;;  %3212 = vmatpush.msra.mxu0 %v7922_v7  ;;  %v7971_v26 = vld [vmem:[%s15257_s21 + $0x778] sm:$0xff]  ;;  %v7938_v6 = vld [vmem:[%s15257_s21 + $0x670] sm:$0xff] }
 0x522   : > { %3153 = vmatpush.msrb.mxu1 %v7873_v8  ;;  %3173 = vmatpush.msrb.mxu2 %v7889_v9  ;;  %v7987_v27 = vld [vmem:[%s15257_s21 + $0x7f8] sm:$0xff]  ;;  %v7954_v7 = vld [vmem:[%s15257_s21 + $0x6f0] sm:$0xff] }
 0x523   : > { %3193 = vmatpush.msrb.mxu3 %v7905_v11  ;;  %3213 = vmatpush.msra.mxu0 %v7921_v12  ;;  %v7970_v8 = vld [vmem:[%s15257_s21 + $0x770] sm:$0xff]  ;;  %v7937_v11 = vld [vmem:[%s15257_s21 + $0x668] sm:$0xff] }
 0x524   : > { %3154 = vmatpush.msrb.mxu1 %v7872_v14  ;;  %3174 = vmatpush.msrb.mxu2 %v7888_v15  ;;  %v7986_v9 = vld [vmem:[%s15257_s21 + $0x7f0] sm:$0xff]  ;;  %v7953_v12 = vld [vmem:[%s15257_s21 + $0x6e8] sm:$0xff] }
 0x525   : > { %3194 = vmatpush.msrb.mxu3 %v7904_v16  ;;  %3214 = vmatpush.msra.mxu0 %v7920_v17  ;;  %v7969_v14 = vld [vmem:[%s15257_s21 + $0x768] sm:$0xff]  ;;  %v7936_v16 = vld [vmem:[%s15257_s21 + $0x660] sm:$0xff] }
 0x526   : > { %2925 = vmatmul.f32.vlgmr.msra.gmra.mxu1 %v11163_v1  ;;  %2945 = vmatmul.f32.vlgmr.msra.gmra.mxu2 %v11163_v1  ;;  %v7985_v15 = vld [vmem:[%s15257_s21 + $0x7e8] sm:$0xff]  ;;  %v7952_v17 = vld [vmem:[%s15257_s21 + $0x6e0] sm:$0xff] }
 0x527   : > { %2965 = vmatmul.f32.vlgmr.msra.gmra.mxu3 %v11163_v1  ;;  %2985 = vmatmul.f32.vlgmr.msrb.gmra.mxu0 %v11163_v1 }
 0x528   : > { %3155 = vmatpush.msrb.mxu1 %v7871_v18  ;;  %3175 = vmatpush.msrb.mxu2 %v7887_v20  ;;  %v7968_v18 = vld [vmem:[%s15257_s21 + $0x760] sm:$0xff] }
 0x529   : > { %3195 = vmatpush.msrb.mxu3 %v7903_v22  ;;  %3215 = vmatpush.msra.mxu0 %v7919_v24  ;;  %v7984_v20 = vld [vmem:[%s15257_s21 + $0x7e0] sm:$0xff]  ;;  %v7935_v22 = vld [vmem:[%s15257_s21 + $0x658] sm:$0xff] }
 0x52a   : > { %3156 = vmatpush.msrb.mxu1 %v7870_v25  ;;  %3176 = vmatpush.msrb.mxu2 %v7886_v28  ;;  %v7951_v24 = vld [vmem:[%s15257_s21 + $0x6d8] sm:$0xff] }
 0x52b   : > { %3196 = vmatpush.msrb.mxu3 %v7902_v29  ;;  %3216 = vmatpush.msra.mxu0 %v7918_v30  ;;  %v7967_v25 = vld [vmem:[%s15257_s21 + $0x758] sm:$0xff]  ;;  %v7934_v29 = vld [vmem:[%s15257_s21 + $0x650] sm:$0xff] }
 0x52c   : > { %3157 = vmatpush.msrb.mxu1 %v7869_v31  ;;  %3177 = vmatpush.msrb.mxu2 %v7885_v32  ;;  %v7983_v28 = vld [vmem:[%s15257_s21 + $0x7d8] sm:$0xff]  ;;  %v7950_v30 = vld [vmem:[%s15257_s21 + $0x6d0] sm:$0xff] }
 0x52d   : > { %3197 = vmatpush.msrb.mxu3 %v7901_v33  ;;  %3217 = vmatpush.msra.mxu0 %v7917_v34  ;;  %v7966_v31 = vld [vmem:[%s15257_s21 + $0x750] sm:$0xff]  ;;  %v7933_v33 = vld [vmem:[%s15257_s21 + $0x648] sm:$0xff] }
 0x52e   : > { %3158 = vmatpush.msrb.mxu1 %v7868_v35  ;;  %3178 = vmatpush.msrb.mxu2 %v7884_v36  ;;  %v7982_v32 = vld [vmem:[%s15257_s21 + $0x7d0] sm:$0xff]  ;;  %v7949_v34 = vld [vmem:[%s15257_s21 + $0x6c8] sm:$0xff] }
 0x52f   : > { %3198 = vmatpush.msrb.mxu3 %v7900_v37  ;;  %3218 = vmatpush.msra.mxu0 %v7916_v38  ;;  %v7965_v35 = vld [vmem:[%s15257_s21 + $0x748] sm:$0xff]  ;;  %v7932_v37 = vld [vmem:[%s15257_s21 + $0x640] sm:$0xff] }
 0x530   : > { %3159 = vmatpush.msrb.mxu1 %v7867_v39  ;;  %3179 = vmatpush.msrb.mxu2 %v7883_v40  ;;  %v7981_v36 = vld [vmem:[%s15257_s21 + $0x7c8] sm:$0xff]  ;;  %v7948_v38 = vld [vmem:[%s15257_s21 + $0x6c0] sm:$0xff] }
 0x531   : > { %3199 = vmatpush.msrb.mxu3 %v7899_v41  ;;  %3219 = vmatpush.msra.mxu0 %v7915_v43  ;;  %v7964_v39 = vld [vmem:[%s15257_s21 + $0x740] sm:$0xff]  ;;  %v7931_v41 = vld [vmem:[%s15257_s21 + $0x638] sm:$0xff] }
 0x532   : > { %3160 = vmatpush.msrb.mxu1 %v7866_v44  ;;  %3180 = vmatpush.msrb.mxu2 %v7882_v45  ;;  %v7980_v40 = vld [vmem:[%s15257_s21 + $0x7c0] sm:$0xff]  ;;  %v7947_v43 = vld [vmem:[%s15257_s21 + $0x6b8] sm:$0xff] }
 0x533   : > { %3200 = vmatpush.msrb.mxu3 %v7898_v5  ;;  %3220 = vmatpush.msra.mxu0 %v7914_v10  ;;  %v7963_v44 = vld [vmem:[%s15257_s21 + $0x738] sm:$0xff]  ;;  %v7930_v5 = vld [vmem:[%s15257_s21 + $0x630] sm:$0xff] }
 0x534   : > { %3161 = vmatpush.msrb.mxu1 %v7865_v46  ;;  %3181 = vmatpush.msrb.mxu2 %v7881_v13  ;;  %v7979_v45 = vld [vmem:[%s15257_s21 + $0x7b8] sm:$0xff]  ;;  %v7946_v10 = vld [vmem:[%s15257_s21 + $0x6b0] sm:$0xff] }
 0x535   : > { %3201 = vmatpush.msrb.mxu3 %v7897_v47  ;;  %3221 = vmatpush.msra.mxu0 %v7913_v48  ;;  %v7962_v46 = vld [vmem:[%s15257_s21 + $0x730] sm:$0xff]  ;;  %v7929_v47 = vld [vmem:[%s15257_s21 + $0x628] sm:$0xff] }
 0x536   : > { %3162 = vmatpush.msrb.mxu1 %v7864_v49  ;;  %3182 = vmatpush.msrb.mxu2 %v7880_v50  ;;  %v7978_v13 = vld [vmem:[%s15257_s21 + $0x7b0] sm:$0xff]  ;;  %v7945_v48 = vld [vmem:[%s15257_s21 + $0x6a8] sm:$0xff] }
 0x537   : > { %3202 = vmatpush.msrb.mxu3 %v7896_v51  ;;  %3222 = vmatpush.msra.mxu0 %v7912_v52  ;;  %v7961_v49 = vld [vmem:[%s15257_s21 + $0x728] sm:$0xff]  ;;  %v7928_v51 = vld [vmem:[%s15257_s21 + $0x620] sm:$0xff] }
 0x538   : > { %3163 = vmatpush.msrb.mxu1 %v7863_v53  ;;  %3183 = vmatpush.msrb.mxu2 %v7879_v54  ;;  %v7977_v50 = vld [vmem:[%s15257_s21 + $0x7a8] sm:$0xff]  ;;  %v7944_v52 = vld [vmem:[%s15257_s21 + $0x6a0] sm:$0xff] }
 0x539   : > { %3203 = vmatpush.msrb.mxu3 %v7895_v55  ;;  %3223 = vmatpush.msra.mxu0 %v7911_v56  ;;  %v7960_v53 = vld [vmem:[%s15257_s21 + $0x720] sm:$0xff]  ;;  %v7927_v55 = vld [vmem:[%s15257_s21 + $0x618] sm:$0xff] }
 0x53a   : > { %3164 = vmatpush.msrb.mxu1 %v7862_v57  ;;  %3184 = vmatpush.msrb.mxu2 %v7878_v21  ;;  %v7976_v54 = vld [vmem:[%s15257_s21 + $0x7a0] sm:$0xff]  ;;  %v7943_v56 = vld [vmem:[%s15257_s21 + $0x698] sm:$0xff] }
 0x53b   : > { %3204 = vmatpush.msrb.mxu3 %v7894_v58  ;;  %3224 = vmatpush.msra.mxu0 %v7910_v23  ;;  %v7959_v57 = vld [vmem:[%s15257_s21 + $0x718] sm:$0xff]  ;;  %v7926_v58 = vld [vmem:[%s15257_s21 + $0x610] sm:$0xff] }
 0x53c   : > { %3165 = vmatpush.msrb.mxu1 %v7861_v59  ;;  %3185 = vmatpush.msrb.mxu2 %v7877_v61  ;;  %v7975_v21 = vld [vmem:[%s15257_s21 + $0x798] sm:$0xff]  ;;  %v7942_v23 = vld [vmem:[%s15257_s21 + $0x690] sm:$0xff] }
 0x53d   : > { %3205 = vmatpush.msrb.mxu3 %v7893_v62  ;;  %3225 = vmatpush.msra.mxu0 %v7909_v63  ;;  %v7958_v59 = vld [vmem:[%s15257_s21 + $0x710] sm:$0xff]  ;;  %v7925_v62 = vld [vmem:[%s15257_s21 + $0x608] sm:$0xff] }
 0x53e   : > { %3166 = vmatpush.msrb.mxu1 %v7860_v60  ;;  %3186 = vmatpush.msrb.mxu2 %v7876_v0  ;;  %v7974_v61 = vld [vmem:[%s15257_s21 + $0x790] sm:$0xff]  ;;  %v7941_v63 = vld [vmem:[%s15257_s21 + $0x688] sm:$0xff] }
 0x53f   : > { %3206 = vmatpush.msrb.mxu3 %v7892_v2  ;;  %3226 = vmatpush.msra.mxu0 %v7908_v3  ;;  %v7957_v60 = vld [vmem:[%s15257_s21 + $0x708] sm:$0xff]  ;;  %v7924_v2 = vld [vmem:[%s15257_s21 + $0x600] sm:$0xff] }
 0x540   : > { %3167 = vmatmul.f32.vlgmr.msrb.gmra.mxu1 %v11163_v1  ;;  %3187 = vmatmul.f32.vlgmr.msrb.gmra.mxu2 %v11163_v1  ;;  %v7973_v0 = vld [vmem:[%s15257_s21 + $0x788] sm:$0xff]  ;;  %v7940_v3 = vld [vmem:[%s15257_s21 + $0x680] sm:$0xff] }
 0x541   : > { %3207 = vmatmul.f32.vlgmr.msrb.gmra.mxu3 %v11163_v1  ;;  %3227 = vmatmul.f32.vlgmr.msra.gmra.mxu0 %v11163_v1 }
 0x542   : > { %3231 = vmatpush.msra.mxu1 %v7939_v4  ;;  %3251 = vmatpush.msra.mxu2 %v7955_v42  ;;  %v7956_v4 = vld [vmem:[%s15257_s21 + $0x700] sm:$0xff] }
 0x543   : > { %3271 = vmatpush.msra.mxu3 %v7971_v26  ;;  %3291 = vmatpush.msrb.mxu0 %v7987_v27  ;;  %v7972_v42 = vld [vmem:[%s15257_s21 + $0x780] sm:$0xff]  ;;  %v8011_v26 = vld [vmem:[%s15228_s8 + $0x478] sm:$0xff] }
 0x544   : > { %3232 = vmatpush.msra.mxu1 %v7938_v6  ;;  %3252 = vmatpush.msra.mxu2 %v7954_v7  ;;  %v8027_v27 = vld [vmem:[%s15228_s8 + $0x4f8] sm:$0xff] }
 0x545   : > { %3272 = vmatpush.msra.mxu3 %v7970_v8  ;;  %3292 = vmatpush.msrb.mxu0 %v7986_v9  ;;  %v8043_v6 = vld [vmem:[%s15228_s8 + $0x578] sm:$0xff]  ;;  %v8010_v8 = vld [vmem:[%s15228_s8 + $0x470] sm:$0xff] }
 0x546   : > { %3233 = vmatpush.msra.mxu1 %v7937_v11  ;;  %3253 = vmatpush.msra.mxu2 %v7953_v12  ;;  %v8059_v7 = vld [vmem:[%s15228_s8 + $0x5f8] sm:$0xff]  ;;  %v8026_v9 = vld [vmem:[%s15228_s8 + $0x4f0] sm:$0xff] }
 0x547   : > { %3273 = vmatpush.msra.mxu3 %v7969_v14  ;;  %3293 = vmatpush.msrb.mxu0 %v7985_v15  ;;  %v8042_v11 = vld [vmem:[%s15228_s8 + $0x570] sm:$0xff]  ;;  %v8009_v14 = vld [vmem:[%s15228_s8 + $0x468] sm:$0xff] }
 0x548   : > { %3234 = vmatpush.msra.mxu1 %v7936_v16  ;;  %3254 = vmatpush.msra.mxu2 %v7952_v17  ;;  %v8058_v12 = vld [vmem:[%s15228_s8 + $0x5f0] sm:$0xff]  ;;  %v8025_v15 = vld [vmem:[%s15228_s8 + $0x4e8] sm:$0xff] }
 0x549   : > { %3274 = vmatpush.msra.mxu3 %v7968_v18  ;;  %3294 = vmatpush.msrb.mxu0 %v7984_v20  ;;  %v8041_v16 = vld [vmem:[%s15228_s8 + $0x568] sm:$0xff]  ;;  %v8008_v18 = vld [vmem:[%s15228_s8 + $0x460] sm:$0xff] }
 0x54a   : > { %3235 = vmatpush.msra.mxu1 %v7935_v22  ;;  %3255 = vmatpush.msra.mxu2 %v7951_v24  ;;  %v8057_v17 = vld [vmem:[%s15228_s8 + $0x5e8] sm:$0xff]  ;;  %v8024_v20 = vld [vmem:[%s15228_s8 + $0x4e0] sm:$0xff] }
 0x54b   : > { %3275 = vmatpush.msra.mxu3 %v7967_v25  ;;  %3295 = vmatpush.msrb.mxu0 %v7983_v28  ;;  %v8040_v22 = vld [vmem:[%s15228_s8 + $0x560] sm:$0xff]  ;;  %v8007_v25 = vld [vmem:[%s15228_s8 + $0x458] sm:$0xff] }
 0x54c   : > { %3236 = vmatpush.msra.mxu1 %v7934_v29  ;;  %3256 = vmatpush.msra.mxu2 %v7950_v30  ;;  %v8056_v24 = vld [vmem:[%s15228_s8 + $0x5e0] sm:$0xff]  ;;  %v8023_v28 = vld [vmem:[%s15228_s8 + $0x4d8] sm:$0xff] }
 0x54d   : > { %3276 = vmatpush.msra.mxu3 %v7966_v31  ;;  %3296 = vmatpush.msrb.mxu0 %v7982_v32  ;;  %v8039_v29 = vld [vmem:[%s15228_s8 + $0x558] sm:$0xff]  ;;  %v8006_v31 = vld [vmem:[%s15228_s8 + $0x450] sm:$0xff] }
 0x54e   : > { %3237 = vmatpush.msra.mxu1 %v7933_v33  ;;  %3257 = vmatpush.msra.mxu2 %v7949_v34  ;;  %v8055_v30 = vld [vmem:[%s15228_s8 + $0x5d8] sm:$0xff]  ;;  %v8022_v32 = vld [vmem:[%s15228_s8 + $0x4d0] sm:$0xff] }
 0x54f   : > { %3277 = vmatpush.msra.mxu3 %v7965_v35  ;;  %3297 = vmatpush.msrb.mxu0 %v7981_v36  ;;  %v8038_v33 = vld [vmem:[%s15228_s8 + $0x550] sm:$0xff]  ;;  %v8005_v35 = vld [vmem:[%s15228_s8 + $0x448] sm:$0xff] }
 0x550   : > { %3238 = vmatpush.msra.mxu1 %v7932_v37  ;;  %3258 = vmatpush.msra.mxu2 %v7948_v38  ;;  %v8054_v34 = vld [vmem:[%s15228_s8 + $0x5d0] sm:$0xff]  ;;  %v8021_v36 = vld [vmem:[%s15228_s8 + $0x4c8] sm:$0xff] }
 0x551   : > { %3278 = vmatpush.msra.mxu3 %v7964_v39  ;;  %3298 = vmatpush.msrb.mxu0 %v7980_v40  ;;  %v8037_v37 = vld [vmem:[%s15228_s8 + $0x548] sm:$0xff]  ;;  %v8004_v39 = vld [vmem:[%s15228_s8 + $0x440] sm:$0xff] }
 0x552   : > { %3239 = vmatpush.msra.mxu1 %v7931_v41  ;;  %3259 = vmatpush.msra.mxu2 %v7947_v43  ;;  %v8053_v38 = vld [vmem:[%s15228_s8 + $0x5c8] sm:$0xff]  ;;  %v8020_v40 = vld [vmem:[%s15228_s8 + $0x4c0] sm:$0xff] }
 0x553   : > { %3279 = vmatpush.msra.mxu3 %v7963_v44  ;;  %3299 = vmatpush.msrb.mxu0 %v7979_v45  ;;  %v8036_v41 = vld [vmem:[%s15228_s8 + $0x540] sm:$0xff]  ;;  %v8003_v44 = vld [vmem:[%s15228_s8 + $0x438] sm:$0xff] }
 0x554   : > { %3240 = vmatpush.msra.mxu1 %v7930_v5  ;;  %3260 = vmatpush.msra.mxu2 %v7946_v10  ;;  %v8052_v43 = vld [vmem:[%s15228_s8 + $0x5c0] sm:$0xff]  ;;  %v8019_v45 = vld [vmem:[%s15228_s8 + $0x4b8] sm:$0xff] }
 0x555   : > { %3280 = vmatpush.msra.mxu3 %v7962_v46  ;;  %3300 = vmatpush.msrb.mxu0 %v7978_v13  ;;  %v8035_v5 = vld [vmem:[%s15228_s8 + $0x538] sm:$0xff]  ;;  %v8002_v46 = vld [vmem:[%s15228_s8 + $0x430] sm:$0xff] }
 0x556   : > { %3241 = vmatpush.msra.mxu1 %v7929_v47  ;;  %3261 = vmatpush.msra.mxu2 %v7945_v48  ;;  %v8051_v10 = vld [vmem:[%s15228_s8 + $0x5b8] sm:$0xff]  ;;  %v8018_v13 = vld [vmem:[%s15228_s8 + $0x4b0] sm:$0xff] }
 0x557   : > { %3281 = vmatpush.msra.mxu3 %v7961_v49  ;;  %3301 = vmatpush.msrb.mxu0 %v7977_v50  ;;  %v8034_v47 = vld [vmem:[%s15228_s8 + $0x530] sm:$0xff]  ;;  %v8001_v49 = vld [vmem:[%s15228_s8 + $0x428] sm:$0xff] }
 0x558   : > { %3242 = vmatpush.msra.mxu1 %v7928_v51  ;;  %3262 = vmatpush.msra.mxu2 %v7944_v52  ;;  %v8050_v48 = vld [vmem:[%s15228_s8 + $0x5b0] sm:$0xff]  ;;  %v8017_v50 = vld [vmem:[%s15228_s8 + $0x4a8] sm:$0xff] }
 0x559   : > { %3282 = vmatpush.msra.mxu3 %v7960_v53  ;;  %3302 = vmatpush.msrb.mxu0 %v7976_v54  ;;  %v8033_v51 = vld [vmem:[%s15228_s8 + $0x528] sm:$0xff]  ;;  %v8000_v53 = vld [vmem:[%s15228_s8 + $0x420] sm:$0xff] }
 0x55a   : > { %3243 = vmatpush.msra.mxu1 %v7927_v55  ;;  %3263 = vmatpush.msra.mxu2 %v7943_v56  ;;  %v8049_v52 = vld [vmem:[%s15228_s8 + $0x5a8] sm:$0xff]  ;;  %v8016_v54 = vld [vmem:[%s15228_s8 + $0x4a0] sm:$0xff] }
 0x55b   : > { %3283 = vmatpush.msra.mxu3 %v7959_v57  ;;  %3303 = vmatpush.msrb.mxu0 %v7975_v21  ;;  %v8032_v55 = vld [vmem:[%s15228_s8 + $0x520] sm:$0xff]  ;;  %v7999_v57 = vld [vmem:[%s15228_s8 + $0x418] sm:$0xff] }
 0x55c   : > { %3244 = vmatpush.msra.mxu1 %v7926_v58  ;;  %3264 = vmatpush.msra.mxu2 %v7942_v23  ;;  %v8048_v56 = vld [vmem:[%s15228_s8 + $0x5a0] sm:$0xff]  ;;  %v8015_v21 = vld [vmem:[%s15228_s8 + $0x498] sm:$0xff] }
 0x55d   : > { %3284 = vmatpush.msra.mxu3 %v7958_v59  ;;  %3304 = vmatpush.msrb.mxu0 %v7974_v61  ;;  %v8031_v58 = vld [vmem:[%s15228_s8 + $0x518] sm:$0xff]  ;;  %v7998_v59 = vld [vmem:[%s15228_s8 + $0x410] sm:$0xff] }
 0x55e   : > { %3245 = vmatpush.msra.mxu1 %v7925_v62  ;;  %3265 = vmatpush.msra.mxu2 %v7941_v63  ;;  %v8047_v23 = vld [vmem:[%s15228_s8 + $0x598] sm:$0xff]  ;;  %v8014_v61 = vld [vmem:[%s15228_s8 + $0x490] sm:$0xff] }
 0x55f   : > { %3285 = vmatpush.msra.mxu3 %v7957_v60  ;;  %3305 = vmatpush.msrb.mxu0 %v7973_v0  ;;  %v8030_v62 = vld [vmem:[%s15228_s8 + $0x510] sm:$0xff]  ;;  %v7997_v60 = vld [vmem:[%s15228_s8 + $0x408] sm:$0xff] }
 0x560   : > { %3246 = vmatpush.msra.mxu1 %v7924_v2  ;;  %3266 = vmatpush.msra.mxu2 %v7940_v3  ;;  %v8046_v63 = vld [vmem:[%s15228_s8 + $0x590] sm:$0xff]  ;;  %v8013_v0 = vld [vmem:[%s15228_s8 + $0x488] sm:$0xff] }
 0x561   : > { %3286 = vmatpush.msra.mxu3 %v7956_v4  ;;  %3306 = vmatpush.msrb.mxu0 %v7972_v42  ;;  %v8029_v2 = vld [vmem:[%s15228_s8 + $0x508] sm:$0xff]  ;;  %v7996_v4 = vld [vmem:[%s15228_s8 + $0x400] sm:$0xff] }
 0x562   : > { %3247 = vmatmul.f32.vlgmr.msra.gmra.mxu1 %v11163_v1  ;;  %3267 = vmatmul.f32.vlgmr.msra.gmra.mxu2 %v11163_v1  ;;  %v8045_v3 = vld [vmem:[%s15228_s8 + $0x588] sm:$0xff]  ;;  %v8012_v42 = vld [vmem:[%s15228_s8 + $0x480] sm:$0xff] }
 0x563   : > { %3287 = vmatmul.f32.vlgmr.msra.gmra.mxu3 %v11163_v1  ;;  %3307 = vmatmul.f32.vlgmr.msrb.gmra.mxu0 %v11163_v1 }
 0x564   : > { %3473 = vmatpush.msrb.mxu1 %v8011_v26  ;;  %3493 = vmatpush.msrb.mxu2 %v8027_v27  ;;  %v8028_v26 = vld [vmem:[%s15228_s8 + $0x500] sm:$0xff] }
 0x565   : > { %3513 = vmatpush.msrb.mxu3 %v8043_v6  ;;  %3533 = vmatpush.msra.mxu0 %v8059_v7  ;;  %v8044_v27 = vld [vmem:[%s15228_s8 + $0x580] sm:$0xff]  ;;  %v8075_v6 = vld [vmem:[%s15228_s8 + $0x678] sm:$0xff] }
 0x566   : > { %3474 = vmatpush.msrb.mxu1 %v8010_v8  ;;  %3494 = vmatpush.msrb.mxu2 %v8026_v9  ;;  %v8091_v7 = vld [vmem:[%s15228_s8 + $0x6f8] sm:$0xff] }
 0x567   : > { %3514 = vmatpush.msrb.mxu3 %v8042_v11  ;;  %3534 = vmatpush.msra.mxu0 %v8058_v12  ;;  %v8107_v8 = vld [vmem:[%s15228_s8 + $0x778] sm:$0xff]  ;;  %v8074_v11 = vld [vmem:[%s15228_s8 + $0x670] sm:$0xff] }
 0x568   : > { %3475 = vmatpush.msrb.mxu1 %v8009_v14  ;;  %3495 = vmatpush.msrb.mxu2 %v8025_v15  ;;  %v8123_v9 = vld [vmem:[%s15228_s8 + $0x7f8] sm:$0xff]  ;;  %v8090_v12 = vld [vmem:[%s15228_s8 + $0x6f0] sm:$0xff] }
 0x569   : > { %3515 = vmatpush.msrb.mxu3 %v8041_v16  ;;  %3535 = vmatpush.msra.mxu0 %v8057_v17  ;;  %v8106_v14 = vld [vmem:[%s15228_s8 + $0x770] sm:$0xff]  ;;  %v8073_v16 = vld [vmem:[%s15228_s8 + $0x668] sm:$0xff] }
 0x56a   : > { %3476 = vmatpush.msrb.mxu1 %v8008_v18  ;;  %3496 = vmatpush.msrb.mxu2 %v8024_v20  ;;  %v8122_v15 = vld [vmem:[%s15228_s8 + $0x7f0] sm:$0xff]  ;;  %v8089_v17 = vld [vmem:[%s15228_s8 + $0x6e8] sm:$0xff] }
 0x56b   : > { %3516 = vmatpush.msrb.mxu3 %v8040_v22  ;;  %3536 = vmatpush.msra.mxu0 %v8056_v24  ;;  %v8105_v18 = vld [vmem:[%s15228_s8 + $0x768] sm:$0xff]  ;;  %v8072_v22 = vld [vmem:[%s15228_s8 + $0x660] sm:$0xff] }
 0x56c   : > { %3477 = vmatpush.msrb.mxu1 %v8007_v25  ;;  %3497 = vmatpush.msrb.mxu2 %v8023_v28  ;;  %v8121_v20 = vld [vmem:[%s15228_s8 + $0x7e8] sm:$0xff]  ;;  %v8088_v24 = vld [vmem:[%s15228_s8 + $0x6e0] sm:$0xff] }
 0x56d   : > { %3517 = vmatpush.msrb.mxu3 %v8039_v29  ;;  %3537 = vmatpush.msra.mxu0 %v8055_v30  ;;  %v8104_v25 = vld [vmem:[%s15228_s8 + $0x760] sm:$0xff]  ;;  %v8071_v29 = vld [vmem:[%s15228_s8 + $0x658] sm:$0xff] }
 0x56e   : > { %3478 = vmatpush.msrb.mxu1 %v8006_v31  ;;  %3498 = vmatpush.msrb.mxu2 %v8022_v32  ;;  %v8120_v28 = vld [vmem:[%s15228_s8 + $0x7e0] sm:$0xff]  ;;  %v8087_v30 = vld [vmem:[%s15228_s8 + $0x6d8] sm:$0xff] }
 0x56f   : > { %3518 = vmatpush.msrb.mxu3 %v8038_v33  ;;  %3538 = vmatpush.msra.mxu0 %v8054_v34  ;;  %v8103_v31 = vld [vmem:[%s15228_s8 + $0x758] sm:$0xff]  ;;  %v8070_v33 = vld [vmem:[%s15228_s8 + $0x650] sm:$0xff] }
 0x570   : > { %3479 = vmatpush.msrb.mxu1 %v8005_v35  ;;  %3499 = vmatpush.msrb.mxu2 %v8021_v36  ;;  %v8119_v32 = vld [vmem:[%s15228_s8 + $0x7d8] sm:$0xff]  ;;  %v8086_v34 = vld [vmem:[%s15228_s8 + $0x6d0] sm:$0xff] }
 0x571   : > { %3519 = vmatpush.msrb.mxu3 %v8037_v37  ;;  %3539 = vmatpush.msra.mxu0 %v8053_v38  ;;  %v8102_v35 = vld [vmem:[%s15228_s8 + $0x750] sm:$0xff]  ;;  %v8069_v37 = vld [vmem:[%s15228_s8 + $0x648] sm:$0xff] }
 0x572   : > { %3480 = vmatpush.msrb.mxu1 %v8004_v39  ;;  %3500 = vmatpush.msrb.mxu2 %v8020_v40  ;;  %v8118_v36 = vld [vmem:[%s15228_s8 + $0x7d0] sm:$0xff]  ;;  %v8085_v38 = vld [vmem:[%s15228_s8 + $0x6c8] sm:$0xff] }
 0x573   : > { %3520 = vmatpush.msrb.mxu3 %v8036_v41  ;;  %3540 = vmatpush.msra.mxu0 %v8052_v43  ;;  %v8101_v39 = vld [vmem:[%s15228_s8 + $0x748] sm:$0xff]  ;;  %v8068_v41 = vld [vmem:[%s15228_s8 + $0x640] sm:$0xff] }
 0x574   : > { %3481 = vmatpush.msrb.mxu1 %v8003_v44  ;;  %3501 = vmatpush.msrb.mxu2 %v8019_v45  ;;  %v8117_v40 = vld [vmem:[%s15228_s8 + $0x7c8] sm:$0xff]  ;;  %v8084_v43 = vld [vmem:[%s15228_s8 + $0x6c0] sm:$0xff] }
 0x575   : > { %3521 = vmatpush.msrb.mxu3 %v8035_v5  ;;  %3541 = vmatpush.msra.mxu0 %v8051_v10  ;;  %v8100_v44 = vld [vmem:[%s15228_s8 + $0x740] sm:$0xff]  ;;  %v8067_v5 = vld [vmem:[%s15228_s8 + $0x638] sm:$0xff] }
 0x576   : > { %3482 = vmatpush.msrb.mxu1 %v8002_v46  ;;  %3502 = vmatpush.msrb.mxu2 %v8018_v13  ;;  %v8116_v45 = vld [vmem:[%s15228_s8 + $0x7c0] sm:$0xff]  ;;  %v8083_v10 = vld [vmem:[%s15228_s8 + $0x6b8] sm:$0xff] }
 0x577   : > { %3522 = vmatpush.msrb.mxu3 %v8034_v47  ;;  %3542 = vmatpush.msra.mxu0 %v8050_v48  ;;  %v8099_v46 = vld [vmem:[%s15228_s8 + $0x738] sm:$0xff]  ;;  %v8066_v47 = vld [vmem:[%s15228_s8 + $0x630] sm:$0xff] }
 0x578   : > { %3483 = vmatpush.msrb.mxu1 %v8001_v49  ;;  %3503 = vmatpush.msrb.mxu2 %v8017_v50  ;;  %v8115_v13 = vld [vmem:[%s15228_s8 + $0x7b8] sm:$0xff]  ;;  %v8082_v48 = vld [vmem:[%s15228_s8 + $0x6b0] sm:$0xff] }
 0x579   : > { %3523 = vmatpush.msrb.mxu3 %v8033_v51  ;;  %3543 = vmatpush.msra.mxu0 %v8049_v52  ;;  %v8098_v49 = vld [vmem:[%s15228_s8 + $0x730] sm:$0xff]  ;;  %v8065_v51 = vld [vmem:[%s15228_s8 + $0x628] sm:$0xff] }
 0x57a   : > { %3484 = vmatpush.msrb.mxu1 %v8000_v53  ;;  %3504 = vmatpush.msrb.mxu2 %v8016_v54  ;;  %v8114_v50 = vld [vmem:[%s15228_s8 + $0x7b0] sm:$0xff]  ;;  %v8081_v52 = vld [vmem:[%s15228_s8 + $0x6a8] sm:$0xff] }
 0x57b   : > { %3524 = vmatpush.msrb.mxu3 %v8032_v55  ;;  %3544 = vmatpush.msra.mxu0 %v8048_v56  ;;  %v8097_v53 = vld [vmem:[%s15228_s8 + $0x728] sm:$0xff]  ;;  %v8064_v55 = vld [vmem:[%s15228_s8 + $0x620] sm:$0xff] }
 0x57c   : > { %3485 = vmatpush.msrb.mxu1 %v7999_v57  ;;  %3505 = vmatpush.msrb.mxu2 %v8015_v21  ;;  %v8113_v54 = vld [vmem:[%s15228_s8 + $0x7a8] sm:$0xff]  ;;  %v8080_v56 = vld [vmem:[%s15228_s8 + $0x6a0] sm:$0xff] }
 0x57d   : > { %3525 = vmatpush.msrb.mxu3 %v8031_v58  ;;  %3545 = vmatpush.msra.mxu0 %v8047_v23  ;;  %v8096_v57 = vld [vmem:[%s15228_s8 + $0x720] sm:$0xff]  ;;  %v8063_v58 = vld [vmem:[%s15228_s8 + $0x618] sm:$0xff] }
 0x57e   : > { %3486 = vmatpush.msrb.mxu1 %v7998_v59  ;;  %3506 = vmatpush.msrb.mxu2 %v8014_v61  ;;  %v8112_v21 = vld [vmem:[%s15228_s8 + $0x7a0] sm:$0xff]  ;;  %v8079_v23 = vld [vmem:[%s15228_s8 + $0x698] sm:$0xff] }
 0x57f   : > { %3526 = vmatpush.msrb.mxu3 %v8030_v62  ;;  %3546 = vmatpush.msra.mxu0 %v8046_v63  ;;  %v8095_v59 = vld [vmem:[%s15228_s8 + $0x718] sm:$0xff]  ;;  %v8062_v62 = vld [vmem:[%s15228_s8 + $0x610] sm:$0xff] }
 0x580   : > { %3487 = vmatpush.msrb.mxu1 %v7997_v60  ;;  %3507 = vmatpush.msrb.mxu2 %v8013_v0  ;;  %v8111_v61 = vld [vmem:[%s15228_s8 + $0x798] sm:$0xff]  ;;  %v8078_v63 = vld [vmem:[%s15228_s8 + $0x690] sm:$0xff] }
 0x581   : > { %3527 = vmatpush.msrb.mxu3 %v8029_v2  ;;  %3547 = vmatpush.msra.mxu0 %v8045_v3  ;;  %v8094_v60 = vld [vmem:[%s15228_s8 + $0x710] sm:$0xff]  ;;  %v8061_v2 = vld [vmem:[%s15228_s8 + $0x608] sm:$0xff] }
 0x582   : > { %3488 = vmatpush.msrb.mxu1 %v7996_v4  ;;  %3508 = vmatpush.msrb.mxu2 %v8012_v42  ;;  %v8110_v0 = vld [vmem:[%s15228_s8 + $0x790] sm:$0xff]  ;;  %v8077_v3 = vld [vmem:[%s15228_s8 + $0x688] sm:$0xff] }
 0x583   : > { %3528 = vmatpush.msrb.mxu3 %v8028_v26  ;;  %3548 = vmatpush.msra.mxu0 %v8044_v27  ;;  %v8093_v4 = vld [vmem:[%s15228_s8 + $0x708] sm:$0xff]  ;;  %v8060_v26 = vld [vmem:[%s15228_s8 + $0x600] sm:$0xff] }
 0x584   : > { %3489 = vmatmul.f32.vlgmr.msrb.gmra.mxu1 %v11163_v1  ;;  %3509 = vmatmul.f32.vlgmr.msrb.gmra.mxu2 %v11163_v1  ;;  %v8109_v42 = vld [vmem:[%s15228_s8 + $0x788] sm:$0xff]  ;;  %v8076_v27 = vld [vmem:[%s15228_s8 + $0x680] sm:$0xff] }
 0x585   : > { %3529 = vmatmul.f32.vlgmr.msrb.gmra.mxu3 %v11163_v1  ;;  %3549 = vmatmul.f32.vlgmr.msra.gmra.mxu0 %v11163_v1 }
 0x586   : > { %3553 = vmatpush.msra.mxu1 %v8075_v6  ;;  %3573 = vmatpush.msra.mxu2 %v8091_v7  ;;  %v8092_v6 = vld [vmem:[%s15228_s8 + $0x700] sm:$0xff] }
 0x587   : > { %3593 = vmatpush.msra.mxu3 %v8107_v8  ;;  %3613 = vmatpush.msrb.mxu0 %v8123_v9  ;;  %v8108_v7 = vld [vmem:[%s15228_s8 + $0x780] sm:$0xff] }
 0x588   : > { %3554 = vmatpush.msra.mxu1 %v8074_v11  ;;  %3574 = vmatpush.msra.mxu2 %v8090_v12 }
 0x589   : > { %3594 = vmatpush.msra.mxu3 %v8106_v14  ;;  %3614 = vmatpush.msrb.mxu0 %v8122_v15 }
 0x58a   : > { %3555 = vmatpush.msra.mxu1 %v8073_v16  ;;  %3575 = vmatpush.msra.mxu2 %v8089_v17  ;;  %v8825_v16 = vld [vmem:[%s15227_s7 + $0x8] ss:$0 sm:$0xff] }
 0x58b   : > { %3595 = vmatpush.msra.mxu3 %v8105_v18  ;;  %3615 = vmatpush.msrb.mxu0 %v8121_v20  ;;  %v8826_v18 = vld [vmem:[%s15227_s7 + $0xb] ss:$0 sm:$0xff] }
 0x58c   : > { %3556 = vmatpush.msra.mxu1 %v8072_v22  ;;  %3576 = vmatpush.msra.mxu2 %v8088_v24  ;;  %v8817_v22 = vld [vmem:[%s15258_s23 + $0x8] ss:$0 sm:$0xff] }
 0x58d   : > { %3596 = vmatpush.msra.mxu3 %v8104_v25  ;;  %3616 = vmatpush.msrb.mxu0 %v8120_v28  ;;  %v8818_v25 = vld [vmem:[%s15258_s23 + $0xb] ss:$0 sm:$0xff] }
 0x58e   : > { %3557 = vmatpush.msra.mxu1 %v8071_v29  ;;  %3577 = vmatpush.msra.mxu2 %v8087_v30 }
 0x58f   : > { %3597 = vmatpush.msra.mxu3 %v8103_v31  ;;  %3617 = vmatpush.msrb.mxu0 %v8119_v32  ;;  %v8827_v31 = vld [vmem:[%s15227_s7 + $0x9] ss:$0 sm:$0xff] }
 0x590   : > { %3558 = vmatpush.msra.mxu1 %v8070_v33  ;;  %3578 = vmatpush.msra.mxu2 %v8086_v34  ;;  %v8828_v33 = vld [vmem:[%s15227_s7 + $0xa] ss:$0 sm:$0xff] }
 0x591   : > { %3598 = vmatpush.msra.mxu3 %v8102_v35  ;;  %3618 = vmatpush.msrb.mxu0 %v8118_v36  ;;  %v8819_v35 = vld [vmem:[%s15258_s23 + $0x9] ss:$0 sm:$0xff] }
 0x592   : > { %3559 = vmatpush.msra.mxu1 %v8069_v37  ;;  %3579 = vmatpush.msra.mxu2 %v8085_v38  ;;  %v8820_v37 = vld [vmem:[%s15258_s23 + $0xa] ss:$0 sm:$0xff] }
 0x593   : > { %3599 = vmatpush.msra.mxu3 %v8101_v39  ;;  %3619 = vmatpush.msrb.mxu0 %v8117_v40 }
 0x594   : > { %3560 = vmatpush.msra.mxu1 %v8068_v41  ;;  %3580 = vmatpush.msra.mxu2 %v8084_v43 }
 0x595   : > { %3600 = vmatpush.msra.mxu3 %v8100_v44  ;;  %3620 = vmatpush.msrb.mxu0 %v8116_v45  ;;  %v8829_v44 = vld [vmem:[%s15227_s7 + $0xc] ss:$0 sm:$0xff]  ;;  %v8830_v45 = vld [vmem:[%s15227_s7 + $0xf] ss:$0 sm:$0xff] }
 0x596   : > { %3561 = vmatpush.msra.mxu1 %v8067_v5  ;;  %3581 = vmatpush.msra.mxu2 %v8083_v10  ;;  %v8821_v5 = vld [vmem:[%s15258_s23 + $0xc] ss:$0 sm:$0xff] }
 0x597   : > { %3601 = vmatpush.msra.mxu3 %v8099_v46  ;;  %3621 = vmatpush.msrb.mxu0 %v8115_v13  ;;  %v8822_v46 = vld [vmem:[%s15258_s23 + $0xf] ss:$0 sm:$0xff] }
 0x598   : > { %3562 = vmatpush.msra.mxu1 %v8066_v47  ;;  %3582 = vmatpush.msra.mxu2 %v8082_v48 }
 0x599   : > { %3602 = vmatpush.msra.mxu3 %v8098_v49  ;;  %3622 = vmatpush.msrb.mxu0 %v8114_v50  ;;  %v2846_v8 = vpop.f32.mrf.mxu1  ;;  %v8831_v49 = vld [vmem:[%s15227_s7 + $0xd] ss:$0 sm:$0xff] }
 0x59a   : > { %3563 = vmatpush.msra.mxu1 %v8065_v51  ;;  %3583 = vmatpush.msra.mxu2 %v8081_v52  ;;  %v2906_v9 = vpop.f32.mrf.mxu0  ;;  %v2847_v32 = vadd.f32 %v8817_v22, %v2846_v8  ;;  %v8832_v51 = vld [vmem:[%s15227_s7 + $0xe] ss:$0 sm:$0xff] }
 0x59b   : > { %3603 = vmatpush.msra.mxu3 %v8097_v53  ;;  %3623 = vmatpush.msrb.mxu0 %v8113_v54  ;;  %v2907_v34 = vadd.f32 %v8818_v25, %v2906_v9  ;;  %v8823_v53 = vld [vmem:[%s15258_s23 + $0xd] ss:$0 sm:$0xff] }
 0x59c   : > { %3564 = vmatpush.msra.mxu1 %v8064_v55  ;;  %3584 = vmatpush.msra.mxu2 %v8080_v56  ;;  %v8824_v55 = vld [vmem:[%s15258_s23 + $0xe] ss:$0 sm:$0xff] }
 0x59d   : > { %3604 = vmatpush.msra.mxu3 %v8096_v57  ;;  %3624 = vmatpush.msrb.mxu0 %v8112_v21 }
 0x59e   : > { %3565 = vmatpush.msra.mxu1 %v8063_v58  ;;  %3585 = vmatpush.msra.mxu2 %v8079_v23 }
 0x59f   : > { %3605 = vmatpush.msra.mxu3 %v8095_v59  ;;  %3625 = vmatpush.msrb.mxu0 %v8111_v61  ;;  %v2866_v11 = vpop.f32.mrf.mxu2  ;;  %v8833_v59 = vld [vmem:[%s15229_s9 + $0x8] ss:$0 sm:$0xff]  ;;  %v8834_v61 = vld [vmem:[%s15229_s9 + $0xb] ss:$0 sm:$0xff] }
 0x5a0   : > { %3566 = vmatpush.msra.mxu1 %v8062_v62  ;;  %3586 = vmatpush.msra.mxu2 %v8078_v63  ;;  %v2886_v12 = vpop.f32.mrf.mxu3  ;;  %v2867_v41 = vadd.f32 %v8819_v35, %v2866_v11 }
 0x5a1   : > { %3606 = vmatpush.msra.mxu3 %v8094_v60  ;;  %3626 = vmatpush.msrb.mxu0 %v8110_v0  ;;  %v2887_v43 = vadd.f32 %v8820_v37, %v2886_v12 }
 0x5a2   : > { %3567 = vmatpush.msra.mxu1 %v8061_v2  ;;  %3587 = vmatpush.msra.mxu2 %v8077_v3  ;;  %v8835_v2 = vld [vmem:[%s15229_s9 + $0x9] ss:$0 sm:$0xff]  ;;  %v8836_v3 = vld [vmem:[%s15229_s9 + $0xa] ss:$0 sm:$0xff] }
 0x5a3   : > { %3607 = vmatpush.msra.mxu3 %v8093_v4  ;;  %3627 = vmatpush.msrb.mxu0 %v8109_v42  ;;  %v2926_v14 = vpop.f32.mrf.mxu1 }
 0x5a4   : > { %3568 = vmatpush.msra.mxu1 %v8060_v26  ;;  %3588 = vmatpush.msra.mxu2 %v8076_v27  ;;  %v2986_v15 = vpop.f32.mrf.mxu0  ;;  %v2927_v50 = vadd.f32 %v8821_v5, %v2926_v14  ;;  %v8839_v14 = vld [vmem:[%s15229_s9 + $0xd] ss:$0 sm:$0xff] }
 0x5a5   : > { %3608 = vmatpush.msra.mxu3 %v8092_v6  ;;  %3628 = vmatpush.msrb.mxu0 %v8108_v7  ;;  %v2987_v52 = vadd.f32 %v8822_v46, %v2986_v15  ;;  %v8837_v6 = vld [vmem:[%s15229_s9 + $0xc] ss:$0 sm:$0xff]  ;;  %v8838_v7 = vld [vmem:[%s15229_s9 + $0xf] ss:$0 sm:$0xff]  ;;  %v8840_v15 = vld [vmem:[%s15229_s9 + $0xe] ss:$0 sm:$0xff] }
 0x5a6   : > { %3569 = vmatmul.f32.vlgmr.msra.gmra.mxu1 %v11163_v1  ;;  %3589 = vmatmul.f32.vlgmr.msra.gmra.mxu2 %v11163_v1 }
 0x5a7   : > { %3609 = vmatmul.f32.vlgmr.msra.gmra.mxu3 %v11163_v1  ;;  %3629 = vmatmul.f32.vlgmr.msrb.gmra.mxu0 %v11163_v1 }
 0x5a9   : > { %v2946_v17 = vpop.f32.mrf.mxu2 }
 0x5aa   : > { %v2966_v20 = vpop.f32.mrf.mxu3  ;;  %v2947_v58 = vadd.f32 %v8823_v53, %v2946_v17 }
 0x5ab   : > { %v2967_v23 = vadd.f32 %v8824_v55, %v2966_v20 }
 0x5bd   : > { %v3168_v24 = vpop.f32.mrf.mxu1 }
 0x5be   : > { %v3169_v28 = vadd.f32 %v8825_v16, %v3168_v24  ;;  %v3228_v29 = vpop.f32.mrf.mxu0 }
 0x5bf   : > { %v3229_v30 = vadd.f32 %v8826_v18, %v3228_v29 }
 0x5c0   : > { %8132 = vmatpush.xpose.msk.msrb.mxu1 %vm1692_vm2, %v3169_v28 }
 0x5c1   : > { %8138 = vmatpush.xpose.msk.msra.mxu0 %vm1692_vm2, %v3229_v30 }
 0x5c3   : > { %v3188_v36 = vpop.f32.mrf.mxu2  ;;  %8133 = vmatmul.msk.f32.vlgmr.msrb.gmra.mxu1 %vm1692_vm2, %v2847_v32 }
 0x5c4   : > { %v3189_v38 = vadd.f32 %v8827_v31, %v3188_v36  ;;  %v3208_v39 = vpop.f32.mrf.mxu3  ;;  %8139 = vmatmul.msk.f32.vlgmr.msra.gmra.mxu0 %vm1692_vm2, %v2907_v34 }
 0x5c5   : > { %v3209_v40 = vadd.f32 %v8828_v33, %v3208_v39 }
 0x5c6   : > { %8134 = vmatpush.xpose.msk.msrb.mxu2 %vm1692_vm2, %v3189_v38 }
 0x5c7   : > { %8136 = vmatpush.xpose.msk.msrb.mxu3 %vm1692_vm2, %v3209_v40 }
 0x5c9   : > { %8135 = vmatmul.msk.f32.vlgmr.msrb.gmra.mxu2 %vm1692_vm2, %v2867_v41 }
 0x5ca   : > { %8137 = vmatmul.msk.f32.vlgmr.msrb.gmra.mxu3 %vm1692_vm2, %v2887_v43 }
 0x5df   : > { %v3248_v10 = vpop.f32.mrf.mxu1 }
 0x5e0   : > { %v3249_v13 = vadd.f32 %v8829_v44, %v3248_v10  ;;  %v3308_v47 = vpop.f32.mrf.mxu0 }
 0x5e1   : > { %v3309_v48 = vadd.f32 %v8830_v45, %v3308_v47 }
 0x5e2   : > { %8140 = vmatpush.xpose.msk.msra.mxu1 %vm1692_vm2, %v3249_v13 }
 0x5e3   : > { %8146 = vmatpush.xpose.msk.msrb.mxu0 %vm1692_vm2, %v3309_v48 }
 0x5e5   : > { %v3268_v54 = vpop.f32.mrf.mxu2  ;;  %8141 = vmatmul.msk.f32.vlgmr.msra.gmra.mxu1 %vm1692_vm2, %v2927_v50 }
 0x5e6   : > { %v3269_v56 = vadd.f32 %v8831_v49, %v3268_v54  ;;  %v3288_v57 = vpop.f32.mrf.mxu3  ;;  %8147 = vmatmul.msk.f32.vlgmr.msrb.gmra.mxu0 %vm1692_vm2, %v2987_v52 }
 0x5e7   : > { %v3289_v21 = vadd.f32 %v8832_v51, %v3288_v57 }
 0x5e8   : > { %8142 = vmatpush.xpose.msk.msra.mxu2 %vm1692_vm2, %v3269_v56 }
 0x5e9   : > { %8144 = vmatpush.xpose.msk.msra.mxu3 %vm1692_vm2, %v3289_v21 }
 0x5eb   : > { %8143 = vmatmul.msk.f32.vlgmr.msra.gmra.mxu2 %vm1692_vm2, %v2947_v58 }
 0x5ec   : > { %8145 = vmatmul.msk.f32.vlgmr.msra.gmra.mxu3 %vm1692_vm2, %v2967_v23 }
 0x601   : > { %v3490_v62 = vpop.f32.mrf.mxu1 }
 0x602   : > { %v3491_v63 = vadd.f32 %v8833_v59, %v3490_v62  ;;  %v3550_v60 = vpop.f32.mrf.mxu0 }
 0x603   : > { %v3551_v0 = vadd.f32 %v8834_v61, %v3550_v60 }
 0x604   : > { %4067 = vmatpush.msrb.mxu1 %v3491_v63 }
 0x605   : > { %4136 = vmatpush.msra.mxu0 %v3551_v0 }
 0x607   : > { %v3510_v4 = vpop.f32.mrf.mxu2 }
 0x608   : > { %v3511_v42 = vadd.f32 %v8835_v2, %v3510_v4  ;;  %v3530_v26 = vpop.f32.mrf.mxu3 }
 0x609   : > { %v3531_v27 = vadd.f32 %v8836_v3, %v3530_v26 }
 0x60a   : > { %4090 = vmatpush.msrb.mxu2 %v3511_v42 }
 0x60b   : > { %4113 = vmatpush.msrb.mxu3 %v3531_v27 }
 0x623   : > { %v3570_v8 = vpop.f32.mrf.mxu1 }
 0x624   : > { %v3571_v9 = vadd.f32 %v8837_v6, %v3570_v8  ;;  %v3630_v11 = vpop.f32.mrf.mxu0 }
 0x625   : > { %v3631_v12 = vadd.f32 %v8838_v7, %v3630_v11 }
 0x626   : > { %4159 = vmatpush.msra.mxu1 %v3571_v9 }
 0x627   : > { %4228 = vmatpush.msrb.mxu0 %v3631_v12 }
 0x629   : > { %v3590_v16 = vpop.f32.mrf.mxu2 }
 0x62a   : > { %v3591_v17 = vadd.f32 %v8839_v14, %v3590_v16  ;;  %v3610_v18 = vpop.f32.mrf.mxu3 }
 0x62b   : > { %v3611_v20 = vadd.f32 %v8840_v15, %v3610_v18 }
 0x62c   : > { %4182 = vmatpush.msra.mxu2 %v3591_v17 }
 0x62d   : > { %4205 = vmatpush.msra.mxu3 %v3611_v20 }
 0x640   : > { %v3656_v28 = vpop.f32.mrf.mxu1 }
 0x641   : > { %v3841_v33 = vmul.f32 0.25, %v3656_v28  ;;  %v3734_v41 = vpop.f32.mrf.mxu0 }
 0x642   : > { %v3844_v48 = vmul.f32 0.25, %v3734_v41 }
 0x643   : > { %v3849_v35 = vsel %vm698_vm3, -1e+09, %v3841_v33 }
 0x644   : > { %v3857_v36 = vsel %vm1919_vm4, %v3849_v35, -inf  ;;  %v3852_v51 = vsel %vm698_vm3, -1e+09, %v3844_v48 }
 0x645   : > { %v3866_v53 = vsel %vm1919_vm4, %v3852_v51, -inf }
 0x64c   : > { %v3682_v22 = vpop.f32.mrf.mxu2 }
 0x64d   : > { %v3842_v24 = vmul.f32 0.25, %v3682_v22  ;;  %v3708_v25 = vpop.f32.mrf.mxu3 }
 0x64e   : > { %v3843_v29 = vmul.f32 0.25, %v3708_v25 }
 0x64f   : > { %v3850_v30 = vsel %vm698_vm3, -1e+09, %v3842_v24 }
 0x650   : > { %v3851_v31 = vsel %vm698_vm3, -1e+09, %v3843_v29  ;;  %v3860_v32 = vsel %vm1919_vm4, %v3850_v30, -inf }
 0x651   : > { %v3863_v34 = vsel %vm1919_vm4, %v3851_v31, -inf  ;;  %3861 = vmax.xlane.f32.xlu1 %v3860_v32 }
 0x652   : > { %3864 = vmax.xlane.f32.xlu2 %v3863_v34 }
 0x659   : > { %3858 = vmax.xlane.f32.xlu1 %v3857_v36 }
 0x662   : > { %v3760_v37 = vpop.f32.mrf.mxu1 }
 0x663   : > { %v3845_v38 = vmul.f32 0.25, %v3760_v37  ;;  %v3838_v10 = vpop.f32.mrf.mxu0 }
 0x664   : > { %v3848_v50 = vmul.f32 0.25, %v3838_v10 }
 0x665   : > { %v3853_v39 = vsel %vm698_vm3, -1e+09, %v3845_v38 }
 0x666   : > { %v3869_v40 = vsel %vm1919_vm4, %v3853_v39, -inf  ;;  %v3856_v52 = vsel %vm698_vm3, -1e+09, %v3848_v50 }
 0x667   : > { %3870 = vmax.xlane.f32.xlu1 %v3869_v40  ;;  %v3878_v54 = vsel %vm1919_vm4, %v3856_v52, -inf }
 0x66e   : > { %v3786_v43 = vpop.f32.mrf.mxu2 }
 0x66f   : > { %v3846_v44 = vmul.f32 0.25, %v3786_v43  ;;  %v3812_v45 = vpop.f32.mrf.mxu3 }
 0x670   : > { %v3847_v5 = vmul.f32 0.25, %v3812_v45 }
 0x671   : > { %v3854_v46 = vsel %vm698_vm3, -1e+09, %v3846_v44 }
 0x672   : > { %v3855_v13 = vsel %vm698_vm3, -1e+09, %v3847_v5  ;;  %v3872_v47 = vsel %vm1919_vm4, %v3854_v46, -inf }
 0x673   : > { %v3875_v49 = vsel %vm1919_vm4, %v3855_v13, -inf  ;;  %3873 = vmax.xlane.f32.xlu0 %v3872_v47 }
 0x674   : > { %3876 = vmax.xlane.f32.xlu2 %v3875_v49 }
 0x67b   : > { %3867 = vmax.xlane.f32.xlu0 %v3866_v53 }
 0x67c   : > { %3879 = vmax.xlane.f32.xlu2 %v3878_v54 }
 0x6c4   : > { %v3862_v55 = vpop.xlane.xlu1 %3861 }
 0x6c5   : > { %v3865_v56 = vpop.xlane.xlu2 %3864  ;;  %v3882_v57 = vsub.f32 %v3850_v30, %v3862_v55 }
 0x6c6   : > { %v3883_v21 = vsub.f32 %v3851_v31, %v3865_v56 }
 0x6c7   : > { %v3891_v58 = vmul.f32 1.442695, %v3882_v57 }
 0x6c8   : > { %v3893_v23 = vmul.f32 1.442695, %v3883_v21 }
 0x6c9   : > { %8901 = vpow2.f32 %v3891_v58 }
 0x6ca   : > { %8903 = vpow2.f32 %v3893_v23 }
 0x6cc   : > { %v3859_v59 = vpop.xlane.xlu1 %3858 }
 0x6cd   : > { %v3881_v61 = vsub.f32 %v3849_v35, %v3859_v59 }
 0x6cf   : > { %v12069_v62 = vpop.eup %8901  ;;  %v3889_v63 = vmul.f32 1.442695, %v3881_v61 }
 0x6d0   : > { %v12071_v60 = vpop.eup %8903  ;;  %v3908_v0 = vsel %vm1919_vm4, %v12069_v62, 0.0 }
 0x6d1   : > { %8905 = vpow2.f32 %v3889_v63  ;;  %3909 = vadd.xlane.f32.xlu0 %v3908_v0  ;;  %v3911_v2 = vsel %vm1919_vm4, %v12071_v60, 0.0 }
 0x6d2   : > { %3912 = vadd.xlane.f32.xlu1 %v3911_v2 }
 0x6d7   : > { %v12077_v3 = vpop.eup %8905 }
 0x6d8   : > { %v3905_v4 = vsel %vm1919_vm4, %v12077_v3, 0.0 }
 0x6d9   : > { %3906 = vadd.xlane.f32.xlu0 %v3905_v4 }
 0x6da   : > { %v3871_v42 = vpop.xlane.xlu1 %3870 }
 0x6db   : > { %v3885_v26 = vsub.f32 %v3853_v39, %v3871_v42 }
 0x6dd   : > { %v3897_v27 = vmul.f32 1.442695, %v3885_v26 }
 0x6df   : > { %8907 = vpow2.f32 %v3897_v27 }
 0x6e5   : > { %v12081_v6 = vpop.eup %8907 }
 0x6e6   : > { %v3874_v7 = vpop.xlane.xlu0 %3873  ;;  %v3917_v8 = vsel %vm1919_vm4, %v12081_v6, 0.0 }
 0x6e7   : > { %v3877_v9 = vpop.xlane.xlu2 %3876  ;;  %v3886_v11 = vsub.f32 %v3854_v46, %v3874_v7  ;;  %3918 = vadd.xlane.f32.xlu0 %v3917_v8 }
 0x6e8   : > { %v3887_v12 = vsub.f32 %v3855_v13, %v3877_v9 }
 0x6e9   : > { %v3899_v14 = vmul.f32 1.442695, %v3886_v11 }
 0x6ea   : > { %v3901_v15 = vmul.f32 1.442695, %v3887_v12 }
 0x6eb   : > { %8909 = vpow2.f32 %v3899_v14 }
 0x6ec   : > { %8911 = vpow2.f32 %v3901_v15 }
 0x6ee   : > { %v3868_v16 = vpop.xlane.xlu0 %3867 }
 0x6ef   : > { %v3880_v17 = vpop.xlane.xlu2 %3879  ;;  %v3884_v18 = vsub.f32 %v3852_v51, %v3868_v16 }
 0x6f0   : > { %v3888_v20 = vsub.f32 %v3856_v52, %v3880_v17 }
 0x6f1   : > { %v12085_v22 = vpop.eup %8909  ;;  %v3895_v24 = vmul.f32 1.442695, %v3884_v18  ;;  %v8161_v18 = vld [vmem:[%s15230_s10 + $0xa8] sm:$0xff] }
 0x6f2   : > { %v12087_v25 = vpop.eup %8911  ;;  %v3903_v28 = vmul.f32 1.442695, %v3888_v20  ;;  %v3920_v29 = vsel %vm1919_vm4, %v12085_v22, 0.0 }
 0x6f3   : > { %8913 = vpow2.f32 %v3895_v24  ;;  %3921 = vadd.xlane.f32.xlu2 %v3920_v29  ;;  %v3923_v30 = vsel %vm1919_vm4, %v12087_v25, 0.0 }
 0x6f4   : > { %8915 = vpow2.f32 %v3903_v28  ;;  %3924 = vadd.xlane.f32.xlu1 %v3923_v30 }
 0x6f9   : > { %v12093_v31 = vpop.eup %8913 }
 0x6fa   : > { %v12095_v32 = vpop.eup %8915  ;;  %v3914_v33 = vsel %vm1919_vm4, %v12093_v31, 0.0 }
 0x6fb   : > { %3915 = vadd.xlane.f32.xlu2 %v3914_v33  ;;  %v3926_v34 = vsel %vm1919_vm4, %v12095_v32, 0.0 }
 0x6fc   : > { %3927 = vadd.xlane.f32.xlu1 %v3926_v34 }
 0x744   : > { %v3910_v35 = vpop.xlane.xlu0 %3909 }
 0x745   : > { %8917 = vrcp.f32 %v3910_v35  ;;  %v3913_v36 = vpop.xlane.xlu1 %3912  ;;  %v3954_v44 = vand.u32 2147483648, %v3910_v35  ;;  %v3952_v10 = vand.u32 2147483647, %v3910_v35  ;;  %vm3948_vm13 = vweird.f32 %v3910_v35 }
 0x746   : > { %8919 = vrcp.f32 %v3913_v36  ;;  %v3968_v46 = vand.u32 2147483648, %v3913_v36  ;;  %v3966_v47 = vand.u32 2147483647, %v3913_v36  ;;  %vm3962_vm15 = vweird.f32 %v3913_v36 }
 0x747   : > { %v3955_v50 = vor.u32 1.1754944e-38, %v3954_v44  ;;  %vm3953_vm0 = vcmp.eq.f32.partialorder %v3952_v10, 8.507059e+37 }
 0x748   : > { %v3969_v53 = vor.u32 1.1754944e-38, %v3968_v46  ;;  %vm3967_vm5 = vcmp.eq.f32.partialorder %v3966_v47, 8.507059e+37 }
 0x74b   : > { %v8918_v37 = vpop.eup %8917 }
 0x74c   : > { %v8920_v38 = vpop.eup %8919  ;;  %v3944_v39 = vmul.f32 %v8918_v37, %v3910_v35  ;;  %v3907_v40 = vpop.xlane.xlu0 %3906  ;;  %vm3949_vm11 = vweird.f32 %v8918_v37 }
 0x74d   : > { %v3958_v41 = vmul.f32 %v8920_v38, %v3913_v36  ;;  %8921 = vrcp.f32 %v3907_v40  ;;  %vm3963_vm12 = vweird.f32 %v8920_v38  ;;  %vm3950_vm14 = vmor %vm3948_vm13, %vm3949_vm11  ;;  %v3940_v23 = vand.u32 2147483648, %v3907_v40 }
 0x74e   : > { %v3945_v43 = vsub.f32 1.0, %v3944_v39  ;;  %vm3964_vm1 = vmor %vm3962_vm15, %vm3963_vm12  ;;  %v3938_v63 = vand.u32 2147483647, %v3907_v40  ;;  %vm3934_vm7 = vweird.f32 %v3907_v40 }
 0x74f   : > { %v3959_v45 = vsub.f32 1.0, %v3958_v41  ;;  %v3941_v4 = vor.u32 1.1754944e-38, %v3940_v23 }
 0x750   : > { %v3946_v5 = vmul.f32 %v8918_v37, %v3945_v43  ;;  %vm3939_vm9 = vcmp.eq.f32.partialorder %v3938_v63, 8.507059e+37 }
 0x751   : > { %v3960_v13 = vmul.f32 %v8920_v38, %v3959_v45 }
 0x752   : > { %v3947_v48 = vadd.f32 %v8918_v37, %v3946_v5 }
 0x753   : > { %v8922_v49 = vpop.eup %8921  ;;  %v3961_v51 = vadd.f32 %v8920_v38, %v3960_v13 }
 0x754   : > { %v3951_v52 = vsel %vm3950_vm14, %v8918_v37, %v3947_v48  ;;  %v3930_v54 = vmul.f32 %v8922_v49, %v3907_v40  ;;  %vm3935_vm6 = vweird.f32 %v8922_v49 }
 0x755   : > { %v3956_v55 = vsel %vm3953_vm0, %v3955_v50, %v3951_v52  ;;  %v3965_v56 = vsel %vm3964_vm1, %v8920_v38, %v3961_v51  ;;  %vm3936_vm8 = vmor %vm3934_vm7, %vm3935_vm6 }
 0x756   : > { %v3970_v57 = vsel %vm3967_vm5, %v3969_v53, %v3965_v56  ;;  %v3931_v21 = vsub.f32 1.0, %v3930_v54  ;;  %v4042_v58 = vmul.f32 %v12069_v62, %v3956_v55 }
 0x757   : > { %v4043_v59 = vmul.f32 %v12071_v60, %v3970_v57 }
 0x758   : > { %v3932_v61 = vmul.f32 %v8922_v49, %v3931_v21  ;;  %8149 = vmatmul.msk.f32.vlgmr.msrb.gmra.mxu2 %vm1919_vm4, %v4042_v58 }
 0x759   : > { %8150 = vmatmul.msk.f32.vlgmr.msrb.gmra.mxu3 %vm1919_vm4, %v4043_v59 }
 0x75a   : > { %v3933_v0 = vadd.f32 %v8922_v49, %v3932_v61  ;;  %v3919_v2 = vpop.xlane.xlu0 %3918  ;;  %4313 = vmatpush.msrb.mxu3 %v8161_v18  ;;  %v8168_v18 = vld [vmem:[%s15230_s10 + $0xe0] sm:$0xff] }
 0x75b   : > { %8923 = vrcp.f32 %v3919_v2  ;;  %v3996_v8 = vand.u32 2147483648, %v3919_v2  ;;  %v3994_v11 = vand.u32 2147483647, %v3919_v2  ;;  %vm3990_vm11 = vweird.f32 %v3919_v2 }
 0x75c   : > { %v3937_v42 = vsel %vm3936_vm8, %v8922_v49, %v3933_v0 }
 0x75d   : > { %v3942_v26 = vsel %vm3939_vm9, %v3941_v4, %v3937_v42  ;;  %v3997_v16 = vor.u32 1.1754944e-38, %v3996_v8  ;;  %vm3995_vm13 = vcmp.eq.f32.partialorder %v3994_v11, 8.507059e+37  ;;  %v8165_v8 = vld [vmem:[%s15230_s10 + $0xc8] sm:$0xff]  ;;  %v8167_v11 = vld [vmem:[%s15230_s10 + $0xd8] sm:$0xff] }
 0x75e   : > { %v4041_v62 = vmul.f32 %v12077_v3, %v3942_v26  ;;  %v8159_v3 = vld [vmem:[%s15230_s10 + $0x98] sm:$0xff] }
 0x75f   : > { %4290 = vmatpush.msrb.mxu2 %v8159_v3  ;;  %v8166_v3 = vld [vmem:[%s15230_s10 + $0xd0] sm:$0xff] }
 0x760   : > { %8148 = vmatmul.msk.f32.vlgmr.msrb.gmra.mxu1 %vm1919_vm4, %v4041_v62 }
 0x761   : > { %v8924_v60 = vpop.eup %8923 }
 0x762   : > { %v3986_v27 = vmul.f32 %v8924_v60, %v3919_v2  ;;  %vm3991_vm10 = vweird.f32 %v8924_v60 }
 0x763   : > { %vm3992_vm12 = vmor %vm3990_vm11, %vm3991_vm10 }
 0x764   : > { %v3987_v7 = vsub.f32 1.0, %v3986_v27  ;;  %v8157_v27 = vld [vmem:[%s15230_s10 + $0x88] sm:$0xff] }
 0x765   : > { %4267 = vmatpush.msrb.mxu1 %v8157_v27  ;;  %v8242_v27 = vld [vmem:[%s15234_s14 + $0x1e0] sm:$0xff] }
 0x766   : > { %v3988_v9 = vmul.f32 %v8924_v60, %v3987_v7  ;;  %v3922_v12 = vpop.xlane.xlu2 %3921  ;;  %v8158_v7 = vld [vmem:[%s15230_s10 + $0x90] sm:$0xff] }
 0x767   : > { %8925 = vrcp.f32 %v3922_v12  ;;  %v3925_v14 = vpop.xlane.xlu1 %3924  ;;  %v4010_v37 = vand.u32 2147483648, %v3922_v12  ;;  %v4008_v40 = vand.u32 2147483647, %v3922_v12  ;;  %vm4004_vm0 = vweird.f32 %v3922_v12  ;;  %4291 = vmatpush.msrb.mxu2 %v8158_v7 }
 0x768   : > { %v3989_v15 = vadd.f32 %v8924_v60, %v3988_v9  ;;  %8927 = vrcp.f32 %v3925_v14  ;;  %v4024_v41 = vand.u32 2147483648, %v3925_v14  ;;  %vm4018_vm5 = vweird.f32 %v3925_v14  ;;  %v8164_v9 = vld [vmem:[%s15230_s10 + $0xc0] sm:$0xff] }
 0x769   : > { %v4011_v5 = vor.u32 1.1754944e-38, %v4010_v37  ;;  %vm4009_vm6 = vcmp.eq.f32.partialorder %v4008_v40, 8.507059e+37  ;;  %v8212_v37 = vld [vmem:[%s15232_s12 + $0x1f8] sm:$0xff]  ;;  %v8207_v40 = vld [vmem:[%s15232_s12 + $0x1d0] sm:$0xff] }
 0x76a   : > { %v3993_v17 = vsel %vm3992_vm12, %v8924_v60, %v3989_v15  ;;  %v4025_v47 = vor.u32 1.1754944e-38, %v4024_v41  ;;  %v8208_v41 = vld [vmem:[%s15232_s12 + $0x1d8] sm:$0xff] }
 0x76b   : > { %v3998_v20 = vsel %vm3995_vm13, %v3997_v16, %v3993_v17  ;;  %v8163_v17 = vld [vmem:[%s15230_s10 + $0xb8] sm:$0xff] }
 0x76c   : > { %v4045_v24 = vmul.f32 %v12081_v6, %v3998_v20  ;;  %v4022_v6 = vand.u32 2147483647, %v3925_v14  ;;  %v8162_v20 = vld [vmem:[%s15230_s10 + $0xb0] sm:$0xff] }
 0x76d   : > { %v8926_v28 = vpop.eup %8925 }
 0x76e   : > { %v8928_v29 = vpop.eup %8927  ;;  %v4000_v30 = vmul.f32 %v8926_v28, %v3922_v12  ;;  %v3916_v33 = vpop.xlane.xlu2 %3915  ;;  %8152 = vmatmul.msk.f32.vlgmr.msra.gmra.mxu1 %vm1919_vm4, %v4045_v24  ;;  %vm4005_vm14 = vweird.f32 %v8926_v28  ;;  %vm4023_vm8 = vcmp.eq.f32.partialorder %v4022_v6, 8.507059e+37  ;;  %v8169_v12 = vld [vmem:[%s15230_s10 + $0xe8] sm:$0xff]  ;;  %v8171_v24 = vld [vmem:[%s15230_s10 + $0xf8] sm:$0xff] }
 0x76f   : > { %v4014_v34 = vmul.f32 %v8928_v29, %v3925_v14  ;;  %8929 = vrcp.f32 %v3916_v33  ;;  %v3928_v35 = vpop.xlane.xlu1 %3927  ;;  %vm4019_vm15 = vweird.f32 %v8928_v29  ;;  %vm4006_vm1 = vmor %vm4004_vm0, %vm4005_vm14  ;;  %v3982_v55 = vand.u32 2147483648, %v3916_v33  ;;  %v8206_v6 = vld [vmem:[%s15232_s12 + $0x1c8] sm:$0xff] }
 0x770   : > { %v4001_v36 = vsub.f32 1.0, %v4000_v30  ;;  %8931 = vrcp.f32 %v3928_v35  ;;  %vm4020_vm7 = vmor %vm4018_vm5, %vm4019_vm15  ;;  %v3980_v58 = vand.u32 2147483647, %v3916_v33  ;;  %vm3976_vm10 = vweird.f32 %v3916_v33 }
 0x771   : > { %v4015_v38 = vsub.f32 1.0, %v4014_v34  ;;  %v3983_v61 = vor.u32 1.1754944e-38, %v3982_v55  ;;  %v4038_v2 = vand.u32 2147483648, %v3928_v35  ;;  %vm4032_vm14 = vweird.f32 %v3928_v35  ;;  %v8189_v55 = vld [vmem:[%s15232_s12 + $0x140] sm:$0xff] }
 0x772   : > { %v4002_v39 = vmul.f32 %v8926_v28, %v4001_v36  ;;  %vm3981_vm12 = vcmp.eq.f32.partialorder %v3980_v58, 8.507059e+37  ;;  %v8211_v36 = vld [vmem:[%s15232_s12 + $0x1f0] sm:$0xff]  ;;  %v8185_v58 = vld [vmem:[%s15232_s12 + $0x120] sm:$0xff] }
 0x773   : > { %v4016_v43 = vmul.f32 %v8928_v29, %v4015_v38  ;;  %v4039_v26 = vor.u32 1.1754944e-38, %v4038_v2  ;;  %v8209_v38 = vld [vmem:[%s15232_s12 + $0x1e0] sm:$0xff]  ;;  %v8182_v2 = vld [vmem:[%s15232_s12 + $0x108] sm:$0xff] }
 0x774   : > { %v4003_v44 = vadd.f32 %v8926_v28, %v4002_v39  ;;  %v8210_v39 = vld [vmem:[%s15232_s12 + $0x1e8] sm:$0xff] }
 0x775   : > { %v8930_v45 = vpop.eup %8929  ;;  %v4017_v10 = vadd.f32 %v8928_v29, %v4016_v43  ;;  %v8205_v43 = vld [vmem:[%s15232_s12 + $0x1c0] sm:$0xff] }
 0x776   : > { %v8932_v46 = vpop.eup %8931  ;;  %v4007_v13 = vsel %vm4006_vm1, %v8926_v28, %v4003_v44  ;;  %v3972_v48 = vmul.f32 %v8930_v45, %v3916_v33  ;;  %vm3977_vm9 = vweird.f32 %v8930_v45  ;;  %v8170_v28 = vld [vmem:[%s15230_s10 + $0xf0] sm:$0xff] }
 0x777   : > { %v4012_v49 = vsel %vm4009_vm6, %v4011_v5, %v4007_v13  ;;  %v4021_v50 = vsel %vm4020_vm7, %v8928_v29, %v4017_v10  ;;  %v4028_v51 = vmul.f32 %v8932_v46, %v3928_v35  ;;  %vm3978_vm11 = vmor %vm3976_vm10, %vm3977_vm9  ;;  %vm4033_vm13 = vweird.f32 %v8932_v46  ;;  %v8203_v44 = vld [vmem:[%s15232_s12 + $0x1b0] sm:$0xff]  ;;  %v8201_v5 = vld [vmem:[%s15232_s12 + $0x1a0] sm:$0xff] }
 0x778   : > { %v4026_v52 = vsel %vm4023_vm8, %v4025_v47, %v4021_v50  ;;  %v3973_v53 = vsub.f32 1.0, %v3972_v48  ;;  %v4046_v54 = vmul.f32 %v12085_v22, %v4012_v49  ;;  %vm4034_vm15 = vmor %vm4032_vm14, %vm4033_vm13  ;;  %v8202_v10 = vld [vmem:[%s15232_s12 + $0x1a8] sm:$0xff]  ;;  %v8200_v13 = vld [vmem:[%s15232_s12 + $0x198] sm:$0xff] }
 0x779   : > { %v4029_v56 = vsub.f32 1.0, %v4028_v51  ;;  %v4047_v57 = vmul.f32 %v12087_v25, %v4026_v52  ;;  %v4036_v25 = vand.u32 2147483647, %v3928_v35  ;;  %v8197_v47 = vld [vmem:[%s15232_s12 + $0x180] sm:$0xff]  ;;  %v8198_v48 = vld [vmem:[%s15232_s12 + $0x188] sm:$0xff]  ;;  %v8195_v49 = vld [vmem:[%s15232_s12 + $0x170] sm:$0xff] }
 0x77a   : > { %v3974_v21 = vmul.f32 %v8930_v45, %v3973_v53  ;;  %8153 = vmatmul.msk.f32.vlgmr.msra.gmra.mxu2 %vm1919_vm4, %v4046_v54  ;;  %v8196_v50 = vld [vmem:[%s15232_s12 + $0x178] sm:$0xff]  ;;  %v8193_v51 = vld [vmem:[%s15232_s12 + $0x160] sm:$0xff]  ;;  %v8194_v52 = vld [vmem:[%s15232_s12 + $0x168] sm:$0xff] }
 0x77b   : > { %v4030_v23 = vmul.f32 %v8932_v46, %v4029_v56  ;;  %8154 = vmatmul.msk.f32.vlgmr.msra.gmra.mxu3 %vm1919_vm4, %v4047_v57  ;;  %vm4037_vm0 = vcmp.eq.f32.partialorder %v4036_v25, 8.507059e+37  ;;  %4382 = vmatpush.msra.mxu2 %v8167_v11  ;;  %v8191_v53 = vld [vmem:[%s15232_s12 + $0x150] sm:$0xff]  ;;  %v8192_v54 = vld [vmem:[%s15232_s12 + $0x158] sm:$0xff]  ;;  %v8190_v56 = vld [vmem:[%s15232_s12 + $0x148] sm:$0xff] }
 0x77c   : > { %v3975_v59 = vadd.f32 %v8930_v45, %v3974_v21  ;;  %v8187_v57 = vld [vmem:[%s15232_s12 + $0x130] sm:$0xff]  ;;  %v8188_v21 = vld [vmem:[%s15232_s12 + $0x138] sm:$0xff] }
 0x77d   : > { %v4031_v0 = vadd.f32 %v8932_v46, %v4030_v23  ;;  %4383 = vmatpush.msra.mxu2 %v8166_v3  ;;  %v8186_v23 = vld [vmem:[%s15232_s12 + $0x128] sm:$0xff]  ;;  %v8245_v25 = vld [vmem:[%s15234_s14 + $0x1f8] sm:$0xff]  ;;  %v8240_v11 = vld [vmem:[%s15234_s14 + $0x1d0] sm:$0xff] }
 0x77e   : > { %v3979_v63 = vsel %vm3978_vm11, %v8930_v45, %v3975_v59  ;;  %v8204_v45 = vld [vmem:[%s15232_s12 + $0x1b8] sm:$0xff]  ;;  %v8183_v59 = vld [vmem:[%s15232_s12 + $0x110] sm:$0xff]  ;;  %v8238_v3 = vld [vmem:[%s15234_s14 + $0x1c0] sm:$0xff] }
 0x77f   : > { %v3984_v22 = vsel %vm3981_vm12, %v3983_v61, %v3979_v63  ;;  %v4035_v42 = vsel %vm4034_vm15, %v8932_v46, %v4031_v0  ;;  %v8199_v46 = vld [vmem:[%s15232_s12 + $0x190] sm:$0xff]  ;;  %v8184_v61 = vld [vmem:[%s15232_s12 + $0x118] sm:$0xff] }
 0x780   : > { %v4044_v4 = vmul.f32 %v12093_v31, %v3984_v22  ;;  %v4040_v62 = vsel %vm4037_vm0, %v4039_v26, %v4035_v42  ;;  %v8160_v31 = vld [vmem:[%s15230_s10 + $0xa0] sm:$0xff]  ;;  %v8229_v63 = vld [vmem:[%s15234_s14 + $0x178] sm:$0xff]  ;;  %v8228_v0 = vld [vmem:[%s15234_s14 + $0x170] sm:$0xff] }
 0x781   : > { %v4048_v60 = vmul.f32 %v12095_v32, %v4040_v62  ;;  %v8156_v32 = vld [vmem:[%s15230_s10 + $0x80] sm:$0xff]  ;;  %4314 = vmatpush.msrb.mxu3 %v8160_v31  ;;  %v8244_v42 = vld [vmem:[%s15234_s14 + $0x1f0] sm:$0xff]  ;;  %v8243_v62 = vld [vmem:[%s15234_s14 + $0x1e8] sm:$0xff] }
 0x782   : > { %8151 = vmatmul.msk.f32.vlgmr.msra.gmra.mxu0 %vm1919_vm4, %v4044_v4  ;;  %4268 = vmatpush.msrb.mxu1 %v8156_v32  ;;  %v8181_v22 = vld [vmem:[%s15232_s12 + $0x100] sm:$0xff]  ;;  %v8227_v4 = vld [vmem:[%s15234_s14 + $0x168] sm:$0xff]  ;;  %v8224_v31 = vld [vmem:[%s15234_s14 + $0x150] sm:$0xff] }
 0x783   : > { %4405 = vmatpush.msra.mxu3 %v8169_v12  ;;  %4336 = vmatpush.msra.mxu0 %v8163_v17  ;;  %v8226_v26 = vld [vmem:[%s15234_s14 + $0x160] sm:$0xff]  ;;  %v8241_v32 = vld [vmem:[%s15234_s14 + $0x1d8] sm:$0xff] }
 0x784   : > { %4359 = vmatpush.msra.mxu1 %v8165_v8  ;;  %v8221_v17 = vld [vmem:[%s15234_s14 + $0x138] sm:$0xff] }
 0x785   : > { %4406 = vmatpush.msra.mxu3 %v8168_v18  ;;  %4337 = vmatpush.msra.mxu0 %v8162_v20 }
 0x786   : > { %4360 = vmatpush.msra.mxu1 %v8164_v9  ;;  %v8223_v9 = vld [vmem:[%s15234_s14 + $0x148] sm:$0xff] }
 0x78a   : > { %8155 = vmatmul.msk.f32.vlgmr.msrb.gmra.mxu0 %vm1919_vm4, %v4048_v60  ;;  %v8225_v60 = vld [vmem:[%s15234_s14 + $0x158] sm:$0xff] }
 0x78b   : > { %4428 = vmatpush.msrb.mxu0 %v8171_v24  ;;  %v8220_v24 = vld [vmem:[%s15234_s14 + $0x130] sm:$0xff] }
 0x78d   : > { %4429 = vmatpush.msrb.mxu0 %v8170_v28  ;;  %v8237_v28 = vld [vmem:[%s15234_s14 + $0x1b8] sm:$0xff] }
 0x7db   : > { %v4092_v14 = vpop.f32.mrf.mxu2 }
 0x7dc   : > { %v4115_v15 = vpop.f32.mrf.mxu3  ;;  %8173 = vmatmul.msk.f32.vlgmr.msrb.gmra.mxu2 %vm1692_vm2, %v4092_v14  ;;  %v8222_v14 = vld [vmem:[%s15234_s14 + $0x140] sm:$0xff] }
 0x7dd   : > { %8174 = vmatmul.msk.f32.vlgmr.msrb.gmra.mxu3 %vm1692_vm2, %v4115_v15  ;;  %v4069_v16 = vpop.f32.mrf.mxu1  ;;  %4508 = vmatpush.msrb.mxu2 %v8212_v37  ;;  %v8239_v15 = vld [vmem:[%s15234_s14 + $0x1c8] sm:$0xff]  ;;  %v8218_v37 = vld [vmem:[%s15234_s14 + $0x120] sm:$0xff] }
 0x7de   : > { %8172 = vmatmul.msk.f32.vlgmr.msrb.gmra.mxu1 %vm1692_vm2, %v4069_v16  ;;  %4563 = vmatpush.msrb.mxu3 %v8229_v63  ;;  %v8259_v63 = vld [vmem:[%s15254_s5 + $0x860] sm:$0xff] }
 0x7df   : > { %4488 = vmatpush.msrb.mxu1 %v8211_v36  ;;  %4509 = vmatpush.msrb.mxu2 %v8210_v39 }
 0x7e0   : > { %4564 = vmatpush.msrb.mxu3 %v8228_v0  ;;  %v8308_v0 = vld [vmem:[%s15254_s5 + $0x9e8] sm:$0xff] }
 0x7e1   : > { %4489 = vmatpush.msrb.mxu1 %v8209_v38  ;;  %4510 = vmatpush.msrb.mxu2 %v8208_v41 }
 0x7e2   : > { %4565 = vmatpush.msrb.mxu3 %v8227_v4  ;;  %v8307_v4 = vld [vmem:[%s15254_s5 + $0x9e0] sm:$0xff] }
 0x7e3   : > { %4490 = vmatpush.msrb.mxu1 %v8207_v40  ;;  %4511 = vmatpush.msrb.mxu2 %v8206_v6  ;;  %v8217_v40 = vld [vmem:[%s15234_s14 + $0x118] sm:$0xff] }
 0x7e4   : > { %4566 = vmatpush.msrb.mxu3 %v8226_v26  ;;  %v8290_v26 = vld [vmem:[%s15254_s5 + $0x958] sm:$0xff] }
 0x7e5   : > { %4491 = vmatpush.msrb.mxu1 %v8205_v43  ;;  %4512 = vmatpush.msrb.mxu2 %v8204_v45  ;;  %v8841_v43 = vld [vmem:[%s15231_s11 + $0x1] ss:$0 sm:$0xff] }
 0x7e6   : > { %4567 = vmatpush.msrb.mxu3 %v8225_v60  ;;  %v8306_v60 = vld [vmem:[%s15254_s5 + $0x9d8] sm:$0xff] }
 0x7e7   : > { %4492 = vmatpush.msrb.mxu1 %v8203_v44  ;;  %4513 = vmatpush.msrb.mxu2 %v8202_v10  ;;  %v8216_v10 = vld [vmem:[%s15234_s14 + $0x110] sm:$0xff] }
 0x7e8   : > { %4568 = vmatpush.msrb.mxu3 %v8224_v31  ;;  %v8256_v31 = vld [vmem:[%s15254_s5 + $0x848] sm:$0xff] }
 0x7e9   : > { %4493 = vmatpush.msrb.mxu1 %v8201_v5  ;;  %4514 = vmatpush.msrb.mxu2 %v8200_v13  ;;  %v8215_v13 = vld [vmem:[%s15234_s14 + $0x108] sm:$0xff] }
 0x7ea   : > { %4569 = vmatpush.msrb.mxu3 %v8223_v9  ;;  %v8288_v9 = vld [vmem:[%s15254_s5 + $0x948] sm:$0xff] }
 0x7eb   : > { %v4161_v29 = vpop.f32.mrf.mxu1  ;;  %4494 = vmatpush.msrb.mxu1 %v8199_v46  ;;  %4515 = vmatpush.msrb.mxu2 %v8198_v48  ;;  %v8235_v46 = vld [vmem:[%s15234_s14 + $0x1a8] sm:$0xff]  ;;  %v8233_v48 = vld [vmem:[%s15234_s14 + $0x198] sm:$0xff] }
 0x7ec   : > { %8176 = vmatmul.msk.f32.vlgmr.msra.gmra.mxu1 %vm1692_vm2, %v4161_v29  ;;  %4570 = vmatpush.msrb.mxu3 %v8222_v14  ;;  %v8271_v14 = vld [vmem:[%s15254_s5 + $0x8c0] sm:$0xff] }
 0x7ed   : > { %4495 = vmatpush.msrb.mxu1 %v8197_v47  ;;  %4516 = vmatpush.msrb.mxu2 %v8196_v50  ;;  %v8214_v47 = vld [vmem:[%s15234_s14 + $0x100] sm:$0xff]  ;;  %v8231_v50 = vld [vmem:[%s15234_s14 + $0x188] sm:$0xff] }
 0x7ee   : > { %4571 = vmatpush.msrb.mxu3 %v8221_v17  ;;  %v8213_v17 = vld [vmem:[%s15233_s13 + $0x2] sm:$0x3] }
 0x7ef   : > { %4496 = vmatpush.msrb.mxu1 %v8195_v49  ;;  %4517 = vmatpush.msrb.mxu2 %v8194_v52  ;;  %v8232_v49 = vld [vmem:[%s15234_s14 + $0x190] sm:$0xff]  ;;  %v8262_v52 = vld [vmem:[%s15254_s5 + $0x878] sm:$0xff] }
 0x7f0   : > { %4572 = vmatpush.msrb.mxu3 %v8220_v24  ;;  %v8253_v24 = vld [vmem:[%s15254_s5 + $0x830] sm:$0xff] }
 0x7f1   : > { %4497 = vmatpush.msrb.mxu1 %v8193_v51  ;;  %4518 = vmatpush.msrb.mxu2 %v8192_v54  ;;  %v8230_v51 = vld [vmem:[%s15234_s14 + $0x180] sm:$0xff]  ;;  %v8294_v54 = vld [vmem:[%s15254_s5 + $0x978] sm:$0xff] }
 0x7f3   : > { %4498 = vmatpush.msrb.mxu1 %v8191_v53  ;;  %4519 = vmatpush.msrb.mxu2 %v8190_v56  ;;  %v8278_v53 = vld [vmem:[%s15254_s5 + $0x8f8] sm:$0xff]  ;;  %v8261_v56 = vld [vmem:[%s15254_s5 + $0x870] sm:$0xff] }
 0x7f5   : > { %4499 = vmatpush.msrb.mxu1 %v8189_v55  ;;  %4520 = vmatpush.msrb.mxu2 %v8188_v21  ;;  %v8310_v55 = vld [vmem:[%s15254_s5 + $0x9f8] sm:$0xff]  ;;  %v8293_v21 = vld [vmem:[%s15254_s5 + $0x970] sm:$0xff] }
 0x7f7   : > { %4500 = vmatpush.msrb.mxu1 %v8187_v57  ;;  %4521 = vmatpush.msrb.mxu2 %v8186_v23  ;;  %v8277_v57 = vld [vmem:[%s15254_s5 + $0x8f0] sm:$0xff] }
 0x7f8   : > { %v8309_v23 = vld [vmem:[%s15254_s5 + $0x9f0] sm:$0xff] }
 0x7f9   : > { %4501 = vmatpush.msrb.mxu1 %v8185_v58  ;;  %4522 = vmatpush.msrb.mxu2 %v8184_v61  ;;  %v8260_v58 = vld [vmem:[%s15254_s5 + $0x868] sm:$0xff] }
 0x7fa   : > { %v8292_v61 = vld [vmem:[%s15254_s5 + $0x968] sm:$0xff] }
 0x7fb   : > { %4502 = vmatpush.msrb.mxu1 %v8183_v59  ;;  %4523 = vmatpush.msrb.mxu2 %v8182_v2  ;;  %v8276_v59 = vld [vmem:[%s15254_s5 + $0x8e8] sm:$0xff]  ;;  %v8291_v2 = vld [vmem:[%s15254_s5 + $0x960] sm:$0xff] }
 0x7fd   : > { %v4184_v30 = vpop.f32.mrf.mxu2  ;;  %4503 = vmatpush.msrb.mxu1 %v8181_v22  ;;  %v8275_v22 = vld [vmem:[%s15254_s5 + $0x8e0] sm:$0xff] }
 0x7fe   : > { %v4207_v33 = vpop.f32.mrf.mxu3  ;;  %8177 = vmatmul.msk.f32.vlgmr.msra.gmra.mxu2 %vm1692_vm2, %v4184_v30 }
 0x7ff   : > { %8178 = vmatmul.msk.f32.vlgmr.msra.gmra.mxu3 %vm1692_vm2, %v4207_v33  ;;  %v4138_v34 = vpop.f32.mrf.mxu0  ;;  %v8219_v33 = vld [vmem:[%s15234_s14 + $0x128] sm:$0xff]  ;;  %4772 = vmatpush.msra.mxu1 %v8262_v52  ;;  %v8297_v52 = vld [vmem:[%s15254_s5 + $0x990] sm:$0xff] }
 0x800   : > { %8175 = vmatmul.msk.f32.vlgmr.msra.gmra.mxu0 %vm1692_vm2, %v4138_v34  ;;  %v8236_v34 = vld [vmem:[%s15234_s14 + $0x1b0] sm:$0xff]  ;;  %4573 = vmatpush.msrb.mxu3 %v8219_v33 }
 0x801   : > { %4583 = vmatpush.msra.mxu0 %v8245_v25  ;;  %4792 = vmatpush.msra.mxu2 %v8278_v53  ;;  %v8258_v25 = vld [vmem:[%s15254_s5 + $0x858] sm:$0xff]  ;;  %v8285_v33 = vld [vmem:[%s15254_s5 + $0x930] sm:$0xff]  ;;  %v8248_v53 = vld [vmem:[%s15254_s5 + $0x808] sm:$0xff] }
 0x802   : > { %4574 = vmatpush.msrb.mxu3 %v8218_v37  ;;  %4773 = vmatpush.msra.mxu1 %v8261_v56  ;;  %v8284_v37 = vld [vmem:[%s15254_s5 + $0x928] sm:$0xff] }
 0x803   : > { %4584 = vmatpush.msra.mxu0 %v8244_v42  ;;  %4793 = vmatpush.msra.mxu2 %v8277_v57  ;;  %v8274_v42 = vld [vmem:[%s15254_s5 + $0x8d8] sm:$0xff]  ;;  %v8280_v56 = vld [vmem:[%s15254_s5 + $0x908] sm:$0xff]  ;;  %v8247_v57 = vld [vmem:[%s15254_s5 + $0x800] sm:$0xff] }
 0x804   : > { %4575 = vmatpush.msrb.mxu3 %v8217_v40  ;;  %4774 = vmatpush.msra.mxu1 %v8260_v58  ;;  %v8300_v40 = vld [vmem:[%s15254_s5 + $0x9a8] sm:$0xff] }
 0x805   : > { %4585 = vmatpush.msra.mxu0 %v8243_v62  ;;  %4794 = vmatpush.msra.mxu2 %v8276_v59  ;;  %v8257_v62 = vld [vmem:[%s15254_s5 + $0x850] sm:$0xff]  ;;  %v8296_v58 = vld [vmem:[%s15254_s5 + $0x988] sm:$0xff]  ;;  %v8279_v59 = vld [vmem:[%s15254_s5 + $0x900] sm:$0xff] }
 0x806   : > { %4576 = vmatpush.msrb.mxu3 %v8216_v10  ;;  %4775 = vmatpush.msra.mxu1 %v8259_v63  ;;  %v8295_v63 = vld [vmem:[%s15254_s5 + $0x980] sm:$0xff] }
 0x807   : > { %v4230_v35 = vpop.f32.mrf.mxu0  ;;  %4586 = vmatpush.msra.mxu0 %v8242_v27  ;;  %4795 = vmatpush.msra.mxu2 %v8275_v22  ;;  %v8273_v27 = vld [vmem:[%s15254_s5 + $0x8d0] sm:$0xff]  ;;  %v8358_v22 = vld [vmem:[%s15254_s5 + $0xb78] sm:$0xff] }
 0x808   : > { %8179 = vmatmul.msk.f32.vlgmr.msrb.gmra.mxu0 %vm1692_vm2, %v4230_v35  ;;  %4577 = vmatpush.msrb.mxu3 %v8215_v13  ;;  %v8266_v13 = vld [vmem:[%s15254_s5 + $0x898] sm:$0xff] }
 0x809   : > { %4587 = vmatpush.msra.mxu0 %v8241_v32  ;;  %4776 = vmatpush.msra.mxu1 %v8258_v25  ;;  %v8305_v32 = vld [vmem:[%s15254_s5 + $0x9d0] sm:$0xff] }
 0x80a   : > { %4578 = vmatpush.msrb.mxu3 %v8214_v47  ;;  %4796 = vmatpush.msra.mxu2 %v8274_v42  ;;  %v8298_v47 = vld [vmem:[%s15254_s5 + $0x998] sm:$0xff]  ;;  %v8325_v25 = vld [vmem:[%s15254_s5 + $0xa70] sm:$0xff] }
 0x80b   : > { %4588 = vmatpush.msra.mxu0 %v8240_v11  ;;  %4777 = vmatpush.msra.mxu1 %v8257_v62  ;;  %v8255_v11 = vld [vmem:[%s15254_s5 + $0x840] sm:$0xff]  ;;  %v8357_v42 = vld [vmem:[%s15254_s5 + $0xb70] sm:$0xff]  ;;  %v8324_v62 = vld [vmem:[%s15254_s5 + $0xa68] sm:$0xff] }
 0x80c   : > { %4812 = vmatpush.msra.mxu3 %v8294_v54  ;;  %4797 = vmatpush.msra.mxu2 %v8273_v27  ;;  %v8356_v27 = vld [vmem:[%s15254_s5 + $0xb68] sm:$0xff] }
 0x80d   : > { %4589 = vmatpush.msra.mxu0 %v8239_v15  ;;  %4778 = vmatpush.msra.mxu1 %v8256_v31  ;;  %v8287_v15 = vld [vmem:[%s15254_s5 + $0x940] sm:$0xff] }
 0x80e   : > { %4813 = vmatpush.msra.mxu3 %v8293_v21  ;;  %v8323_v31 = vld [vmem:[%s15254_s5 + $0xa60] sm:$0xff] }
 0x80f   : > { %4590 = vmatpush.msra.mxu0 %v8238_v3  ;;  %4779 = vmatpush.msra.mxu1 %v8255_v11  ;;  %v8303_v3 = vld [vmem:[%s15254_s5 + $0x9c0] sm:$0xff]  ;;  %v8322_v11 = vld [vmem:[%s15254_s5 + $0xa58] sm:$0xff] }
 0x810   : > { %4814 = vmatpush.msra.mxu3 %v8292_v61  ;;  %v8326_v61 = vld [vmem:[%s15254_s5 + $0xa78] sm:$0xff] }
 0x811   : > { %4591 = vmatpush.msra.mxu0 %v8237_v28  ;;  %v8302_v28 = vld [vmem:[%s15254_s5 + $0x9b8] sm:$0xff] }
 0x812   : > { %4815 = vmatpush.msra.mxu3 %v8291_v2  ;;  %v8374_v2 = vld [vmem:[%s15254_s5 + $0xbf8] sm:$0xff] }
 0x813   : > { %4592 = vmatpush.msra.mxu0 %v8236_v34  ;;  %v8252_v34 = vld [vmem:[%s15254_s5 + $0x828] sm:$0xff] }
 0x814   : > { %4816 = vmatpush.msra.mxu3 %v8290_v26  ;;  %v8373_v26 = vld [vmem:[%s15254_s5 + $0xbf0] sm:$0xff] }
 0x815   : > { %4593 = vmatpush.msra.mxu0 %v8235_v46  ;;  %v4485_v46 = vperm.slane %v8213_v17, 1 }
 0x85b   : > { %v4270_v8 = vpop.f32.mrf.mxu1 }
 0x85f   : > { %v4293_v7 = vpop.f32.mrf.mxu2 }
 0x860   : > { %v4434_v12 = vadd.f32 %v4293_v7, %v4270_v8  ;;  %v4316_v16 = vpop.f32.mrf.mxu3  ;;  %v8289_v7 = vld [vmem:[%s15254_s5 + $0x950] sm:$0xff]  ;;  %v8272_v8 = vld [vmem:[%s15254_s5 + $0x8c8] sm:$0xff] }
 0x861   : > { %4817 = vmatpush.msra.mxu3 %v8289_v7  ;;  %4798 = vmatpush.msra.mxu2 %v8272_v8  ;;  %v8372_v7 = vld [vmem:[%s15254_s5 + $0xbe8] sm:$0xff]  ;;  %v8355_v8 = vld [vmem:[%s15254_s5 + $0xb60] sm:$0xff] }
 0x862   : > { %v4435_v18 = vadd.f32 %v4434_v12, %v4316_v16  ;;  %v8304_v12 = vld [vmem:[%s15254_s5 + $0x9c8] sm:$0xff]  ;;  %v8254_v16 = vld [vmem:[%s15254_s5 + $0x838] sm:$0xff] }
 0x863   : > { %4818 = vmatpush.msra.mxu3 %v8288_v9  ;;  %4799 = vmatpush.msra.mxu2 %v8271_v14  ;;  %v8371_v9 = vld [vmem:[%s15254_s5 + $0xbe0] sm:$0xff]  ;;  %v8354_v14 = vld [vmem:[%s15254_s5 + $0xb58] sm:$0xff] }
 0x864   : > { %4780 = vmatpush.msra.mxu1 %v8254_v16  ;;  %v8321_v16 = vld [vmem:[%s15254_s5 + $0xa50] sm:$0xff] }
 0x865   : > { %4819 = vmatpush.msra.mxu3 %v8287_v15  ;;  %v8370_v15 = vld [vmem:[%s15254_s5 + $0xbd8] sm:$0xff] }
 0x866   : > { %4781 = vmatpush.msra.mxu1 %v8253_v24  ;;  %v8336_v24 = vld [vmem:[%s15254_s5 + $0xac8] sm:$0xff] }
 0x868   : > { %4782 = vmatpush.msra.mxu1 %v8252_v34  ;;  %v8351_v34 = vld [vmem:[%s15254_s5 + $0xb40] sm:$0xff] }
 0x869   : > { %v4362_v30 = vpop.f32.mrf.mxu1 }
 0x87d   : > { %v4339_v20 = vpop.f32.mrf.mxu0 }
 0x87e   : > { %v4436_v29 = vadd.f32 %v4435_v18, %v4339_v20  ;;  %v8270_v18 = vld [vmem:[%s15254_s5 + $0x8b8] sm:$0xff] }
 0x87f   : > { %v8286_v20 = vld [vmem:[%s15254_s5 + $0x938] sm:$0xff]  ;;  %4800 = vmatpush.msra.mxu2 %v8270_v18  ;;  %v8369_v18 = vld [vmem:[%s15254_s5 + $0xbd0] sm:$0xff] }
 0x880   : > { %v4437_v35 = vadd.f32 %v4436_v29, %v4362_v30  ;;  %v8269_v29 = vld [vmem:[%s15254_s5 + $0x8b0] sm:$0xff]  ;;  %v4484_v30 = vperm.slane %v8213_v17, 0  ;;  %4820 = vmatpush.msra.mxu3 %v8286_v20  ;;  %v8320_v20 = vld [vmem:[%s15254_s5 + $0xa48] sm:$0xff] }
 0x881   : > { %v4385_v36 = vpop.f32.mrf.mxu2  ;;  %4801 = vmatpush.msra.mxu2 %v8269_v29  ;;  %v8337_v17 = vld [vmem:[%s15254_s5 + $0xad0] sm:$0xff]  ;;  %v8368_v29 = vld [vmem:[%s15254_s5 + $0xbc8] sm:$0xff] }
 0x882   : > { %v4438_v38 = vadd.f32 %v4437_v35, %v4385_v36  ;;  %v4408_v39 = vpop.f32.mrf.mxu3  ;;  %v8301_v35 = vld [vmem:[%s15254_s5 + $0x9b0] sm:$0xff]  ;;  %v8268_v36 = vld [vmem:[%s15254_s5 + $0x8a8] sm:$0xff]  ;;  %4821 = vmatpush.msra.mxu3 %v8285_v33  ;;  %v8335_v33 = vld [vmem:[%s15254_s5 + $0xac0] sm:$0xff] }
 0x883   : > { %4802 = vmatpush.msra.mxu2 %v8268_v36  ;;  %v8318_v36 = vld [vmem:[%s15254_s5 + $0xa38] sm:$0xff] }
 0x884   : > { %v4439_v41 = vadd.f32 %v4438_v38, %v4408_v39  ;;  %v8251_v38 = vld [vmem:[%s15254_s5 + $0x820] sm:$0xff]  ;;  %4822 = vmatpush.msra.mxu3 %v8284_v37  ;;  %v8334_v37 = vld [vmem:[%s15254_s5 + $0xab8] sm:$0xff] }
 0x885   : > { %v4431_v6 = vpop.f32.mrf.mxu0  ;;  %4783 = vmatpush.msra.mxu1 %v8251_v38  ;;  %v8350_v38 = vld [vmem:[%s15254_s5 + $0xb38] sm:$0xff] }
 0x886   : > { %v4440_v44 = vadd.f32 %v4439_v41, %v4431_v6  ;;  %v8267_v41 = vld [vmem:[%s15254_s5 + $0x8a0] sm:$0xff] }
 0x887   : > { %v8283_v6 = vld [vmem:[%s15254_s5 + $0x920] sm:$0xff]  ;;  %4803 = vmatpush.msra.mxu2 %v8267_v41  ;;  %v8333_v41 = vld [vmem:[%s15254_s5 + $0xab0] sm:$0xff] }
 0x888   : > { %v4446_v45 = vadd.f32 %v8841_v43, %v4440_v44  ;;  %v8250_v44 = vld [vmem:[%s15254_s5 + $0x818] sm:$0xff]  ;;  %4823 = vmatpush.msra.mxu3 %v8283_v6  ;;  %v8365_v6 = vld [vmem:[%s15254_s5 + $0xbb0] sm:$0xff] }
 0x889   : > { %4784 = vmatpush.msra.mxu1 %v8250_v44  ;;  %4804 = vmatpush.msra.mxu2 %v8266_v13  ;;  %v8316_v44 = vld [vmem:[%s15254_s5 + $0xa28] sm:$0xff]  ;;  %v8315_v13 = vld [vmem:[%s15254_s5 + $0xa20] sm:$0xff] }
 0x88a   : > { %v12342_v5 = vadd.f32 %v4446_v45, %v11163_v1  ;;  %v8234_v1 = vld [vmem:[%s15234_s14 + $0x1a0] sm:$0xff] }
 0x88b   : > { %4594 = vmatpush.msra.mxu0 %v8234_v1  ;;  %v8299_v45 = vld [vmem:[%s15254_s5 + $0x9a0] sm:$0xff]  ;;  %v8282_v1 = vld [vmem:[%s15254_s5 + $0x918] sm:$0xff] }
 0x88c   : > { %4504 = vmatmul.f32.vlgmr.msrb.gmra.mxu1 %v12342_v5  ;;  %4524 = vmatmul.f32.vlgmr.msrb.gmra.mxu2 %v12342_v5 }
 0x88d   : > { %4595 = vmatpush.msra.mxu0 %v8233_v48  ;;  %v8249_v48 = vld [vmem:[%s15254_s5 + $0x810] sm:$0xff]  ;;  %4824 = vmatpush.msra.mxu3 %v8282_v1  ;;  %v8331_v1 = vld [vmem:[%s15254_s5 + $0xaa0] sm:$0xff] }
 0x88e   : > { %4785 = vmatpush.msra.mxu1 %v8249_v48  ;;  %v8363_v48 = vld [vmem:[%s15254_s5 + $0xba0] sm:$0xff] }
 0x88f   : > { %4596 = vmatpush.msra.mxu0 %v8232_v49  ;;  %v8265_v49 = vld [vmem:[%s15254_s5 + $0x890] sm:$0xff] }
 0x890   : > { %4805 = vmatpush.msra.mxu2 %v8265_v49  ;;  %4786 = vmatpush.msra.mxu1 %v8248_v53  ;;  %v8314_v49 = vld [vmem:[%s15254_s5 + $0xa18] sm:$0xff]  ;;  %v8313_v53 = vld [vmem:[%s15254_s5 + $0xa10] sm:$0xff] }
 0x891   : > { %4597 = vmatpush.msra.mxu0 %v8231_v50  ;;  %v8281_v50 = vld [vmem:[%s15254_s5 + $0x910] sm:$0xff] }
 0x892   : > { %4825 = vmatpush.msra.mxu3 %v8281_v50  ;;  %4787 = vmatpush.msra.mxu1 %v8247_v57  ;;  %v8330_v50 = vld [vmem:[%s15254_s5 + $0xa98] sm:$0xff]  ;;  %v8312_v57 = vld [vmem:[%s15254_s5 + $0xa08] sm:$0xff] }
 0x893   : > { %4598 = vmatpush.msra.mxu0 %v8230_v51 }
 0x894   : > { %4826 = vmatpush.msra.mxu3 %v8280_v56  ;;  %4852 = vmatpush.msrb.mxu1 %v8326_v61  ;;  %v8361_v56 = vld [vmem:[%s15254_s5 + $0xb90] sm:$0xff]  ;;  %v8327_v61 = vld [vmem:[%s15254_s5 + $0xa80] sm:$0xff] }
 0x895   : > { %4832 = vmatpush.msrb.mxu0 %v8310_v55  ;;  %v8264_v55 = vld [vmem:[%s15254_s5 + $0x888] sm:$0xff] }
 0x896   : > { %4806 = vmatpush.msra.mxu2 %v8264_v55  ;;  %4827 = vmatpush.msra.mxu3 %v8279_v59  ;;  %v8345_v55 = vld [vmem:[%s15254_s5 + $0xb10] sm:$0xff]  ;;  %v8311_v59 = vld [vmem:[%s15254_s5 + $0xa00] sm:$0xff] }
 0x897   : > { %4833 = vmatpush.msrb.mxu0 %v8309_v23  ;;  %v8263_v23 = vld [vmem:[%s15254_s5 + $0x880] sm:$0xff]  ;;  %4853 = vmatpush.msrb.mxu1 %v8325_v25 }
 0x898   : > { %4807 = vmatpush.msra.mxu2 %v8263_v23  ;;  %v8360_v23 = vld [vmem:[%s15254_s5 + $0xb88] sm:$0xff] }
 0x899   : > { %4834 = vmatpush.msrb.mxu0 %v8308_v0  ;;  %v8342_v0 = vld [vmem:[%s15254_s5 + $0xaf8] sm:$0xff]  ;;  %4854 = vmatpush.msrb.mxu1 %v8324_v62 }
 0x89a   : > { %4872 = vmatpush.msrb.mxu2 %v8342_v0  ;;  %v8359_v0 = vld [vmem:[%s15254_s5 + $0xb80] sm:$0xff]  ;;  %v8398_v62 = vld [vmem:[%s15257_s21 + $0x878] sm:$0xff] }
 0x89b   : > { %4835 = vmatpush.msrb.mxu0 %v8307_v4  ;;  %v8341_v4 = vld [vmem:[%s15254_s5 + $0xaf0] sm:$0xff]  ;;  %4855 = vmatpush.msrb.mxu1 %v8323_v31 }
 0x89c   : > { %4873 = vmatpush.msrb.mxu2 %v8341_v4  ;;  %v8842_v4 = vld [vmem:[%s15235_s15 + $0x1] ss:$0 sm:$0xff]  ;;  %v8413_v31 = vld [vmem:[%s15257_s21 + $0x8f0] sm:$0xff] }
 0x89d   : > { %4836 = vmatpush.msrb.mxu0 %v8306_v60  ;;  %v8340_v60 = vld [vmem:[%s15254_s5 + $0xae8] sm:$0xff]  ;;  %4856 = vmatpush.msrb.mxu1 %v8322_v11 }
 0x89e   : > { %4874 = vmatpush.msrb.mxu2 %v8340_v60  ;;  %v8414_v60 = vld [vmem:[%s15257_s21 + $0x8f8] sm:$0xff]  ;;  %v8412_v11 = vld [vmem:[%s15257_s21 + $0x8e8] sm:$0xff] }
 0x89f   : > { %4837 = vmatpush.msrb.mxu0 %v8305_v32  ;;  %v8339_v32 = vld [vmem:[%s15254_s5 + $0xae0] sm:$0xff]  ;;  %4857 = vmatpush.msrb.mxu1 %v8321_v16 }
 0x8a0   : > { %4875 = vmatpush.msrb.mxu2 %v8339_v32  ;;  %v8429_v32 = vld [vmem:[%s15257_s21 + $0x970] sm:$0xff]  ;;  %v8411_v16 = vld [vmem:[%s15257_s21 + $0x8e0] sm:$0xff] }
 0x8a1   : > { %4838 = vmatpush.msrb.mxu0 %v8304_v12  ;;  %v8338_v12 = vld [vmem:[%s15254_s5 + $0xad8] sm:$0xff]  ;;  %4858 = vmatpush.msrb.mxu1 %v8320_v20 }
 0x8a2   : > { %4876 = vmatpush.msrb.mxu2 %v8338_v12  ;;  %v8428_v12 = vld [vmem:[%s15257_s21 + $0x968] sm:$0xff]  ;;  %v8410_v20 = vld [vmem:[%s15257_s21 + $0x8d8] sm:$0xff] }
 0x8a3   : > { %4839 = vmatpush.msrb.mxu0 %v8303_v3  ;;  %v8353_v3 = vld [vmem:[%s15254_s5 + $0xb50] sm:$0xff] }
 0x8a4   : > { %4877 = vmatpush.msrb.mxu2 %v8337_v17  ;;  %v8427_v17 = vld [vmem:[%s15257_s21 + $0x960] sm:$0xff] }
 0x8a5   : > { %4840 = vmatpush.msrb.mxu0 %v8302_v28  ;;  %v8352_v28 = vld [vmem:[%s15254_s5 + $0xb48] sm:$0xff] }
 0x8a6   : > { %4878 = vmatpush.msrb.mxu2 %v8336_v24  ;;  %v8426_v24 = vld [vmem:[%s15257_s21 + $0x958] sm:$0xff] }
 0x8a7   : > { %4841 = vmatpush.msrb.mxu0 %v8301_v35  ;;  %v8367_v35 = vld [vmem:[%s15254_s5 + $0xbc0] sm:$0xff] }
 0x8a8   : > { %4879 = vmatpush.msrb.mxu2 %v8335_v33  ;;  %v8425_v33 = vld [vmem:[%s15257_s21 + $0x950] sm:$0xff] }
 0x8a9   : > { %4842 = vmatpush.msrb.mxu0 %v8300_v40  ;;  %v8317_v40 = vld [vmem:[%s15254_s5 + $0xa30] sm:$0xff] }
 0x8aa   : > { %4880 = vmatpush.msrb.mxu2 %v8334_v37  ;;  %v8424_v37 = vld [vmem:[%s15257_s21 + $0x948] sm:$0xff] }
 0x8ab   : > { %4843 = vmatpush.msrb.mxu0 %v8299_v45  ;;  %v8332_v45 = vld [vmem:[%s15254_s5 + $0xaa8] sm:$0xff] }
 0x8ac   : > { %4881 = vmatpush.msrb.mxu2 %v8333_v41  ;;  %v8423_v41 = vld [vmem:[%s15257_s21 + $0x940] sm:$0xff] }
 0x8ad   : > { %4844 = vmatpush.msrb.mxu0 %v8298_v47  ;;  %v8347_v47 = vld [vmem:[%s15254_s5 + $0xb20] sm:$0xff] }
 0x8ae   : > { %4882 = vmatpush.msrb.mxu2 %v8332_v45  ;;  %v8422_v45 = vld [vmem:[%s15257_s21 + $0x938] sm:$0xff] }
 0x8af   : > { %4845 = vmatpush.msrb.mxu0 %v8297_v52  ;;  %v8362_v52 = vld [vmem:[%s15254_s5 + $0xb98] sm:$0xff] }
 0x8b0   : > { %4883 = vmatpush.msrb.mxu2 %v8331_v1  ;;  %v8421_v1 = vld [vmem:[%s15257_s21 + $0x930] sm:$0xff] }
 0x8b1   : > { %4846 = vmatpush.msrb.mxu0 %v8296_v58  ;;  %v8344_v58 = vld [vmem:[%s15254_s5 + $0xb08] sm:$0xff] }
 0x8b2   : > { %4884 = vmatpush.msrb.mxu2 %v8330_v50  ;;  %v8420_v50 = vld [vmem:[%s15257_s21 + $0x928] sm:$0xff] }
 0x8b3   : > { %4847 = vmatpush.msrb.mxu0 %v8295_v63  ;;  %v8343_v63 = vld [vmem:[%s15254_s5 + $0xb00] sm:$0xff] }
 0x909   : > { %v4505_v39 = vpop.f32.mrf.mxu1 }
 0x90a   : > { %v4506_v43 = vadd.f32 %v4505_v39, %v4484_v30  ;;  %v8319_v30 = vld [vmem:[%s15254_s5 + $0xa40] sm:$0xff]  ;;  %v8366_v39 = vld [vmem:[%s15254_s5 + $0xbb8] sm:$0xff] }
 0x90b   : > { %4859 = vmatpush.msrb.mxu1 %v8319_v30  ;;  %v8409_v30 = vld [vmem:[%s15257_s21 + $0x8d0] sm:$0xff] }
 0x90c   : > { %v4528_v10 = vmax.f32 %v4506_v43, 0.0  ;;  %v8349_v43 = vld [vmem:[%s15254_s5 + $0xb30] sm:$0xff] }
 0x90d   : > { %4860 = vmatpush.msrb.mxu1 %v8318_v36  ;;  %v8408_v36 = vld [vmem:[%s15257_s21 + $0x8c8] sm:$0xff] }
 0x90e   : > { %4579 = vmatmul.f32.vlgmr.msrb.gmra.mxu3 %v4528_v10  ;;  %v8348_v10 = vld [vmem:[%s15254_s5 + $0xb28] sm:$0xff] }
 0x90f   : > { %v4525_v51 = vpop.f32.mrf.mxu2  ;;  %4892 = vmatpush.msrb.mxu3 %v8358_v22  ;;  %4861 = vmatpush.msrb.mxu1 %v8317_v40  ;;  %v8407_v40 = vld [vmem:[%s15257_s21 + $0x8c0] sm:$0xff] }
 0x910   : > { %v4526_v54 = vadd.f32 %v4525_v51, %v4485_v46  ;;  %v8364_v46 = vld [vmem:[%s15254_s5 + $0xba8] sm:$0xff]  ;;  %v8346_v51 = vld [vmem:[%s15254_s5 + $0xb18] sm:$0xff] }
 0x911   : > { %4893 = vmatpush.msrb.mxu3 %v8357_v42  ;;  %4862 = vmatpush.msrb.mxu1 %v8316_v44  ;;  %v8406_v44 = vld [vmem:[%s15257_s21 + $0x8b8] sm:$0xff] }
 0x912   : > { %v4529_v21 = vmax.f32 %v4526_v54, 0.0  ;;  %v8329_v54 = vld [vmem:[%s15254_s5 + $0xa90] sm:$0xff] }
 0x913   : > { %4894 = vmatpush.msrb.mxu3 %v8356_v27  ;;  %4863 = vmatpush.msrb.mxu1 %v8315_v13  ;;  %v8430_v27 = vld [vmem:[%s15257_s21 + $0x978] sm:$0xff]  ;;  %v8405_v13 = vld [vmem:[%s15257_s21 + $0x8b0] sm:$0xff] }
 0x914   : > { %4599 = vmatmul.f32.vlgmr.msra.gmra.mxu0 %v4529_v21  ;;  %4885 = vmatpush.msrb.mxu2 %v8329_v54  ;;  %v8328_v21 = vld [vmem:[%s15254_s5 + $0xa88] sm:$0xff]  ;;  %v8419_v54 = vld [vmem:[%s15257_s21 + $0x920] sm:$0xff] }
 0x915   : > { %4912 = vmatpush.msra.mxu0 %v8374_v2  ;;  %4895 = vmatpush.msrb.mxu3 %v8355_v8  ;;  %v8445_v8 = vld [vmem:[%s15257_s21 + $0x9f0] sm:$0xff] }
 0x916   : > { %4864 = vmatpush.msrb.mxu1 %v8314_v49  ;;  %4886 = vmatpush.msrb.mxu2 %v8328_v21  ;;  %v8404_v49 = vld [vmem:[%s15257_s21 + $0x8a8] sm:$0xff]  ;;  %v8418_v21 = vld [vmem:[%s15257_s21 + $0x918] sm:$0xff] }
 0x917   : > { %4913 = vmatpush.msra.mxu0 %v8373_v26  ;;  %4896 = vmatpush.msrb.mxu3 %v8354_v14  ;;  %v8444_v14 = vld [vmem:[%s15257_s21 + $0x9e8] sm:$0xff] }
 0x918   : > { %4865 = vmatpush.msrb.mxu1 %v8313_v53  ;;  %4887 = vmatpush.msrb.mxu2 %v8327_v61  ;;  %v8403_v53 = vld [vmem:[%s15257_s21 + $0x8a0] sm:$0xff]  ;;  %v8417_v61 = vld [vmem:[%s15257_s21 + $0x910] sm:$0xff] }
 0x919   : > { %4914 = vmatpush.msra.mxu0 %v8372_v7  ;;  %4897 = vmatpush.msrb.mxu3 %v8353_v3  ;;  %v8397_v7 = vld [vmem:[%s15257_s21 + $0x870] sm:$0xff]  ;;  %v8443_v3 = vld [vmem:[%s15257_s21 + $0x9e0] sm:$0xff] }
 0x91a   : > { %4866 = vmatpush.msrb.mxu1 %v8312_v57  ;;  %v8402_v57 = vld [vmem:[%s15257_s21 + $0x898] sm:$0xff] }
 0x91b   : > { %4915 = vmatpush.msra.mxu0 %v8371_v9  ;;  %4898 = vmatpush.msrb.mxu3 %v8352_v28  ;;  %v8396_v9 = vld [vmem:[%s15257_s21 + $0x868] sm:$0xff]  ;;  %v8442_v28 = vld [vmem:[%s15257_s21 + $0x9d8] sm:$0xff] }
 0x91c   : > { %4867 = vmatpush.msrb.mxu1 %v8311_v59  ;;  %v8401_v59 = vld [vmem:[%s15257_s21 + $0x890] sm:$0xff] }
 0x91d   : > { %4916 = vmatpush.msra.mxu0 %v8370_v15  ;;  %4899 = vmatpush.msrb.mxu3 %v8351_v34  ;;  %v8395_v15 = vld [vmem:[%s15257_s21 + $0x860] sm:$0xff]  ;;  %v8441_v34 = vld [vmem:[%s15257_s21 + $0x9d0] sm:$0xff] }
 0x91f   : > { %4917 = vmatpush.msra.mxu0 %v8369_v18  ;;  %4900 = vmatpush.msrb.mxu3 %v8350_v38  ;;  %v8394_v18 = vld [vmem:[%s15257_s21 + $0x858] sm:$0xff]  ;;  %v8440_v38 = vld [vmem:[%s15257_s21 + $0x9c8] sm:$0xff] }
 0x921   : > { %4918 = vmatpush.msra.mxu0 %v8368_v29  ;;  %4901 = vmatpush.msrb.mxu3 %v8349_v43  ;;  %v8393_v29 = vld [vmem:[%s15257_s21 + $0x850] sm:$0xff]  ;;  %v8439_v43 = vld [vmem:[%s15257_s21 + $0x9c0] sm:$0xff] }
 0x923   : > { %4919 = vmatpush.msra.mxu0 %v8367_v35  ;;  %4902 = vmatpush.msrb.mxu3 %v8348_v10  ;;  %v8392_v35 = vld [vmem:[%s15257_s21 + $0x848] sm:$0xff]  ;;  %v8438_v10 = vld [vmem:[%s15257_s21 + $0x9b8] sm:$0xff] }
 0x925   : > { %4920 = vmatpush.msra.mxu0 %v8366_v39  ;;  %4903 = vmatpush.msrb.mxu3 %v8347_v47  ;;  %v8391_v39 = vld [vmem:[%s15257_s21 + $0x840] sm:$0xff]  ;;  %v8437_v47 = vld [vmem:[%s15257_s21 + $0x9b0] sm:$0xff] }
 0x927   : > { %4921 = vmatpush.msra.mxu0 %v8365_v6  ;;  %4904 = vmatpush.msrb.mxu3 %v8346_v51  ;;  %v8390_v6 = vld [vmem:[%s15257_s21 + $0x838] sm:$0xff]  ;;  %v8436_v51 = vld [vmem:[%s15257_s21 + $0x9a8] sm:$0xff] }
 0x929   : > { %4922 = vmatpush.msra.mxu0 %v8364_v46  ;;  %4905 = vmatpush.msrb.mxu3 %v8345_v55  ;;  %v8389_v46 = vld [vmem:[%s15257_s21 + $0x830] sm:$0xff]  ;;  %v8435_v55 = vld [vmem:[%s15257_s21 + $0x9a0] sm:$0xff] }
 0x92b   : > { %4923 = vmatpush.msra.mxu0 %v8363_v48  ;;  %4906 = vmatpush.msrb.mxu3 %v8344_v58  ;;  %v8388_v48 = vld [vmem:[%s15257_s21 + $0x828] sm:$0xff]  ;;  %v8434_v58 = vld [vmem:[%s15257_s21 + $0x998] sm:$0xff] }
 0x92d   : > { %4924 = vmatpush.msra.mxu0 %v8362_v52  ;;  %4907 = vmatpush.msrb.mxu3 %v8343_v63  ;;  %v8387_v52 = vld [vmem:[%s15257_s21 + $0x820] sm:$0xff]  ;;  %v8433_v63 = vld [vmem:[%s15257_s21 + $0x990] sm:$0xff] }
 0x92f   : > { %4925 = vmatpush.msra.mxu0 %v8361_v56  ;;  %v8386_v56 = vld [vmem:[%s15257_s21 + $0x818] sm:$0xff] }
 0x931   : > { %4926 = vmatpush.msra.mxu0 %v8360_v23  ;;  %v8385_v23 = vld [vmem:[%s15257_s21 + $0x810] sm:$0xff] }
 0x933   : > { %4927 = vmatpush.msra.mxu0 %v8359_v0  ;;  %v8384_v0 = vld [vmem:[%s15257_s21 + $0x808] sm:$0xff] }
 0x991   : > { %v4580_v22 = vpop.f32.mrf.mxu3  ;;  %v4600_v2 = vpop.f32.mrf.mxu0 }
 0x992   : > { %v4601_v25 = vadd.f32 %v4600_v2, %v4580_v22  ;;  %v8400_v22 = vld [vmem:[%s15257_s21 + $0x888] sm:$0xff] }
 0x993   : > { %v8416_v2 = vld [vmem:[%s15257_s21 + $0x908] sm:$0xff] }
 0x994   : > { %v4603_v42 = vadd.f32 %v4601_v25, %v12342_v5  ;;  %v8446_v5 = vld [vmem:[%s15257_s21 + $0x9f8] sm:$0xff]  ;;  %v8432_v25 = vld [vmem:[%s15257_s21 + $0x988] sm:$0xff] }
 0x996   : > { %v12764_v26 = vadd.f32 %v8842_v4, %v4603_v42  ;;  %v8383_v4 = vld [vmem:[%s15257_s21 + $0x800] sm:$0xff] }
 0x997   : > { %v8399_v42 = vld [vmem:[%s15257_s21 + $0x880] sm:$0xff] }
 0x998   : > { %4788 = vmatmul.f32.vlgmr.msra.gmra.mxu1 %v12764_v26  ;;  %4808 = vmatmul.f32.vlgmr.msra.gmra.mxu2 %v12764_v26 }
 0x999   : > { %4828 = vmatmul.f32.vlgmr.msra.gmra.mxu3 %v12764_v26  ;;  %4848 = vmatmul.f32.vlgmr.msrb.gmra.mxu0 %v12764_v26 }
 0x99a   : > { %5094 = vmatpush.msra.mxu1 %v8398_v62  ;;  %5114 = vmatpush.msra.mxu2 %v8414_v60  ;;  %v8415_v62 = vld [vmem:[%s15257_s21 + $0x900] sm:$0xff] }
 0x99b   : > { %5134 = vmatpush.msra.mxu3 %v8430_v27  ;;  %5154 = vmatpush.msrb.mxu0 %v8446_v5  ;;  %v8431_v60 = vld [vmem:[%s15257_s21 + $0x980] sm:$0xff]  ;;  %v8462_v27 = vld [vmem:[%s15257_s21 + $0xa78] sm:$0xff] }
 0x99c   : > { %5095 = vmatpush.msra.mxu1 %v8397_v7  ;;  %5115 = vmatpush.msra.mxu2 %v8413_v31  ;;  %v8478_v5 = vld [vmem:[%s15257_s21 + $0xaf8] sm:$0xff] }
 0x99d   : > { %5135 = vmatpush.msra.mxu3 %v8429_v32  ;;  %5155 = vmatpush.msrb.mxu0 %v8445_v8  ;;  %v8494_v7 = vld [vmem:[%s15257_s21 + $0xb78] sm:$0xff]  ;;  %v8461_v32 = vld [vmem:[%s15257_s21 + $0xa70] sm:$0xff] }
 0x99e   : > { %5096 = vmatpush.msra.mxu1 %v8396_v9  ;;  %5116 = vmatpush.msra.mxu2 %v8412_v11  ;;  %v8510_v31 = vld [vmem:[%s15257_s21 + $0xbf8] sm:$0xff]  ;;  %v8477_v8 = vld [vmem:[%s15257_s21 + $0xaf0] sm:$0xff] }
 0x99f   : > { %5136 = vmatpush.msra.mxu3 %v8428_v12  ;;  %5156 = vmatpush.msrb.mxu0 %v8444_v14  ;;  %v8493_v9 = vld [vmem:[%s15257_s21 + $0xb70] sm:$0xff]  ;;  %v8460_v12 = vld [vmem:[%s15257_s21 + $0xa68] sm:$0xff] }
 0x9a0   : > { %5097 = vmatpush.msra.mxu1 %v8395_v15  ;;  %5117 = vmatpush.msra.mxu2 %v8411_v16  ;;  %v8509_v11 = vld [vmem:[%s15257_s21 + $0xbf0] sm:$0xff]  ;;  %v8476_v14 = vld [vmem:[%s15257_s21 + $0xae8] sm:$0xff] }
 0x9a1   : > { %5137 = vmatpush.msra.mxu3 %v8427_v17  ;;  %5157 = vmatpush.msrb.mxu0 %v8443_v3  ;;  %v8492_v15 = vld [vmem:[%s15257_s21 + $0xb68] sm:$0xff]  ;;  %v8459_v17 = vld [vmem:[%s15257_s21 + $0xa60] sm:$0xff] }
 0x9a2   : > { %4868 = vmatmul.f32.vlgmr.msrb.gmra.mxu1 %v12764_v26  ;;  %4888 = vmatmul.f32.vlgmr.msrb.gmra.mxu2 %v12764_v26  ;;  %v8508_v16 = vld [vmem:[%s15257_s21 + $0xbe8] sm:$0xff]  ;;  %v8475_v3 = vld [vmem:[%s15257_s21 + $0xae0] sm:$0xff] }
 0x9a3   : > { %4908 = vmatmul.f32.vlgmr.msrb.gmra.mxu3 %v12764_v26  ;;  %4928 = vmatmul.f32.vlgmr.msra.gmra.mxu0 %v12764_v26 }
 0x9a4   : > { %5098 = vmatpush.msra.mxu1 %v8394_v18  ;;  %5118 = vmatpush.msra.mxu2 %v8410_v20  ;;  %v8491_v18 = vld [vmem:[%s15257_s21 + $0xb60] sm:$0xff] }
 0x9a5   : > { %5138 = vmatpush.msra.mxu3 %v8426_v24  ;;  %5158 = vmatpush.msrb.mxu0 %v8442_v28  ;;  %v8507_v20 = vld [vmem:[%s15257_s21 + $0xbe0] sm:$0xff]  ;;  %v8458_v24 = vld [vmem:[%s15257_s21 + $0xa58] sm:$0xff] }
 0x9a6   : > { %5099 = vmatpush.msra.mxu1 %v8393_v29  ;;  %5119 = vmatpush.msra.mxu2 %v8409_v30  ;;  %v8474_v28 = vld [vmem:[%s15257_s21 + $0xad8] sm:$0xff] }
 0x9a7   : > { %5139 = vmatpush.msra.mxu3 %v8425_v33  ;;  %5159 = vmatpush.msrb.mxu0 %v8441_v34  ;;  %v8490_v29 = vld [vmem:[%s15257_s21 + $0xb58] sm:$0xff]  ;;  %v8457_v33 = vld [vmem:[%s15257_s21 + $0xa50] sm:$0xff] }
 0x9a8   : > { %5100 = vmatpush.msra.mxu1 %v8392_v35  ;;  %5120 = vmatpush.msra.mxu2 %v8408_v36  ;;  %v8506_v30 = vld [vmem:[%s15257_s21 + $0xbd8] sm:$0xff]  ;;  %v8473_v34 = vld [vmem:[%s15257_s21 + $0xad0] sm:$0xff] }
 0x9a9   : > { %5140 = vmatpush.msra.mxu3 %v8424_v37  ;;  %5160 = vmatpush.msrb.mxu0 %v8440_v38  ;;  %v8489_v35 = vld [vmem:[%s15257_s21 + $0xb50] sm:$0xff]  ;;  %v8456_v37 = vld [vmem:[%s15257_s21 + $0xa48] sm:$0xff] }
 0x9aa   : > { %5101 = vmatpush.msra.mxu1 %v8391_v39  ;;  %5121 = vmatpush.msra.mxu2 %v8407_v40  ;;  %v8505_v36 = vld [vmem:[%s15257_s21 + $0xbd0] sm:$0xff]  ;;  %v8472_v38 = vld [vmem:[%s15257_s21 + $0xac8] sm:$0xff] }
 0x9ab   : > { %5141 = vmatpush.msra.mxu3 %v8423_v41  ;;  %5161 = vmatpush.msrb.mxu0 %v8439_v43  ;;  %v8488_v39 = vld [vmem:[%s15257_s21 + $0xb48] sm:$0xff]  ;;  %v8455_v41 = vld [vmem:[%s15257_s21 + $0xa40] sm:$0xff] }
 0x9ac   : > { %5102 = vmatpush.msra.mxu1 %v8390_v6  ;;  %5122 = vmatpush.msra.mxu2 %v8406_v44  ;;  %v8504_v40 = vld [vmem:[%s15257_s21 + $0xbc8] sm:$0xff]  ;;  %v8471_v43 = vld [vmem:[%s15257_s21 + $0xac0] sm:$0xff] }
 0x9ad   : > { %5142 = vmatpush.msra.mxu3 %v8422_v45  ;;  %5162 = vmatpush.msrb.mxu0 %v8438_v10  ;;  %v8487_v6 = vld [vmem:[%s15257_s21 + $0xb40] sm:$0xff]  ;;  %v8454_v45 = vld [vmem:[%s15257_s21 + $0xa38] sm:$0xff] }
 0x9ae   : > { %5103 = vmatpush.msra.mxu1 %v8389_v46  ;;  %5123 = vmatpush.msra.mxu2 %v8405_v13  ;;  %v8503_v44 = vld [vmem:[%s15257_s21 + $0xbc0] sm:$0xff]  ;;  %v8470_v10 = vld [vmem:[%s15257_s21 + $0xab8] sm:$0xff] }
 0x9af   : > { %5143 = vmatpush.msra.mxu3 %v8421_v1  ;;  %5163 = vmatpush.msrb.mxu0 %v8437_v47  ;;  %v8486_v46 = vld [vmem:[%s15257_s21 + $0xb38] sm:$0xff]  ;;  %v8453_v1 = vld [vmem:[%s15257_s21 + $0xa30] sm:$0xff] }
 0x9b0   : > { %5104 = vmatpush.msra.mxu1 %v8388_v48  ;;  %5124 = vmatpush.msra.mxu2 %v8404_v49  ;;  %v8502_v13 = vld [vmem:[%s15257_s21 + $0xbb8] sm:$0xff]  ;;  %v8469_v47 = vld [vmem:[%s15257_s21 + $0xab0] sm:$0xff] }
 0x9b1   : > { %5144 = vmatpush.msra.mxu3 %v8420_v50  ;;  %5164 = vmatpush.msrb.mxu0 %v8436_v51  ;;  %v8485_v48 = vld [vmem:[%s15257_s21 + $0xb30] sm:$0xff]  ;;  %v8452_v50 = vld [vmem:[%s15257_s21 + $0xa28] sm:$0xff] }
 0x9b2   : > { %5105 = vmatpush.msra.mxu1 %v8387_v52  ;;  %5125 = vmatpush.msra.mxu2 %v8403_v53  ;;  %v8501_v49 = vld [vmem:[%s15257_s21 + $0xbb0] sm:$0xff]  ;;  %v8468_v51 = vld [vmem:[%s15257_s21 + $0xaa8] sm:$0xff] }
 0x9b3   : > { %5145 = vmatpush.msra.mxu3 %v8419_v54  ;;  %5165 = vmatpush.msrb.mxu0 %v8435_v55  ;;  %v8484_v52 = vld [vmem:[%s15257_s21 + $0xb28] sm:$0xff]  ;;  %v8451_v54 = vld [vmem:[%s15257_s21 + $0xa20] sm:$0xff] }
 0x9b4   : > { %5106 = vmatpush.msra.mxu1 %v8386_v56  ;;  %5126 = vmatpush.msra.mxu2 %v8402_v57  ;;  %v8500_v53 = vld [vmem:[%s15257_s21 + $0xba8] sm:$0xff]  ;;  %v8467_v55 = vld [vmem:[%s15257_s21 + $0xaa0] sm:$0xff] }
 0x9b5   : > { %5146 = vmatpush.msra.mxu3 %v8418_v21  ;;  %5166 = vmatpush.msrb.mxu0 %v8434_v58  ;;  %v8483_v56 = vld [vmem:[%s15257_s21 + $0xb20] sm:$0xff]  ;;  %v8450_v21 = vld [vmem:[%s15257_s21 + $0xa18] sm:$0xff] }
 0x9b6   : > { %5107 = vmatpush.msra.mxu1 %v8385_v23  ;;  %5127 = vmatpush.msra.mxu2 %v8401_v59  ;;  %v8499_v57 = vld [vmem:[%s15257_s21 + $0xba0] sm:$0xff]  ;;  %v8466_v58 = vld [vmem:[%s15257_s21 + $0xa98] sm:$0xff] }
 0x9b7   : > { %5147 = vmatpush.msra.mxu3 %v8417_v61  ;;  %5167 = vmatpush.msrb.mxu0 %v8433_v63  ;;  %v8482_v23 = vld [vmem:[%s15257_s21 + $0xb18] sm:$0xff]  ;;  %v8449_v61 = vld [vmem:[%s15257_s21 + $0xa10] sm:$0xff] }
 0x9b8   : > { %5108 = vmatpush.msra.mxu1 %v8384_v0  ;;  %5128 = vmatpush.msra.mxu2 %v8400_v22  ;;  %v8498_v59 = vld [vmem:[%s15257_s21 + $0xb98] sm:$0xff]  ;;  %v8465_v63 = vld [vmem:[%s15257_s21 + $0xa90] sm:$0xff] }
 0x9b9   : > { %5148 = vmatpush.msra.mxu3 %v8416_v2  ;;  %5168 = vmatpush.msrb.mxu0 %v8432_v25  ;;  %v8481_v0 = vld [vmem:[%s15257_s21 + $0xb10] sm:$0xff]  ;;  %v8448_v2 = vld [vmem:[%s15257_s21 + $0xa08] sm:$0xff] }
 0x9ba   : > { %5109 = vmatpush.msra.mxu1 %v8383_v4  ;;  %5129 = vmatpush.msra.mxu2 %v8399_v42  ;;  %v8497_v22 = vld [vmem:[%s15257_s21 + $0xb90] sm:$0xff]  ;;  %v8464_v25 = vld [vmem:[%s15257_s21 + $0xa88] sm:$0xff] }
 0x9bb   : > { %5149 = vmatpush.msra.mxu3 %v8415_v62  ;;  %5169 = vmatpush.msrb.mxu0 %v8431_v60  ;;  %v8480_v4 = vld [vmem:[%s15257_s21 + $0xb08] sm:$0xff]  ;;  %v8447_v62 = vld [vmem:[%s15257_s21 + $0xa00] sm:$0xff] }
 0x9bc   : > { %5110 = vmatmul.f32.vlgmr.msra.gmra.mxu1 %v12764_v26  ;;  %5130 = vmatmul.f32.vlgmr.msra.gmra.mxu2 %v12764_v26  ;;  %v8496_v42 = vld [vmem:[%s15257_s21 + $0xb88] sm:$0xff]  ;;  %v8463_v60 = vld [vmem:[%s15257_s21 + $0xa80] sm:$0xff] }
 0x9bd   : > { %5150 = vmatmul.f32.vlgmr.msra.gmra.mxu3 %v12764_v26  ;;  %5170 = vmatmul.f32.vlgmr.msrb.gmra.mxu0 %v12764_v26 }
 0x9be   : > { %5174 = vmatpush.msrb.mxu1 %v8462_v27  ;;  %5194 = vmatpush.msrb.mxu2 %v8478_v5  ;;  %v8479_v27 = vld [vmem:[%s15257_s21 + $0xb00] sm:$0xff] }
 0x9bf   : > { %5214 = vmatpush.msrb.mxu3 %v8494_v7  ;;  %5234 = vmatpush.msra.mxu0 %v8510_v31  ;;  %v8495_v5 = vld [vmem:[%s15257_s21 + $0xb80] sm:$0xff]  ;;  %v8534_v7 = vld [vmem:[%s15228_s8 + $0x878] sm:$0xff] }
 0x9c0   : > { %5175 = vmatpush.msrb.mxu1 %v8461_v32  ;;  %5195 = vmatpush.msrb.mxu2 %v8477_v8  ;;  %v8550_v31 = vld [vmem:[%s15228_s8 + $0x8f8] sm:$0xff] }
 0x9c1   : > { %5215 = vmatpush.msrb.mxu3 %v8493_v9  ;;  %5235 = vmatpush.msra.mxu0 %v8509_v11  ;;  %v8566_v32 = vld [vmem:[%s15228_s8 + $0x978] sm:$0xff]  ;;  %v8533_v9 = vld [vmem:[%s15228_s8 + $0x870] sm:$0xff] }
 0x9c2   : > { %5176 = vmatpush.msrb.mxu1 %v8460_v12  ;;  %5196 = vmatpush.msrb.mxu2 %v8476_v14  ;;  %v8582_v8 = vld [vmem:[%s15228_s8 + $0x9f8] sm:$0xff]  ;;  %v8549_v11 = vld [vmem:[%s15228_s8 + $0x8f0] sm:$0xff] }
 0x9c3   : > { %5216 = vmatpush.msrb.mxu3 %v8492_v15  ;;  %5236 = vmatpush.msra.mxu0 %v8508_v16  ;;  %v8565_v12 = vld [vmem:[%s15228_s8 + $0x970] sm:$0xff]  ;;  %v8532_v15 = vld [vmem:[%s15228_s8 + $0x868] sm:$0xff] }
 0x9c4   : > { %5177 = vmatpush.msrb.mxu1 %v8459_v17  ;;  %5197 = vmatpush.msrb.mxu2 %v8475_v3  ;;  %v8581_v14 = vld [vmem:[%s15228_s8 + $0x9f0] sm:$0xff]  ;;  %v8548_v16 = vld [vmem:[%s15228_s8 + $0x8e8] sm:$0xff] }
 0x9c5   : > { %5217 = vmatpush.msrb.mxu3 %v8491_v18  ;;  %5237 = vmatpush.msra.mxu0 %v8507_v20  ;;  %v8564_v17 = vld [vmem:[%s15228_s8 + $0x968] sm:$0xff]  ;;  %v8531_v18 = vld [vmem:[%s15228_s8 + $0x860] sm:$0xff] }
 0x9c6   : > { %5178 = vmatpush.msrb.mxu1 %v8458_v24  ;;  %5198 = vmatpush.msrb.mxu2 %v8474_v28  ;;  %v8580_v3 = vld [vmem:[%s15228_s8 + $0x9e8] sm:$0xff]  ;;  %v8547_v20 = vld [vmem:[%s15228_s8 + $0x8e0] sm:$0xff] }
 0x9c7   : > { %5218 = vmatpush.msrb.mxu3 %v8490_v29  ;;  %5238 = vmatpush.msra.mxu0 %v8506_v30  ;;  %v8563_v24 = vld [vmem:[%s15228_s8 + $0x960] sm:$0xff]  ;;  %v8530_v29 = vld [vmem:[%s15228_s8 + $0x858] sm:$0xff] }
 0x9c8   : > { %5179 = vmatpush.msrb.mxu1 %v8457_v33  ;;  %5199 = vmatpush.msrb.mxu2 %v8473_v34  ;;  %v8579_v28 = vld [vmem:[%s15228_s8 + $0x9e0] sm:$0xff]  ;;  %v8546_v30 = vld [vmem:[%s15228_s8 + $0x8d8] sm:$0xff] }
 0x9c9   : > { %5219 = vmatpush.msrb.mxu3 %v8489_v35  ;;  %5239 = vmatpush.msra.mxu0 %v8505_v36  ;;  %v8562_v33 = vld [vmem:[%s15228_s8 + $0x958] sm:$0xff]  ;;  %v8529_v35 = vld [vmem:[%s15228_s8 + $0x850] sm:$0xff] }
 0x9ca   : > { %5180 = vmatpush.msrb.mxu1 %v8456_v37  ;;  %5200 = vmatpush.msrb.mxu2 %v8472_v38  ;;  %v8578_v34 = vld [vmem:[%s15228_s8 + $0x9d8] sm:$0xff]  ;;  %v8545_v36 = vld [vmem:[%s15228_s8 + $0x8d0] sm:$0xff] }
 0x9cb   : > { %5220 = vmatpush.msrb.mxu3 %v8488_v39  ;;  %5240 = vmatpush.msra.mxu0 %v8504_v40  ;;  %v8561_v37 = vld [vmem:[%s15228_s8 + $0x950] sm:$0xff]  ;;  %v8528_v39 = vld [vmem:[%s15228_s8 + $0x848] sm:$0xff] }
 0x9cc   : > { %5181 = vmatpush.msrb.mxu1 %v8455_v41  ;;  %5201 = vmatpush.msrb.mxu2 %v8471_v43  ;;  %v8577_v38 = vld [vmem:[%s15228_s8 + $0x9d0] sm:$0xff]  ;;  %v8544_v40 = vld [vmem:[%s15228_s8 + $0x8c8] sm:$0xff] }
 0x9cd   : > { %5221 = vmatpush.msrb.mxu3 %v8487_v6  ;;  %5241 = vmatpush.msra.mxu0 %v8503_v44  ;;  %v8560_v41 = vld [vmem:[%s15228_s8 + $0x948] sm:$0xff]  ;;  %v8527_v6 = vld [vmem:[%s15228_s8 + $0x840] sm:$0xff] }
 0x9ce   : > { %5182 = vmatpush.msrb.mxu1 %v8454_v45  ;;  %5202 = vmatpush.msrb.mxu2 %v8470_v10  ;;  %v8576_v43 = vld [vmem:[%s15228_s8 + $0x9c8] sm:$0xff]  ;;  %v8543_v44 = vld [vmem:[%s15228_s8 + $0x8c0] sm:$0xff] }
 0x9cf   : > { %5222 = vmatpush.msrb.mxu3 %v8486_v46  ;;  %5242 = vmatpush.msra.mxu0 %v8502_v13  ;;  %v8559_v45 = vld [vmem:[%s15228_s8 + $0x940] sm:$0xff]  ;;  %v8526_v46 = vld [vmem:[%s15228_s8 + $0x838] sm:$0xff] }
 0x9d0   : > { %5183 = vmatpush.msrb.mxu1 %v8453_v1  ;;  %5203 = vmatpush.msrb.mxu2 %v8469_v47  ;;  %v8575_v10 = vld [vmem:[%s15228_s8 + $0x9c0] sm:$0xff]  ;;  %v8542_v13 = vld [vmem:[%s15228_s8 + $0x8b8] sm:$0xff] }
 0x9d1   : > { %5223 = vmatpush.msrb.mxu3 %v8485_v48  ;;  %5243 = vmatpush.msra.mxu0 %v8501_v49  ;;  %v8558_v1 = vld [vmem:[%s15228_s8 + $0x938] sm:$0xff]  ;;  %v8525_v48 = vld [vmem:[%s15228_s8 + $0x830] sm:$0xff] }
 0x9d2   : > { %5184 = vmatpush.msrb.mxu1 %v8452_v50  ;;  %5204 = vmatpush.msrb.mxu2 %v8468_v51  ;;  %v8574_v47 = vld [vmem:[%s15228_s8 + $0x9b8] sm:$0xff]  ;;  %v8541_v49 = vld [vmem:[%s15228_s8 + $0x8b0] sm:$0xff] }
 0x9d3   : > { %5224 = vmatpush.msrb.mxu3 %v8484_v52  ;;  %5244 = vmatpush.msra.mxu0 %v8500_v53  ;;  %v8557_v50 = vld [vmem:[%s15228_s8 + $0x930] sm:$0xff]  ;;  %v8524_v52 = vld [vmem:[%s15228_s8 + $0x828] sm:$0xff] }
 0x9d4   : > { %5185 = vmatpush.msrb.mxu1 %v8451_v54  ;;  %5205 = vmatpush.msrb.mxu2 %v8467_v55  ;;  %v8573_v51 = vld [vmem:[%s15228_s8 + $0x9b0] sm:$0xff]  ;;  %v8540_v53 = vld [vmem:[%s15228_s8 + $0x8a8] sm:$0xff] }
 0x9d5   : > { %5225 = vmatpush.msrb.mxu3 %v8483_v56  ;;  %5245 = vmatpush.msra.mxu0 %v8499_v57  ;;  %v8556_v54 = vld [vmem:[%s15228_s8 + $0x928] sm:$0xff]  ;;  %v8523_v56 = vld [vmem:[%s15228_s8 + $0x820] sm:$0xff] }
 0x9d6   : > { %5186 = vmatpush.msrb.mxu1 %v8450_v21  ;;  %5206 = vmatpush.msrb.mxu2 %v8466_v58  ;;  %v8572_v55 = vld [vmem:[%s15228_s8 + $0x9a8] sm:$0xff]  ;;  %v8539_v57 = vld [vmem:[%s15228_s8 + $0x8a0] sm:$0xff] }
 0x9d7   : > { %5226 = vmatpush.msrb.mxu3 %v8482_v23  ;;  %5246 = vmatpush.msra.mxu0 %v8498_v59  ;;  %v8555_v21 = vld [vmem:[%s15228_s8 + $0x920] sm:$0xff]  ;;  %v8522_v23 = vld [vmem:[%s15228_s8 + $0x818] sm:$0xff] }
 0x9d8   : > { %5187 = vmatpush.msrb.mxu1 %v8449_v61  ;;  %5207 = vmatpush.msrb.mxu2 %v8465_v63  ;;  %v8571_v58 = vld [vmem:[%s15228_s8 + $0x9a0] sm:$0xff]  ;;  %v8538_v59 = vld [vmem:[%s15228_s8 + $0x898] sm:$0xff] }
 0x9d9   : > { %5227 = vmatpush.msrb.mxu3 %v8481_v0  ;;  %5247 = vmatpush.msra.mxu0 %v8497_v22  ;;  %v8554_v61 = vld [vmem:[%s15228_s8 + $0x918] sm:$0xff]  ;;  %v8521_v0 = vld [vmem:[%s15228_s8 + $0x810] sm:$0xff] }
 0x9da   : > { %5188 = vmatpush.msrb.mxu1 %v8448_v2  ;;  %5208 = vmatpush.msrb.mxu2 %v8464_v25  ;;  %v8570_v63 = vld [vmem:[%s15228_s8 + $0x998] sm:$0xff]  ;;  %v8537_v22 = vld [vmem:[%s15228_s8 + $0x890] sm:$0xff] }
 0x9db   : > { %5228 = vmatpush.msrb.mxu3 %v8480_v4  ;;  %5248 = vmatpush.msra.mxu0 %v8496_v42  ;;  %v8553_v2 = vld [vmem:[%s15228_s8 + $0x910] sm:$0xff]  ;;  %v8520_v4 = vld [vmem:[%s15228_s8 + $0x808] sm:$0xff] }
 0x9dc   : > { %5189 = vmatpush.msrb.mxu1 %v8447_v62  ;;  %5209 = vmatpush.msrb.mxu2 %v8463_v60  ;;  %v8569_v25 = vld [vmem:[%s15228_s8 + $0x990] sm:$0xff]  ;;  %v8536_v42 = vld [vmem:[%s15228_s8 + $0x888] sm:$0xff] }
 0x9dd   : > { %5229 = vmatpush.msrb.mxu3 %v8479_v27  ;;  %5249 = vmatpush.msra.mxu0 %v8495_v5  ;;  %v8552_v62 = vld [vmem:[%s15228_s8 + $0x908] sm:$0xff]  ;;  %v8519_v27 = vld [vmem:[%s15228_s8 + $0x800] sm:$0xff] }
 0x9de   : > { %5190 = vmatmul.f32.vlgmr.msrb.gmra.mxu1 %v12764_v26  ;;  %5210 = vmatmul.f32.vlgmr.msrb.gmra.mxu2 %v12764_v26  ;;  %v8568_v60 = vld [vmem:[%s15228_s8 + $0x988] sm:$0xff]  ;;  %v8535_v5 = vld [vmem:[%s15228_s8 + $0x880] sm:$0xff] }
 0x9df   : > { %5230 = vmatmul.f32.vlgmr.msrb.gmra.mxu3 %v12764_v26  ;;  %5250 = vmatmul.f32.vlgmr.msra.gmra.mxu0 %v12764_v26 }
 0x9e0   : > { %5416 = vmatpush.msra.mxu1 %v8534_v7  ;;  %5436 = vmatpush.msra.mxu2 %v8550_v31  ;;  %v8551_v7 = vld [vmem:[%s15228_s8 + $0x900] sm:$0xff] }
 0x9e1   : > { %5456 = vmatpush.msra.mxu3 %v8566_v32  ;;  %5476 = vmatpush.msrb.mxu0 %v8582_v8  ;;  %v8567_v31 = vld [vmem:[%s15228_s8 + $0x980] sm:$0xff]  ;;  %v8598_v32 = vld [vmem:[%s15228_s8 + $0xa78] sm:$0xff] }
 0x9e2   : > { %5417 = vmatpush.msra.mxu1 %v8533_v9  ;;  %5437 = vmatpush.msra.mxu2 %v8549_v11  ;;  %v8614_v8 = vld [vmem:[%s15228_s8 + $0xaf8] sm:$0xff] }
 0x9e3   : > { %5457 = vmatpush.msra.mxu3 %v8565_v12  ;;  %5477 = vmatpush.msrb.mxu0 %v8581_v14  ;;  %v8630_v9 = vld [vmem:[%s15228_s8 + $0xb78] sm:$0xff]  ;;  %v8597_v12 = vld [vmem:[%s15228_s8 + $0xa70] sm:$0xff] }
 0x9e4   : > { %5418 = vmatpush.msra.mxu1 %v8532_v15  ;;  %5438 = vmatpush.msra.mxu2 %v8548_v16  ;;  %v8646_v11 = vld [vmem:[%s15228_s8 + $0xbf8] sm:$0xff]  ;;  %v8613_v14 = vld [vmem:[%s15228_s8 + $0xaf0] sm:$0xff] }
 0x9e5   : > { %5458 = vmatpush.msra.mxu3 %v8564_v17  ;;  %5478 = vmatpush.msrb.mxu0 %v8580_v3  ;;  %v8629_v15 = vld [vmem:[%s15228_s8 + $0xb70] sm:$0xff]  ;;  %v8596_v17 = vld [vmem:[%s15228_s8 + $0xa68] sm:$0xff] }
 0x9e6   : > { %5419 = vmatpush.msra.mxu1 %v8531_v18  ;;  %5439 = vmatpush.msra.mxu2 %v8547_v20  ;;  %v8645_v16 = vld [vmem:[%s15228_s8 + $0xbf0] sm:$0xff]  ;;  %v8612_v3 = vld [vmem:[%s15228_s8 + $0xae8] sm:$0xff] }
 0x9e7   : > { %5459 = vmatpush.msra.mxu3 %v8563_v24  ;;  %5479 = vmatpush.msrb.mxu0 %v8579_v28  ;;  %v8628_v18 = vld [vmem:[%s15228_s8 + $0xb68] sm:$0xff]  ;;  %v8595_v24 = vld [vmem:[%s15228_s8 + $0xa60] sm:$0xff] }
 0x9e8   : > { %5420 = vmatpush.msra.mxu1 %v8530_v29  ;;  %5440 = vmatpush.msra.mxu2 %v8546_v30  ;;  %v8644_v20 = vld [vmem:[%s15228_s8 + $0xbe8] sm:$0xff]  ;;  %v8611_v28 = vld [vmem:[%s15228_s8 + $0xae0] sm:$0xff] }
 0x9e9   : > { %5460 = vmatpush.msra.mxu3 %v8562_v33  ;;  %5480 = vmatpush.msrb.mxu0 %v8578_v34  ;;  %v8627_v29 = vld [vmem:[%s15228_s8 + $0xb60] sm:$0xff]  ;;  %v8594_v33 = vld [vmem:[%s15228_s8 + $0xa58] sm:$0xff] }
 0x9ea   : > { %5421 = vmatpush.msra.mxu1 %v8529_v35  ;;  %5441 = vmatpush.msra.mxu2 %v8545_v36  ;;  %v8643_v30 = vld [vmem:[%s15228_s8 + $0xbe0] sm:$0xff]  ;;  %v8610_v34 = vld [vmem:[%s15228_s8 + $0xad8] sm:$0xff] }
 0x9eb   : > { %5461 = vmatpush.msra.mxu3 %v8561_v37  ;;  %5481 = vmatpush.msrb.mxu0 %v8577_v38  ;;  %v8626_v35 = vld [vmem:[%s15228_s8 + $0xb58] sm:$0xff]  ;;  %v8593_v37 = vld [vmem:[%s15228_s8 + $0xa50] sm:$0xff] }
 0x9ec   : > { %5422 = vmatpush.msra.mxu1 %v8528_v39  ;;  %5442 = vmatpush.msra.mxu2 %v8544_v40  ;;  %v8642_v36 = vld [vmem:[%s15228_s8 + $0xbd8] sm:$0xff]  ;;  %v8609_v38 = vld [vmem:[%s15228_s8 + $0xad0] sm:$0xff] }
 0x9ed   : > { %5462 = vmatpush.msra.mxu3 %v8560_v41  ;;  %5482 = vmatpush.msrb.mxu0 %v8576_v43  ;;  %v8625_v39 = vld [vmem:[%s15228_s8 + $0xb50] sm:$0xff]  ;;  %v8592_v41 = vld [vmem:[%s15228_s8 + $0xa48] sm:$0xff] }
 0x9ee   : > { %5423 = vmatpush.msra.mxu1 %v8527_v6  ;;  %5443 = vmatpush.msra.mxu2 %v8543_v44  ;;  %v8641_v40 = vld [vmem:[%s15228_s8 + $0xbd0] sm:$0xff]  ;;  %v8608_v43 = vld [vmem:[%s15228_s8 + $0xac8] sm:$0xff] }
 0x9ef   : > { %5463 = vmatpush.msra.mxu3 %v8559_v45  ;;  %5483 = vmatpush.msrb.mxu0 %v8575_v10  ;;  %v8624_v6 = vld [vmem:[%s15228_s8 + $0xb48] sm:$0xff]  ;;  %v8591_v45 = vld [vmem:[%s15228_s8 + $0xa40] sm:$0xff] }
 0x9f0   : > { %5424 = vmatpush.msra.mxu1 %v8526_v46  ;;  %5444 = vmatpush.msra.mxu2 %v8542_v13  ;;  %v8640_v44 = vld [vmem:[%s15228_s8 + $0xbc8] sm:$0xff]  ;;  %v8607_v10 = vld [vmem:[%s15228_s8 + $0xac0] sm:$0xff] }
 0x9f1   : > { %5464 = vmatpush.msra.mxu3 %v8558_v1  ;;  %5484 = vmatpush.msrb.mxu0 %v8574_v47  ;;  %v8623_v46 = vld [vmem:[%s15228_s8 + $0xb40] sm:$0xff]  ;;  %v8590_v1 = vld [vmem:[%s15228_s8 + $0xa38] sm:$0xff] }
 0x9f2   : > { %5425 = vmatpush.msra.mxu1 %v8525_v48  ;;  %5445 = vmatpush.msra.mxu2 %v8541_v49  ;;  %v8639_v13 = vld [vmem:[%s15228_s8 + $0xbc0] sm:$0xff]  ;;  %v8606_v47 = vld [vmem:[%s15228_s8 + $0xab8] sm:$0xff] }
 0x9f3   : > { %5465 = vmatpush.msra.mxu3 %v8557_v50  ;;  %5485 = vmatpush.msrb.mxu0 %v8573_v51  ;;  %v8622_v48 = vld [vmem:[%s15228_s8 + $0xb38] sm:$0xff]  ;;  %v8589_v50 = vld [vmem:[%s15228_s8 + $0xa30] sm:$0xff] }
 0x9f4   : > { %5426 = vmatpush.msra.mxu1 %v8524_v52  ;;  %5446 = vmatpush.msra.mxu2 %v8540_v53  ;;  %v8638_v49 = vld [vmem:[%s15228_s8 + $0xbb8] sm:$0xff]  ;;  %v8605_v51 = vld [vmem:[%s15228_s8 + $0xab0] sm:$0xff] }
 0x9f5   : > { %5466 = vmatpush.msra.mxu3 %v8556_v54  ;;  %5486 = vmatpush.msrb.mxu0 %v8572_v55  ;;  %v8621_v52 = vld [vmem:[%s15228_s8 + $0xb30] sm:$0xff]  ;;  %v8588_v54 = vld [vmem:[%s15228_s8 + $0xa28] sm:$0xff] }
 0x9f6   : > { %5427 = vmatpush.msra.mxu1 %v8523_v56  ;;  %5447 = vmatpush.msra.mxu2 %v8539_v57  ;;  %v8637_v53 = vld [vmem:[%s15228_s8 + $0xbb0] sm:$0xff]  ;;  %v8604_v55 = vld [vmem:[%s15228_s8 + $0xaa8] sm:$0xff] }
 0x9f7   : > { %5467 = vmatpush.msra.mxu3 %v8555_v21  ;;  %5487 = vmatpush.msrb.mxu0 %v8571_v58  ;;  %v8620_v56 = vld [vmem:[%s15228_s8 + $0xb28] sm:$0xff]  ;;  %v8587_v21 = vld [vmem:[%s15228_s8 + $0xa20] sm:$0xff] }
 0x9f8   : > { %5428 = vmatpush.msra.mxu1 %v8522_v23  ;;  %5448 = vmatpush.msra.mxu2 %v8538_v59  ;;  %v8636_v57 = vld [vmem:[%s15228_s8 + $0xba8] sm:$0xff]  ;;  %v8603_v58 = vld [vmem:[%s15228_s8 + $0xaa0] sm:$0xff] }
 0x9f9   : > { %5468 = vmatpush.msra.mxu3 %v8554_v61  ;;  %5488 = vmatpush.msrb.mxu0 %v8570_v63  ;;  %v8619_v23 = vld [vmem:[%s15228_s8 + $0xb20] sm:$0xff]  ;;  %v8586_v61 = vld [vmem:[%s15228_s8 + $0xa18] sm:$0xff] }
 0x9fa   : > { %5429 = vmatpush.msra.mxu1 %v8521_v0  ;;  %5449 = vmatpush.msra.mxu2 %v8537_v22  ;;  %v8635_v59 = vld [vmem:[%s15228_s8 + $0xba0] sm:$0xff]  ;;  %v8602_v63 = vld [vmem:[%s15228_s8 + $0xa98] sm:$0xff] }
 0x9fb   : > { %5469 = vmatpush.msra.mxu3 %v8553_v2  ;;  %5489 = vmatpush.msrb.mxu0 %v8569_v25  ;;  %v8618_v0 = vld [vmem:[%s15228_s8 + $0xb18] sm:$0xff]  ;;  %v8585_v2 = vld [vmem:[%s15228_s8 + $0xa10] sm:$0xff] }
 0x9fc   : > { %5430 = vmatpush.msra.mxu1 %v8520_v4  ;;  %5450 = vmatpush.msra.mxu2 %v8536_v42  ;;  %v8634_v22 = vld [vmem:[%s15228_s8 + $0xb98] sm:$0xff]  ;;  %v8601_v25 = vld [vmem:[%s15228_s8 + $0xa90] sm:$0xff] }
 0x9fd   : > { %5470 = vmatpush.msra.mxu3 %v8552_v62  ;;  %5490 = vmatpush.msrb.mxu0 %v8568_v60  ;;  %v8617_v4 = vld [vmem:[%s15228_s8 + $0xb10] sm:$0xff]  ;;  %v8584_v62 = vld [vmem:[%s15228_s8 + $0xa08] sm:$0xff] }
 0x9fe   : > { %5431 = vmatpush.msra.mxu1 %v8519_v27  ;;  %5451 = vmatpush.msra.mxu2 %v8535_v5  ;;  %v8633_v42 = vld [vmem:[%s15228_s8 + $0xb90] sm:$0xff]  ;;  %v8600_v60 = vld [vmem:[%s15228_s8 + $0xa88] sm:$0xff] }
 0x9ff   : > { %5471 = vmatpush.msra.mxu3 %v8551_v7  ;;  %5491 = vmatpush.msrb.mxu0 %v8567_v31  ;;  %v8616_v27 = vld [vmem:[%s15228_s8 + $0xb08] sm:$0xff]  ;;  %v8583_v7 = vld [vmem:[%s15228_s8 + $0xa00] sm:$0xff] }
 0xa00   : > { %5432 = vmatmul.f32.vlgmr.msra.gmra.mxu1 %v12764_v26  ;;  %5452 = vmatmul.f32.vlgmr.msra.gmra.mxu2 %v12764_v26  ;;  %v8632_v5 = vld [vmem:[%s15228_s8 + $0xb88] sm:$0xff]  ;;  %v8599_v31 = vld [vmem:[%s15228_s8 + $0xa80] sm:$0xff] }
 0xa01   : > { %5472 = vmatmul.f32.vlgmr.msra.gmra.mxu3 %v12764_v26  ;;  %5492 = vmatmul.f32.vlgmr.msrb.gmra.mxu0 %v12764_v26 }
 0xa02   : > { %5496 = vmatpush.msrb.mxu1 %v8598_v32  ;;  %5516 = vmatpush.msrb.mxu2 %v8614_v8  ;;  %v8615_v32 = vld [vmem:[%s15228_s8 + $0xb00] sm:$0xff] }
 0xa03   : > { %5536 = vmatpush.msrb.mxu3 %v8630_v9  ;;  %5556 = vmatpush.msra.mxu0 %v8646_v11  ;;  %v8631_v8 = vld [vmem:[%s15228_s8 + $0xb80] sm:$0xff] }
 0xa04   : > { %5497 = vmatpush.msrb.mxu1 %v8597_v12  ;;  %5517 = vmatpush.msrb.mxu2 %v8613_v14 }
 0xa05   : > { %5537 = vmatpush.msrb.mxu3 %v8629_v15  ;;  %5557 = vmatpush.msra.mxu0 %v8645_v16 }
 0xa06   : > { %5498 = vmatpush.msrb.mxu1 %v8596_v17  ;;  %5518 = vmatpush.msrb.mxu2 %v8612_v3  ;;  %v8851_v17 = vld [vmem:[%s15227_s7 + $0x10] ss:$0 sm:$0xff] }
 0xa07   : > { %5538 = vmatpush.msrb.mxu3 %v8628_v18  ;;  %5558 = vmatpush.msra.mxu0 %v8644_v20  ;;  %v8852_v18 = vld [vmem:[%s15227_s7 + $0x13] ss:$0 sm:$0xff] }
 0xa08   : > { %5499 = vmatpush.msrb.mxu1 %v8595_v24  ;;  %5519 = vmatpush.msrb.mxu2 %v8611_v28  ;;  %v8843_v24 = vld [vmem:[%s15258_s23 + $0x10] ss:$0 sm:$0xff] }
 0xa09   : > { %5539 = vmatpush.msrb.mxu3 %v8627_v29  ;;  %5559 = vmatpush.msra.mxu0 %v8643_v30  ;;  %v8844_v29 = vld [vmem:[%s15258_s23 + $0x13] ss:$0 sm:$0xff] }
 0xa0a   : > { %5500 = vmatpush.msrb.mxu1 %v8594_v33  ;;  %5520 = vmatpush.msrb.mxu2 %v8610_v34 }
 0xa0b   : > { %5540 = vmatpush.msrb.mxu3 %v8626_v35  ;;  %5560 = vmatpush.msra.mxu0 %v8642_v36  ;;  %v8853_v35 = vld [vmem:[%s15227_s7 + $0x11] ss:$0 sm:$0xff] }
 0xa0c   : > { %5501 = vmatpush.msrb.mxu1 %v8593_v37  ;;  %5521 = vmatpush.msrb.mxu2 %v8609_v38  ;;  %v8854_v37 = vld [vmem:[%s15227_s7 + $0x12] ss:$0 sm:$0xff] }
 0xa0d   : > { %5541 = vmatpush.msrb.mxu3 %v8625_v39  ;;  %5561 = vmatpush.msra.mxu0 %v8641_v40  ;;  %v8845_v39 = vld [vmem:[%s15258_s23 + $0x11] ss:$0 sm:$0xff] }
 0xa0e   : > { %5502 = vmatpush.msrb.mxu1 %v8592_v41  ;;  %5522 = vmatpush.msrb.mxu2 %v8608_v43  ;;  %v8846_v41 = vld [vmem:[%s15258_s23 + $0x12] ss:$0 sm:$0xff] }
 0xa0f   : > { %5542 = vmatpush.msrb.mxu3 %v8624_v6  ;;  %5562 = vmatpush.msra.mxu0 %v8640_v44 }
 0xa10   : > { %5503 = vmatpush.msrb.mxu1 %v8591_v45  ;;  %5523 = vmatpush.msrb.mxu2 %v8607_v10 }
 0xa11   : > { %5543 = vmatpush.msrb.mxu3 %v8623_v46  ;;  %5563 = vmatpush.msra.mxu0 %v8639_v13  ;;  %v8855_v46 = vld [vmem:[%s15227_s7 + $0x14] ss:$0 sm:$0xff]  ;;  %v8856_v13 = vld [vmem:[%s15227_s7 + $0x17] ss:$0 sm:$0xff] }
 0xa12   : > { %5504 = vmatpush.msrb.mxu1 %v8590_v1  ;;  %5524 = vmatpush.msrb.mxu2 %v8606_v47  ;;  %v8847_v1 = vld [vmem:[%s15258_s23 + $0x14] ss:$0 sm:$0xff] }
 0xa13   : > { %5544 = vmatpush.msrb.mxu3 %v8622_v48  ;;  %5564 = vmatpush.msra.mxu0 %v8638_v49  ;;  %v8848_v48 = vld [vmem:[%s15258_s23 + $0x17] ss:$0 sm:$0xff] }
 0xa14   : > { %5505 = vmatpush.msrb.mxu1 %v8589_v50  ;;  %5525 = vmatpush.msrb.mxu2 %v8605_v51 }
 0xa15   : > { %5545 = vmatpush.msrb.mxu3 %v8621_v52  ;;  %5565 = vmatpush.msra.mxu0 %v8637_v53  ;;  %v4789_v9 = vpop.f32.mrf.mxu1  ;;  %v8857_v52 = vld [vmem:[%s15227_s7 + $0x15] ss:$0 sm:$0xff] }
 0xa16   : > { %5506 = vmatpush.msrb.mxu1 %v8588_v54  ;;  %5526 = vmatpush.msrb.mxu2 %v8604_v55  ;;  %v4849_v11 = vpop.f32.mrf.mxu0  ;;  %v4790_v36 = vadd.f32 %v8843_v24, %v4789_v9  ;;  %v8858_v54 = vld [vmem:[%s15227_s7 + $0x16] ss:$0 sm:$0xff] }
 0xa17   : > { %5546 = vmatpush.msrb.mxu3 %v8620_v56  ;;  %5566 = vmatpush.msra.mxu0 %v8636_v57  ;;  %v4850_v38 = vadd.f32 %v8844_v29, %v4849_v11  ;;  %v8849_v56 = vld [vmem:[%s15258_s23 + $0x15] ss:$0 sm:$0xff] }
 0xa18   : > { %5507 = vmatpush.msrb.mxu1 %v8587_v21  ;;  %5527 = vmatpush.msrb.mxu2 %v8603_v58  ;;  %v8850_v21 = vld [vmem:[%s15258_s23 + $0x16] ss:$0 sm:$0xff] }
 0xa19   : > { %5547 = vmatpush.msrb.mxu3 %v8619_v23  ;;  %5567 = vmatpush.msra.mxu0 %v8635_v59 }
 0xa1a   : > { %5508 = vmatpush.msrb.mxu1 %v8586_v61  ;;  %5528 = vmatpush.msrb.mxu2 %v8602_v63 }
 0xa1b   : > { %5548 = vmatpush.msrb.mxu3 %v8618_v0  ;;  %5568 = vmatpush.msra.mxu0 %v8634_v22  ;;  %v4809_v12 = vpop.f32.mrf.mxu2  ;;  %v8859_v0 = vld [vmem:[%s15229_s9 + $0x10] ss:$0 sm:$0xff]  ;;  %v8860_v22 = vld [vmem:[%s15229_s9 + $0x13] ss:$0 sm:$0xff] }
 0xa1c   : > { %5509 = vmatpush.msrb.mxu1 %v8585_v2  ;;  %5529 = vmatpush.msrb.mxu2 %v8601_v25  ;;  %v4829_v14 = vpop.f32.mrf.mxu3  ;;  %v4810_v45 = vadd.f32 %v8845_v39, %v4809_v12 }
 0xa1d   : > { %5549 = vmatpush.msrb.mxu3 %v8617_v4  ;;  %5569 = vmatpush.msra.mxu0 %v8633_v42  ;;  %v4830_v10 = vadd.f32 %v8846_v41, %v4829_v14 }
 0xa1e   : > { %5510 = vmatpush.msrb.mxu1 %v8584_v62  ;;  %5530 = vmatpush.msrb.mxu2 %v8600_v60  ;;  %v8861_v62 = vld [vmem:[%s15229_s9 + $0x11] ss:$0 sm:$0xff]  ;;  %v8862_v60 = vld [vmem:[%s15229_s9 + $0x12] ss:$0 sm:$0xff] }
 0xa1f   : > { %5550 = vmatpush.msrb.mxu3 %v8616_v27  ;;  %5570 = vmatpush.msra.mxu0 %v8632_v5  ;;  %v4869_v15 = vpop.f32.mrf.mxu1 }
 0xa20   : > { %5511 = vmatpush.msrb.mxu1 %v8583_v7  ;;  %5531 = vmatpush.msrb.mxu2 %v8599_v31  ;;  %v4929_v16 = vpop.f32.mrf.mxu0  ;;  %v4870_v53 = vadd.f32 %v8847_v1, %v4869_v15  ;;  %v8865_v15 = vld [vmem:[%s15229_s9 + $0x15] ss:$0 sm:$0xff] }
 0xa21   : > { %5551 = vmatpush.msrb.mxu3 %v8615_v32  ;;  %5571 = vmatpush.msra.mxu0 %v8631_v8  ;;  %v4930_v55 = vadd.f32 %v8848_v48, %v4929_v16  ;;  %v8863_v32 = vld [vmem:[%s15229_s9 + $0x14] ss:$0 sm:$0xff]  ;;  %v8864_v8 = vld [vmem:[%s15229_s9 + $0x17] ss:$0 sm:$0xff]  ;;  %v8866_v16 = vld [vmem:[%s15229_s9 + $0x16] ss:$0 sm:$0xff] }
 0xa22   : > { %5512 = vmatmul.f32.vlgmr.msrb.gmra.mxu1 %v12764_v26  ;;  %5532 = vmatmul.f32.vlgmr.msrb.gmra.mxu2 %v12764_v26 }
 0xa23   : > { %5552 = vmatmul.f32.vlgmr.msrb.gmra.mxu3 %v12764_v26  ;;  %5572 = vmatmul.f32.vlgmr.msra.gmra.mxu0 %v12764_v26 }
 0xa25   : > { %v4889_v3 = vpop.f32.mrf.mxu2 }
 0xa26   : > { %v4909_v20 = vpop.f32.mrf.mxu3  ;;  %v4890_v61 = vadd.f32 %v8849_v56, %v4889_v3 }
 0xa27   : > { %v4910_v63 = vadd.f32 %v8850_v21, %v4909_v20 }
 0xa39   : > { %v5111_v28 = vpop.f32.mrf.mxu1 }
 0xa3a   : > { %v5112_v30 = vadd.f32 %v8851_v17, %v5111_v28  ;;  %v5171_v33 = vpop.f32.mrf.mxu0 }
 0xa3b   : > { %v5172_v34 = vadd.f32 %v8852_v18, %v5171_v33 }
 0xa3c   : > { %8655 = vmatpush.xpose.msk.msra.mxu1 %vm1692_vm2, %v5112_v30 }
 0xa3d   : > { %8661 = vmatpush.xpose.msk.msrb.mxu0 %vm1692_vm2, %v5172_v34 }
 0xa3f   : > { %v5131_v40 = vpop.f32.mrf.mxu2  ;;  %8656 = vmatmul.msk.f32.vlgmr.msra.gmra.mxu1 %vm1692_vm2, %v4790_v36 }
 0xa40   : > { %v5132_v43 = vadd.f32 %v8853_v35, %v5131_v40  ;;  %v5151_v6 = vpop.f32.mrf.mxu3  ;;  %8662 = vmatmul.msk.f32.vlgmr.msrb.gmra.mxu0 %vm1692_vm2, %v4850_v38 }
 0xa41   : > { %v5152_v44 = vadd.f32 %v8854_v37, %v5151_v6 }
 0xa42   : > { %8657 = vmatpush.xpose.msk.msra.mxu2 %vm1692_vm2, %v5132_v43 }
 0xa43   : > { %8659 = vmatpush.xpose.msk.msra.mxu3 %vm1692_vm2, %v5152_v44 }
 0xa45   : > { %8658 = vmatmul.msk.f32.vlgmr.msra.gmra.mxu2 %vm1692_vm2, %v4810_v45 }
 0xa46   : > { %8660 = vmatmul.msk.f32.vlgmr.msra.gmra.mxu3 %vm1692_vm2, %v4830_v10 }
 0xa5b   : > { %v5191_v47 = vpop.f32.mrf.mxu1 }
 0xa5c   : > { %v5192_v49 = vadd.f32 %v8855_v46, %v5191_v47  ;;  %v5251_v50 = vpop.f32.mrf.mxu0 }
 0xa5d   : > { %v5252_v51 = vadd.f32 %v8856_v13, %v5251_v50 }
 0xa5e   : > { %8663 = vmatpush.xpose.msk.msrb.mxu1 %vm1692_vm2, %v5192_v49 }
 0xa5f   : > { %8669 = vmatpush.xpose.msk.msra.mxu0 %vm1692_vm2, %v5252_v51 }
 0xa61   : > { %v5211_v57 = vpop.f32.mrf.mxu2  ;;  %8664 = vmatmul.msk.f32.vlgmr.msrb.gmra.mxu1 %vm1692_vm2, %v4870_v53 }
 0xa62   : > { %v5212_v58 = vadd.f32 %v8857_v52, %v5211_v57  ;;  %v5231_v23 = vpop.f32.mrf.mxu3  ;;  %8670 = vmatmul.msk.f32.vlgmr.msra.gmra.mxu0 %vm1692_vm2, %v4930_v55 }
 0xa63   : > { %v5232_v59 = vadd.f32 %v8858_v54, %v5231_v23 }
 0xa64   : > { %8665 = vmatpush.xpose.msk.msrb.mxu2 %vm1692_vm2, %v5212_v58 }
 0xa65   : > { %8667 = vmatpush.xpose.msk.msrb.mxu3 %vm1692_vm2, %v5232_v59 }
 0xa67   : > { %8666 = vmatmul.msk.f32.vlgmr.msrb.gmra.mxu2 %vm1692_vm2, %v4890_v61 }
 0xa68   : > { %8668 = vmatmul.msk.f32.vlgmr.msrb.gmra.mxu3 %vm1692_vm2, %v4910_v63 }
 0xa7d   : > { %v5433_v2 = vpop.f32.mrf.mxu1 }
 0xa7e   : > { %v5434_v25 = vadd.f32 %v8859_v0, %v5433_v2  ;;  %v5493_v4 = vpop.f32.mrf.mxu0 }
 0xa7f   : > { %v5494_v42 = vadd.f32 %v8860_v22, %v5493_v4 }
 0xa80   : > { %6010 = vmatpush.msra.mxu1 %v5434_v25 }
 0xa81   : > { %6079 = vmatpush.msrb.mxu0 %v5494_v42 }
 0xa83   : > { %v5453_v27 = vpop.f32.mrf.mxu2 }
 0xa84   : > { %v5454_v5 = vadd.f32 %v8861_v62, %v5453_v27  ;;  %v5473_v7 = vpop.f32.mrf.mxu3 }
 0xa85   : > { %v5474_v31 = vadd.f32 %v8862_v60, %v5473_v7 }
 0xa86   : > { %6033 = vmatpush.msra.mxu2 %v5454_v5 }
 0xa87   : > { %6056 = vmatpush.msra.mxu3 %v5474_v31 }
 0xa9f   : > { %v5513_v9 = vpop.f32.mrf.mxu1 }
 0xaa0   : > { %v5514_v11 = vadd.f32 %v8863_v32, %v5513_v9  ;;  %v5573_v12 = vpop.f32.mrf.mxu0 }
 0xaa1   : > { %v5574_v14 = vadd.f32 %v8864_v8, %v5573_v12 }
 0xaa2   : > { %6102 = vmatpush.msrb.mxu1 %v5514_v11 }
 0xaa3   : > { %6171 = vmatpush.msra.mxu0 %v5574_v14 }
 0xaa5   : > { %v5533_v17 = vpop.f32.mrf.mxu2 }
 0xaa6   : > { %v5534_v3 = vadd.f32 %v8865_v15, %v5533_v17  ;;  %v5553_v18 = vpop.f32.mrf.mxu3 }
 0xaa7   : > { %v5554_v20 = vadd.f32 %v8866_v16, %v5553_v18 }
 0xaa8   : > { %6125 = vmatpush.msrb.mxu2 %v5534_v3 }
 0xaa9   : > { %6148 = vmatpush.msrb.mxu3 %v5554_v20 }
 0xabc   : > { %v5599_v30 = vpop.f32.mrf.mxu1 }
 0xabd   : > { %v5784_v37 = vmul.f32 0.25, %v5599_v30  ;;  %v5677_v45 = vpop.f32.mrf.mxu0 }
 0xabe   : > { %v5787_v51 = vmul.f32 0.25, %v5677_v45 }
 0xabf   : > { %v5792_v39 = vsel %vm698_vm3, -1e+09, %v5784_v37 }
 0xac0   : > { %v5800_v40 = vsel %vm1919_vm4, %v5792_v39, -inf  ;;  %v5795_v54 = vsel %vm698_vm3, -1e+09, %v5787_v51 }
 0xac1   : > { %v5809_v56 = vsel %vm1919_vm4, %v5795_v54, -inf }
 0xac8   : > { %v5625_v24 = vpop.f32.mrf.mxu2 }
 0xac9   : > { %v5785_v28 = vmul.f32 0.25, %v5625_v24  ;;  %v5651_v29 = vpop.f32.mrf.mxu3 }
 0xaca   : > { %v5786_v33 = vmul.f32 0.25, %v5651_v29 }
 0xacb   : > { %v5793_v34 = vsel %vm698_vm3, -1e+09, %v5785_v28 }
 0xacc   : > { %v5794_v35 = vsel %vm698_vm3, -1e+09, %v5786_v33  ;;  %v5803_v36 = vsel %vm1919_vm4, %v5793_v34, -inf }
 0xacd   : > { %v5806_v38 = vsel %vm1919_vm4, %v5794_v35, -inf  ;;  %5804 = vmax.xlane.f32.xlu2 %v5803_v36 }
 0xace   : > { %5807 = vmax.xlane.f32.xlu0 %v5806_v38 }
 0xad5   : > { %5801 = vmax.xlane.f32.xlu2 %v5800_v40 }
 0xade   : > { %v5703_v41 = vpop.f32.mrf.mxu1 }
 0xadf   : > { %v5788_v43 = vmul.f32 0.25, %v5703_v41  ;;  %v5781_v47 = vpop.f32.mrf.mxu0 }
 0xae0   : > { %v5791_v53 = vmul.f32 0.25, %v5781_v47 }
 0xae1   : > { %v5796_v6 = vsel %vm698_vm3, -1e+09, %v5788_v43 }
 0xae2   : > { %v5812_v44 = vsel %vm1919_vm4, %v5796_v6, -inf  ;;  %v5799_v55 = vsel %vm698_vm3, -1e+09, %v5791_v53 }
 0xae3   : > { %5813 = vmax.xlane.f32.xlu2 %v5812_v44  ;;  %v5821_v57 = vsel %vm1919_vm4, %v5799_v55, -inf }
 0xaea   : > { %v5729_v10 = vpop.f32.mrf.mxu2 }
 0xaeb   : > { %v5789_v46 = vmul.f32 0.25, %v5729_v10  ;;  %v5755_v13 = vpop.f32.mrf.mxu3 }
 0xaec   : > { %v5790_v1 = vmul.f32 0.25, %v5755_v13 }
 0xaed   : > { %v5797_v48 = vsel %vm698_vm3, -1e+09, %v5789_v46 }
 0xaee   : > { %v5798_v49 = vsel %vm698_vm3, -1e+09, %v5790_v1  ;;  %v5815_v50 = vsel %vm1919_vm4, %v5797_v48, -inf }
 0xaef   : > { %v5818_v52 = vsel %vm1919_vm4, %v5798_v49, -inf  ;;  %5816 = vmax.xlane.f32.xlu1 %v5815_v50 }
 0xaf0   : > { %5819 = vmax.xlane.f32.xlu0 %v5818_v52 }
 0xaf7   : > { %5810 = vmax.xlane.f32.xlu1 %v5809_v56 }
 0xaf8   : > { %5822 = vmax.xlane.f32.xlu0 %v5821_v57 }
 0xb40   : > { %v5805_v21 = vpop.xlane.xlu2 %5804 }
 0xb41   : > { %v5808_v58 = vpop.xlane.xlu0 %5807  ;;  %v5825_v23 = vsub.f32 %v5793_v34, %v5805_v21 }
 0xb42   : > { %v5826_v59 = vsub.f32 %v5794_v35, %v5808_v58 }
 0xb43   : > { %v5834_v61 = vmul.f32 1.442695, %v5825_v23 }
 0xb44   : > { %v5836_v63 = vmul.f32 1.442695, %v5826_v59 }
 0xb45   : > { %8933 = vpow2.f32 %v5834_v61 }
 0xb46   : > { %8935 = vpow2.f32 %v5836_v63 }
 0xb48   : > { %v5802_v0 = vpop.xlane.xlu2 %5801 }
 0xb49   : > { %v5824_v22 = vsub.f32 %v5792_v39, %v5802_v0 }
 0xb4b   : > { %v13670_v2 = vpop.eup %8933  ;;  %v5832_v19 = vmul.f32 1.442695, %v5824_v22 }
 0xb4c   : > { %v13672_v25 = vpop.eup %8935  ;;  %v5851_v4 = vsel %vm1919_vm4, %v13670_v2, 0.0 }
 0xb4d   : > { %8937 = vpow2.f32 %v5832_v19  ;;  %5852 = vadd.xlane.f32.xlu1 %v5851_v4  ;;  %v5854_v42 = vsel %vm1919_vm4, %v13672_v25, 0.0 }
 0xb4e   : > { %5855 = vadd.xlane.f32.xlu2 %v5854_v42 }
 0xb53   : > { %v13678_v62 = vpop.eup %8937 }
 0xb54   : > { %v5848_v60 = vsel %vm1919_vm4, %v13678_v62, 0.0 }
 0xb55   : > { %5849 = vadd.xlane.f32.xlu1 %v5848_v60 }
 0xb56   : > { %v5814_v27 = vpop.xlane.xlu2 %5813 }
 0xb57   : > { %v5828_v5 = vsub.f32 %v5796_v6, %v5814_v27 }
 0xb59   : > { %v5840_v7 = vmul.f32 1.442695, %v5828_v5 }
 0xb5b   : > { %8939 = vpow2.f32 %v5840_v7 }
 0xb61   : > { %v13682_v31 = vpop.eup %8939 }
 0xb62   : > { %v5817_v32 = vpop.xlane.xlu1 %5816  ;;  %v5860_v8 = vsel %vm1919_vm4, %v13682_v31, 0.0 }
 0xb63   : > { %v5820_v9 = vpop.xlane.xlu0 %5819  ;;  %v5829_v11 = vsub.f32 %v5797_v48, %v5817_v32  ;;  %5861 = vadd.xlane.f32.xlu1 %v5860_v8 }
 0xb64   : > { %v5830_v12 = vsub.f32 %v5798_v49, %v5820_v9 }
 0xb65   : > { %v5842_v14 = vmul.f32 1.442695, %v5829_v11 }
 0xb66   : > { %v5844_v15 = vmul.f32 1.442695, %v5830_v12 }
 0xb67   : > { %8941 = vpow2.f32 %v5842_v14 }
 0xb68   : > { %8943 = vpow2.f32 %v5844_v15 }
 0xb6a   : > { %v5811_v16 = vpop.xlane.xlu1 %5810 }
 0xb6b   : > { %v5823_v17 = vpop.xlane.xlu0 %5822  ;;  %v5827_v3 = vsub.f32 %v5795_v54, %v5811_v16 }
 0xb6c   : > { %v5831_v18 = vsub.f32 %v5799_v55, %v5823_v17  ;;  %v8684_v17 = vld [vmem:[%s15230_s10 + $0x128] sm:$0xff] }
 0xb6d   : > { %v13686_v20 = vpop.eup %8941  ;;  %v5838_v24 = vmul.f32 1.442695, %v5827_v3 }
 0xb6e   : > { %v13688_v28 = vpop.eup %8943  ;;  %v5846_v29 = vmul.f32 1.442695, %v5831_v18  ;;  %v5863_v30 = vsel %vm1919_vm4, %v13686_v20, 0.0 }
 0xb6f   : > { %8945 = vpow2.f32 %v5838_v24  ;;  %5864 = vadd.xlane.f32.xlu0 %v5863_v30  ;;  %v5866_v33 = vsel %vm1919_vm4, %v13688_v28, 0.0 }
 0xb70   : > { %8947 = vpow2.f32 %v5846_v29  ;;  %5867 = vadd.xlane.f32.xlu2 %v5866_v33 }
 0xb75   : > { %v13694_v34 = vpop.eup %8945 }
 0xb76   : > { %v13696_v35 = vpop.eup %8947  ;;  %v5857_v36 = vsel %vm1919_vm4, %v13694_v34, 0.0 }
 0xb77   : > { %5858 = vadd.xlane.f32.xlu0 %v5857_v36  ;;  %v5869_v37 = vsel %vm1919_vm4, %v13696_v35, 0.0 }
 0xb78   : > { %5870 = vadd.xlane.f32.xlu2 %v5869_v37 }
 0xbc0   : > { %v5853_v38 = vpop.xlane.xlu1 %5852 }
 0xbc1   : > { %8949 = vrcp.f32 %v5853_v38  ;;  %v5856_v39 = vpop.xlane.xlu2 %5855  ;;  %v5897_v10 = vand.u32 2147483648, %v5853_v38  ;;  %v5895_v1 = vand.u32 2147483647, %v5853_v38  ;;  %vm5891_vm5 = vweird.f32 %v5853_v38 }
 0xbc2   : > { %8951 = vrcp.f32 %v5856_v39  ;;  %v5911_v47 = vand.u32 2147483648, %v5856_v39  ;;  %v5909_v49 = vand.u32 2147483647, %v5856_v39  ;;  %vm5905_vm7 = vweird.f32 %v5856_v39 }
 0xbc3   : > { %v5898_v52 = vor.u32 1.1754944e-38, %v5897_v10  ;;  %vm5896_vm8 = vcmp.eq.f32.partialorder %v5895_v1, 8.507059e+37 }
 0xbc4   : > { %v5912_v55 = vor.u32 1.1754944e-38, %v5911_v47  ;;  %vm5910_vm10 = vcmp.eq.f32.partialorder %v5909_v49, 8.507059e+37 }
 0xbc7   : > { %v8950_v40 = vpop.eup %8949 }
 0xbc8   : > { %v8952_v41 = vpop.eup %8951  ;;  %v5887_v43 = vmul.f32 %v8950_v40, %v5853_v38  ;;  %v5850_v6 = vpop.xlane.xlu1 %5849  ;;  %vm5892_vm3 = vweird.f32 %v8950_v40 }
 0xbc9   : > { %v5901_v44 = vmul.f32 %v8952_v41, %v5856_v39  ;;  %8953 = vrcp.f32 %v5850_v6  ;;  %vm5906_vm1 = vweird.f32 %v8952_v41  ;;  %vm5893_vm6 = vmor %vm5891_vm5, %vm5892_vm3  ;;  %v5883_v63 = vand.u32 2147483648, %v5850_v6 }
 0xbca   : > { %v5888_v45 = vsub.f32 1.0, %v5887_v43  ;;  %vm5907_vm9 = vmor %vm5905_vm7, %vm5906_vm1  ;;  %v5881_v22 = vand.u32 2147483647, %v5850_v6  ;;  %vm5877_vm12 = vweird.f32 %v5850_v6 }
 0xbcb   : > { %v5902_v46 = vsub.f32 1.0, %v5901_v44  ;;  %v5884_v42 = vor.u32 1.1754944e-38, %v5883_v63 }
 0xbcc   : > { %v5889_v13 = vmul.f32 %v8950_v40, %v5888_v45  ;;  %vm5882_vm14 = vcmp.eq.f32.partialorder %v5881_v22, 8.507059e+37 }
 0xbcd   : > { %v5903_v48 = vmul.f32 %v8952_v41, %v5902_v46 }
 0xbce   : > { %v5890_v50 = vadd.f32 %v8950_v40, %v5889_v13 }
 0xbcf   : > { %v8954_v51 = vpop.eup %8953  ;;  %v5904_v53 = vadd.f32 %v8952_v41, %v5903_v48 }
 0xbd0   : > { %v5894_v54 = vsel %vm5893_vm6, %v8950_v40, %v5890_v50  ;;  %v5873_v56 = vmul.f32 %v8954_v51, %v5850_v6  ;;  %vm5878_vm11 = vweird.f32 %v8954_v51 }
 0xbd1   : > { %v5899_v57 = vsel %vm5896_vm8, %v5898_v52, %v5894_v54  ;;  %v5908_v21 = vsel %vm5907_vm9, %v8952_v41, %v5904_v53  ;;  %vm5879_vm13 = vmor %vm5877_vm12, %vm5878_vm11 }
 0xbd2   : > { %v5985_v58 = vmul.f32 %v13670_v2, %v5899_v57  ;;  %v5913_v23 = vsel %vm5910_vm10, %v5912_v55, %v5908_v21  ;;  %v5874_v59 = vsub.f32 1.0, %v5873_v56 }
 0xbd3   : > { %v5986_v61 = vmul.f32 %v13672_v25, %v5913_v23 }
 0xbd4   : > { %v5875_v0 = vmul.f32 %v8954_v51, %v5874_v59  ;;  %8672 = vmatmul.msk.f32.vlgmr.msra.gmra.mxu2 %vm1919_vm4, %v5985_v58 }
 0xbd5   : > { %8673 = vmatmul.msk.f32.vlgmr.msra.gmra.mxu3 %vm1919_vm4, %v5986_v61 }
 0xbd6   : > { %v5876_v19 = vadd.f32 %v8954_v51, %v5875_v0  ;;  %v5862_v4 = vpop.xlane.xlu1 %5861  ;;  %6256 = vmatpush.msra.mxu3 %v8684_v17  ;;  %v8685_v17 = vld [vmem:[%s15230_s10 + $0x130] sm:$0xff] }
 0xbd7   : > { %8955 = vrcp.f32 %v5862_v4  ;;  %v5939_v32 = vand.u32 2147483648, %v5862_v4  ;;  %v5937_v9 = vand.u32 2147483647, %v5862_v4  ;;  %vm5933_vm0 = vweird.f32 %v5862_v4 }
 0xbd8   : > { %v5880_v60 = vsel %vm5879_vm13, %v8954_v51, %v5876_v19 }
 0xbd9   : > { %v5885_v2 = vsel %vm5882_vm14, %v5884_v42, %v5880_v60  ;;  %v5940_v15 = vor.u32 1.1754944e-38, %v5939_v32  ;;  %vm5938_vm1 = vcmp.eq.f32.partialorder %v5937_v9, 8.507059e+37  ;;  %v8687_v32 = vld [vmem:[%s15230_s10 + $0x140] sm:$0xff]  ;;  %v8692_v9 = vld [vmem:[%s15230_s10 + $0x168] sm:$0xff] }
 0xbda   : > { %v5984_v27 = vmul.f32 %v13678_v62, %v5885_v2  ;;  %v8682_v62 = vld [vmem:[%s15230_s10 + $0x118] sm:$0xff] }
 0xbdb   : > { %6233 = vmatpush.msra.mxu2 %v8682_v62  ;;  %v8691_v62 = vld [vmem:[%s15230_s10 + $0x160] sm:$0xff] }
 0xbdc   : > { %8671 = vmatmul.msk.f32.vlgmr.msra.gmra.mxu1 %vm1919_vm4, %v5984_v27 }
 0xbdd   : > { %v8956_v25 = vpop.eup %8955 }
 0xbde   : > { %v5929_v5 = vmul.f32 %v8956_v25, %v5862_v4  ;;  %vm5934_vm15 = vweird.f32 %v8956_v25 }
 0xbdf   : > { %vm5935_vm3 = vmor %vm5933_vm0, %vm5934_vm15 }
 0xbe0   : > { %v5930_v7 = vsub.f32 1.0, %v5929_v5  ;;  %v8683_v5 = vld [vmem:[%s15230_s10 + $0x120] sm:$0xff] }
 0xbe1   : > { %6257 = vmatpush.msra.mxu3 %v8683_v5  ;;  %v8764_v5 = vld [vmem:[%s15234_s14 + $0x2d8] sm:$0xff] }
 0xbe2   : > { %v5931_v8 = vmul.f32 %v8956_v25, %v5930_v7  ;;  %v5865_v11 = vpop.xlane.xlu0 %5864  ;;  %v8688_v7 = vld [vmem:[%s15230_s10 + $0x148] sm:$0xff] }
 0xbe3   : > { %8957 = vrcp.f32 %v5865_v11  ;;  %v5868_v12 = vpop.xlane.xlu2 %5867  ;;  %v5953_v39 = vand.u32 2147483648, %v5865_v11  ;;  %v5951_v43 = vand.u32 2147483647, %v5865_v11  ;;  %vm5947_vm7 = vweird.f32 %v5865_v11 }
 0xbe4   : > { %v5932_v14 = vadd.f32 %v8956_v25, %v5931_v8  ;;  %8959 = vrcp.f32 %v5868_v12  ;;  %v5967_v6 = vand.u32 2147483648, %v5868_v12  ;;  %vm5961_vm9 = vweird.f32 %v5868_v12  ;;  %v8690_v8 = vld [vmem:[%s15230_s10 + $0x158] sm:$0xff] }
 0xbe5   : > { %v5954_v46 = vor.u32 1.1754944e-38, %v5953_v39  ;;  %vm5952_vm10 = vcmp.eq.f32.partialorder %v5951_v43, 8.507059e+37  ;;  %v8732_v39 = vld [vmem:[%s15232_s12 + $0x2e0] sm:$0xff]  ;;  %v8731_v43 = vld [vmem:[%s15232_s12 + $0x2d8] sm:$0xff] }
 0xbe6   : > { %v5936_v16 = vsel %vm5935_vm3, %v8956_v25, %v5932_v14  ;;  %v5968_v48 = vor.u32 1.1754944e-38, %v5967_v6  ;;  %v8680_v25 = vld [vmem:[%s15230_s10 + $0x108] sm:$0xff]  ;;  %v8728_v6 = vld [vmem:[%s15232_s12 + $0x2c0] sm:$0xff] }
 0xbe7   : > { %v5941_v3 = vsel %vm5938_vm1, %v5940_v15, %v5936_v16  ;;  %6210 = vmatpush.msra.mxu1 %v8680_v25  ;;  %v8686_v15 = vld [vmem:[%s15230_s10 + $0x138] sm:$0xff]  ;;  %v8689_v16 = vld [vmem:[%s15230_s10 + $0x150] sm:$0xff] }
 0xbe8   : > { %v5988_v18 = vmul.f32 %v13682_v31, %v5941_v3  ;;  %v5965_v31 = vand.u32 2147483647, %v5868_v12  ;;  %v8694_v3 = vld [vmem:[%s15230_s10 + $0x178] sm:$0xff] }
 0xbe9   : > { %v8958_v24 = vpop.eup %8957 }
 0xbea   : > { %v8960_v29 = vpop.eup %8959  ;;  %v5943_v30 = vmul.f32 %v8958_v24, %v5865_v11  ;;  %v5859_v33 = vpop.xlane.xlu0 %5858  ;;  %8675 = vmatmul.msk.f32.vlgmr.msrb.gmra.mxu1 %vm1919_vm4, %v5988_v18  ;;  %vm5948_vm5 = vweird.f32 %v8958_v24  ;;  %vm5966_vm12 = vcmp.eq.f32.partialorder %v5965_v31, 8.507059e+37  ;;  %v8693_v18 = vld [vmem:[%s15230_s10 + $0x170] sm:$0xff] }
 0xbeb   : > { %v5957_v36 = vmul.f32 %v8960_v29, %v5868_v12  ;;  %8961 = vrcp.f32 %v5859_v33  ;;  %v5871_v37 = vpop.xlane.xlu2 %5870  ;;  %vm5962_vm6 = vweird.f32 %v8960_v29  ;;  %vm5949_vm8 = vmor %vm5947_vm7, %vm5948_vm5  ;;  %v5925_v57 = vand.u32 2147483648, %v5859_v33  ;;  %v8726_v31 = vld [vmem:[%s15232_s12 + $0x2b0] sm:$0xff] }
 0xbec   : > { %v5944_v38 = vsub.f32 1.0, %v5943_v30  ;;  %8963 = vrcp.f32 %v5871_v37  ;;  %vm5963_vm11 = vmor %vm5961_vm9, %vm5962_vm6  ;;  %v5923_v23 = vand.u32 2147483647, %v5859_v33  ;;  %vm5919_vm14 = vweird.f32 %v5859_v33 }
 0xbed   : > { %v5958_v40 = vsub.f32 1.0, %v5957_v36  ;;  %v5926_v63 = vor.u32 1.1754944e-38, %v5925_v57  ;;  %vm5975_vm1 = vweird.f32 %v5871_v37  ;;  %v5979_v4 = vand.u32 2147483647, %v5871_v37  ;;  %v8710_v57 = vld [vmem:[%s15232_s12 + $0x230] sm:$0xff] }
 0xbee   : > { %v5945_v41 = vmul.f32 %v8958_v24, %v5944_v38  ;;  %vm5924_vm0 = vcmp.eq.f32.partialorder %v5923_v23, 8.507059e+37  ;;  %v8735_v38 = vld [vmem:[%s15232_s12 + $0x2f8] sm:$0xff]  ;;  %v8709_v23 = vld [vmem:[%s15232_s12 + $0x228] sm:$0xff]  ;;  %vm7055_vm7 = vcmask 949248  }
 0xbef   : > { %v5959_v44 = vmul.f32 %v8960_v29, %v5958_v40  ;;  %vm5980_vm6 = vcmp.eq.f32.partialorder %v5979_v4, 8.507059e+37  ;;  %v8733_v40 = vld [vmem:[%s15232_s12 + $0x2e8] sm:$0xff]  ;;  %v8767_v4 = vld [vmem:[%s15234_s14 + $0x2f0] sm:$0xff] }
 0xbf0   : > { %v5946_v45 = vadd.f32 %v8958_v24, %v5945_v41  ;;  %v8730_v41 = vld [vmem:[%s15232_s12 + $0x2d0] sm:$0xff] }
 0xbf1   : > { %v8962_v10 = vpop.eup %8961  ;;  %v5960_v13 = vadd.f32 %v8960_v29, %v5959_v44  ;;  %v8729_v44 = vld [vmem:[%s15232_s12 + $0x2c8] sm:$0xff] }
 0xbf2   : > { %v8964_v1 = vpop.eup %8963  ;;  %v5950_v47 = vsel %vm5949_vm8, %v8958_v24, %v5946_v45  ;;  %v5915_v49 = vmul.f32 %v8962_v10, %v5859_v33  ;;  %vm5920_vm13 = vweird.f32 %v8962_v10  ;;  %v8727_v45 = vld [vmem:[%s15232_s12 + $0x2b8] sm:$0xff] }
 0xbf3   : > { %v5955_v50 = vsel %vm5952_vm10, %v5954_v46, %v5950_v47  ;;  %v5964_v51 = vsel %vm5963_vm11, %v8960_v29, %v5960_v13  ;;  %v5971_v52 = vmul.f32 %v8964_v1, %v5871_v37  ;;  %vm5921_vm15 = vmor %vm5919_vm14, %vm5920_vm13  ;;  %vm5976_vm3 = vweird.f32 %v8964_v1  ;;  %v8725_v46 = vld [vmem:[%s15232_s12 + $0x2a8] sm:$0xff]  ;;  %v8722_v13 = vld [vmem:[%s15232_s12 + $0x290] sm:$0xff] }
 0xbf4   : > { %v5989_v53 = vmul.f32 %v13686_v20, %v5955_v50  ;;  %v5969_v54 = vsel %vm5966_vm12, %v5968_v48, %v5964_v51  ;;  %v5916_v55 = vsub.f32 1.0, %v5915_v49  ;;  %vm5977_vm5 = vmor %vm5975_vm1, %vm5976_vm3  ;;  %v8720_v47 = vld [vmem:[%s15232_s12 + $0x280] sm:$0xff]  ;;  %v8721_v48 = vld [vmem:[%s15232_s12 + $0x288] sm:$0xff] }
 0xbf5   : > { %v5990_v56 = vmul.f32 %v13688_v28, %v5969_v54  ;;  %v5972_v21 = vsub.f32 1.0, %v5971_v52  ;;  %v5981_v28 = vand.u32 2147483648, %v5871_v37  ;;  %v8734_v37 = vld [vmem:[%s15232_s12 + $0x2f0] sm:$0xff]  ;;  %v8719_v50 = vld [vmem:[%s15232_s12 + $0x278] sm:$0xff]  ;;  %v8716_v51 = vld [vmem:[%s15232_s12 + $0x260] sm:$0xff] }
 0xbf6   : > { %v5917_v58 = vmul.f32 %v8962_v10, %v5916_v55  ;;  %8676 = vmatmul.msk.f32.vlgmr.msrb.gmra.mxu2 %vm1919_vm4, %v5989_v53  ;;  %v8718_v49 = vld [vmem:[%s15232_s12 + $0x270] sm:$0xff]  ;;  %v8717_v52 = vld [vmem:[%s15232_s12 + $0x268] sm:$0xff]  ;;  %v8715_v54 = vld [vmem:[%s15232_s12 + $0x258] sm:$0xff] }
 0xbf7   : > { %v5973_v59 = vmul.f32 %v8964_v1, %v5972_v21  ;;  %8677 = vmatmul.msk.f32.vlgmr.msrb.gmra.mxu3 %vm1919_vm4, %v5990_v56  ;;  %v5982_v60 = vor.u32 1.1754944e-38, %v5981_v28  ;;  %v8714_v53 = vld [vmem:[%s15232_s12 + $0x250] sm:$0xff]  ;;  %v8712_v55 = vld [vmem:[%s15232_s12 + $0x240] sm:$0xff]  ;;  %v8713_v56 = vld [vmem:[%s15232_s12 + $0x248] sm:$0xff] }
 0xbf8   : > { %v5918_v61 = vadd.f32 %v8962_v10, %v5917_v58  ;;  %6348 = vmatpush.msrb.mxu3 %v8692_v9  ;;  %v8711_v21 = vld [vmem:[%s15232_s12 + $0x238] sm:$0xff]  ;;  %v8708_v58 = vld [vmem:[%s15232_s12 + $0x220] sm:$0xff] }
 0xbf9   : > { %v5974_v20 = vadd.f32 %v8964_v1, %v5973_v59  ;;  %v8706_v59 = vld [vmem:[%s15232_s12 + $0x210] sm:$0xff]  ;;  %v8768_v28 = vld [vmem:[%s15234_s14 + $0x2f8] sm:$0xff]  ;;  %v8745_v9 = vld [vmem:[%s15234_s14 + $0x240] sm:$0xff] }
 0xbfa   : > { %v5922_v0 = vsel %vm5921_vm15, %v8962_v10, %v5918_v61  ;;  %6349 = vmatpush.msrb.mxu3 %v8691_v62  ;;  %v8724_v10 = vld [vmem:[%s15232_s12 + $0x2a0] sm:$0xff]  ;;  %v8707_v61 = vld [vmem:[%s15232_s12 + $0x218] sm:$0xff] }
 0xbfb   : > { %v5927_v22 = vsel %vm5924_vm0, %v5926_v63, %v5922_v0  ;;  %v5978_v42 = vsel %vm5977_vm5, %v8964_v1, %v5974_v20  ;;  %v8723_v1 = vld [vmem:[%s15232_s12 + $0x298] sm:$0xff]  ;;  %v8751_v0 = vld [vmem:[%s15234_s14 + $0x270] sm:$0xff]  ;;  %v8704_v20 = vld [vmem:[%s15232_s12 + $0x200] sm:$0xff] }
 0xbfc   : > { %v5987_v19 = vmul.f32 %v13694_v34, %v5927_v22  ;;  %v5983_v2 = vsel %vm5980_vm6, %v5982_v60, %v5978_v42  ;;  %v8681_v34 = vld [vmem:[%s15230_s10 + $0x110] sm:$0xff]  ;;  %v8752_v63 = vld [vmem:[%s15234_s14 + $0x278] sm:$0xff]  ;;  %v8705_v22 = vld [vmem:[%s15232_s12 + $0x208] sm:$0xff] }
 0xbfd   : > { %v5991_v27 = vmul.f32 %v13696_v35, %v5983_v2  ;;  %6234 = vmatpush.msra.mxu2 %v8681_v34  ;;  %v8679_v35 = vld [vmem:[%s15230_s10 + $0x100] sm:$0xff]  ;;  %v8766_v60 = vld [vmem:[%s15234_s14 + $0x2e8] sm:$0xff]  ;;  %v8748_v2 = vld [vmem:[%s15234_s14 + $0x258] sm:$0xff] }
 0xbfe   : > { %8674 = vmatmul.msk.f32.vlgmr.msrb.gmra.mxu0 %vm1919_vm4, %v5987_v19  ;;  %6211 = vmatpush.msra.mxu1 %v8679_v35  ;;  %v8750_v19 = vld [vmem:[%s15234_s14 + $0x268] sm:$0xff]  ;;  %v8749_v42 = vld [vmem:[%s15234_s14 + $0x260] sm:$0xff]  ;;  %v8747_v34 = vld [vmem:[%s15234_s14 + $0x250] sm:$0xff] }
 0xbff   : > { %6325 = vmatpush.msrb.mxu2 %v8690_v8  ;;  %6279 = vmatpush.msrb.mxu0 %v8686_v15  ;;  %v8761_v15 = vld [vmem:[%s15234_s14 + $0x2c0] sm:$0xff] }
 0xc00   : > { %6302 = vmatpush.msrb.mxu1 %v8688_v7  ;;  %v8746_v7 = vld [vmem:[%s15234_s14 + $0x248] sm:$0xff] }
 0xc01   : > { %6326 = vmatpush.msrb.mxu2 %v8689_v16  ;;  %6280 = vmatpush.msrb.mxu0 %v8685_v17  ;;  %v8743_v17 = vld [vmem:[%s15234_s14 + $0x230] sm:$0xff] }
 0xc02   : > { %6303 = vmatpush.msrb.mxu1 %v8687_v32  ;;  %v8763_v32 = vld [vmem:[%s15234_s14 + $0x2d0] sm:$0xff] }
 0xc06   : > { %8678 = vmatmul.msk.f32.vlgmr.msra.gmra.mxu0 %vm1919_vm4, %v5991_v27  ;;  %v8765_v27 = vld [vmem:[%s15234_s14 + $0x2e0] sm:$0xff] }
 0xc07   : > { %6371 = vmatpush.msra.mxu0 %v8694_v3  ;;  %v8760_v3 = vld [vmem:[%s15234_s14 + $0x2b8] sm:$0xff] }
 0xc09   : > { %6372 = vmatpush.msra.mxu0 %v8693_v18 }
 0xc57   : > { %v6035_v11 = vpop.f32.mrf.mxu2 }
 0xc58   : > { %v6058_v12 = vpop.f32.mrf.mxu3  ;;  %8696 = vmatmul.msk.f32.vlgmr.msra.gmra.mxu2 %vm1692_vm2, %v6035_v11  ;;  %v8762_v11 = vld [vmem:[%s15234_s14 + $0x2c8] sm:$0xff] }
 0xc59   : > { %8697 = vmatmul.msk.f32.vlgmr.msra.gmra.mxu3 %vm1692_vm2, %v6058_v12  ;;  %v6012_v14 = vpop.f32.mrf.mxu1  ;;  %6451 = vmatpush.msra.mxu2 %v8735_v38 }
 0xc5a   : > { %8695 = vmatmul.msk.f32.vlgmr.msra.gmra.mxu1 %vm1692_vm2, %v6012_v14  ;;  %6506 = vmatpush.msra.mxu3 %v8752_v63  ;;  %v8744_v14 = vld [vmem:[%s15234_s14 + $0x238] sm:$0xff] }
 0xc5b   : > { %6431 = vmatpush.msra.mxu1 %v8734_v37  ;;  %6452 = vmatpush.msra.mxu2 %v8733_v40  ;;  %v8741_v37 = vld [vmem:[%s15234_s14 + $0x220] sm:$0xff]  ;;  %v8740_v40 = vld [vmem:[%s15234_s14 + $0x218] sm:$0xff] }
 0xc5c   : > { %6507 = vmatpush.msra.mxu3 %v8751_v0  ;;  %v6614_v63 = vld [vmem:[%s15236_s16 + $0x1b8] sm:$0xff]  ;;  %v6608_v0 = vld [vmem:[%s15236_s16 + $0x188] sm:$0xff] }
 0xc5d   : > { %6432 = vmatpush.msra.mxu1 %v8732_v39  ;;  %6453 = vmatpush.msra.mxu2 %v8731_v43  ;;  %v8867_v43 = vld [vmem:[%s15231_s11 + $0x2] ss:$0 sm:$0xff] }
 0xc5e   : > { %6508 = vmatpush.msra.mxu3 %v8750_v19  ;;  %v6604_v19 = vld [vmem:[%s15236_s16 + $0x168] sm:$0xff] }
 0xc5f   : > { %6433 = vmatpush.msra.mxu1 %v8730_v41  ;;  %6454 = vmatpush.msra.mxu2 %v8729_v44 }
 0xc60   : > { %6509 = vmatpush.msra.mxu3 %v8749_v42  ;;  %v6599_v42 = vld [vmem:[%s15236_s16 + $0x140] sm:$0xff] }
 0xc61   : > { %6434 = vmatpush.msra.mxu1 %v8728_v6  ;;  %6455 = vmatpush.msra.mxu2 %v8727_v45 }
 0xc62   : > { %6510 = vmatpush.msra.mxu3 %v8748_v2  ;;  %v6600_v2 = vld [vmem:[%s15236_s16 + $0x148] sm:$0xff] }
 0xc63   : > { %6435 = vmatpush.msra.mxu1 %v8726_v31  ;;  %6456 = vmatpush.msra.mxu2 %v8725_v46  ;;  %v8758_v46 = vld [vmem:[%s15234_s14 + $0x2a8] sm:$0xff] }
 0xc64   : > { %6511 = vmatpush.msra.mxu3 %v8747_v34  ;;  %v8736_v34 = vld [vmem:[%s15233_s13 + $0x4] sm:$0x3] }
 0xc65   : > { %6436 = vmatpush.msra.mxu1 %v8724_v10  ;;  %6457 = vmatpush.msra.mxu2 %v8723_v1  ;;  %v8739_v10 = vld [vmem:[%s15234_s14 + $0x210] sm:$0xff]  ;;  %v8737_v1 = vld [vmem:[%s15234_s14 + $0x200] sm:$0xff] }
 0xc66   : > { %6512 = vmatpush.msra.mxu3 %v8746_v7 }
 0xc67   : > { %v6104_v24 = vpop.f32.mrf.mxu1  ;;  %6437 = vmatpush.msra.mxu1 %v8722_v13  ;;  %6458 = vmatpush.msra.mxu2 %v8721_v48  ;;  %v8738_v13 = vld [vmem:[%s15234_s14 + $0x208] sm:$0xff]  ;;  %v8755_v48 = vld [vmem:[%s15234_s14 + $0x290] sm:$0xff] }
 0xc68   : > { %8699 = vmatmul.msk.f32.vlgmr.msrb.gmra.mxu1 %vm1692_vm2, %v6104_v24  ;;  %6513 = vmatpush.msra.mxu3 %v8745_v9 }
 0xc69   : > { %6438 = vmatpush.msra.mxu1 %v8720_v47  ;;  %6459 = vmatpush.msra.mxu2 %v8719_v50  ;;  %v8756_v47 = vld [vmem:[%s15234_s14 + $0x298] sm:$0xff]  ;;  %v8753_v50 = vld [vmem:[%s15234_s14 + $0x280] sm:$0xff] }
 0xc6a   : > { %6514 = vmatpush.msra.mxu3 %v8744_v14  ;;  %v6595_v14 = vld [vmem:[%s15236_s16 + $0x120] sm:$0xff] }
 0xc6b   : > { %6439 = vmatpush.msra.mxu1 %v8718_v49  ;;  %6460 = vmatpush.msra.mxu2 %v8717_v52  ;;  %v8754_v49 = vld [vmem:[%s15234_s14 + $0x288] sm:$0xff] }
 0xc6c   : > { %6515 = vmatpush.msra.mxu3 %v8743_v17  ;;  %v6620_v52 = vld [vmem:[%s15236_s16 + $0x1e8] sm:$0xff]  ;;  %v6591_v17 = vld [vmem:[%s15236_s16 + $0x100] sm:$0xff] }
 0xc6d   : > { %6440 = vmatpush.msra.mxu1 %v8716_v51  ;;  %6461 = vmatpush.msra.mxu2 %v8715_v54  ;;  %v6619_v51 = vld [vmem:[%s15236_s16 + $0x1e0] sm:$0xff]  ;;  %v6622_v54 = vld [vmem:[%s15236_s16 + $0x1f8] sm:$0xff] }
 0xc6f   : > { %6441 = vmatpush.msra.mxu1 %v8714_v53  ;;  %6462 = vmatpush.msra.mxu2 %v8713_v56  ;;  %v6621_v53 = vld [vmem:[%s15236_s16 + $0x1f0] sm:$0xff]  ;;  %v6616_v56 = vld [vmem:[%s15236_s16 + $0x1c8] sm:$0xff] }
 0xc71   : > { %6442 = vmatpush.msra.mxu1 %v8712_v55  ;;  %6463 = vmatpush.msra.mxu2 %v8711_v21  ;;  %v6615_v55 = vld [vmem:[%s15236_s16 + $0x1c0] sm:$0xff] }
 0xc72   : > { %v6611_v21 = vld [vmem:[%s15236_s16 + $0x1a0] sm:$0xff] }
 0xc73   : > { %6443 = vmatpush.msra.mxu1 %v8710_v57  ;;  %6464 = vmatpush.msra.mxu2 %v8709_v23  ;;  %v6617_v57 = vld [vmem:[%s15236_s16 + $0x1d0] sm:$0xff]  ;;  %v6612_v23 = vld [vmem:[%s15236_s16 + $0x1a8] sm:$0xff] }
 0xc75   : > { %6444 = vmatpush.msra.mxu1 %v8708_v58  ;;  %6465 = vmatpush.msra.mxu2 %v8707_v61  ;;  %v6618_v58 = vld [vmem:[%s15236_s16 + $0x1d8] sm:$0xff]  ;;  %v6607_v61 = vld [vmem:[%s15236_s16 + $0x180] sm:$0xff] }
 0xc77   : > { %6445 = vmatpush.msra.mxu1 %v8706_v59  ;;  %6466 = vmatpush.msra.mxu2 %v8705_v22  ;;  %v6613_v59 = vld [vmem:[%s15236_s16 + $0x1b0] sm:$0xff]  ;;  %v6603_v22 = vld [vmem:[%s15236_s16 + $0x160] sm:$0xff] }
 0xc79   : > { %v6127_v29 = vpop.f32.mrf.mxu2  ;;  %6446 = vmatpush.msra.mxu1 %v8704_v20  ;;  %v6609_v20 = vld [vmem:[%s15236_s16 + $0x190] sm:$0xff] }
 0xc7a   : > { %v6150_v30 = vpop.f32.mrf.mxu3  ;;  %8700 = vmatmul.msk.f32.vlgmr.msrb.gmra.mxu2 %vm1692_vm2, %v6127_v29  ;;  %v8742_v29 = vld [vmem:[%s15234_s14 + $0x228] sm:$0xff] }
 0xc7b   : > { %8701 = vmatmul.msk.f32.vlgmr.msrb.gmra.mxu3 %vm1692_vm2, %v6150_v30  ;;  %v6081_v33 = vpop.f32.mrf.mxu0  ;;  %v8759_v30 = vld [vmem:[%s15234_s14 + $0x2b0] sm:$0xff]  ;;  %6633 = vmatpush.msrb.mxu1 %v6619_v51 }
 0xc7c   : > { %8698 = vmatmul.msk.f32.vlgmr.msrb.gmra.mxu0 %vm1692_vm2, %v6081_v33  ;;  %6516 = vmatpush.msra.mxu3 %v8742_v29  ;;  %v6587_v29 = vld [vmem:[%s15236_s16 + $0xe0] sm:$0xff]  ;;  %v6569_v51 = vld [vmem:[%s15236_s16 + $0x50] sm:$0xff] }
 0xc7d   : > { %6526 = vmatpush.msrb.mxu0 %v8768_v28  ;;  %6653 = vmatpush.msrb.mxu2 %v6620_v52  ;;  %v6610_v28 = vld [vmem:[%s15236_s16 + $0x198] sm:$0xff] }
 0xc7e   : > { %6517 = vmatpush.msra.mxu3 %v8741_v37  ;;  %6634 = vmatpush.msrb.mxu1 %v6615_v55  ;;  %v6583_v37 = vld [vmem:[%s15236_s16 + $0xc0] sm:$0xff]  ;;  %v6570_v52 = vld [vmem:[%s15236_s16 + $0x58] sm:$0xff]  ;;  %v6565_v55 = vld [vmem:[%s15236_s16 + $0x30] sm:$0xff] }
 0xc7f   : > { %6527 = vmatpush.msrb.mxu0 %v8767_v4  ;;  %6654 = vmatpush.msrb.mxu2 %v6616_v56  ;;  %v6605_v4 = vld [vmem:[%s15236_s16 + $0x170] sm:$0xff]  ;;  %v6566_v56 = vld [vmem:[%s15236_s16 + $0x38] sm:$0xff] }
 0xc80   : > { %6518 = vmatpush.msra.mxu3 %v8740_v40  ;;  %6635 = vmatpush.msrb.mxu1 %v6611_v21  ;;  %v6586_v40 = vld [vmem:[%s15236_s16 + $0xd8] sm:$0xff]  ;;  %v6560_v21 = vld [vmem:[%s15236_s16 + $0x8] sm:$0xff] }
 0xc81   : > { %6528 = vmatpush.msrb.mxu0 %v8766_v60  ;;  %6655 = vmatpush.msrb.mxu2 %v6612_v23  ;;  %v6606_v60 = vld [vmem:[%s15236_s16 + $0x178] sm:$0xff] }
 0xc82   : > { %6519 = vmatpush.msra.mxu3 %v8739_v10  ;;  %6636 = vmatpush.msrb.mxu1 %v6607_v61  ;;  %v6576_v10 = vld [vmem:[%s15236_s16 + $0x88] sm:$0xff]  ;;  %v6562_v23 = vld [vmem:[%s15236_s16 + $0x18] sm:$0xff]  ;;  %v7041_v61 = vld [vmem:[%s15238_s18 + $0x7c0] sm:$0xf] }
 0xc83   : > { %v6173_v36 = vpop.f32.mrf.mxu0  ;;  %6529 = vmatpush.msrb.mxu0 %v8765_v27  ;;  %6656 = vmatpush.msrb.mxu2 %v6608_v0  ;;  %v6601_v27 = vld [vmem:[%s15236_s16 + $0x150] sm:$0xff]  ;;  %v6849_v0 = vld [vmem:[%s15238_s18 + $0x1c0] sm:$0xff] }
 0xc84   : > { %8702 = vmatmul.msk.f32.vlgmr.msra.gmra.mxu0 %vm1692_vm2, %v6173_v36  ;;  %6520 = vmatpush.msra.mxu3 %v8738_v13  ;;  %v6578_v13 = vld [vmem:[%s15236_s16 + $0x98] sm:$0xff]  ;;  %vm7059_vm2 = vcmask 1043456  }
 0xc85   : > { %6530 = vmatpush.msrb.mxu0 %v8764_v5  ;;  %6637 = vmatpush.msrb.mxu1 %v6603_v22  ;;  %v6427_v5 = vperm.slane %v8736_v34, 0  ;;  %v6981_v22 = vld [vmem:[%s15238_s18 + $0x5e0] sm:$0xff] }
 0xc86   : > { %6521 = vmatpush.msra.mxu3 %v8737_v1  ;;  %6657 = vmatpush.msrb.mxu2 %v6604_v19  ;;  %v6572_v1 = vld [vmem:[%s15236_s16 + $0x68] sm:$0xff]  ;;  %v6977_v19 = vld [vmem:[%s15238_s18 + $0x5c0] sm:$0xff] }
 0xc87   : > { %6531 = vmatpush.msrb.mxu0 %v8763_v32  ;;  %6638 = vmatpush.msrb.mxu1 %v6599_v42  ;;  %v7033_v42 = vld [vmem:[%s15238_s18 + $0x780] sm:$0xff] }
 0xc88   : > { %6673 = vmatpush.msrb.mxu3 %v6621_v53  ;;  %6658 = vmatpush.msrb.mxu2 %v6600_v2  ;;  %v6563_v53 = vld [vmem:[%s15236_s16 + $0x20] sm:$0xff] }
 0xc89   : > { %6532 = vmatpush.msrb.mxu0 %v8762_v11  ;;  %6639 = vmatpush.msrb.mxu1 %v6595_v14  ;;  %v6973_v2 = vld [vmem:[%s15238_s18 + $0x5a0] sm:$0xff] }
 0xc8a   : > { %6674 = vmatpush.msrb.mxu3 %v6617_v57  ;;  %v6559_v57 = vld [vmem:[%s15236_s16] sm:$0xff] }
 0xc8b   : > { %6533 = vmatpush.msrb.mxu0 %v8761_v15  ;;  %v6596_v15 = vld [vmem:[%s15236_s16 + $0x128] sm:$0xff]  ;;  %6640 = vmatpush.msrb.mxu1 %v6591_v17  ;;  %v6965_v14 = vld [vmem:[%s15238_s18 + $0x560] sm:$0xff] }
 0xc8c   : > { %6675 = vmatpush.msrb.mxu3 %v6613_v59  ;;  %6659 = vmatpush.msrb.mxu2 %v6596_v15  ;;  %v6853_v59 = vld [vmem:[%s15238_s18 + $0x1e0] sm:$0xff] }
 0xc8d   : > { %6534 = vmatpush.msrb.mxu0 %v8760_v3  ;;  %v6592_v3 = vld [vmem:[%s15236_s16 + $0x108] sm:$0xff]  ;;  %6641 = vmatpush.msrb.mxu1 %v6587_v29  ;;  %v6833_v15 = vld [vmem:[%s15238_s18 + $0x140] sm:$0xff] }
 0xc8e   : > { %6676 = vmatpush.msrb.mxu3 %v6609_v20  ;;  %6660 = vmatpush.msrb.mxu2 %v6592_v3  ;;  %v7037_v20 = vld [vmem:[%s15238_s18 + $0x7a0] sm:$0xff] }
 0xc8f   : > { %6535 = vmatpush.msrb.mxu0 %v8759_v30  ;;  %v6588_v30 = vld [vmem:[%s15236_s16 + $0xe8] sm:$0xff]  ;;  %6642 = vmatpush.msrb.mxu1 %v6583_v37  ;;  %v6897_v17 = vld [vmem:[%s15238_s18 + $0x340] sm:$0xff] }
 0xc90   : > { %6677 = vmatpush.msrb.mxu3 %v6605_v4  ;;  %6661 = vmatpush.msrb.mxu2 %v6588_v30  ;;  %v6845_v4 = vld [vmem:[%s15238_s18 + $0x1a0] sm:$0xff] }
 0xc91   : > { %6536 = vmatpush.msrb.mxu0 %v8758_v46  ;;  %v6577_v46 = vld [vmem:[%s15236_s16 + $0x90] sm:$0xff]  ;;  %v6961_v3 = vld [vmem:[%s15238_s18 + $0x540] sm:$0xff] }
 0xc92   : > { %6678 = vmatpush.msrb.mxu3 %v6601_v27  ;;  %v6841_v27 = vld [vmem:[%s15238_s18 + $0x180] sm:$0xff] }
 0xc93   : > { %v6893_v29 = vld [vmem:[%s15238_s18 + $0x320] sm:$0xff] }
 0xc94   : > { %v6957_v30 = vld [vmem:[%s15238_s18 + $0x520] sm:$0xff] }
 0xcd7   : > { %v6213_v35 = vpop.f32.mrf.mxu1 }
 0xcdb   : > { %v6236_v25 = vpop.f32.mrf.mxu2 }
 0xcdc   : > { %v6377_v8 = vadd.f32 %v6236_v25, %v6213_v35  ;;  %v6259_v12 = vpop.f32.mrf.mxu3  ;;  %v6602_v25 = vld [vmem:[%s15236_s16 + $0x158] sm:$0xff] }
 0xcde   : > { %v6378_v16 = vadd.f32 %v6377_v8, %v6259_v12  ;;  %v6428_v8 = vperm.slane %v8736_v34, 1  ;;  %v6905_v34 = vld [vmem:[%s15238_s18 + $0x380] sm:$0xff] }
 0xce5   : > { %v6305_v24 = vpop.f32.mrf.mxu1 }
 0xcf9   : > { %v6282_v62 = vpop.f32.mrf.mxu0 }
 0xcfa   : > { %v6379_v18 = vadd.f32 %v6378_v16, %v6282_v62  ;;  %v6597_v16 = vld [vmem:[%s15236_s16 + $0x130] sm:$0xff]  ;;  %v6598_v62 = vld [vmem:[%s15236_s16 + $0x138] sm:$0xff] }
 0xcfb   : > { %6679 = vmatpush.msrb.mxu3 %v6597_v16  ;;  %v7021_v16 = vld [vmem:[%s15238_s18 + $0x720] sm:$0xff] }
 0xcfc   : > { %v6380_v33 = vadd.f32 %v6379_v18, %v6305_v24  ;;  %v6593_v18 = vld [vmem:[%s15236_s16 + $0x110] sm:$0xff]  ;;  %v6594_v24 = vld [vmem:[%s15236_s16 + $0x118] sm:$0xff] }
 0xcfd   : > { %v6328_v36 = vpop.f32.mrf.mxu2  ;;  %6680 = vmatpush.msrb.mxu3 %v6593_v18  ;;  %v6829_v18 = vld [vmem:[%s15238_s18 + $0x120] sm:$0xff] }
 0xcfe   : > { %v6381_v38 = vadd.f32 %v6380_v33, %v6328_v36  ;;  %v6351_v39 = vpop.f32.mrf.mxu3  ;;  %v6589_v33 = vld [vmem:[%s15236_s16 + $0xf0] sm:$0xff]  ;;  %v6590_v36 = vld [vmem:[%s15236_s16 + $0xf8] sm:$0xff] }
 0xcff   : > { %6681 = vmatpush.msrb.mxu3 %v6589_v33  ;;  %v6825_v33 = vld [vmem:[%s15238_s18 + $0x100] sm:$0xff] }
 0xd00   : > { %v6382_v41 = vadd.f32 %v6381_v38, %v6351_v39  ;;  %v6584_v38 = vld [vmem:[%s15236_s16 + $0xc8] sm:$0xff]  ;;  %v6585_v39 = vld [vmem:[%s15236_s16 + $0xd0] sm:$0xff] }
 0xd01   : > { %v6374_v6 = vpop.f32.mrf.mxu0  ;;  %6662 = vmatpush.msrb.mxu2 %v6584_v38  ;;  %6682 = vmatpush.msrb.mxu3 %v6585_v39  ;;  %v6889_v38 = vld [vmem:[%s15238_s18 + $0x300] sm:$0xff] }
 0xd02   : > { %v6383_v44 = vadd.f32 %v6382_v41, %v6374_v6  ;;  %v6579_v41 = vld [vmem:[%s15236_s16 + $0xa0] sm:$0xff]  ;;  %v6581_v6 = vld [vmem:[%s15236_s16 + $0xb0] sm:$0xff] }
 0xd03   : > { %6643 = vmatpush.msrb.mxu1 %v6579_v41  ;;  %6683 = vmatpush.msrb.mxu3 %v6581_v6  ;;  %v6953_v39 = vld [vmem:[%s15238_s18 + $0x500] sm:$0xff] }
 0xd04   : > { %v6389_v31 = vadd.f32 %v8867_v43, %v6383_v44  ;;  %v6580_v43 = vld [vmem:[%s15236_s16 + $0xa8] sm:$0xff]  ;;  %v6582_v44 = vld [vmem:[%s15236_s16 + $0xb8] sm:$0xff]  ;;  %v7009_v41 = vld [vmem:[%s15238_s18 + $0x6c0] sm:$0xff] }
 0xd05   : > { %6663 = vmatpush.msrb.mxu2 %v6580_v43  ;;  %6684 = vmatpush.msrb.mxu3 %v6577_v46  ;;  %v6885_v6 = vld [vmem:[%s15238_s18 + $0x2e0] sm:$0xff] }
 0xd06   : > { %v13943_v45 = vadd.f32 %v6389_v31, %v12764_v26  ;;  %v8757_v26 = vld [vmem:[%s15234_s14 + $0x2a0] sm:$0xff] }
 0xd07   : > { %6537 = vmatpush.msrb.mxu0 %v8757_v26  ;;  %v6575_v31 = vld [vmem:[%s15236_s16 + $0x80] sm:$0xff]  ;;  %6664 = vmatpush.msrb.mxu2 %v6576_v10 }
 0xd08   : > { %6447 = vmatmul.f32.vlgmr.msra.gmra.mxu1 %v13943_v45  ;;  %6467 = vmatmul.f32.vlgmr.msra.gmra.mxu2 %v13943_v45  ;;  %v6571_v26 = vld [vmem:[%s15236_s16 + $0x60] sm:$0xff] }
 0xd09   : > { %6538 = vmatpush.msrb.mxu0 %v8756_v47  ;;  %6644 = vmatpush.msrb.mxu1 %v6575_v31  ;;  %v6573_v47 = vld [vmem:[%s15236_s16 + $0x70] sm:$0xff]  ;;  %v6817_v31 = vld [vmem:[%s15238_s18 + $0xc0] sm:$0xff] }
 0xd0a   : > { %6665 = vmatpush.msrb.mxu2 %v6572_v1  ;;  %6685 = vmatpush.msrb.mxu3 %v6573_v47  ;;  %v7005_v10 = vld [vmem:[%s15238_s18 + $0x6a0] sm:$0xff] }
 0xd0b   : > { %6539 = vmatpush.msrb.mxu0 %v8755_v48  ;;  %v6574_v48 = vld [vmem:[%s15236_s16 + $0x78] sm:$0xff]  ;;  %6645 = vmatpush.msrb.mxu1 %v6571_v26  ;;  %v6945_v26 = vld [vmem:[%s15238_s18 + $0x4c0] sm:$0xff] }
 0xd0c   : > { %6686 = vmatpush.msrb.mxu3 %v6569_v51  ;;  %v6813_v1 = vld [vmem:[%s15238_s18 + $0xa0] sm:$0xff] }
 0xd0d   : > { %6540 = vmatpush.msrb.mxu0 %v8754_v49  ;;  %v6567_v49 = vld [vmem:[%s15236_s16 + $0x40] sm:$0xff] }
 0xd0e   : > { %6646 = vmatpush.msrb.mxu1 %v6567_v49  ;;  %6687 = vmatpush.msrb.mxu3 %v6565_v55  ;;  %v7001_v47 = vld [vmem:[%s15238_s18 + $0x680] sm:$0xff] }
 0xd0f   : > { %6541 = vmatpush.msrb.mxu0 %v8753_v50  ;;  %v6568_v50 = vld [vmem:[%s15236_s16 + $0x48] sm:$0xff]  ;;  %v6877_v49 = vld [vmem:[%s15238_s18 + $0x2a0] sm:$0xff] }
 0xd10   : > { %6666 = vmatpush.msrb.mxu2 %v6568_v50  ;;  %6647 = vmatpush.msrb.mxu1 %v6563_v53  ;;  %v6809_v50 = vld [vmem:[%s15238_s18 + $0x80] sm:$0xff] }
 0xd11   : > { %6693 = vmatpush.msra.mxu0 %v6622_v54  ;;  %v6564_v54 = vld [vmem:[%s15236_s16 + $0x28] sm:$0xff]  ;;  %v6997_v51 = vld [vmem:[%s15238_s18 + $0x660] sm:$0xff] }
 0xd12   : > { %6667 = vmatpush.msrb.mxu2 %v6564_v54  ;;  %6648 = vmatpush.msrb.mxu1 %v6559_v57  ;;  %v6805_v54 = vld [vmem:[%s15238_s18 + $0x60] sm:$0xff] }
 0xd13   : > { %6694 = vmatpush.msra.mxu0 %v6618_v58  ;;  %v6561_v58 = vld [vmem:[%s15236_s16 + $0x10] sm:$0xff]  ;;  %v6993_v55 = vld [vmem:[%s15238_s18 + $0x640] sm:$0xff] }
 0xd14   : > { %6668 = vmatpush.msrb.mxu2 %v6560_v21  ;;  %6688 = vmatpush.msrb.mxu3 %v6561_v58  ;;  %v6797_v57 = vld [vmem:[%s15238_s18 + $0x20] sm:$0xff] }
 0xd15   : > { %6695 = vmatpush.msra.mxu0 %v6614_v63  ;;  %v6917_v63 = vld [vmem:[%s15238_s18 + $0x3e0] sm:$0xff]  ;;  %7072 = vmatpush.msra.mxu1 %v6853_v59 }
 0xd16   : > { %7092 = vmatpush.msra.mxu2 %v6917_v63  ;;  %v6873_v21 = vld [vmem:[%s15238_s18 + $0x280] sm:$0xff] }
 0xd17   : > { %6696 = vmatpush.msra.mxu0 %v6610_v28  ;;  %v6913_v28 = vld [vmem:[%s15238_s18 + $0x3c0] sm:$0xff]  ;;  %7073 = vmatpush.msra.mxu1 %v6849_v0 }
 0xd18   : > { %7093 = vmatpush.msra.mxu2 %v6913_v28  ;;  %v6941_v58 = vld [vmem:[%s15238_s18 + $0x4a0] sm:$0xff] }
 0xd19   : > { %6697 = vmatpush.msra.mxu0 %v6606_v60  ;;  %v6909_v60 = vld [vmem:[%s15238_s18 + $0x3a0] sm:$0xff]  ;;  %7074 = vmatpush.msra.mxu1 %v6845_v4  ;;  %v6850_v4 = vld [vmem:[%s15238_s18 + $0x1c8] sm:$0xff] }
 0xd1a   : > { %7094 = vmatpush.msra.mxu2 %v6909_v60  ;;  %v6793_v59 = vld [vmem:[%s15238_s18] sm:$0xff] }
 0xd1b   : > { %6698 = vmatpush.msra.mxu0 %v6602_v25  ;;  %v7029_v25 = vld [vmem:[%s15238_s18 + $0x760] sm:$0xff]  ;;  %7075 = vmatpush.msra.mxu1 %v6841_v27  ;;  %v6846_v27 = vld [vmem:[%s15238_s18 + $0x1a8] sm:$0xff] }
 0xd1c   : > { %7095 = vmatpush.msra.mxu2 %v6905_v34  ;;  %v6937_v63 = vld [vmem:[%s15238_s18 + $0x480] sm:$0xff] }
 0xd1d   : > { %6699 = vmatpush.msra.mxu0 %v6598_v62  ;;  %v6985_v0 = vld [vmem:[%s15238_s18 + $0x600] sm:$0xff] }
 0xd1e   : > { %v6865_v28 = vld [vmem:[%s15238_s18 + $0x240] sm:$0xff] }
 0xd1f   : > { %6700 = vmatpush.msra.mxu0 %v6594_v24  ;;  %v7017_v24 = vld [vmem:[%s15238_s18 + $0x700] sm:$0xff] }
 0xd20   : > { %v6861_v60 = vld [vmem:[%s15238_s18 + $0x220] sm:$0xff] }
 0xd21   : > { %6701 = vmatpush.msra.mxu0 %v6590_v36  ;;  %v7013_v36 = vld [vmem:[%s15238_s18 + $0x6e0] sm:$0xff] }
 0xd22   : > { %v6857_v34 = vld [vmem:[%s15238_s18 + $0x200] sm:$0xff] }
 0xd23   : > { %6702 = vmatpush.msra.mxu0 %v6586_v40  ;;  %v6821_v40 = vld [vmem:[%s15238_s18 + $0xe0] sm:$0xff] }
 0xd25   : > { %6703 = vmatpush.msra.mxu0 %v6582_v44  ;;  %v6949_v44 = vld [vmem:[%s15238_s18 + $0x4e0] sm:$0xff] }
 0xd27   : > { %6704 = vmatpush.msra.mxu0 %v6578_v13  ;;  %v6881_v13 = vld [vmem:[%s15238_s18 + $0x2c0] sm:$0xff] }
 0xd29   : > { %6705 = vmatpush.msra.mxu0 %v6574_v48 }
 0xd2b   : > { %6706 = vmatpush.msra.mxu0 %v6570_v52 }
 0xd2d   : > { %6707 = vmatpush.msra.mxu0 %v6566_v56  ;;  %v6801_v56 = vld [vmem:[%s15238_s18 + $0x40] sm:$0xff] }
 0xd2f   : > { %6708 = vmatpush.msra.mxu0 %v6562_v23  ;;  %v6989_v23 = vld [vmem:[%s15238_s18 + $0x620] sm:$0xff] }
 0xd85   : > { %v6448_v35 = vpop.f32.mrf.mxu1 }
 0xd86   : > { %v6449_v7 = vadd.f32 %v6448_v35, %v6427_v5  ;;  %v6969_v5 = vld [vmem:[%s15238_s18 + $0x580] sm:$0xff] }
 0xd88   : > { %v6471_v32 = vmax.f32 %v6449_v7, 0.0 }
 0xd8a   : > { %6522 = vmatmul.f32.vlgmr.msra.gmra.mxu3 %v6471_v32  ;;  %v6837_v32 = vld [vmem:[%s15238_s18 + $0x160] sm:$0xff] }
 0xd8b   : > { %v6468_v9 = vpop.f32.mrf.mxu2  ;;  %7112 = vmatpush.msra.mxu3 %v6981_v22  ;;  %7076 = vmatpush.msra.mxu1 %v6837_v32  ;;  %v6918_v22 = vld [vmem:[%s15238_s18 + $0x3e8] sm:$0xff] }
 0xd8c   : > { %v6469_v11 = vadd.f32 %v6468_v9, %v6428_v8  ;;  %v7025_v8 = vld [vmem:[%s15238_s18 + $0x740] sm:$0xff]  ;;  %v6982_v32 = vld [vmem:[%s15238_s18 + $0x5e8] sm:$0xff] }
 0xd8d   : > { %7113 = vmatpush.msra.mxu3 %v6977_v19  ;;  %7077 = vmatpush.msra.mxu1 %v6833_v15  ;;  %v6933_v19 = vld [vmem:[%s15238_s18 + $0x460] sm:$0xff]  ;;  %v6834_v15 = vld [vmem:[%s15238_s18 + $0x148] sm:$0xff] }
 0xd8e   : > { %v6472_v12 = vmax.f32 %v6469_v11, 0.0  ;;  %v8868_v11 = vld [vmem:[%s15235_s15 + $0x2] ss:$0 sm:$0xff] }
 0xd8f   : > { %7114 = vmatpush.msra.mxu3 %v6973_v2  ;;  %7078 = vmatpush.msra.mxu1 %v6829_v18  ;;  %v6929_v2 = vld [vmem:[%s15238_s18 + $0x440] sm:$0xff]  ;;  %v6894_v18 = vld [vmem:[%s15238_s18 + $0x328] sm:$0xff] }
 0xd90   : > { %6542 = vmatmul.f32.vlgmr.msrb.gmra.mxu0 %v6472_v12  ;;  %v6901_v12 = vld [vmem:[%s15238_s18 + $0x360] sm:$0xff] }
 0xd91   : > { %8770 = vmatpush.msk.msrb.mxu0 %vm7059_vm2, %v7041_v61  ;;  %7115 = vmatpush.msra.mxu3 %v6969_v5  ;;  %v6869_v61 = vld [vmem:[%s15238_s18 + $0x260] sm:$0xff] }
 0xd92   : > { %7096 = vmatpush.msra.mxu2 %v6901_v12  ;;  %7079 = vmatpush.msra.mxu1 %v6825_v33  ;;  %v6925_v5 = vld [vmem:[%s15238_s18 + $0x420] sm:$0xff]  ;;  %v6978_v12 = vld [vmem:[%s15238_s18 + $0x5c8] sm:$0xff] }
 0xd93   : > { %7134 = vmatpush.msrb.mxu0 %v7037_v20  ;;  %7116 = vmatpush.msra.mxu3 %v6965_v14  ;;  %v6854_v20 = vld [vmem:[%s15238_s18 + $0x1e8] sm:$0xff] }
 0xd94   : > { %7097 = vmatpush.msra.mxu2 %v6897_v17  ;;  %7080 = vmatpush.msra.mxu1 %v6821_v40  ;;  %v7042_v14 = vld [vmem:[%s15238_s18 + $0x7c8] sm:$0xf] }
 0xd95   : > { %7135 = vmatpush.msrb.mxu0 %v7033_v42  ;;  %7117 = vmatpush.msra.mxu3 %v6961_v3  ;;  %v6914_v42 = vld [vmem:[%s15238_s18 + $0x3c8] sm:$0xff] }
 0xd96   : > { %7098 = vmatpush.msra.mxu2 %v6893_v29  ;;  %7081 = vmatpush.msra.mxu1 %v6817_v31  ;;  %v7038_v17 = vld [vmem:[%s15238_s18 + $0x7a8] sm:$0xff] }
 0xd97   : > { %7136 = vmatpush.msrb.mxu0 %v7029_v25  ;;  %7118 = vmatpush.msra.mxu3 %v6957_v30  ;;  %v6910_v25 = vld [vmem:[%s15238_s18 + $0x3a8] sm:$0xff] }
 0xd98   : > { %7099 = vmatpush.msra.mxu2 %v6889_v38  ;;  %7082 = vmatpush.msra.mxu1 %v6813_v1  ;;  %v6830_v3 = vld [vmem:[%s15238_s18 + $0x128] sm:$0xff] }
 0xd99   : > { %7137 = vmatpush.msrb.mxu0 %v7025_v8  ;;  %7119 = vmatpush.msra.mxu3 %v6953_v39  ;;  %v6921_v8 = vld [vmem:[%s15238_s18 + $0x400] sm:$0xff]  ;;  %v6826_v29 = vld [vmem:[%s15238_s18 + $0x108] sm:$0xff] }
 0xd9a   : > { %7100 = vmatpush.msra.mxu2 %v6885_v6  ;;  %7083 = vmatpush.msra.mxu1 %v6809_v50  ;;  %v6890_v30 = vld [vmem:[%s15238_s18 + $0x308] sm:$0xff] }
 0xd9b   : > { %7138 = vmatpush.msrb.mxu0 %v7021_v16  ;;  %7120 = vmatpush.msra.mxu3 %v6949_v44  ;;  %v6898_v16 = vld [vmem:[%s15238_s18 + $0x348] sm:$0xff] }
 0xd9c   : > { %7101 = vmatpush.msra.mxu2 %v6881_v13  ;;  %7084 = vmatpush.msra.mxu1 %v6805_v54  ;;  %v6966_v33 = vld [vmem:[%s15238_s18 + $0x568] sm:$0xff] }
 0xd9d   : > { %7139 = vmatpush.msrb.mxu0 %v7017_v24  ;;  %7121 = vmatpush.msra.mxu3 %v6945_v26  ;;  %v6970_v24 = vld [vmem:[%s15238_s18 + $0x588] sm:$0xff] }
 0xd9e   : > { %7102 = vmatpush.msra.mxu2 %v6877_v49  ;;  %7085 = vmatpush.msra.mxu1 %v6801_v56  ;;  %v6822_v38 = vld [vmem:[%s15238_s18 + $0xe8] sm:$0xff] }
 0xd9f   : > { %7140 = vmatpush.msrb.mxu0 %v7013_v36  ;;  %7122 = vmatpush.msra.mxu3 %v6941_v58  ;;  %v14439_v36 = vld [vmem:[%s15237_s17] sm:$0xf]  ;;  %v6886_v39 = vld [vmem:[%s15238_s18 + $0x2e8] sm:$0xff] }
 0xda0   : > { %7086 = vmatpush.msra.mxu1 %v6797_v57  ;;  %7103 = vmatpush.msra.mxu2 %v6873_v21  ;;  %v6962_v40 = vld [vmem:[%s15238_s18 + $0x548] sm:$0xff]  ;;  %v6625_v31 = vperm.slane %v14439_v36, 0 }
 0xda1   : > { %7141 = vmatpush.msrb.mxu0 %v7009_v41  ;;  %7123 = vmatpush.msra.mxu3 %v6937_v63  ;;  %v7026_v41 = vld [vmem:[%s15238_s18 + $0x748] sm:$0xff]  ;;  %v6627_v63 = vperm.slane %v14439_v36, 2 }
 0xda2   : > { %7087 = vmatpush.msra.mxu1 %v6793_v59  ;;  %7104 = vmatpush.msra.mxu2 %v6869_v61  ;;  %v6882_v6 = vld [vmem:[%s15238_s18 + $0x2c8] sm:$0xff] }
 0xda3   : > { %7142 = vmatpush.msrb.mxu0 %v7005_v10  ;;  %7124 = vmatpush.msra.mxu3 %v6933_v19  ;;  %v6958_v44 = vld [vmem:[%s15238_s18 + $0x528] sm:$0xff] }
 0xda4   : > { %7105 = vmatpush.msra.mxu2 %v6865_v28  ;;  %v7022_v10 = vld [vmem:[%s15238_s18 + $0x728] sm:$0xff] }
 0xda5   : > { %7143 = vmatpush.msrb.mxu0 %v7001_v47  ;;  %7125 = vmatpush.msra.mxu3 %v6929_v2  ;;  %v6814_v13 = vld [vmem:[%s15238_s18 + $0xa8] sm:$0xff] }
 0xda6   : > { %7106 = vmatpush.msra.mxu2 %v6861_v60  ;;  %v6878_v26 = vld [vmem:[%s15238_s18 + $0x2a8] sm:$0xff] }
 0xda7   : > { %7144 = vmatpush.msrb.mxu0 %v6997_v51  ;;  %7126 = vmatpush.msra.mxu3 %v6925_v5  ;;  %v6954_v1 = vld [vmem:[%s15238_s18 + $0x508] sm:$0xff] }
 0xda8   : > { %7107 = vmatpush.msra.mxu2 %v6857_v34  ;;  %v7018_v47 = vld [vmem:[%s15238_s18 + $0x708] sm:$0xff] }
 0xda9   : > { %7145 = vmatpush.msrb.mxu0 %v6993_v55  ;;  %7127 = vmatpush.msra.mxu3 %v6921_v8  ;;  %v6810_v49 = vld [vmem:[%s15238_s18 + $0x88] sm:$0xff] }
 0xdaa   : > { %v6874_v50 = vld [vmem:[%s15238_s18 + $0x288] sm:$0xff] }
 0xdab   : > { %7146 = vmatpush.msrb.mxu0 %v6989_v23  ;;  %v6950_v51 = vld [vmem:[%s15238_s18 + $0x4e8] sm:$0xff]  ;;  %v6626_v23 = vperm.slane %v14439_v36, 1 }
 0xdac   : > { %v7014_v54 = vld [vmem:[%s15238_s18 + $0x6e8] sm:$0xff] }
 0xdad   : > { %7147 = vmatpush.msrb.mxu0 %v6985_v0  ;;  %v6806_v56 = vld [vmem:[%s15238_s18 + $0x68] sm:$0xff] }
 0xdae   : > { %v6870_v57 = vld [vmem:[%s15238_s18 + $0x268] sm:$0xff] }
 0xdaf   : > { %v6946_v21 = vld [vmem:[%s15238_s18 + $0x4c8] sm:$0xff] }
 0xdb0   : > { %v7010_v59 = vld [vmem:[%s15238_s18 + $0x6c8] sm:$0xff] }
 0xdb1   : > { %v6802_v0 = vld [vmem:[%s15238_s18 + $0x48] sm:$0xff] }
 0xdb2   : > { %v7006_v19 = vld [vmem:[%s15238_s18 + $0x6a8] sm:$0xff] }
 0xdb3   : > { %v6798_v60 = vld [vmem:[%s15238_s18 + $0x28] sm:$0xff] }
 0xdb4   : > { %v6862_v2 = vld [vmem:[%s15238_s18 + $0x228] sm:$0xff] }
 0xdb5   : > { %v7002_v5 = vld [vmem:[%s15238_s18 + $0x688] sm:$0xff] }
 0xdb6   : > { %v6934_v8 = vld [vmem:[%s15238_s18 + $0x468] sm:$0xff] }
 0xe0d   : > { %v6523_v35 = vpop.f32.mrf.mxu3  ;;  %v6543_v7 = vpop.f32.mrf.mxu0 }
 0xe0e   : > { %v6544_v9 = vadd.f32 %v6543_v7, %v6523_v35  ;;  %v6842_v35 = vld [vmem:[%s15238_s18 + $0x188] sm:$0xff] }
 0xe0f   : > { %v6906_v7 = vld [vmem:[%s15238_s18 + $0x388] sm:$0xff] }
 0xe10   : > { %v6546_v62 = vadd.f32 %v6544_v9, %v13943_v45  ;;  %v6838_v9 = vld [vmem:[%s15238_s18 + $0x168] sm:$0xff] }
 0xe12   : > { %v6552_v45 = vadd.f32 %v8868_v11, %v6546_v62  ;;  %v6902_v11 = vld [vmem:[%s15238_s18 + $0x368] sm:$0xff] }
 0xe13   : > { %v6974_v62 = vld [vmem:[%s15238_s18 + $0x5a8] sm:$0xff] }
 0xe14   : > { %v6553_v37 = vrot.slane %v6552_v45, 4 }
 0xe16   : > { %v6554_v43 = vadd.f32 %v6553_v37, %v6552_v45  ;;  %v7034_v45 = vld [vmem:[%s15238_s18 + $0x788] sm:$0xff] }
 0xe17   : > { %v7030_v37 = vld [vmem:[%s15238_s18 + $0x768] sm:$0xff] }
 0xe18   : > { %v6555_v46 = vrot.slane %v6554_v43, 2 }
 0xe1a   : > { %v6556_v48 = vadd.f32 %v6555_v46, %v6554_v43  ;;  %v6818_v43 = vld [vmem:[%s15238_s18 + $0xc8] sm:$0xff]  ;;  %v6628_v46 = vperm.slane %v14439_v36, 3 }
 0xe1c   : > { %v6557_v52 = vrot.slane %v6556_v48, 1 }
 0xe1e   : > { %v6558_v53 = vadd.f32 %v6557_v52, %v6556_v48 }
 0xe20   : > { %6649 = vmatmul.f32.vlgmr.msrb.gmra.mxu1 %v6558_v53  ;;  %6669 = vmatmul.f32.vlgmr.msrb.gmra.mxu2 %v6558_v53 }
 0xe21   : > { %6689 = vmatmul.f32.vlgmr.msrb.gmra.mxu3 %v6558_v53  ;;  %6709 = vmatmul.f32.vlgmr.msra.gmra.mxu0 %v6558_v53 }
 0xe22   : > { %7152 = vmatpush.msra.mxu0 %v6854_v20  ;;  %7172 = vmatpush.msrb.mxu1 %v6918_v22  ;;  %v6866_v20 = vld [vmem:[%s15238_s18 + $0x248] sm:$0xff] }
 0xe23   : > { %7192 = vmatpush.msrb.mxu2 %v6982_v32  ;;  %8772 = vmatpush.msk.msrb.mxu3 %vm7059_vm2, %v7042_v14  ;;  %v6942_v22 = vld [vmem:[%s15238_s18 + $0x4a8] sm:$0xff] }
 0xe24   : > { %7153 = vmatpush.msra.mxu0 %v6850_v4  ;;  %7173 = vmatpush.msrb.mxu1 %v6914_v42  ;;  %v6858_v32 = vld [vmem:[%s15238_s18 + $0x208] sm:$0xff] }
 0xe25   : > { %7193 = vmatpush.msrb.mxu2 %v6978_v12  ;;  %7214 = vmatpush.msrb.mxu3 %v7038_v17  ;;  %v6930_v14 = vld [vmem:[%s15238_s18 + $0x448] sm:$0xff] }
 0xe26   : > { %7154 = vmatpush.msra.mxu0 %v6846_v27  ;;  %7174 = vmatpush.msrb.mxu1 %v6910_v25  ;;  %v6938_v27 = vld [vmem:[%s15238_s18 + $0x488] sm:$0xff] }
 0xe27   : > { %7194 = vmatpush.msrb.mxu2 %v6974_v62  ;;  %7215 = vmatpush.msrb.mxu3 %v7034_v45  ;;  %v6926_v17 = vld [vmem:[%s15238_s18 + $0x428] sm:$0xff] }
 0xe28   : > { %7155 = vmatpush.msra.mxu0 %v6842_v35  ;;  %7175 = vmatpush.msrb.mxu1 %v6906_v7  ;;  %v6794_v7 = vld [vmem:[%s15238_s18 + $0x8] sm:$0xff] }
 0xe29   : > { %7195 = vmatpush.msrb.mxu2 %v6970_v24  ;;  %7216 = vmatpush.msrb.mxu3 %v7030_v37 }
 0xe2a   : > { %7156 = vmatpush.msra.mxu0 %v6838_v9  ;;  %7176 = vmatpush.msrb.mxu1 %v6902_v11  ;;  %v6998_v11 = vld [vmem:[%s15238_s18 + $0x668] sm:$0xff] }
 0xe2b   : > { %7196 = vmatpush.msrb.mxu2 %v6966_v33  ;;  %7217 = vmatpush.msrb.mxu3 %v7026_v41 }
 0xe2c   : > { %7157 = vmatpush.msra.mxu0 %v6834_v15  ;;  %7177 = vmatpush.msrb.mxu1 %v6898_v16  ;;  %v6994_v15 = vld [vmem:[%s15238_s18 + $0x648] sm:$0xff] }
 0xe2d   : > { %7197 = vmatpush.msrb.mxu2 %v6962_v40  ;;  %7218 = vmatpush.msrb.mxu3 %v7022_v10 }
 0xe2e   : > { %7158 = vmatpush.msra.mxu0 %v6830_v3  ;;  %7178 = vmatpush.msrb.mxu1 %v6894_v18  ;;  %v6990_v3 = vld [vmem:[%s15238_s18 + $0x628] sm:$0xff] }
 0xe2f   : > { %7198 = vmatpush.msrb.mxu2 %v6958_v44  ;;  %7219 = vmatpush.msrb.mxu3 %v7018_v47 }
 0xe30   : > { %7159 = vmatpush.msra.mxu0 %v6826_v29  ;;  %7179 = vmatpush.msrb.mxu1 %v6890_v30  ;;  %v6922_v29 = vld [vmem:[%s15238_s18 + $0x408] sm:$0xff] }
 0xe31   : > { %7199 = vmatpush.msrb.mxu2 %v6954_v1  ;;  %7220 = vmatpush.msrb.mxu3 %v7014_v54  ;;  %v6986_v30 = vld [vmem:[%s15238_s18 + $0x608] sm:$0xff] }
 0xe32   : > { %7160 = vmatpush.msra.mxu0 %v6822_v38  ;;  %7180 = vmatpush.msrb.mxu1 %v6886_v39 }
 0xe33   : > { %7200 = vmatpush.msrb.mxu2 %v6950_v51  ;;  %7221 = vmatpush.msrb.mxu3 %v7010_v59 }
 0xe34   : > { %7161 = vmatpush.msra.mxu0 %v6818_v43  ;;  %7181 = vmatpush.msrb.mxu1 %v6882_v6 }
 0xe35   : > { %7201 = vmatpush.msrb.mxu2 %v6946_v21  ;;  %7222 = vmatpush.msrb.mxu3 %v7006_v19 }
 0xe36   : > { %7162 = vmatpush.msra.mxu0 %v6814_v13  ;;  %7182 = vmatpush.msrb.mxu1 %v6878_v26 }
 0xe37   : > { %7202 = vmatpush.msrb.mxu2 %v6942_v22  ;;  %7223 = vmatpush.msrb.mxu3 %v7002_v5 }
 0xe38   : > { %7163 = vmatpush.msra.mxu0 %v6810_v49  ;;  %7183 = vmatpush.msrb.mxu1 %v6874_v50 }
 0xe39   : > { %7203 = vmatpush.msrb.mxu2 %v6938_v27  ;;  %7224 = vmatpush.msrb.mxu3 %v6998_v11  ;;  %v6919_v27 = vld [vmem:[%s15238_s18 + $0x3f0] sm:$0xff] }
 0xe3a   : > { %7164 = vmatpush.msra.mxu0 %v6806_v56  ;;  %7184 = vmatpush.msrb.mxu1 %v6870_v57 }
 0xe3b   : > { %7204 = vmatpush.msrb.mxu2 %v6934_v8  ;;  %7225 = vmatpush.msrb.mxu3 %v6994_v15 }
 0xe3c   : > { %7165 = vmatpush.msra.mxu0 %v6802_v0  ;;  %7185 = vmatpush.msrb.mxu1 %v6866_v20 }
 0xe3d   : > { %7205 = vmatpush.msrb.mxu2 %v6930_v14  ;;  %7226 = vmatpush.msrb.mxu3 %v6990_v3  ;;  %v6911_v14 = vld [vmem:[%s15238_s18 + $0x3b0] sm:$0xff] }
 0xe3e   : > { %7166 = vmatpush.msra.mxu0 %v6798_v60  ;;  %7186 = vmatpush.msrb.mxu1 %v6862_v2  ;;  %v6855_v3 = vld [vmem:[%s15238_s18 + $0x1f0] sm:$0xff] }
 0xe3f   : > { %7206 = vmatpush.msrb.mxu2 %v6926_v17  ;;  %7227 = vmatpush.msrb.mxu3 %v6986_v30  ;;  %v6847_v30 = vld [vmem:[%s15238_s18 + $0x1b0] sm:$0xff] }
 0xe40   : > { %7167 = vmatpush.msra.mxu0 %v6794_v7  ;;  %7187 = vmatpush.msrb.mxu1 %v6858_v32  ;;  %v6915_v7 = vld [vmem:[%s15238_s18 + $0x3d0] sm:$0xff] }
 0xe41   : > { %7207 = vmatpush.msrb.mxu2 %v6922_v29  ;;  %v7039_v29 = vld [vmem:[%s15238_s18 + $0x7b0] sm:$0xff] }
 0xe9d   : > { %v6650_v48 = vpop.f32.mrf.mxu1 }
 0xe9e   : > { %v14491_v52 = vadd.f32 %v6650_v48, %v6625_v31  ;;  %v6710_v53 = vpop.f32.mrf.mxu0 }
 0xe9f   : > { %v14496_v55 = vadd.f32 %v6710_v53, %v6628_v46 }
 0xea0   : > { %v6713_v58 = vsub.f32 0.0, %v14491_v52 }
 0xea1   : > { %v6716_v61 = vsub.f32 0.0, %v14496_v55 }
 0xea2   : > { %v6717_v28 = vmul.f32 1.442695, %v6713_v58 }
 0xea3   : > { %v6723_v4 = vmul.f32 1.442695, %v6716_v61  ;;  %v6670_v42 = vpop.f32.mrf.mxu2 }
 0xea4   : > { %8965 = vpow2.f32 %v6717_v28  ;;  %v14535_v25 = vadd.f32 %v6670_v42, %v6626_v23  ;;  %v6690_v34 = vpop.f32.mrf.mxu3 }
 0xea5   : > { %8967 = vpow2.f32 %v6723_v4  ;;  %v14540_v35 = vadd.f32 %v6690_v34, %v6627_v63  ;;  %v6983_v4 = vld [vmem:[%s15238_s18 + $0x5f0] sm:$0xff] }
 0xea6   : > { %v6714_v9 = vsub.f32 0.0, %v14535_v25  ;;  %v6979_v34 = vld [vmem:[%s15238_s18 + $0x5d0] sm:$0xff] }
 0xea7   : > { %v6715_v12 = vsub.f32 0.0, %v14540_v35 }
 0xea8   : > { %v6719_v16 = vmul.f32 1.442695, %v6714_v9  ;;  %v6975_v9 = vld [vmem:[%s15238_s18 + $0x5b0] sm:$0xff] }
 0xea9   : > { %v6721_v62 = vmul.f32 1.442695, %v6715_v12 }
 0xeaa   : > { %v8966_v18 = vpop.eup %8965  ;;  %8969 = vpow2.f32 %v6719_v16 }
 0xeab   : > { %v8968_v24 = vpop.eup %8967  ;;  %v6725_v45 = vadd.f32 1.0, %v8966_v18  ;;  %8971 = vpow2.f32 %v6721_v62  ;;  %v6971_v62 = vld [vmem:[%s15238_s18 + $0x590] sm:$0xff] }
 0xeac   : > { %v6728_v33 = vadd.f32 1.0, %v8968_v24  ;;  %v6907_v18 = vld [vmem:[%s15238_s18 + $0x390] sm:$0xff] }
 0xead   : > { %8973 = vrcp.f32 %v6725_v45  ;;  %v6738_v31 = vand.u32 2147483647, %v6725_v45  ;;  %v6740_v10 = vand.u32 2147483648, %v6725_v45  ;;  %vm6734_vm8 = vweird.f32 %v6725_v45  ;;  %v6903_v24 = vld [vmem:[%s15238_s18 + $0x370] sm:$0xff] }
 0xeae   : > { %8975 = vrcp.f32 %v6728_v33  ;;  %v6783_v13 = vand.u32 2147483647, %v6728_v33  ;;  %v6785_v26 = vand.u32 2147483648, %v6728_v33  ;;  %vm6779_vm9 = vweird.f32 %v6728_v33 }
 0xeaf   : > { %vm6739_vm11 = vcmp.eq.f32.partialorder %v6738_v31, 8.507059e+37  ;;  %v6741_v51 = vor.u32 1.1754944e-38, %v6740_v10  ;;  %v7027_v31 = vld [vmem:[%s15238_s18 + $0x750] sm:$0xff] }
 0xeb0   : > { %v8970_v36 = vpop.eup %8969  ;;  %vm6784_vm13 = vcmp.eq.f32.partialorder %v6783_v13, 8.507059e+37  ;;  %v6786_v56 = vor.u32 1.1754944e-38, %v6785_v26  ;;  %v6835_v10 = vld [vmem:[%s15238_s18 + $0x150] sm:$0xff] }
 0xeb1   : > { %v8972_v37 = vpop.eup %8971  ;;  %v14574_v38 = vadd.f32 1.0, %v8970_v36  ;;  %v6963_v36 = vld [vmem:[%s15238_s18 + $0x550] sm:$0xff] }
 0xeb2   : > { %v14576_v39 = vadd.f32 1.0, %v8972_v37  ;;  %v7035_v37 = vld [vmem:[%s15238_s18 + $0x790] sm:$0xff] }
 0xeb3   : > { %v8974_v40 = vpop.eup %8973  ;;  %8977 = vrcp.f32 %v14574_v38  ;;  %v6753_v23 = vand.u32 2147483647, %v14574_v38  ;;  %v6755_v59 = vand.u32 2147483648, %v14574_v38  ;;  %vm6749_vm3 = vweird.f32 %v14574_v38  ;;  %v6951_v13 = vld [vmem:[%s15238_s18 + $0x4f0] sm:$0xff] }
 0xeb4   : > { %v8976_v41 = vpop.eup %8975  ;;  %v6730_v43 = vmul.f32 %v8974_v40, %v6725_v45  ;;  %8979 = vrcp.f32 %v14576_v39  ;;  %vm6735_vm4 = vweird.f32 %v8974_v40  ;;  %v6770_v20 = vand.u32 2147483648, %v14576_v39  ;;  %v6967_v45 = vld [vmem:[%s15238_s18 + $0x570] sm:$0xff] }
 0xeb5   : > { %v6775_v6 = vmul.f32 %v8976_v41, %v6728_v33  ;;  %vm6780_vm10 = vweird.f32 %v8976_v41  ;;  %vm6736_vm12 = vmor %vm6734_vm8, %vm6735_vm4  ;;  %v6768_v2 = vand.u32 2147483647, %v14576_v39  ;;  %vm6764_vm5 = vweird.f32 %v14576_v39  ;;  %v6899_v33 = vld [vmem:[%s15238_s18 + $0x350] sm:$0xff] }
 0xeb6   : > { %v6731_v44 = vsub.f32 1.0, %v6730_v43  ;;  %vm6781_vm14 = vmor %vm6779_vm9, %vm6780_vm10  ;;  %vm6754_vm6 = vcmp.eq.f32.partialorder %v6753_v23, 8.507059e+37  ;;  %v6771_v8 = vor.u32 1.1754944e-38, %v6770_v20  ;;  %v6839_v43 = vld [vmem:[%s15238_s18 + $0x170] sm:$0xff] }
 0xeb7   : > { %v6776_v46 = vsub.f32 1.0, %v6775_v6  ;;  %vm6769_vm8 = vcmp.eq.f32.partialorder %v6768_v2, 8.507059e+37  ;;  %v6891_v6 = vld [vmem:[%s15238_s18 + $0x310] sm:$0xff] }
 0xeb8   : > { %v6732_v1 = vmul.f32 %v8974_v40, %v6731_v44  ;;  %v6955_v44 = vld [vmem:[%s15238_s18 + $0x510] sm:$0xff] }
 0xeb9   : > { %v8978_v47 = vpop.eup %8977  ;;  %v6777_v48 = vmul.f32 %v8976_v41, %v6776_v46  ;;  %v6887_v46 = vld [vmem:[%s15238_s18 + $0x2f0] sm:$0xff] }
 0xeba   : > { %v8980_v49 = vpop.eup %8979  ;;  %v6733_v50 = vadd.f32 %v8974_v40, %v6732_v1  ;;  %v6745_v53 = vmul.f32 %v8978_v47, %v14574_v38  ;;  %vm6750_vm15 = vweird.f32 %v8978_v47  ;;  %v6843_v38 = vld [vmem:[%s15238_s18 + $0x190] sm:$0xff] }
 0xebb   : > { %v6778_v54 = vadd.f32 %v8976_v41, %v6777_v48  ;;  %v6760_v57 = vmul.f32 %v8980_v49, %v14576_v39  ;;  %vm6765_vm0 = vweird.f32 %v8980_v49  ;;  %vm6751_vm1 = vmor %vm6749_vm3, %vm6750_vm15  ;;  %v6895_v39 = vld [vmem:[%s15238_s18 + $0x330] sm:$0xff] }
 0xebc   : > { %v6737_v21 = vsel %vm6736_vm12, %v8974_v40, %v6733_v50  ;;  %v6746_v58 = vsub.f32 1.0, %v6745_v53  ;;  %vm6766_vm4 = vmor %vm6764_vm5, %vm6765_vm0  ;;  %v6959_v40 = vld [vmem:[%s15238_s18 + $0x530] sm:$0xff] }
 0xebd   : > { %v6742_v61 = vsel %vm6739_vm11, %v6741_v51, %v6737_v21  ;;  %v6782_v63 = vsel %vm6781_vm14, %v8976_v41, %v6778_v54  ;;  %v6761_v0 = vsub.f32 1.0, %v6760_v57  ;;  %v7031_v41 = vld [vmem:[%s15238_s18 + $0x770] sm:$0xff] }
 0xebe   : > { %v14586_v22 = vmul.f32 %v6742_v61, %v14491_v52  ;;  %v6787_v28 = vsel %vm6784_vm13, %v6786_v56, %v6782_v63  ;;  %v6747_v19 = vmul.f32 %v8978_v47, %v6746_v58  ;;  %v7023_v26 = vld [vmem:[%s15238_s18 + $0x730] sm:$0xff] }
 0xebf   : > { %v14592_v42 = vmul.f32 %v6787_v28, %v14496_v55  ;;  %v6762_v60 = vmul.f32 %v8980_v49, %v6761_v0  ;;  %v6756_v55 = vor.u32 1.1754944e-38, %v6755_v59  ;;  %v6831_v1 = vld [vmem:[%s15238_s18 + $0x130] sm:$0xff] }
 0xec0   : > { %v6748_v52 = vadd.f32 %v8978_v47, %v6747_v19  ;;  %7088 = vmatmul.f32.vlgmr.msra.gmra.mxu1 %v14586_v22  ;;  %v6947_v48 = vld [vmem:[%s15238_s18 + $0x4d0] sm:$0xff] }
 0xec1   : > { %v6763_v5 = vadd.f32 %v8980_v49, %v6762_v60  ;;  %8771 = vmatmul.msk.f32.vlgmr.msrb.gmra.mxu0 %vm7055_vm7, %v14592_v42  ;;  %7272 = vmatpush.msra.mxu1 %v6983_v4  ;;  %v6827_v50 = vld [vmem:[%s15238_s18 + $0x110] sm:$0xff] }
 0xec2   : > { %v6752_v32 = vsel %vm6751_vm1, %v8978_v47, %v6748_v52  ;;  %7252 = vmatpush.msrb.mxu0 %v6919_v27  ;;  %v6883_v47 = vld [vmem:[%s15238_s18 + $0x2d0] sm:$0xff] }
 0xec3   : > { %v6757_v11 = vsel %vm6754_vm6, %v6756_v55, %v6752_v32  ;;  %v6767_v12 = vsel %vm6766_vm4, %v8980_v49, %v6763_v5  ;;  %7273 = vmatpush.msra.mxu1 %v6979_v34  ;;  %v7019_v49 = vld [vmem:[%s15238_s18 + $0x710] sm:$0xff]  ;;  %v7044_v32 = vld [vmem:[%s15238_s18 + $0x7d8] sm:$0xf] }
 0xec4   : > { %v14617_v15 = vmul.f32 %v6757_v11, %v14535_v25  ;;  %v6772_v16 = vsel %vm6769_vm8, %v6771_v8, %v6767_v12  ;;  %7253 = vmatpush.msrb.mxu0 %v6915_v7  ;;  %v7043_v25 = vld [vmem:[%s15238_s18 + $0x7d0] sm:$0xf]  ;;  %v6984_v7 = vld [vmem:[%s15238_s18 + $0x5f8] sm:$0xff] }
 0xec5   : > { %v14623_v17 = vmul.f32 %v6772_v16, %v14540_v35  ;;  %7274 = vmatpush.msra.mxu1 %v6975_v9  ;;  %v6851_v35 = vld [vmem:[%s15238_s18 + $0x1d0] sm:$0xff]  ;;  %v6980_v11 = vld [vmem:[%s15238_s18 + $0x5d8] sm:$0xff] }
 0xec6   : > { %7254 = vmatpush.msrb.mxu0 %v6911_v14  ;;  %7108 = vmatmul.f32.vlgmr.msra.gmra.mxu2 %v14617_v15  ;;  %v6879_v51 = vld [vmem:[%s15238_s18 + $0x2b0] sm:$0xff]  ;;  %v7040_v12 = vld [vmem:[%s15238_s18 + $0x7b8] sm:$0xff] }
 0xec7   : > { %7128 = vmatmul.f32.vlgmr.msra.gmra.mxu3 %v14623_v17  ;;  %7275 = vmatpush.msra.mxu1 %v6971_v62  ;;  %v6943_v53 = vld [vmem:[%s15238_s18 + $0x4b0] sm:$0xff]  ;;  %v6976_v62 = vld [vmem:[%s15238_s18 + $0x5b8] sm:$0xff] }
 0xec8   : > { %7232 = vmatpush.msra.mxu3 %v6855_v3  ;;  %7255 = vmatpush.msrb.mxu0 %v6907_v18  ;;  %v7015_v54 = vld [vmem:[%s15238_s18 + $0x6f0] sm:$0xff]  ;;  %v7036_v3 = vld [vmem:[%s15238_s18 + $0x798] sm:$0xff] }
 0xec9   : > { %8774 = vmatpush.msk.msra.mxu2 %vm7059_vm2, %v7043_v25  ;;  %7168 = vmatmul.f32.vlgmr.msra.gmra.mxu0 %v14586_v22  ;;  %v6823_v56 = vld [vmem:[%s15238_s18 + $0xf0] sm:$0xff]  ;;  %v6856_v18 = vld [vmem:[%s15238_s18 + $0x1f8] sm:$0xff] }
 0xeca   : > { %7188 = vmatmul.f32.vlgmr.msrb.gmra.mxu1 %v14617_v15  ;;  %7233 = vmatpush.msra.mxu3 %v6851_v35  ;;  %v6875_v57 = vld [vmem:[%s15238_s18 + $0x290] sm:$0xff]  ;;  %v6972_v35 = vld [vmem:[%s15238_s18 + $0x598] sm:$0xff] }
 0xecb   : > { %7256 = vmatpush.msrb.mxu0 %v6903_v24  ;;  %7276 = vmatpush.msra.mxu1 %v6967_v45  ;;  %v6939_v21 = vld [vmem:[%s15238_s18 + $0x490] sm:$0xff]  ;;  %v6852_v24 = vld [vmem:[%s15238_s18 + $0x1d8] sm:$0xff] }
 0xecc   : > { %7294 = vmatpush.msra.mxu2 %v7039_v29  ;;  %7234 = vmatpush.msra.mxu3 %v6847_v30  ;;  %v7011_v58 = vld [vmem:[%s15238_s18 + $0x6d0] sm:$0xff]  ;;  %v6920_v45 = vld [vmem:[%s15238_s18 + $0x3f8] sm:$0xff] }
 0xecd   : > { %7257 = vmatpush.msrb.mxu0 %v6899_v33  ;;  %7277 = vmatpush.msra.mxu1 %v6963_v36  ;;  %v6819_v23 = vld [vmem:[%s15238_s18 + $0xd0] sm:$0xff]  ;;  %v7032_v29 = vld [vmem:[%s15238_s18 + $0x778] sm:$0xff] }
 0xece   : > { %7295 = vmatpush.msra.mxu2 %v7035_v37  ;;  %7235 = vmatpush.msra.mxu3 %v6843_v38  ;;  %v6871_v59 = vld [vmem:[%s15238_s18 + $0x270] sm:$0xff]  ;;  %v6968_v30 = vld [vmem:[%s15238_s18 + $0x578] sm:$0xff] }
 0xecf   : > { %7258 = vmatpush.msrb.mxu0 %v6895_v39  ;;  %7278 = vmatpush.msra.mxu1 %v6959_v40  ;;  %v6935_v61 = vld [vmem:[%s15238_s18 + $0x470] sm:$0xff]  ;;  %v6848_v33 = vld [vmem:[%s15238_s18 + $0x1b8] sm:$0xff] }
 0xed0   : > { %7296 = vmatpush.msra.mxu2 %v7031_v41  ;;  %8773 = vmatmul.msk.f32.vlgmr.msrb.gmra.mxu3 %vm7055_vm7, %v14592_v42  ;;  %v7007_v63 = vld [vmem:[%s15238_s18 + $0x6b0] sm:$0xff]  ;;  %v6916_v36 = vld [vmem:[%s15238_s18 + $0x3d8] sm:$0xff] }
 0xed1   : > { %7208 = vmatmul.f32.vlgmr.msrb.gmra.mxu2 %v14623_v17  ;;  %7236 = vmatpush.msra.mxu3 %v6839_v43  ;;  %v6815_v0 = vld [vmem:[%s15238_s18 + $0xb0] sm:$0xff]  ;;  %v7028_v37 = vld [vmem:[%s15238_s18 + $0x758] sm:$0xff] }
 0xed2   : > { %7259 = vmatpush.msrb.mxu0 %v6891_v6  ;;  %7279 = vmatpush.msra.mxu1 %v6955_v44  ;;  %v6867_v20 = vld [vmem:[%s15238_s18 + $0x250] sm:$0xff]  ;;  %v6964_v38 = vld [vmem:[%s15238_s18 + $0x558] sm:$0xff] }
 0xed3   : > { %7297 = vmatpush.msra.mxu2 %v7027_v31  ;;  %7237 = vmatpush.msra.mxu3 %v6835_v10  ;;  %v6931_v28 = vld [vmem:[%s15238_s18 + $0x450] sm:$0xff]  ;;  %v6844_v39 = vld [vmem:[%s15238_s18 + $0x198] sm:$0xff] }
 0xed4   : > { %7260 = vmatpush.msrb.mxu0 %v6887_v46  ;;  %7280 = vmatpush.msra.mxu1 %v6951_v13  ;;  %v7003_v19 = vld [vmem:[%s15238_s18 + $0x690] sm:$0xff]  ;;  %v6912_v40 = vld [vmem:[%s15238_s18 + $0x3b8] sm:$0xff] }
 0xed5   : > { %7298 = vmatpush.msra.mxu2 %v7023_v26  ;;  %7238 = vmatpush.msra.mxu3 %v6831_v1  ;;  %v6811_v4 = vld [vmem:[%s15238_s18 + $0x90] sm:$0xff]  ;;  %v7024_v41 = vld [vmem:[%s15238_s18 + $0x738] sm:$0xff] }
 0xed6   : > { %7261 = vmatpush.msrb.mxu0 %v6883_v47  ;;  %7281 = vmatpush.msra.mxu1 %v6947_v48  ;;  %v6863_v60 = vld [vmem:[%s15238_s18 + $0x230] sm:$0xff]  ;;  %v6960_v43 = vld [vmem:[%s15238_s18 + $0x538] sm:$0xff] }
 0xed7   : > { %7299 = vmatpush.msra.mxu2 %v7019_v49  ;;  %7239 = vmatpush.msra.mxu3 %v6827_v50  ;;  %v6927_v2 = vld [vmem:[%s15238_s18 + $0x430] sm:$0xff]  ;;  %v6840_v6 = vld [vmem:[%s15238_s18 + $0x178] sm:$0xff] }
 0xed8   : > { %7262 = vmatpush.msrb.mxu0 %v6879_v51  ;;  %7282 = vmatpush.msra.mxu1 %v6943_v53  ;;  %v6999_v27 = vld [vmem:[%s15238_s18 + $0x670] sm:$0xff]  ;;  %v6908_v44 = vld [vmem:[%s15238_s18 + $0x398] sm:$0xff] }
 0xed9   : > { %7300 = vmatpush.msra.mxu2 %v7015_v54  ;;  %7240 = vmatpush.msra.mxu3 %v6823_v56  ;;  %v6807_v52 = vld [vmem:[%s15238_s18 + $0x70] sm:$0xff]  ;;  %v7020_v31 = vld [vmem:[%s15238_s18 + $0x718] sm:$0xff] }
 0xeda   : > { %7263 = vmatpush.msrb.mxu0 %v6875_v57  ;;  %7283 = vmatpush.msra.mxu1 %v6939_v21  ;;  %v6859_v34 = vld [vmem:[%s15238_s18 + $0x210] sm:$0xff]  ;;  %v6956_v10 = vld [vmem:[%s15238_s18 + $0x518] sm:$0xff] }
 0xedb   : > { %7301 = vmatpush.msra.mxu2 %v7011_v58  ;;  %7241 = vmatpush.msra.mxu3 %v6819_v23  ;;  %v6923_v55 = vld [vmem:[%s15238_s18 + $0x410] sm:$0xff]  ;;  %v6836_v46 = vld [vmem:[%s15238_s18 + $0x158] sm:$0xff] }
 0xedc   : > { %7264 = vmatpush.msrb.mxu0 %v6871_v59  ;;  %7284 = vmatpush.msra.mxu1 %v6935_v61  ;;  %v6995_v5 = vld [vmem:[%s15238_s18 + $0x650] sm:$0xff]  ;;  %v6904_v13 = vld [vmem:[%s15238_s18 + $0x378] sm:$0xff] }
 0xedd   : > { %7302 = vmatpush.msra.mxu2 %v7007_v63  ;;  %7242 = vmatpush.msra.mxu3 %v6815_v0  ;;  %v6803_v8 = vld [vmem:[%s15238_s18 + $0x50] sm:$0xff]  ;;  %v7016_v26 = vld [vmem:[%s15238_s18 + $0x6f8] sm:$0xff] }
 0xede   : > { %7265 = vmatpush.msrb.mxu0 %v6867_v20  ;;  %7285 = vmatpush.msra.mxu1 %v6931_v28  ;;  %v6991_v9 = vld [vmem:[%s15238_s18 + $0x630] sm:$0xff]  ;;  %v6952_v1 = vld [vmem:[%s15238_s18 + $0x4f8] sm:$0xff] }
 0xedf   : > { %7303 = vmatpush.msra.mxu2 %v7003_v19  ;;  %7243 = vmatpush.msra.mxu3 %v6811_v4  ;;  %v6799_v14 = vld [vmem:[%s15238_s18 + $0x30] sm:$0xff]  ;;  %v6832_v47 = vld [vmem:[%s15238_s18 + $0x138] sm:$0xff] }
 0xee0   : > { %7266 = vmatpush.msrb.mxu0 %v6863_v60  ;;  %7286 = vmatpush.msra.mxu1 %v6927_v2  ;;  %v6987_v16 = vld [vmem:[%s15238_s18 + $0x610] sm:$0xff]  ;;  %v6900_v48 = vld [vmem:[%s15238_s18 + $0x358] sm:$0xff] }
 0xee1   : > { %7304 = vmatpush.msra.mxu2 %v6999_v27  ;;  %7244 = vmatpush.msra.mxu3 %v6807_v52  ;;  %v6795_v25 = vld [vmem:[%s15238_s18 + $0x10] sm:$0xff]  ;;  %v7012_v49 = vld [vmem:[%s15238_s18 + $0x6d8] sm:$0xff] }
 0xee2   : > { %7267 = vmatpush.msrb.mxu0 %v6859_v34  ;;  %7287 = vmatpush.msra.mxu1 %v6923_v55  ;;  %v6948_v50 = vld [vmem:[%s15238_s18 + $0x4d8] sm:$0xff] }
 0xee3   : > { %7305 = vmatpush.msra.mxu2 %v6995_v5  ;;  %7268 = vmatmul.f32.vlgmr.msrb.gmra.mxu0 %v14617_v15  ;;  %v6828_v51 = vld [vmem:[%s15238_s18 + $0x118] sm:$0xff] }
 0xee4   : > { %7288 = vmatmul.f32.vlgmr.msra.gmra.mxu1 %v14623_v17  ;;  %7352 = vmatpush.msra.mxu0 %v6984_v7  ;;  %v6896_v53 = vld [vmem:[%s15238_s18 + $0x338] sm:$0xff] }
 0xee5   : > { %8776 = vmatpush.msk.msrb.mxu1 %vm7059_vm2, %v7044_v32  ;;  %7245 = vmatpush.msra.mxu3 %v6803_v8  ;;  %v7008_v54 = vld [vmem:[%s15238_s18 + $0x6b8] sm:$0xff] }
 0xee6   : > { %7306 = vmatpush.msra.mxu2 %v6991_v9  ;;  %7353 = vmatpush.msra.mxu0 %v6980_v11  ;;  %v6944_v56 = vld [vmem:[%s15238_s18 + $0x4b8] sm:$0xff] }
 0xee7   : > { %7374 = vmatpush.msrb.mxu1 %v7040_v12  ;;  %7246 = vmatpush.msra.mxu3 %v6799_v14  ;;  %v6824_v57 = vld [vmem:[%s15238_s18 + $0xf8] sm:$0xff] }
 0xee8   : > { %7307 = vmatpush.msra.mxu2 %v6987_v16  ;;  %7354 = vmatpush.msra.mxu0 %v6976_v62  ;;  %v6892_v21 = vld [vmem:[%s15238_s18 + $0x318] sm:$0xff]  ;;  %v7486_v16 = vld [vmem:[%s15240_s20 + $0x70] sm:$0xff]  ;;  %v7485_v62 = vld [vmem:[%s15240_s20 + $0x68] sm:$0xff] }
 0xee9   : > { %8775 = vmatmul.msk.f32.vlgmr.msra.gmra.mxu2 %vm7055_vm7, %v14592_v42  ;;  %7375 = vmatpush.msrb.mxu1 %v7036_v3  ;;  %v7004_v58 = vld [vmem:[%s15238_s18 + $0x698] sm:$0xff] }
 0xeea   : > { %7312 = vmatpush.msrb.mxu2 %v6856_v18  ;;  %7247 = vmatpush.msra.mxu3 %v6795_v25  ;;  %v6940_v23 = vld [vmem:[%s15238_s18 + $0x498] sm:$0xff]  ;;  %v7502_v18 = vld [vmem:[%s15240_s20 + $0xf0] sm:$0xff]  ;;  %v15025_v25 = vld [vmem:[%s15239_s19] sm:$0xf] }
 0xeeb   : > { %7248 = vmatmul.f32.vlgmr.msra.gmra.mxu3 %v14586_v22  ;;  %7355 = vmatpush.msra.mxu0 %v6972_v35  ;;  %v6820_v59 = vld [vmem:[%s15238_s18 + $0xd8] sm:$0xff] }
 0xeec   : > { %7313 = vmatpush.msrb.mxu2 %v6852_v24  ;;  %7332 = vmatpush.msrb.mxu3 %v6920_v45  ;;  %v6888_v61 = vld [vmem:[%s15238_s18 + $0x2f8] sm:$0xff]  ;;  %v7482_v24 = vld [vmem:[%s15240_s20 + $0x50] sm:$0xff]  ;;  %v7501_v45 = vld [vmem:[%s15240_s20 + $0xe8] sm:$0xff] }
 0xeed   : > { %7376 = vmatpush.msrb.mxu1 %v7032_v29  ;;  %7356 = vmatpush.msra.mxu0 %v6968_v30  ;;  %v7000_v63 = vld [vmem:[%s15238_s18 + $0x678] sm:$0xff]  ;;  %v7047_v29 = vperm.slane %v15025_v25, 0  ;;  %v7481_v30 = vld [vmem:[%s15240_s20 + $0x48] sm:$0xff] }
 0xeee   : > { %7314 = vmatpush.msrb.mxu2 %v6848_v33  ;;  %7333 = vmatpush.msrb.mxu3 %v6916_v36  ;;  %v6936_v0 = vld [vmem:[%s15238_s18 + $0x478] sm:$0xff]  ;;  %v7500_v33 = vld [vmem:[%s15240_s20 + $0xe0] sm:$0xff] }
 0xeef   : > { %7377 = vmatpush.msrb.mxu1 %v7028_v37  ;;  %7357 = vmatpush.msra.mxu0 %v6964_v38  ;;  %v6816_v20 = vld [vmem:[%s15238_s18 + $0xb8] sm:$0xff]  ;;  %v7480_v37 = vld [vmem:[%s15240_s20 + $0x40] sm:$0xff] }
 0xef0   : > { %7315 = vmatpush.msrb.mxu2 %v6844_v39  ;;  %7334 = vmatpush.msrb.mxu3 %v6912_v40  ;;  %v6884_v28 = vld [vmem:[%s15238_s18 + $0x2d8] sm:$0xff] }
 0xef1   : > { %7378 = vmatpush.msrb.mxu1 %v7024_v41  ;;  %7358 = vmatpush.msra.mxu0 %v6960_v43  ;;  %v6996_v19 = vld [vmem:[%s15238_s18 + $0x658] sm:$0xff]  ;;  %v7498_v41 = vld [vmem:[%s15240_s20 + $0xd0] sm:$0xff] }
 0xef2   : > { %7316 = vmatpush.msrb.mxu2 %v6840_v6  ;;  %7335 = vmatpush.msrb.mxu3 %v6908_v44  ;;  %v6932_v4 = vld [vmem:[%s15238_s18 + $0x458] sm:$0xff]  ;;  %v7478_v44 = vld [vmem:[%s15240_s20 + $0x30] sm:$0xff] }
 0xef3   : > { %7379 = vmatpush.msrb.mxu1 %v7020_v31  ;;  %7359 = vmatpush.msra.mxu0 %v6956_v10  ;;  %v6812_v60 = vld [vmem:[%s15238_s18 + $0x98] sm:$0xff]  ;;  %v7497_v31 = vld [vmem:[%s15240_s20 + $0xc8] sm:$0xff]  ;;  %v7048_v10 = vperm.slane %v15025_v25, 1 }
 0xef4   : > { %7317 = vmatpush.msrb.mxu2 %v6836_v46  ;;  %7336 = vmatpush.msrb.mxu3 %v6904_v13  ;;  %v6880_v2 = vld [vmem:[%s15238_s18 + $0x2b8] sm:$0xff] }
 0xef5   : > { %7380 = vmatpush.msrb.mxu1 %v7016_v26  ;;  %7360 = vmatpush.msra.mxu0 %v6952_v1  ;;  %v6992_v27 = vld [vmem:[%s15238_s18 + $0x638] sm:$0xff]  ;;  %v7477_v1 = vld [vmem:[%s15240_s20 + $0x28] sm:$0xff] }
 0xef6   : > { %7318 = vmatpush.msrb.mxu2 %v6832_v47  ;;  %7337 = vmatpush.msrb.mxu3 %v6900_v48  ;;  %v6928_v52 = vld [vmem:[%s15238_s18 + $0x438] sm:$0xff]  ;;  %v7496_v47 = vld [vmem:[%s15240_s20 + $0xc0] sm:$0xff] }
 0xef7   : > { %7381 = vmatpush.msrb.mxu1 %v7012_v49  ;;  %7361 = vmatpush.msra.mxu0 %v6948_v50  ;;  %v6808_v34 = vld [vmem:[%s15238_s18 + $0x78] sm:$0xff]  ;;  %v7476_v49 = vld [vmem:[%s15240_s20 + $0x20] sm:$0xff] }
 0xef8   : > { %7319 = vmatpush.msrb.mxu2 %v6828_v51  ;;  %7338 = vmatpush.msrb.mxu3 %v6896_v53  ;;  %v6876_v55 = vld [vmem:[%s15238_s18 + $0x298] sm:$0xff] }
 0xef9   : > { %7382 = vmatpush.msrb.mxu1 %v7008_v54  ;;  %7362 = vmatpush.msra.mxu0 %v6944_v56  ;;  %v6988_v5 = vld [vmem:[%s15238_s18 + $0x618] sm:$0xff]  ;;  %v7494_v56 = vld [vmem:[%s15240_s20 + $0xb0] sm:$0xff] }
 0xefa   : > { %7320 = vmatpush.msrb.mxu2 %v6824_v57  ;;  %7339 = vmatpush.msrb.mxu3 %v6892_v21  ;;  %v6924_v7 = vld [vmem:[%s15238_s18 + $0x418] sm:$0xff] }
 0xefb   : > { %7383 = vmatpush.msrb.mxu1 %v7004_v58  ;;  %7363 = vmatpush.msra.mxu0 %v6940_v23  ;;  %v6804_v32 = vld [vmem:[%s15238_s18 + $0x58] sm:$0xff]  ;;  %v7474_v58 = vld [vmem:[%s15240_s20 + $0x10] sm:$0xff]  ;;  %v7493_v23 = vld [vmem:[%s15240_s20 + $0xa8] sm:$0xff] }
 0xefc   : > { %7321 = vmatpush.msrb.mxu2 %v6820_v59  ;;  %7340 = vmatpush.msrb.mxu3 %v6888_v61  ;;  %v6872_v8 = vld [vmem:[%s15238_s18 + $0x278] sm:$0xff] }
 0xefd   : > { %7384 = vmatpush.msrb.mxu1 %v7000_v63  ;;  %7364 = vmatpush.msra.mxu0 %v6936_v0  ;;  %v6800_v9 = vld [vmem:[%s15238_s18 + $0x38] sm:$0xff]  ;;  %v7473_v63 = vld [vmem:[%s15240_s20 + $0x8] sm:$0xff]  ;;  %v7492_v0 = vld [vmem:[%s15240_s20 + $0xa0] sm:$0xff] }
 0xefe   : > { %7322 = vmatpush.msrb.mxu2 %v6816_v20  ;;  %7341 = vmatpush.msrb.mxu3 %v6884_v28  ;;  %v6868_v11 = vld [vmem:[%s15238_s18 + $0x258] sm:$0xff] }
 0xeff   : > { %7385 = vmatpush.msrb.mxu1 %v6996_v19  ;;  %7365 = vmatpush.msra.mxu0 %v6932_v4  ;;  %v6796_v12 = vld [vmem:[%s15238_s18 + $0x18] sm:$0xff]  ;;  %v7472_v19 = vld [vmem:[%s15240_s20] sm:$0xff] }
 0xf00   : > { %7323 = vmatpush.msrb.mxu2 %v6812_v60  ;;  %7342 = vmatpush.msrb.mxu3 %v6880_v2  ;;  %v6864_v14 = vld [vmem:[%s15238_s18 + $0x238] sm:$0xff]  ;;  %v7490_v2 = vld [vmem:[%s15240_s20 + $0x90] sm:$0xff] }
 0xf01   : > { %7386 = vmatpush.msrb.mxu1 %v6992_v27  ;;  %7366 = vmatpush.msra.mxu0 %v6928_v52  ;;  %v7483_v3 = vld [vmem:[%s15240_s20 + $0x58] sm:$0xff] }
 0xf02   : > { %7324 = vmatpush.msrb.mxu2 %v6808_v34  ;;  %7343 = vmatpush.msrb.mxu3 %v6876_v55  ;;  %v7499_v38 = vld [vmem:[%s15240_s20 + $0xd8] sm:$0xff]  ;;  %v7489_v55 = vld [vmem:[%s15240_s20 + $0x88] sm:$0xff] }
 0xf03   : > { %7387 = vmatpush.msrb.mxu1 %v6988_v5  ;;  %7367 = vmatpush.msra.mxu0 %v6924_v7  ;;  %v7479_v40 = vld [vmem:[%s15240_s20 + $0x38] sm:$0xff] }
 0xf04   : > { %8777 = vmatmul.msk.f32.vlgmr.msrb.gmra.mxu1 %vm7055_vm7, %v14592_v42  ;;  %7325 = vmatpush.msrb.mxu2 %v6804_v32  ;;  %v6860_v42 = vld [vmem:[%s15238_s18 + $0x218] sm:$0xff]  ;;  %v7518_v32 = vld [vmem:[%s15240_s20 + $0x170] sm:$0xff] }
 0xf05   : > { %7344 = vmatpush.msrb.mxu3 %v6872_v8  ;;  %7368 = vmatmul.f32.vlgmr.msra.gmra.mxu0 %v14623_v17  ;;  %v7487_v17 = vld [vmem:[%s15240_s20 + $0x78] sm:$0xff]  ;;  %v7488_v8 = vld [vmem:[%s15240_s20 + $0x80] sm:$0xff] }
 0xf06   : > { %7326 = vmatpush.msrb.mxu2 %v6800_v9  ;;  %7542 = vmatpush.msra.mxu1 %v7487_v17  ;;  %v7495_v50 = vld [vmem:[%s15240_s20 + $0xb8] sm:$0xff]  ;;  %v7517_v9 = vld [vmem:[%s15240_s20 + $0x168] sm:$0xff] }
 0xf07   : > { %7345 = vmatpush.msrb.mxu3 %v6868_v11  ;;  %v7475_v54 = vld [vmem:[%s15240_s20 + $0x18] sm:$0xff]  ;;  %v7516_v11 = vld [vmem:[%s15240_s20 + $0x160] sm:$0xff] }
 0xf08   : > { %7327 = vmatpush.msrb.mxu2 %v6796_v12  ;;  %7543 = vmatpush.msra.mxu1 %v7486_v16  ;;  %v7491_v4 = vld [vmem:[%s15240_s20 + $0x98] sm:$0xff] }
 0xf09   : > { %7346 = vmatpush.msrb.mxu3 %v6864_v14  ;;  %7328 = vmatmul.f32.vlgmr.msrb.gmra.mxu2 %v14586_v22  ;;  %v7484_v22 = vld [vmem:[%s15240_s20 + $0x60] sm:$0xff]  ;;  %v7519_v52 = vld [vmem:[%s15240_s20 + $0x178] sm:$0xff] }
 0xf0a   : > { %7544 = vmatpush.msra.mxu1 %v7485_v62  ;;  %v7515_v12 = vld [vmem:[%s15240_s20 + $0x158] sm:$0xff] }
 0xf0b   : > { %7347 = vmatpush.msrb.mxu3 %v6860_v42  ;;  %v7514_v42 = vld [vmem:[%s15240_s20 + $0x150] sm:$0xff] }
 0xf0c   : > { %7348 = vmatmul.f32.vlgmr.msrb.gmra.mxu3 %v14617_v15  ;;  %v7503_v15 = vld [vmem:[%s15240_s20 + $0xf8] sm:$0xff]  ;;  %7545 = vmatpush.msra.mxu1 %v7484_v22  ;;  %v7513_v22 = vld [vmem:[%s15240_s20 + $0x148] sm:$0xff] }
 0xf0d   : > { %7562 = vmatpush.msra.mxu2 %v7503_v15  ;;  %7582 = vmatpush.msra.mxu3 %v7519_v52  ;;  %v7529_v52 = vld [vmem:[%s15240_s20 + $0x1c8] sm:$0xff] }
 0xf0e   : > { %7546 = vmatpush.msra.mxu1 %v7483_v3 }
 0xf0f   : > { %7563 = vmatpush.msra.mxu2 %v7502_v18  ;;  %7583 = vmatpush.msra.mxu3 %v7518_v32  ;;  %v7512_v18 = vld [vmem:[%s15240_s20 + $0x140] sm:$0xff] }
 0xf10   : > { %7547 = vmatpush.msra.mxu1 %v7482_v24 }
 0xf11   : > { %7564 = vmatpush.msra.mxu2 %v7501_v45  ;;  %7584 = vmatpush.msra.mxu3 %v7517_v9  ;;  %v7511_v45 = vld [vmem:[%s15240_s20 + $0x138] sm:$0xff] }
 0xf12   : > { %7548 = vmatpush.msra.mxu1 %v7481_v30 }
 0xf13   : > { %7565 = vmatpush.msra.mxu2 %v7500_v33  ;;  %7585 = vmatpush.msra.mxu3 %v7516_v11  ;;  %v7049_v33 = vperm.slane %v15025_v25, 2 }
 0xf14   : > { %7549 = vmatpush.msra.mxu1 %v7480_v37 }
 0xf15   : > { %7566 = vmatpush.msra.mxu2 %v7499_v38  ;;  %7586 = vmatpush.msra.mxu3 %v7515_v12  ;;  %v7524_v12 = vld [vmem:[%s15240_s20 + $0x1a0] sm:$0xff] }
 0xf16   : > { %7550 = vmatpush.msra.mxu1 %v7479_v40  ;;  %v7509_v40 = vld [vmem:[%s15240_s20 + $0x128] sm:$0xff] }
 0xf17   : > { %7567 = vmatpush.msra.mxu2 %v7498_v41  ;;  %7587 = vmatpush.msra.mxu3 %v7514_v42 }
 0xf18   : > { %7551 = vmatpush.msra.mxu1 %v7478_v44 }
 0xf19   : > { %7568 = vmatpush.msra.mxu2 %v7497_v31  ;;  %7588 = vmatpush.msra.mxu3 %v7513_v22  ;;  %v7508_v31 = vld [vmem:[%s15240_s20 + $0x120] sm:$0xff] }
 0xf1a   : > { %7552 = vmatpush.msra.mxu1 %v7477_v1  ;;  %v7507_v1 = vld [vmem:[%s15240_s20 + $0x118] sm:$0xff] }
 0xf1b   : > { %7569 = vmatpush.msra.mxu2 %v7496_v47  ;;  %7589 = vmatpush.msra.mxu3 %v7512_v18 }
 0xf1c   : > { %7553 = vmatpush.msra.mxu1 %v7476_v49 }
 0xf1d   : > { %7570 = vmatpush.msra.mxu2 %v7495_v50  ;;  %7590 = vmatpush.msra.mxu3 %v7511_v45 }
 0xf1e   : > { %7554 = vmatpush.msra.mxu1 %v7475_v54 }
 0xf1f   : > { %7571 = vmatpush.msra.mxu2 %v7494_v56 }
 0xf20   : > { %7555 = vmatpush.msra.mxu1 %v7474_v58 }
 0xf21   : > { %7572 = vmatpush.msra.mxu2 %v7493_v23 }
 0xf22   : > { %7556 = vmatpush.msra.mxu1 %v7473_v63 }
 0xf23   : > { %7573 = vmatpush.msra.mxu2 %v7492_v0  ;;  %v7534_v0 = vld [vmem:[%s15240_s20 + $0x1f0] sm:$0xf] }
 0xf24   : > { %7557 = vmatpush.msra.mxu1 %v7472_v19  ;;  %8778 = vmatpush.msk.msrb.mxu0 %vm7059_vm2, %v7534_v0  ;;  %v7532_v19 = vld [vmem:[%s15240_s20 + $0x1e0] sm:$0xff] }
 0xf25   : > { %7574 = vmatpush.msra.mxu2 %v7491_v4  ;;  %v7531_v4 = vld [vmem:[%s15240_s20 + $0x1d8] sm:$0xff] }
 0xf27   : > { %7575 = vmatpush.msra.mxu2 %v7490_v2 }
 0xf29   : > { %7576 = vmatpush.msra.mxu2 %v7489_v55  ;;  %v7527_v55 = vld [vmem:[%s15240_s20 + $0x1b8] sm:$0xff] }
 0xf2b   : > { %7577 = vmatpush.msra.mxu2 %v7488_v8  ;;  %v7525_v8 = vld [vmem:[%s15240_s20 + $0x1a8] sm:$0xff] }
 0xf3d   : > { %v7089_v36 = vpop.f32.mrf.mxu1 }
 0xf3e   : > { %v7149_v35 = vpop.f32.mrf.mxu0  ;;  %v7090_v39 = vadd.f32 %v7089_v36, %v7047_v29  ;;  %v7510_v36 = vld [vmem:[%s15240_s20 + $0x130] sm:$0xff] }
 0xf3f   : > { %7591 = vmatpush.msra.mxu3 %v7510_v36 }
 0xf41   : > { %7592 = vmatpush.msra.mxu3 %v7509_v40 }
 0xf43   : > { %7593 = vmatpush.msra.mxu3 %v7508_v31 }
 0xf45   : > { %7594 = vmatpush.msra.mxu3 %v7507_v1 }
 0xf46   : > { %v7169_v13 = vpop.f32.mrf.mxu0 }
 0xf47   : > { %v7170_v51 = vadd.f32 %v7169_v13, %v7048_v10  ;;  %v7189_v57 = vpop.f32.mrf.mxu1 }
 0xf49   : > { %v7109_v43 = vpop.f32.mrf.mxu2  ;;  %v7190_v59 = vadd.f32 %v7189_v57, %v7170_v51  ;;  %v7506_v51 = vld [vmem:[%s15240_s20 + $0x110] sm:$0xff] }
 0xf4a   : > { %v7110_v6 = vadd.f32 %v7109_v43, %v7090_v39  ;;  %v7129_v46 = vpop.f32.mrf.mxu3  ;;  %7595 = vmatpush.msra.mxu3 %v7506_v51  ;;  %v7535_v51 = vld [vmem:[#allocation2] sm:$0x1] }
 0xf4c   : > { %v7130_v26 = vadd.f32 %v7129_v46, %v7110_v6 }
 0xf4e   : > { %v15065_v48 = vadd.f32 %v7149_v35, %v7130_v26 }
 0xf50   : > { %v7392_v53 = vsub.f32 0.0, %v15065_v48 }
 0xf52   : > { %v7396_v21 = vmul.f32 1.442695, %v7392_v53 }
 0xf53   : > { %v7229_v28 = vpop.f32.mrf.mxu3 }
 0xf54   : > { %8981 = vpow2.f32 %v7396_v21  ;;  %v7209_v61 = vpop.f32.mrf.mxu2  ;;  %v7505_v21 = vld [vmem:[%s15240_s20 + $0x108] sm:$0xff] }
 0xf55   : > { %v7210_v20 = vadd.f32 %v7209_v61, %v7190_v59  ;;  %7596 = vmatpush.msra.mxu3 %v7505_v21  ;;  %v7504_v61 = vld [vmem:[%s15240_s20 + $0x100] sm:$0xff] }
 0xf57   : > { %v15098_v60 = vadd.f32 %v7229_v28, %v7210_v20  ;;  %7597 = vmatpush.msra.mxu3 %v7504_v61  ;;  %v7533_v28 = vld [vmem:[%s15240_s20 + $0x1e8] sm:$0xff] }
 0xf58   : > { %7604 = vmatpush.msrb.mxu0 %v7533_v28 }
 0xf59   : > { %v7393_v27 = vsub.f32 0.0, %v15098_v60 }
 0xf5a   : > { %v8982_v34 = vpop.eup %8981  ;;  %7605 = vmatpush.msrb.mxu0 %v7532_v19 }
 0xf5b   : > { %v7404_v5 = vadd.f32 1.0, %v8982_v34  ;;  %v7398_v7 = vmul.f32 1.442695, %v7393_v27  ;;  %v7528_v34 = vld [vmem:[%s15240_s20 + $0x1c0] sm:$0xff] }
 0xf5c   : > { %7606 = vmatpush.msrb.mxu0 %v7531_v4 }
 0xf5d   : > { %8983 = vrcp.f32 %v7404_v5  ;;  %v7419_v3 = vand.u32 2147483648, %v7404_v5  ;;  %v7417_v24 = vand.u32 2147483647, %v7404_v5  ;;  %vm7413_vm10 = vweird.f32 %v7404_v5 }
 0xf5e   : > { %8985 = vpow2.f32 %v7398_v7  ;;  %v7050_v7 = vperm.slane %v15025_v25, 3  ;;  %v7523_v25 = vld [vmem:[%s15240_s20 + $0x198] sm:$0xff] }
 0xf5f   : > { %v7420_v30 = vor.u32 1.1754944e-38, %v7419_v3  ;;  %vm7418_vm12 = vcmp.eq.f32.partialorder %v7417_v24, 8.507059e+37  ;;  %v7522_v3 = vld [vmem:[%s15240_s20 + $0x190] sm:$0xff] }
 0xf60   : > { %v7269_v46 = vpop.f32.mrf.mxu0 }
 0xf61   : > { %v7289_v49 = vpop.f32.mrf.mxu1 }
 0xf63   : > { %v8984_v14 = vpop.eup %8983 }
 0xf64   : > { %v8986_v17 = vpop.eup %8985  ;;  %v7409_v16 = vmul.f32 %v8984_v14, %v7404_v5  ;;  %vm7414_vm9 = vweird.f32 %v8984_v14  ;;  %v7526_v5 = vld [vmem:[%s15240_s20 + $0x1b0] sm:$0xff] }
 0xf65   : > { %v7405_v62 = vadd.f32 1.0, %v8986_v17  ;;  %vm7415_vm11 = vmor %vm7413_vm10, %vm7414_vm9  ;;  %vm7622_vm10 = vcmask 0  }
 0xf66   : > { %v7410_v15 = vsub.f32 1.0, %v7409_v16 }
 0xf67   : > { %8987 = vrcp.f32 %v7405_v62  ;;  %v7434_v13 = vand.u32 2147483648, %v7405_v62  ;;  %vm7428_vm14 = vweird.f32 %v7405_v62 }
 0xf68   : > { %v7411_v35 = vmul.f32 %v8984_v14, %v7410_v15 }
 0xf69   : > { %v7435_v56 = vor.u32 1.1754944e-38, %v7434_v13 }
 0xf6a   : > { %v7412_v29 = vadd.f32 %v8984_v14, %v7411_v35 }
 0xf6c   : > { %v7416_v37 = vsel %vm7415_vm11, %v8984_v14, %v7412_v29  ;;  %v7309_v54 = vpop.f32.mrf.mxu2  ;;  %v7521_v29 = vld [vmem:[%s15240_s20 + $0x188] sm:$0xff] }
 0xf6d   : > { %v8988_v38 = vpop.eup %8987  ;;  %v7421_v39 = vsel %vm7418_vm12, %v7420_v30, %v7416_v37 }
 0xf6e   : > { %v7468_v41 = vmul.f32 %v7421_v39, %v15065_v48  ;;  %v7424_v43 = vmul.f32 %v8988_v38, %v7405_v62  ;;  %v7249_v6 = vpop.f32.mrf.mxu3  ;;  %vm7429_vm13 = vweird.f32 %v8988_v38  ;;  %v7432_v48 = vand.u32 2147483647, %v7405_v62 }
 0xf6f   : > { %v7250_v44 = vadd.f32 %v7249_v6, %v7049_v33  ;;  %vm7430_vm15 = vmor %vm7428_vm14, %vm7429_vm13 }
 0xf70   : > { %v7425_v10 = vsub.f32 1.0, %v7424_v43  ;;  %7558 = vmatmul.f32.vlgmr.msra.gmra.mxu1 %v7468_v41  ;;  %vm7433_vm0 = vcmp.eq.f32.partialorder %v7432_v48, 8.507059e+37 }
 0xf71   : > { %v7270_v26 = vadd.f32 %v7269_v46, %v7250_v44 }
 0xf72   : > { %v7426_v47 = vmul.f32 %v8988_v38, %v7425_v10 }
 0xf73   : > { %v7290_v50 = vadd.f32 %v7289_v49, %v7270_v26 }
 0xf74   : > { %v7427_v53 = vadd.f32 %v8988_v38, %v7426_v47 }
 0xf75   : > { %v15154_v57 = vadd.f32 %v7309_v54, %v7290_v50 }
 0xf76   : > { %v7431_v58 = vsel %vm7430_vm15, %v8988_v38, %v7427_v53  ;;  %v7520_v38 = vld [vmem:[%s15240_s20 + $0x180] sm:$0xff] }
 0xf77   : > { %v7436_v23 = vsel %vm7433_vm0, %v7435_v56, %v7431_v58  ;;  %v7394_v59 = vsub.f32 0.0, %v15154_v57 }
 0xf78   : > { %v7469_v63 = vmul.f32 %v7436_v23, %v15098_v60  ;;  %v7530_v60 = vld [vmem:[%s15240_s20 + $0x1d0] sm:$0xff] }
 0xf79   : > { %v7400_v20 = vmul.f32 1.442695, %v7394_v59  ;;  %7607 = vmatpush.msrb.mxu0 %v7530_v60 }
 0xf7a   : > { %7578 = vmatmul.f32.vlgmr.msra.gmra.mxu2 %v7469_v63 }
 0xf7b   : > { %8989 = vpow2.f32 %v7400_v20  ;;  %7608 = vmatpush.msrb.mxu0 %v7529_v52 }
 0xf7d   : > { %7609 = vmatpush.msrb.mxu0 %v7528_v34 }
 0xf7f   : > { %7610 = vmatpush.msrb.mxu0 %v7527_v55 }
 0xf81   : > { %v8990_v2 = vpop.eup %8989  ;;  %7611 = vmatpush.msrb.mxu0 %v7526_v5  ;;  %v7389_v33 = vpop.f32.mrf.mxu1 }
 0xf82   : > { %v7406_v27 = vadd.f32 1.0, %v8990_v2  ;;  %v7369_v35 = vpop.f32.mrf.mxu0 }
 0xf83   : > { %7612 = vmatpush.msrb.mxu0 %v7525_v8 }
 0xf84   : > { %8991 = vrcp.f32 %v7406_v27  ;;  %v7449_v17 = vand.u32 2147483648, %v7406_v27  ;;  %v7447_v62 = vand.u32 2147483647, %v7406_v27  ;;  %vm7443_vm3 = vweird.f32 %v7406_v27 }
 0xf85   : > { %7613 = vmatpush.msrb.mxu0 %v7524_v12 }
 0xf86   : > { %v7450_v24 = vor.u32 1.1754944e-38, %v7449_v17  ;;  %vm7448_vm5 = vcmp.eq.f32.partialorder %v7447_v62, 8.507059e+37 }
 0xf87   : > { %7614 = vmatpush.msrb.mxu0 %v7523_v25 }
 0xf89   : > { %7615 = vmatpush.msrb.mxu0 %v7522_v3 }
 0xf8a   : > { %v8992_v32 = vpop.eup %8991 }
 0xf8b   : > { %v7439_v9 = vmul.f32 %v8992_v32, %v7406_v27  ;;  %vm7444_vm2 = vweird.f32 %v8992_v32  ;;  %7616 = vmatpush.msrb.mxu0 %v7521_v29 }
 0xf8c   : > { %v7329_v11 = vpop.f32.mrf.mxu2  ;;  %vm7445_vm1 = vmor %vm7443_vm3, %vm7444_vm2 }
 0xf8d   : > { %v7440_v14 = vsub.f32 1.0, %v7439_v9  ;;  %v7330_v42 = vadd.f32 %v7329_v11, %v7050_v7  ;;  %7617 = vmatpush.msrb.mxu0 %v7520_v38 }
 0xf8f   : > { %v7441_v16 = vmul.f32 %v8992_v32, %v7440_v14  ;;  %v7349_v22 = vpop.f32.mrf.mxu3 }
 0xf90   : > { %v7350_v15 = vadd.f32 %v7349_v22, %v7330_v42 }
 0xf91   : > { %v7442_v18 = vadd.f32 %v8992_v32, %v7441_v16 }
 0xf92   : > { %v7370_v45 = vadd.f32 %v7369_v35, %v7350_v15 }
 0xf93   : > { %v7446_v30 = vsel %vm7445_vm1, %v8992_v32, %v7442_v18 }
 0xf94   : > { %v7451_v36 = vsel %vm7448_vm5, %v7450_v24, %v7446_v30  ;;  %v7390_v37 = vadd.f32 %v7389_v33, %v7370_v45 }
 0xf95   : > { %v7470_v39 = vmul.f32 %v7451_v36, %v15154_v57 }
 0xf96   : > { %v7395_v40 = vsub.f32 0.0, %v7390_v37 }
 0xf97   : > { %7598 = vmatmul.f32.vlgmr.msra.gmra.mxu3 %v7470_v39 }
 0xf98   : > { %v7402_v41 = vmul.f32 1.442695, %v7395_v40 }
 0xf9a   : > { %8993 = vpow2.f32 %v7402_v41 }
 0xfa0   : > { %v8994_v43 = vpop.eup %8993 }
 0xfa1   : > { %v7407_v6 = vadd.f32 1.0, %v8994_v43 }
 0xfa3   : > { %8995 = vrcp.f32 %v7407_v6  ;;  %v7464_v46 = vand.u32 2147483648, %v7407_v6  ;;  %v7462_v26 = vand.u32 2147483647, %v7407_v6  ;;  %vm7458_vm4 = vweird.f32 %v7407_v6 }
 0xfa5   : > { %v7465_v47 = vor.u32 1.1754944e-38, %v7464_v46  ;;  %vm7463_vm9 = vcmp.eq.f32.partialorder %v7462_v26, 8.507059e+37 }
 0xfa9   : > { %v8996_v44 = vpop.eup %8995 }
 0xfaa   : > { %v7454_v31 = vmul.f32 %v8996_v44, %v7407_v6  ;;  %vm7459_vm6 = vweird.f32 %v8996_v44 }
 0xfab   : > { %vm7460_vm8 = vmor %vm7458_vm4, %vm7459_vm6 }
 0xfac   : > { %v7455_v10 = vsub.f32 1.0, %v7454_v31 }
 0xfae   : > { %v7456_v13 = vmul.f32 %v8996_v44, %v7455_v10 }
 0xfb0   : > { %v7457_v1 = vadd.f32 %v8996_v44, %v7456_v13 }
 0xfb2   : > { %v7461_v48 = vsel %vm7460_vm8, %v8996_v44, %v7457_v1 }
 0xfb3   : > { %v7466_v49 = vsel %vm7463_vm9, %v7465_v47, %v7461_v48 }
 0xfb4   : > { %v7471_v50 = vmul.f32 %v7466_v49, %v7390_v37 }
 0xfb6   : > { %8779 = vmatmul.msk.f32.vlgmr.msrb.gmra.mxu0 %vm7055_vm7, %v7471_v50 }
 0xfed   : > { %v7559_v53 = vpop.f32.mrf.mxu1 }
 0xfee   : > { %v7560_v56 = vadd.f32 %v7559_v53, %v7535_v51 }
 0xffd   : > { %v7579_v54 = vpop.f32.mrf.mxu2 }
 0xffe   : > { %v7580_v21 = vadd.f32 %v7579_v54, %v7560_v56 }
0x101a   : > { %v7599_v57 = vpop.f32.mrf.mxu3 }
0x101b   : > { %v7600_v58 = vadd.f32 %v7599_v57, %v7580_v21 }
0x1033   : > { %v7619_v23 = vpop.f32.mrf.mxu0 }
0x1034   : > { %v7620_v59 = vadd.f32 %v7619_v23, %v7600_v58 }
0x1036   : > { %7623 = vst.msk [vmem:[%s695_s3] sm:$0x1] %vm7622_vm10, %v7620_v59 }
0x1037 PF: > { %s34_s29 = sadd.s32 1, %s9003_s29  }
0x1038   : > { %p31_p4 = scmp.ge.s32.totalorder %s34_s29, 4  }
0x103a   :  { %33 = sbr.rel (!%p31_p4) target bundleno = 8 (0x8), region = 165 }

</bundles_post_ra>
